<compile_context>
chip_gen: v7x
topology: tpu7x:2x2x1
jax: 0.10.0
libtpu: 0.0.40
codegen_flags: <defaults>
</compile_context>

<pallas_src>
import functools

import jax
import jax.numpy as jnp
from jax.experimental import pallas as pl
from jax.experimental.pallas import tpu as pltpu

# True (PyTorch) layer widths: encoder then decoder.
TRUE_DIMS = [28 * 28, 512, 240, 120, 60, 30, 60, 120, 240, 512, 28 * 28]
# Lane-padded hidden widths (multiples of 128).  Input and final output keep their
# true 784 width (block last-dim equals the full array extent, so the (8,128) rule
# is satisfied and no output-lane padding/slice is needed).  Padded weight rows/
# cols and biases are zero, so padded lanes stay exactly 0 through the network.
PAD_DIMS = [28 * 28, 512, 256, 128, 128, 128, 128, 128, 256, 512, 28 * 28]
# Per-layer activation: 4x ReLU, bottleneck (none), 4x ReLU, final Sigmoid.
ACTS = ("relu",) * 4 + ("none",) + ("relu",) * 4 + ("sigmoid",)
NUM_LAYERS = len(TRUE_DIMS) - 1


def _autoencoder_kernel(x_ref, *refs):
    """refs = (w1, b1, ..., w10, b10, o_ref). Whole MLP runs per batch tile."""
    o_ref = refs[-1]
    params = refs[:-1]

    h = x_ref[...]  # (TILE_B, 784) bf16 — streamed from HBM as bf16.
    for i in range(NUM_LAYERS):
        w = params[2 * i][...]       # bf16 (in_pad, out_pad), zero-padded
        b = params[2 * i + 1][...]   # f32  (1, out_pad),      zero-padded
        # bf16 operands into the MXU, f32 accumulation; bias add in f32.
        h = jnp.dot(h, w, preferred_element_type=jnp.float32) + b
        if ACTS[i] == "relu":
            # Fuse ReLU with the bf16 down-cast so inter-layer activations are
            # materialized in bf16 (halves vld/vst traffic on the wide layers).
            h = jnp.maximum(h, 0.0).astype(jnp.bfloat16)
        elif ACTS[i] == "sigmoid":
            h = jax.nn.sigmoid(h)               # final layer, f32
        else:
            h = h.astype(jnp.bfloat16)          # bottleneck (no activation)

    o_ref[...] = h.astype(o_ref.dtype)


def init_params(key):
    """PyTorch-style uniform(-1/sqrt(fan_in), 1/sqrt(fan_in)) init, f32, true dims.

    Weights stored as (in_features, out_features) so forward is y = x @ W + b
    (equivalent to torch's x @ W.T with torch-layout weights)."""
    params = []
    for i in range(NUM_LAYERS):
        fan_in, fan_out = TRUE_DIMS[i], TRUE_DIMS[i + 1]
        key, kw, kb = jax.random.split(key, 3)
        bound = float(fan_in) ** -0.5
        w = jax.random.uniform(kw, (fan_in, fan_out), jnp.float32, -bound, bound)
        b = jax.random.uniform(kb, (fan_out,), jnp.float32, -bound, bound)
        params.append((w, b))
    return params


def _pad_params(params):
    """Zero-pad to lane-aligned dims; weights -> bf16, biases -> f32 (1, out)."""
    flat = []
    for i, (w, b) in enumerate(params):
        in_p, out_p = PAD_DIMS[i], PAD_DIMS[i + 1]
        w_p = jnp.zeros((in_p, out_p), jnp.bfloat16)
        w_p = w_p.at[: w.shape[0], : w.shape[1]].set(w.astype(jnp.bfloat16))
        b_p = jnp.zeros((1, out_p), jnp.float32)
        b_p = b_p.at[0, : b.shape[0]].set(b)
        flat += [w_p, b_p]
    return flat


def _round_up(x, m):
    return (x + m - 1) // m * m


def _choose_tile_b(B, max_tile=512):
    """Batch tile: multiple of 16 (bf16 sublane packing), at least 2 grid steps
    when the batch allows it (v7x megacore), prefer a tile that divides B exactly
    (avoids the wrapper-side pad + trailing slice HBM passes)."""
    cap = max(16, _round_up(-(-B // 2), 16))     # <= ceil(B/2) rounded to 16
    t = min(max_tile, cap)
    for cand in range(t, 15, -16):
        if B % cand == 0:
            return cand
    return t


@functools.partial(jax.jit, static_argnames=("tile_b", "single_buffer_weights"))
def _forward_impl(x_nchw, flat_params, *, tile_b, single_buffer_weights):
    B = x_nchw.shape[0]
    # nn.Flatten() fused with the bf16 cast (single XLA fusion under jit).
    x_flat = x_nchw.reshape(B, -1).astype(jnp.bfloat16)
    assert x_flat.shape[1] == TRUE_DIMS[0]

    b_pad = _round_up(B, tile_b)
    if b_pad != B:
        x_flat = jnp.pad(x_flat, ((0, b_pad - B), (0, 0)))

    d_in, d_out = PAD_DIMS[0], PAD_DIMS[-1]
    grid = (b_pad // tile_b,)

    # Input/output tiles stream over the batch; weights/biases use constant index
    # maps so they stay VMEM-resident and are DMA'd exactly once.  Single-buffer
    # the resident params to avoid a pointless second VMEM copy.
    weight_mode = pl.Buffered(1) if single_buffer_weights else None
    in_specs = [pl.BlockSpec((tile_b, d_in), lambda i: (i, 0))]
    for p in flat_params:
        if weight_mode is not None:
            in_specs.append(
                pl.BlockSpec(p.shape, lambda i: (0, 0), pipeline_mode=weight_mode))
        else:
            in_specs.append(pl.BlockSpec(p.shape, lambda i: (0, 0)))
    out_specs = pl.BlockSpec((tile_b, d_out), lambda i: (i, 0))

    flops = 2 * b_pad * sum(PAD_DIMS[i] * PAD_DIMS[i + 1] for i in range(NUM_LAYERS))
    bytes_accessed = (sum(int(p.size) * p.dtype.itemsize for p in flat_params)
                      + b_pad * d_in * 2        # bf16 input
                      + b_pad * d_out * 4)      # f32 output
    cost = pl.CostEstimate(flops=flops,
                           transcendentals=2 * b_pad * d_out,  # sigmoid ~ exp + recip
                           bytes_accessed=bytes_accessed)

    out = pl.pallas_call(
        _autoencoder_kernel,
        out_shape=jax.ShapeDtypeStruct((b_pad, d_out), jnp.float32),
        grid_spec=pltpu.PrefetchScalarGridSpec(
            num_scalar_prefetch=0,
            grid=grid,
            in_specs=in_specs,
            out_specs=out_specs),
        compiler_params=pltpu.CompilerParams(
            dimension_semantics=("parallel",),   # megacore sharding on v7x
            vmem_limit_bytes=32 << 20),
        cost_estimate=cost,
    )(x_flat, *flat_params)

    return out if b_pad == B else out[:B]


def autoencoder_forward(x_nchw, params, tile_b=None):
    """x_nchw: (B, 1, 28, 28) float32 -> (B, 784) float32 (reconstruction)."""
    flat_params = tuple(_pad_params(params))
    B = x_nchw.shape[0]
    tb = _choose_tile_b(B) if tile_b is None else tile_b
    try:
        return _forward_impl(x_nchw, flat_params, tile_b=tb,
                             single_buffer_weights=True)
    except Exception:
        # Fallback for JAX versions where Buffered(1) isn't accepted by the
        # implicit pallas_call pipeliner; constant index maps still ensure the
        # weights are DMA'd only once.
        return _forward_impl(x_nchw, flat_params, tile_b=tb,
                             single_buffer_weights=False)


def autoencoder_ref(x_nchw, params, mirror_bf16=False):
    """Pure-JAX reference. mirror_bf16=True reproduces the kernel's bf16 numerics."""
    h = x_nchw.reshape(x_nchw.shape[0], -1).astype(jnp.float32)
    if mirror_bf16:
        h = h.astype(jnp.bfloat16)
    for i, (w, b) in enumerate(params):
        if mirror_bf16:
            h = jnp.dot(h, w.astype(jnp.bfloat16),
                        preferred_element_type=jnp.float32) + b
        else:
            h = h @ w + b
        if ACTS[i] == "relu":
            h = jnp.maximum(h, 0.0)
            if mirror_bf16:
                h = h.astype(jnp.bfloat16)
        elif ACTS[i] == "sigmoid":
            h = jax.nn.sigmoid(h)
        else:
            if mirror_bf16:
                h = h.astype(jnp.bfloat16)
    return h.astype(jnp.float32)


if __name__ == "__main__":
    key = jax.random.PRNGKey(0)
    kx, kp = jax.random.split(key)

    # Small, module-consistent input: batch=2, NCHW = (2, 1, 28, 28)
    x = jax.random.normal(kx, (2, 1, 28, 28), dtype=jnp.float32)
    params = init_params(kp)

    out = jax.block_until_ready(autoencoder_forward(x, params))
    assert out.shape == (2, 28 * 28), out.shape

    # Exact-numerics check (same bf16-activation / f32-accum recipe as the kernel).
    ref_mirror = autoencoder_ref(x, params, mirror_bf16=True)
    err_mirror = float(jnp.max(jnp.abs(out - ref_mirror)))
    assert err_mirror < 5e-3, err_mirror

    # Semantic sanity check against the full-f32 module reference.
    ref_f32 = autoencoder_ref(x, params, mirror_bf16=False)
    err_f32 = float(jnp.max(jnp.abs(out - ref_f32)))
    assert err_f32 < 1e-1, err_f32

    print("KERNEL_OK")
</pallas_src>

<mosaic_0001>
module attributes {stable_mosaic.version = 11 : i64} {
  func.func @_autoencoder_kernel(%arg0: i32, %arg1: memref<16x784xbf16, #tpu.memory_space<vmem>>, %arg2: memref<784x512xbf16, #tpu.memory_space<vmem>>, %arg3: memref<1x512xf32, #tpu.memory_space<vmem>>, %arg4: memref<512x256xbf16, #tpu.memory_space<vmem>>, %arg5: memref<1x256xf32, #tpu.memory_space<vmem>>, %arg6: memref<256x128xbf16, #tpu.memory_space<vmem>>, %arg7: memref<1x128xf32, #tpu.memory_space<vmem>>, %arg8: memref<128x128xbf16, #tpu.memory_space<vmem>>, %arg9: memref<1x128xf32, #tpu.memory_space<vmem>>, %arg10: memref<128x128xbf16, #tpu.memory_space<vmem>>, %arg11: memref<1x128xf32, #tpu.memory_space<vmem>>, %arg12: memref<128x128xbf16, #tpu.memory_space<vmem>>, %arg13: memref<1x128xf32, #tpu.memory_space<vmem>>, %arg14: memref<128x128xbf16, #tpu.memory_space<vmem>>, %arg15: memref<1x128xf32, #tpu.memory_space<vmem>>, %arg16: memref<128x256xbf16, #tpu.memory_space<vmem>>, %arg17: memref<1x256xf32, #tpu.memory_space<vmem>>, %arg18: memref<256x512xbf16, #tpu.memory_space<vmem>>, %arg19: memref<1x512xf32, #tpu.memory_space<vmem>>, %arg20: memref<512x784xbf16, #tpu.memory_space<vmem>>, %arg21: memref<1x784xf32, #tpu.memory_space<vmem>>, %arg22: memref<16x784xf32, #tpu.memory_space<vmem>>) attributes {dimension_semantics = [#tpu.dimension_semantics<parallel>], iteration_bounds = array<i64: 1>, scalar_prefetch = 0 : i64, scratch_operands = 0 : i64, tpu.core_type = #tpu.core_type<tc>, window_params = [{transform_indices = @transform_0, window_bounds = array<i64: 16, 784>}, {pipeline_mode = #tpu.pipeline_mode<synchronous>, transform_indices = @transform_1, window_bounds = array<i64: 784, 512>}, {pipeline_mode = #tpu.pipeline_mode<synchronous>, transform_indices = @transform_2, window_bounds = array<i64: 1, 512>}, {pipeline_mode = #tpu.pipeline_mode<synchronous>, transform_indices = @transform_3, window_bounds = array<i64: 512, 256>}, {pipeline_mode = #tpu.pipeline_mode<synchronous>, transform_indices = @transform_4, window_bounds = array<i64: 1, 256>}, {pipeline_mode = #tpu.pipeline_mode<synchronous>, transform_indices = @transform_5, window_bounds = array<i64: 256, 128>}, {pipeline_mode = #tpu.pipeline_mode<synchronous>, transform_indices = @transform_6, window_bounds = array<i64: 1, 128>}, {pipeline_mode = #tpu.pipeline_mode<synchronous>, transform_indices = @transform_7, window_bounds = array<i64: 128, 128>}, {pipeline_mode = #tpu.pipeline_mode<synchronous>, transform_indices = @transform_8, window_bounds = array<i64: 1, 128>}, {pipeline_mode = #tpu.pipeline_mode<synchronous>, transform_indices = @transform_9, window_bounds = array<i64: 128, 128>}, {pipeline_mode = #tpu.pipeline_mode<synchronous>, transform_indices = @transform_10, window_bounds = array<i64: 1, 128>}, {pipeline_mode = #tpu.pipeline_mode<synchronous>, transform_indices = @transform_11, window_bounds = array<i64: 128, 128>}, {pipeline_mode = #tpu.pipeline_mode<synchronous>, transform_indices = @transform_12, window_bounds = array<i64: 1, 128>}, {pipeline_mode = #tpu.pipeline_mode<synchronous>, transform_indices = @transform_13, window_bounds = array<i64: 128, 128>}, {pipeline_mode = #tpu.pipeline_mode<synchronous>, transform_indices = @transform_14, window_bounds = array<i64: 1, 128>}, {pipeline_mode = #tpu.pipeline_mode<synchronous>, transform_indices = @transform_15, window_bounds = array<i64: 128, 256>}, {pipeline_mode = #tpu.pipeline_mode<synchronous>, transform_indices = @transform_16, window_bounds = array<i64: 1, 256>}, {pipeline_mode = #tpu.pipeline_mode<synchronous>, transform_indices = @transform_17, window_bounds = array<i64: 256, 512>}, {pipeline_mode = #tpu.pipeline_mode<synchronous>, transform_indices = @transform_18, window_bounds = array<i64: 1, 512>}, {pipeline_mode = #tpu.pipeline_mode<synchronous>, transform_indices = @transform_19, window_bounds = array<i64: 512, 784>}, {pipeline_mode = #tpu.pipeline_mode<synchronous>, transform_indices = @transform_20, window_bounds = array<i64: 1, 784>}, {transform_indices = @transform_21, window_bounds = array<i64: 16, 784>}]} {
    %c0 = arith.constant 0 : index
    %c0_0 = arith.constant 0 : index
    %0 = vector.load %arg1[%c0, %c0_0] : memref<16x784xbf16, #tpu.memory_space<vmem>>, vector<16x784xbf16>
    %c0_1 = arith.constant 0 : index
    %c0_2 = arith.constant 0 : index
    %1 = vector.load %arg2[%c0_1, %c0_2] : memref<784x512xbf16, #tpu.memory_space<vmem>>, vector<784x512xbf16>
    %c0_3 = arith.constant 0 : index
    %c0_4 = arith.constant 0 : index
    %2 = vector.load %arg3[%c0_3, %c0_4] : memref<1x512xf32, #tpu.memory_space<vmem>>, vector<1x512xf32>
    %cst = arith.constant dense<0.000000e+00> : vector<16x512xf32>
    %3 = tpu.matmul %0, %1, %cst {dimension_numbers = #tpu.dot_dimension_numbers<[1], [0], [0], [1], [0, 0, 1, 1], [], []>} : vector<16x784xbf16>, vector<784x512xbf16>, vector<16x512xf32> -> vector<16x512xf32>
    %4 = vector.broadcast %2 : vector<1x512xf32> to vector<16x512xf32>
    %5 = arith.addf %3, %4 : vector<16x512xf32>
    %cst_5 = arith.constant 0.000000e+00 : f32
    %6 = vector.broadcast %cst_5 : f32 to vector<16x512xf32>
    %7 = arith.maximumf %5, %6 : vector<16x512xf32>
    %8 = arith.truncf %7 : vector<16x512xf32> to vector<16x512xbf16>
    %c0_6 = arith.constant 0 : index
    %c0_7 = arith.constant 0 : index
    %9 = vector.load %arg4[%c0_6, %c0_7] : memref<512x256xbf16, #tpu.memory_space<vmem>>, vector<512x256xbf16>
    %c0_8 = arith.constant 0 : index
    %c0_9 = arith.constant 0 : index
    %10 = vector.load %arg5[%c0_8, %c0_9] : memref<1x256xf32, #tpu.memory_space<vmem>>, vector<1x256xf32>
    %cst_10 = arith.constant dense<0.000000e+00> : vector<16x256xf32>
    %11 = tpu.matmul %8, %9, %cst_10 {dimension_numbers = #tpu.dot_dimension_numbers<[1], [0], [0], [1], [0, 0, 1, 1], [], []>} : vector<16x512xbf16>, vector<512x256xbf16>, vector<16x256xf32> -> vector<16x256xf32>
    %12 = vector.broadcast %10 : vector<1x256xf32> to vector<16x256xf32>
    %13 = arith.addf %11, %12 : vector<16x256xf32>
    %cst_11 = arith.constant 0.000000e+00 : f32
    %14 = vector.broadcast %cst_11 : f32 to vector<16x256xf32>
    %15 = arith.maximumf %13, %14 : vector<16x256xf32>
    %16 = arith.truncf %15 : vector<16x256xf32> to vector<16x256xbf16>
    %c0_12 = arith.constant 0 : index
    %c0_13 = arith.constant 0 : index
    %17 = vector.load %arg6[%c0_12, %c0_13] : memref<256x128xbf16, #tpu.memory_space<vmem>>, vector<256x128xbf16>
    %c0_14 = arith.constant 0 : index
    %c0_15 = arith.constant 0 : index
    %18 = vector.load %arg7[%c0_14, %c0_15] : memref<1x128xf32, #tpu.memory_space<vmem>>, vector<1x128xf32>
    %cst_16 = arith.constant dense<0.000000e+00> : vector<16x128xf32>
    %19 = tpu.matmul %16, %17, %cst_16 {dimension_numbers = #tpu.dot_dimension_numbers<[1], [0], [0], [1], [0, 0, 1, 1], [], []>} : vector<16x256xbf16>, vector<256x128xbf16>, vector<16x128xf32> -> vector<16x128xf32>
    %20 = vector.broadcast %18 : vector<1x128xf32> to vector<16x128xf32>
    %21 = arith.addf %19, %20 : vector<16x128xf32>
    %cst_17 = arith.constant 0.000000e+00 : f32
    %22 = vector.broadcast %cst_17 : f32 to vector<16x128xf32>
    %23 = arith.maximumf %21, %22 : vector<16x128xf32>
    %24 = arith.truncf %23 : vector<16x128xf32> to vector<16x128xbf16>
    %c0_18 = arith.constant 0 : index
    %c0_19 = arith.constant 0 : index
    %25 = vector.load %arg8[%c0_18, %c0_19] : memref<128x128xbf16, #tpu.memory_space<vmem>>, vector<128x128xbf16>
    %c0_20 = arith.constant 0 : index
    %c0_21 = arith.constant 0 : index
    %26 = vector.load %arg9[%c0_20, %c0_21] : memref<1x128xf32, #tpu.memory_space<vmem>>, vector<1x128xf32>
    %cst_22 = arith.constant dense<0.000000e+00> : vector<16x128xf32>
    %27 = tpu.matmul %24, %25, %cst_22 {dimension_numbers = #tpu.dot_dimension_numbers<[1], [0], [0], [1], [0, 0, 1, 1], [], []>} : vector<16x128xbf16>, vector<128x128xbf16>, vector<16x128xf32> -> vector<16x128xf32>
    %28 = vector.broadcast %26 : vector<1x128xf32> to vector<16x128xf32>
    %29 = arith.addf %27, %28 : vector<16x128xf32>
    %cst_23 = arith.constant 0.000000e+00 : f32
    %30 = vector.broadcast %cst_23 : f32 to vector<16x128xf32>
    %31 = arith.maximumf %29, %30 : vector<16x128xf32>
    %32 = arith.truncf %31 : vector<16x128xf32> to vector<16x128xbf16>
    %c0_24 = arith.constant 0 : index
    %c0_25 = arith.constant 0 : index
    %33 = vector.load %arg10[%c0_24, %c0_25] : memref<128x128xbf16, #tpu.memory_space<vmem>>, vector<128x128xbf16>
    %c0_26 = arith.constant 0 : index
    %c0_27 = arith.constant 0 : index
    %34 = vector.load %arg11[%c0_26, %c0_27] : memref<1x128xf32, #tpu.memory_space<vmem>>, vector<1x128xf32>
    %cst_28 = arith.constant dense<0.000000e+00> : vector<16x128xf32>
    %35 = tpu.matmul %32, %33, %cst_28 {dimension_numbers = #tpu.dot_dimension_numbers<[1], [0], [0], [1], [0, 0, 1, 1], [], []>} : vector<16x128xbf16>, vector<128x128xbf16>, vector<16x128xf32> -> vector<16x128xf32>
    %36 = vector.broadcast %34 : vector<1x128xf32> to vector<16x128xf32>
    %37 = arith.addf %35, %36 : vector<16x128xf32>
    %38 = arith.truncf %37 : vector<16x128xf32> to vector<16x128xbf16>
    %c0_29 = arith.constant 0 : index
    %c0_30 = arith.constant 0 : index
    %39 = vector.load %arg12[%c0_29, %c0_30] : memref<128x128xbf16, #tpu.memory_space<vmem>>, vector<128x128xbf16>
    %c0_31 = arith.constant 0 : index
    %c0_32 = arith.constant 0 : index
    %40 = vector.load %arg13[%c0_31, %c0_32] : memref<1x128xf32, #tpu.memory_space<vmem>>, vector<1x128xf32>
    %cst_33 = arith.constant dense<0.000000e+00> : vector<16x128xf32>
    %41 = tpu.matmul %38, %39, %cst_33 {dimension_numbers = #tpu.dot_dimension_numbers<[1], [0], [0], [1], [0, 0, 1, 1], [], []>} : vector<16x128xbf16>, vector<128x128xbf16>, vector<16x128xf32> -> vector<16x128xf32>
    %42 = vector.broadcast %40 : vector<1x128xf32> to vector<16x128xf32>
    %43 = arith.addf %41, %42 : vector<16x128xf32>
    %cst_34 = arith.constant 0.000000e+00 : f32
    %44 = vector.broadcast %cst_34 : f32 to vector<16x128xf32>
    %45 = arith.maximumf %43, %44 : vector<16x128xf32>
    %46 = arith.truncf %45 : vector<16x128xf32> to vector<16x128xbf16>
    %c0_35 = arith.constant 0 : index
    %c0_36 = arith.constant 0 : index
    %47 = vector.load %arg14[%c0_35, %c0_36] : memref<128x128xbf16, #tpu.memory_space<vmem>>, vector<128x128xbf16>
    %c0_37 = arith.constant 0 : index
    %c0_38 = arith.constant 0 : index
    %48 = vector.load %arg15[%c0_37, %c0_38] : memref<1x128xf32, #tpu.memory_space<vmem>>, vector<1x128xf32>
    %cst_39 = arith.constant dense<0.000000e+00> : vector<16x128xf32>
    %49 = tpu.matmul %46, %47, %cst_39 {dimension_numbers = #tpu.dot_dimension_numbers<[1], [0], [0], [1], [0, 0, 1, 1], [], []>} : vector<16x128xbf16>, vector<128x128xbf16>, vector<16x128xf32> -> vector<16x128xf32>
    %50 = vector.broadcast %48 : vector<1x128xf32> to vector<16x128xf32>
    %51 = arith.addf %49, %50 : vector<16x128xf32>
    %cst_40 = arith.constant 0.000000e+00 : f32
    %52 = vector.broadcast %cst_40 : f32 to vector<16x128xf32>
    %53 = arith.maximumf %51, %52 : vector<16x128xf32>
    %54 = arith.truncf %53 : vector<16x128xf32> to vector<16x128xbf16>
    %c0_41 = arith.constant 0 : index
    %c0_42 = arith.constant 0 : index
    %55 = vector.load %arg16[%c0_41, %c0_42] : memref<128x256xbf16, #tpu.memory_space<vmem>>, vector<128x256xbf16>
    %c0_43 = arith.constant 0 : index
    %c0_44 = arith.constant 0 : index
    %56 = vector.load %arg17[%c0_43, %c0_44] : memref<1x256xf32, #tpu.memory_space<vmem>>, vector<1x256xf32>
    %cst_45 = arith.constant dense<0.000000e+00> : vector<16x256xf32>
    %57 = tpu.matmul %54, %55, %cst_45 {dimension_numbers = #tpu.dot_dimension_numbers<[1], [0], [0], [1], [0, 0, 1, 1], [], []>} : vector<16x128xbf16>, vector<128x256xbf16>, vector<16x256xf32> -> vector<16x256xf32>
    %58 = vector.broadcast %56 : vector<1x256xf32> to vector<16x256xf32>
    %59 = arith.addf %57, %58 : vector<16x256xf32>
    %cst_46 = arith.constant 0.000000e+00 : f32
    %60 = vector.broadcast %cst_46 : f32 to vector<16x256xf32>
    %61 = arith.maximumf %59, %60 : vector<16x256xf32>
    %62 = arith.truncf %61 : vector<16x256xf32> to vector<16x256xbf16>
    %c0_47 = arith.constant 0 : index
    %c0_48 = arith.constant 0 : index
    %63 = vector.load %arg18[%c0_47, %c0_48] : memref<256x512xbf16, #tpu.memory_space<vmem>>, vector<256x512xbf16>
    %c0_49 = arith.constant 0 : index
    %c0_50 = arith.constant 0 : index
    %64 = vector.load %arg19[%c0_49, %c0_50] : memref<1x512xf32, #tpu.memory_space<vmem>>, vector<1x512xf32>
    %cst_51 = arith.constant dense<0.000000e+00> : vector<16x512xf32>
    %65 = tpu.matmul %62, %63, %cst_51 {dimension_numbers = #tpu.dot_dimension_numbers<[1], [0], [0], [1], [0, 0, 1, 1], [], []>} : vector<16x256xbf16>, vector<256x512xbf16>, vector<16x512xf32> -> vector<16x512xf32>
    %66 = vector.broadcast %64 : vector<1x512xf32> to vector<16x512xf32>
    %67 = arith.addf %65, %66 : vector<16x512xf32>
    %cst_52 = arith.constant 0.000000e+00 : f32
    %68 = vector.broadcast %cst_52 : f32 to vector<16x512xf32>
    %69 = arith.maximumf %67, %68 : vector<16x512xf32>
    %70 = arith.truncf %69 : vector<16x512xf32> to vector<16x512xbf16>
    %c0_53 = arith.constant 0 : index
    %c0_54 = arith.constant 0 : index
    %71 = vector.load %arg20[%c0_53, %c0_54] : memref<512x784xbf16, #tpu.memory_space<vmem>>, vector<512x784xbf16>
    %c0_55 = arith.constant 0 : index
    %c0_56 = arith.constant 0 : index
    %72 = vector.load %arg21[%c0_55, %c0_56] : memref<1x784xf32, #tpu.memory_space<vmem>>, vector<1x784xf32>
    %cst_57 = arith.constant dense<0.000000e+00> : vector<16x784xf32>
    %73 = tpu.matmul %70, %71, %cst_57 {dimension_numbers = #tpu.dot_dimension_numbers<[1], [0], [0], [1], [0, 0, 1, 1], [], []>} : vector<16x512xbf16>, vector<512x784xbf16>, vector<16x784xf32> -> vector<16x784xf32>
    %74 = vector.broadcast %72 : vector<1x784xf32> to vector<16x784xf32>
    %75 = arith.addf %73, %74 : vector<16x784xf32>
    %76 = arith.negf %75 : vector<16x784xf32>
    %77 = math.exp %76 : vector<16x784xf32>
    %cst_58 = arith.constant 1.000000e+00 : f32
    %78 = vector.broadcast %cst_58 : f32 to vector<16x784xf32>
    %79 = arith.addf %78, %77 : vector<16x784xf32>
    %80 = arith.divf %78, %79 : vector<16x784xf32>
    %c0_59 = arith.constant 0 : index
    %c0_60 = arith.constant 0 : index
    %81 = vector.load %arg22[%c0_59, %c0_60] : memref<16x784xf32, #tpu.memory_space<vmem>>, vector<16x784xf32>
    tpu.vector_store %arg22[%c0_59, %c0_60], %80 {strides = array<i32>} : memref<16x784xf32, #tpu.memory_space<vmem>>, vector<16x784xf32>,
    return
  }
  func.func @transform_0(%arg0: i32) -> (i32, i32) {
    %c0_i32 = arith.constant 0 : i32
    %c0_i32_0 = arith.constant 0 : i32
    return %arg0, %c0_i32 : i32, i32
  }
  func.func @transform_1(%arg0: i32) -> (i32, i32) {
    %c0_i32 = arith.constant 0 : i32
    %c0_i32_0 = arith.constant 0 : i32
    %c0_i32_1 = arith.constant 0 : i32
    return %c0_i32, %c0_i32_0 : i32, i32
  }
  func.func @transform_2(%arg0: i32) -> (i32, i32) {
    %c0_i32 = arith.constant 0 : i32
    %c0_i32_0 = arith.constant 0 : i32
    %c0_i32_1 = arith.constant 0 : i32
    return %c0_i32, %c0_i32_0 : i32, i32
  }
  func.func @transform_3(%arg0: i32) -> (i32, i32) {
    %c0_i32 = arith.constant 0 : i32
    %c0_i32_0 = arith.constant 0 : i32
    %c0_i32_1 = arith.constant 0 : i32
    return %c0_i32, %c0_i32_0 : i32, i32
  }
  func.func @transform_4(%arg0: i32) -> (i32, i32) {
    %c0_i32 = arith.constant 0 : i32
    %c0_i32_0 = arith.constant 0 : i32
    %c0_i32_1 = arith.constant 0 : i32
    return %c0_i32, %c0_i32_0 : i32, i32
  }
  func.func @transform_5(%arg0: i32) -> (i32, i32) {
    %c0_i32 = arith.constant 0 : i32
    %c0_i32_0 = arith.constant 0 : i32
    %c0_i32_1 = arith.constant 0 : i32
    return %c0_i32, %c0_i32_0 : i32, i32
  }
  func.func @transform_6(%arg0: i32) -> (i32, i32) {
    %c0_i32 = arith.constant 0 : i32
    %c0_i32_0 = arith.constant 0 : i32
    %c0_i32_1 = arith.constant 0 : i32
    return %c0_i32, %c0_i32_0 : i32, i32
  }
  func.func @transform_7(%arg0: i32) -> (i32, i32) {
    %c0_i32 = arith.constant 0 : i32
    %c0_i32_0 = arith.constant 0 : i32
    %c0_i32_1 = arith.constant 0 : i32
    return %c0_i32, %c0_i32_0 : i32, i32
  }
  func.func @transform_8(%arg0: i32) -> (i32, i32) {
    %c0_i32 = arith.constant 0 : i32
    %c0_i32_0 = arith.constant 0 : i32
    %c0_i32_1 = arith.constant 0 : i32
    return %c0_i32, %c0_i32_0 : i32, i32
  }
  func.func @transform_9(%arg0: i32) -> (i32, i32) {
    %c0_i32 = arith.constant 0 : i32
    %c0_i32_0 = arith.constant 0 : i32
    %c0_i32_1 = arith.constant 0 : i32
    return %c0_i32, %c0_i32_0 : i32, i32
  }
  func.func @transform_10(%arg0: i32) -> (i32, i32) {
    %c0_i32 = arith.constant 0 : i32
    %c0_i32_0 = arith.constant 0 : i32
    %c0_i32_1 = arith.constant 0 : i32
    return %c0_i32, %c0_i32_0 : i32, i32
  }
  func.func @transform_11(%arg0: i32) -> (i32, i32) {
    %c0_i32 = arith.constant 0 : i32
    %c0_i32_0 = arith.constant 0 : i32
    %c0_i32_1 = arith.constant 0 : i32
    return %c0_i32, %c0_i32_0 : i32, i32
  }
  func.func @transform_12(%arg0: i32) -> (i32, i32) {
    %c0_i32 = arith.constant 0 : i32
    %c0_i32_0 = arith.constant 0 : i32
    %c0_i32_1 = arith.constant 0 : i32
    return %c0_i32, %c0_i32_0 : i32, i32
  }
  func.func @transform_13(%arg0: i32) -> (i32, i32) {
    %c0_i32 = arith.constant 0 : i32
    %c0_i32_0 = arith.constant 0 : i32
    %c0_i32_1 = arith.constant 0 : i32
    return %c0_i32, %c0_i32_0 : i32, i32
  }
  func.func @transform_14(%arg0: i32) -> (i32, i32) {
    %c0_i32 = arith.constant 0 : i32
    %c0_i32_0 = arith.constant 0 : i32
    %c0_i32_1 = arith.constant 0 : i32
    return %c0_i32, %c0_i32_0 : i32, i32
  }
  func.func @transform_15(%arg0: i32) -> (i32, i32) {
    %c0_i32 = arith.constant 0 : i32
    %c0_i32_0 = arith.constant 0 : i32
    %c0_i32_1 = arith.constant 0 : i32
    return %c0_i32, %c0_i32_0 : i32, i32
  }
  func.func @transform_16(%arg0: i32) -> (i32, i32) {
    %c0_i32 = arith.constant 0 : i32
    %c0_i32_0 = arith.constant 0 : i32
    %c0_i32_1 = arith.constant 0 : i32
    return %c0_i32, %c0_i32_0 : i32, i32
  }
  func.func @transform_17(%arg0: i32) -> (i32, i32) {
    %c0_i32 = arith.constant 0 : i32
    %c0_i32_0 = arith.constant 0 : i32
    %c0_i32_1 = arith.constant 0 : i32
    return %c0_i32, %c0_i32_0 : i32, i32
  }
  func.func @transform_18(%arg0: i32) -> (i32, i32) {
    %c0_i32 = arith.constant 0 : i32
    %c0_i32_0 = arith.constant 0 : i32
    %c0_i32_1 = arith.constant 0 : i32
    return %c0_i32, %c0_i32_0 : i32, i32
  }
  func.func @transform_19(%arg0: i32) -> (i32, i32) {
    %c0_i32 = arith.constant 0 : i32
    %c0_i32_0 = arith.constant 0 : i32
    %c0_i32_1 = arith.constant 0 : i32
    return %c0_i32, %c0_i32_0 : i32, i32
  }
  func.func @transform_20(%arg0: i32) -> (i32, i32) {
    %c0_i32 = arith.constant 0 : i32
    %c0_i32_0 = arith.constant 0 : i32
    %c0_i32_1 = arith.constant 0 : i32
    return %c0_i32, %c0_i32_0 : i32, i32
  }
  func.func @transform_21(%arg0: i32) -> (i32, i32) {
    %c0_i32 = arith.constant 0 : i32
    %c0_i32_0 = arith.constant 0 : i32
    return %arg0, %c0_i32 : i32, i32
  }
}

module attributes {stable_mosaic.version = 11 : i64} {
  func.func @_autoencoder_kernel(%arg0: i32, %arg1: memref<16x784xbf16, #tpu.memory_space<vmem>>, %arg2: memref<784x512xbf16, #tpu.memory_space<vmem>>, %arg3: memref<1x512xf32, #tpu.memory_space<vmem>>, %arg4: memref<512x256xbf16, #tpu.memory_space<vmem>>, %arg5: memref<1x256xf32, #tpu.memory_space<vmem>>, %arg6: memref<256x128xbf16, #tpu.memory_space<vmem>>, %arg7: memref<1x128xf32, #tpu.memory_space<vmem>>, %arg8: memref<128x128xbf16, #tpu.memory_space<vmem>>, %arg9: memref<1x128xf32, #tpu.memory_space<vmem>>, %arg10: memref<128x128xbf16, #tpu.memory_space<vmem>>, %arg11: memref<1x128xf32, #tpu.memory_space<vmem>>, %arg12: memref<128x128xbf16, #tpu.memory_space<vmem>>, %arg13: memref<1x128xf32, #tpu.memory_space<vmem>>, %arg14: memref<128x128xbf16, #tpu.memory_space<vmem>>, %arg15: memref<1x128xf32, #tpu.memory_space<vmem>>, %arg16: memref<128x256xbf16, #tpu.memory_space<vmem>>, %arg17: memref<1x256xf32, #tpu.memory_space<vmem>>, %arg18: memref<256x512xbf16, #tpu.memory_space<vmem>>, %arg19: memref<1x512xf32, #tpu.memory_space<vmem>>, %arg20: memref<512x784xbf16, #tpu.memory_space<vmem>>, %arg21: memref<1x784xf32, #tpu.memory_space<vmem>>, %arg22: memref<16x784xf32, #tpu.memory_space<vmem>>) attributes {dimension_semantics = [#tpu.dimension_semantics<parallel>], iteration_bounds = array<i64: 1>, scalar_prefetch = 0 : i64, scratch_operands = 0 : i64, tpu.core_type = #tpu.core_type<tc>, window_params = [{transform_indices = @transform_0, window_bounds = array<i64: 16, 784>}, {pipeline_mode = #tpu.pipeline_mode<synchronous>, transform_indices = @transform_1, window_bounds = array<i64: 784, 512>}, {pipeline_mode = #tpu.pipeline_mode<synchronous>, transform_indices = @transform_2, window_bounds = array<i64: 1, 512>}, {pipeline_mode = #tpu.pipeline_mode<synchronous>, transform_indices = @transform_3, window_bounds = array<i64: 512, 256>}, {pipeline_mode = #tpu.pipeline_mode<synchronous>, transform_indices = @transform_4, window_bounds = array<i64: 1, 256>}, {pipeline_mode = #tpu.pipeline_mode<synchronous>, transform_indices = @transform_5, window_bounds = array<i64: 256, 128>}, {pipeline_mode = #tpu.pipeline_mode<synchronous>, transform_indices = @transform_6, window_bounds = array<i64: 1, 128>}, {pipeline_mode = #tpu.pipeline_mode<synchronous>, transform_indices = @transform_7, window_bounds = array<i64: 128, 128>}, {pipeline_mode = #tpu.pipeline_mode<synchronous>, transform_indices = @transform_8, window_bounds = array<i64: 1, 128>}, {pipeline_mode = #tpu.pipeline_mode<synchronous>, transform_indices = @transform_9, window_bounds = array<i64: 128, 128>}, {pipeline_mode = #tpu.pipeline_mode<synchronous>, transform_indices = @transform_10, window_bounds = array<i64: 1, 128>}, {pipeline_mode = #tpu.pipeline_mode<synchronous>, transform_indices = @transform_11, window_bounds = array<i64: 128, 128>}, {pipeline_mode = #tpu.pipeline_mode<synchronous>, transform_indices = @transform_12, window_bounds = array<i64: 1, 128>}, {pipeline_mode = #tpu.pipeline_mode<synchronous>, transform_indices = @transform_13, window_bounds = array<i64: 128, 128>}, {pipeline_mode = #tpu.pipeline_mode<synchronous>, transform_indices = @transform_14, window_bounds = array<i64: 1, 128>}, {pipeline_mode = #tpu.pipeline_mode<synchronous>, transform_indices = @transform_15, window_bounds = array<i64: 128, 256>}, {pipeline_mode = #tpu.pipeline_mode<synchronous>, transform_indices = @transform_16, window_bounds = array<i64: 1, 256>}, {pipeline_mode = #tpu.pipeline_mode<synchronous>, transform_indices = @transform_17, window_bounds = array<i64: 256, 512>}, {pipeline_mode = #tpu.pipeline_mode<synchronous>, transform_indices = @transform_18, window_bounds = array<i64: 1, 512>}, {pipeline_mode = #tpu.pipeline_mode<synchronous>, transform_indices = @transform_19, window_bounds = array<i64: 512, 784>}, {pipeline_mode = #tpu.pipeline_mode<synchronous>, transform_indices = @transform_20, window_bounds = array<i64: 1, 784>}, {transform_indices = @transform_21, window_bounds = array<i64: 16, 784>}]} {
    %c0 = arith.constant 0 : index
    %c0_0 = arith.constant 0 : index
    %0 = vector.load %arg1[%c0, %c0_0] : memref<16x784xbf16, #tpu.memory_space<vmem>>, vector<16x784xbf16>
    %c0_1 = arith.constant 0 : index
    %c0_2 = arith.constant 0 : index
    %1 = vector.load %arg2[%c0_1, %c0_2] : memref<784x512xbf16, #tpu.memory_space<vmem>>, vector<784x512xbf16>
    %c0_3 = arith.constant 0 : index
    %c0_4 = arith.constant 0 : index
    %2 = vector.load %arg3[%c0_3, %c0_4] : memref<1x512xf32, #tpu.memory_space<vmem>>, vector<1x512xf32>
    %cst = arith.constant dense<0.000000e+00> : vector<16x512xf32>
    %3 = tpu.matmul %0, %1, %cst {dimension_numbers = #tpu.dot_dimension_numbers<[1], [0], [0], [1], [0, 0, 1, 1], [], []>} : vector<16x784xbf16>, vector<784x512xbf16>, vector<16x512xf32> -> vector<16x512xf32>
    %4 = vector.broadcast %2 : vector<1x512xf32> to vector<16x512xf32>
    %5 = arith.addf %3, %4 : vector<16x512xf32>
    %cst_5 = arith.constant 0.000000e+00 : f32
    %6 = vector.broadcast %cst_5 : f32 to vector<16x512xf32>
    %7 = arith.maximumf %5, %6 : vector<16x512xf32>
    %8 = arith.truncf %7 : vector<16x512xf32> to vector<16x512xbf16>
    %c0_6 = arith.constant 0 : index
    %c0_7 = arith.constant 0 : index
    %9 = vector.load %arg4[%c0_6, %c0_7] : memref<512x256xbf16, #tpu.memory_space<vmem>>, vector<512x256xbf16>
    %c0_8 = arith.constant 0 : index
    %c0_9 = arith.constant 0 : index
    %10 = vector.load %arg5[%c0_8, %c0_9] : memref<1x256xf32, #tpu.memory_space<vmem>>, vector<1x256xf32>
    %cst_10 = arith.constant dense<0.000000e+00> : vector<16x256xf32>
    %11 = tpu.matmul %8, %9, %cst_10 {dimension_numbers = #tpu.dot_dimension_numbers<[1], [0], [0], [1], [0, 0, 1, 1], [], []>} : vector<16x512xbf16>, vector<512x256xbf16>, vector<16x256xf32> -> vector<16x256xf32>
    %12 = vector.broadcast %10 : vector<1x256xf32> to vector<16x256xf32>
    %13 = arith.addf %11, %12 : vector<16x256xf32>
    %cst_11 = arith.constant 0.000000e+00 : f32
    %14 = vector.broadcast %cst_11 : f32 to vector<16x256xf32>
    %15 = arith.maximumf %13, %14 : vector<16x256xf32>
    %16 = arith.truncf %15 : vector<16x256xf32> to vector<16x256xbf16>
    %c0_12 = arith.constant 0 : index
    %c0_13 = arith.constant 0 : index
    %17 = vector.load %arg6[%c0_12, %c0_13] : memref<256x128xbf16, #tpu.memory_space<vmem>>, vector<256x128xbf16>
    %c0_14 = arith.constant 0 : index
    %c0_15 = arith.constant 0 : index
    %18 = vector.load %arg7[%c0_14, %c0_15] : memref<1x128xf32, #tpu.memory_space<vmem>>, vector<1x128xf32>
    %cst_16 = arith.constant dense<0.000000e+00> : vector<16x128xf32>
    %19 = tpu.matmul %16, %17, %cst_16 {dimension_numbers = #tpu.dot_dimension_numbers<[1], [0], [0], [1], [0, 0, 1, 1], [], []>} : vector<16x256xbf16>, vector<256x128xbf16>, vector<16x128xf32> -> vector<16x128xf32>
    %20 = vector.broadcast %18 : vector<1x128xf32> to vector<16x128xf32>
    %21 = arith.addf %19, %20 : vector<16x128xf32>
    %cst_17 = arith.constant 0.000000e+00 : f32
    %22 = vector.broadcast %cst_17 : f32 to vector<16x128xf32>
    %23 = arith.maximumf %21, %22 : vector<16x128xf32>
    %24 = arith.truncf %23 : vector<16x128xf32> to vector<16x128xbf16>
    %c0_18 = arith.constant 0 : index
    %c0_19 = arith.constant 0 : index
    %25 = vector.load %arg8[%c0_18, %c0_19] : memref<128x128xbf16, #tpu.memory_space<vmem>>, vector<128x128xbf16>
    %c0_20 = arith.constant 0 : index
    %c0_21 = arith.constant 0 : index
    %26 = vector.load %arg9[%c0_20, %c0_21] : memref<1x128xf32, #tpu.memory_space<vmem>>, vector<1x128xf32>
    %cst_22 = arith.constant dense<0.000000e+00> : vector<16x128xf32>
    %27 = tpu.matmul %24, %25, %cst_22 {dimension_numbers = #tpu.dot_dimension_numbers<[1], [0], [0], [1], [0, 0, 1, 1], [], []>} : vector<16x128xbf16>, vector<128x128xbf16>, vector<16x128xf32> -> vector<16x128xf32>
    %28 = vector.broadcast %26 : vector<1x128xf32> to vector<16x128xf32>
    %29 = arith.addf %27, %28 : vector<16x128xf32>
    %cst_23 = arith.constant 0.000000e+00 : f32
    %30 = vector.broadcast %cst_23 : f32 to vector<16x128xf32>
    %31 = arith.maximumf %29, %30 : vector<16x128xf32>
    %32 = arith.truncf %31 : vector<16x128xf32> to vector<16x128xbf16>
    %c0_24 = arith.constant 0 : index
    %c0_25 = arith.constant 0 : index
    %33 = vector.load %arg10[%c0_24, %c0_25] : memref<128x128xbf16, #tpu.memory_space<vmem>>, vector<128x128xbf16>
    %c0_26 = arith.constant 0 : index
    %c0_27 = arith.constant 0 : index
    %34 = vector.load %arg11[%c0_26, %c0_27] : memref<1x128xf32, #tpu.memory_space<vmem>>, vector<1x128xf32>
    %cst_28 = arith.constant dense<0.000000e+00> : vector<16x128xf32>
    %35 = tpu.matmul %32, %33, %cst_28 {dimension_numbers = #tpu.dot_dimension_numbers<[1], [0], [0], [1], [0, 0, 1, 1], [], []>} : vector<16x128xbf16>, vector<128x128xbf16>, vector<16x128xf32> -> vector<16x128xf32>
    %36 = vector.broadcast %34 : vector<1x128xf32> to vector<16x128xf32>
    %37 = arith.addf %35, %36 : vector<16x128xf32>
    %38 = arith.truncf %37 : vector<16x128xf32> to vector<16x128xbf16>
    %c0_29 = arith.constant 0 : index
    %c0_30 = arith.constant 0 : index
    %39 = vector.load %arg12[%c0_29, %c0_30] : memref<128x128xbf16, #tpu.memory_space<vmem>>, vector<128x128xbf16>
    %c0_31 = arith.constant 0 : index
    %c0_32 = arith.constant 0 : index
    %40 = vector.load %arg13[%c0_31, %c0_32] : memref<1x128xf32, #tpu.memory_space<vmem>>, vector<1x128xf32>
    %cst_33 = arith.constant dense<0.000000e+00> : vector<16x128xf32>
    %41 = tpu.matmul %38, %39, %cst_33 {dimension_numbers = #tpu.dot_dimension_numbers<[1], [0], [0], [1], [0, 0, 1, 1], [], []>} : vector<16x128xbf16>, vector<128x128xbf16>, vector<16x128xf32> -> vector<16x128xf32>
    %42 = vector.broadcast %40 : vector<1x128xf32> to vector<16x128xf32>
    %43 = arith.addf %41, %42 : vector<16x128xf32>
    %cst_34 = arith.constant 0.000000e+00 : f32
    %44 = vector.broadcast %cst_34 : f32 to vector<16x128xf32>
    %45 = arith.maximumf %43, %44 : vector<16x128xf32>
    %46 = arith.truncf %45 : vector<16x128xf32> to vector<16x128xbf16>
    %c0_35 = arith.constant 0 : index
    %c0_36 = arith.constant 0 : index
    %47 = vector.load %arg14[%c0_35, %c0_36] : memref<128x128xbf16, #tpu.memory_space<vmem>>, vector<128x128xbf16>
    %c0_37 = arith.constant 0 : index
    %c0_38 = arith.constant 0 : index
    %48 = vector.load %arg15[%c0_37, %c0_38] : memref<1x128xf32, #tpu.memory_space<vmem>>, vector<1x128xf32>
    %cst_39 = arith.constant dense<0.000000e+00> : vector<16x128xf32>
    %49 = tpu.matmul %46, %47, %cst_39 {dimension_numbers = #tpu.dot_dimension_numbers<[1], [0], [0], [1], [0, 0, 1, 1], [], []>} : vector<16x128xbf16>, vector<128x128xbf16>, vector<16x128xf32> -> vector<16x128xf32>
    %50 = vector.broadcast %48 : vector<1x128xf32> to vector<16x128xf32>
    %51 = arith.addf %49, %50 : vector<16x128xf32>
    %cst_40 = arith.constant 0.000000e+00 : f32
    %52 = vector.broadcast %cst_40 : f32 to vector<16x128xf32>
    %53 = arith.maximumf %51, %52 : vector<16x128xf32>
    %54 = arith.truncf %53 : vector<16x128xf32> to vector<16x128xbf16>
    %c0_41 = arith.constant 0 : index
    %c0_42 = arith.constant 0 : index
    %55 = vector.load %arg16[%c0_41, %c0_42] : memref<128x256xbf16, #tpu.memory_space<vmem>>, vector<128x256xbf16>
    %c0_43 = arith.constant 0 : index
    %c0_44 = arith.constant 0 : index
    %56 = vector.load %arg17[%c0_43, %c0_44] : memref<1x256xf32, #tpu.memory_space<vmem>>, vector<1x256xf32>
    %cst_45 = arith.constant dense<0.000000e+00> : vector<16x256xf32>
    %57 = tpu.matmul %54, %55, %cst_45 {dimension_numbers = #tpu.dot_dimension_numbers<[1], [0], [0], [1], [0, 0, 1, 1], [], []>} : vector<16x128xbf16>, vector<128x256xbf16>, vector<16x256xf32> -> vector<16x256xf32>
    %58 = vector.broadcast %56 : vector<1x256xf32> to vector<16x256xf32>
    %59 = arith.addf %57, %58 : vector<16x256xf32>
    %cst_46 = arith.constant 0.000000e+00 : f32
    %60 = vector.broadcast %cst_46 : f32 to vector<16x256xf32>
    %61 = arith.maximumf %59, %60 : vector<16x256xf32>
    %62 = arith.truncf %61 : vector<16x256xf32> to vector<16x256xbf16>
    %c0_47 = arith.constant 0 : index
    %c0_48 = arith.constant 0 : index
    %63 = vector.load %arg18[%c0_47, %c0_48] : memref<256x512xbf16, #tpu.memory_space<vmem>>, vector<256x512xbf16>
    %c0_49 = arith.constant 0 : index
    %c0_50 = arith.constant 0 : index
    %64 = vector.load %arg19[%c0_49, %c0_50] : memref<1x512xf32, #tpu.memory_space<vmem>>, vector<1x512xf32>
    %cst_51 = arith.constant dense<0.000000e+00> : vector<16x512xf32>
    %65 = tpu.matmul %62, %63, %cst_51 {dimension_numbers = #tpu.dot_dimension_numbers<[1], [0], [0], [1], [0, 0, 1, 1], [], []>} : vector<16x256xbf16>, vector<256x512xbf16>, vector<16x512xf32> -> vector<16x512xf32>
    %66 = vector.broadcast %64 : vector<1x512xf32> to vector<16x512xf32>
    %67 = arith.addf %65, %66 : vector<16x512xf32>
    %cst_52 = arith.constant 0.000000e+00 : f32
    %68 = vector.broadcast %cst_52 : f32 to vector<16x512xf32>
    %69 = arith.maximumf %67, %68 : vector<16x512xf32>
    %70 = arith.truncf %69 : vector<16x512xf32> to vector<16x512xbf16>
    %c0_53 = arith.constant 0 : index
    %c0_54 = arith.constant 0 : index
    %71 = vector.load %arg20[%c0_53, %c0_54] : memref<512x784xbf16, #tpu.memory_space<vmem>>, vector<512x784xbf16>
    %c0_55 = arith.constant 0 : index
    %c0_56 = arith.constant 0 : index
    %72 = vector.load %arg21[%c0_55, %c0_56] : memref<1x784xf32, #tpu.memory_space<vmem>>, vector<1x784xf32>
    %cst_57 = arith.constant dense<0.000000e+00> : vector<16x784xf32>
    %73 = tpu.matmul %70, %71, %cst_57 {dimension_numbers = #tpu.dot_dimension_numbers<[1], [0], [0], [1], [0, 0, 1, 1], [], []>} : vector<16x512xbf16>, vector<512x784xbf16>, vector<16x784xf32> -> vector<16x784xf32>
    %74 = vector.broadcast %72 : vector<1x784xf32> to vector<16x784xf32>
    %75 = arith.addf %73, %74 : vector<16x784xf32>
    %76 = arith.negf %75 : vector<16x784xf32>
    %77 = math.exp %76 : vector<16x784xf32>
    %cst_58 = arith.constant 1.000000e+00 : f32
    %78 = vector.broadcast %cst_58 : f32 to vector<16x784xf32>
    %79 = arith.addf %78, %77 : vector<16x784xf32>
    %80 = arith.divf %78, %79 : vector<16x784xf32>
    %c0_59 = arith.constant 0 : index
    %c0_60 = arith.constant 0 : index
    %81 = vector.load %arg22[%c0_59, %c0_60] : memref<16x784xf32, #tpu.memory_space<vmem>>, vector<16x784xf32>
    tpu.vector_store %arg22[%c0_59, %c0_60], %80 {strides = array<i32>} : memref<16x784xf32, #tpu.memory_space<vmem>>, vector<16x784xf32>,
    return
  }
  func.func @transform_0(%arg0: i32) -> (i32, i32) {
    %c0_i32 = arith.constant 0 : i32
    %c0_i32_0 = arith.constant 0 : i32
    return %arg0, %c0_i32 : i32, i32
  }
  func.func @transform_1(%arg0: i32) -> (i32, i32) {
    %c0_i32 = arith.constant 0 : i32
    %c0_i32_0 = arith.constant 0 : i32
    %c0_i32_1 = arith.constant 0 : i32
    return %c0_i32, %c0_i32_0 : i32, i32
  }
  func.func @transform_2(%arg0: i32) -> (i32, i32) {
    %c0_i32 = arith.constant 0 : i32
    %c0_i32_0 = arith.constant 0 : i32
    %c0_i32_1 = arith.constant 0 : i32
    return %c0_i32, %c0_i32_0 : i32, i32
  }
  func.func @transform_3(%arg0: i32) -> (i32, i32) {
    %c0_i32 = arith.constant 0 : i32
    %c0_i32_0 = arith.constant 0 : i32
    %c0_i32_1 = arith.constant 0 : i32
    return %c0_i32, %c0_i32_0 : i32, i32
  }
  func.func @transform_4(%arg0: i32) -> (i32, i32) {
    %c0_i32 = arith.constant 0 : i32
    %c0_i32_0 = arith.constant 0 : i32
    %c0_i32_1 = arith.constant 0 : i32
    return %c0_i32, %c0_i32_0 : i32, i32
  }
  func.func @transform_5(%arg0: i32) -> (i32, i32) {
    %c0_i32 = arith.constant 0 : i32
    %c0_i32_0 = arith.constant 0 : i32
    %c0_i32_1 = arith.constant 0 : i32
    return %c0_i32, %c0_i32_0 : i32, i32
  }
  func.func @transform_6(%arg0: i32) -> (i32, i32) {
    %c0_i32 = arith.constant 0 : i32
    %c0_i32_0 = arith.constant 0 : i32
    %c0_i32_1 = arith.constant 0 : i32
    return %c0_i32, %c0_i32_0 : i32, i32
  }
  func.func @transform_7(%arg0: i32) -> (i32, i32) {
    %c0_i32 = arith.constant 0 : i32
    %c0_i32_0 = arith.constant 0 : i32
    %c0_i32_1 = arith.constant 0 : i32
    return %c0_i32, %c0_i32_0 : i32, i32
  }
  func.func @transform_8(%arg0: i32) -> (i32, i32) {
    %c0_i32 = arith.constant 0 : i32
    %c0_i32_0 = arith.constant 0 : i32
    %c0_i32_1 = arith.constant 0 : i32
    return %c0_i32, %c0_i32_0 : i32, i32
  }
  func.func @transform_9(%arg0: i32) -> (i32, i32) {
    %c0_i32 = arith.constant 0 : i32
    %c0_i32_0 = arith.constant 0 : i32
    %c0_i32_1 = arith.constant 0 : i32
    return %c0_i32, %c0_i32_0 : i32, i32
  }
  func.func @transform_10(%arg0: i32) -> (i32, i32) {
    %c0_i32 = arith.constant 0 : i32
    %c0_i32_0 = arith.constant 0 : i32
    %c0_i32_1 = arith.constant 0 : i32
    return %c0_i32, %c0_i32_0 : i32, i32
  }
  func.func @transform_11(%arg0: i32) -> (i32, i32) {
    %c0_i32 = arith.constant 0 : i32
    %c0_i32_0 = arith.constant 0 : i32
    %c0_i32_1 = arith.constant 0 : i32
    return %c0_i32, %c0_i32_0 : i32, i32
  }
  func.func @transform_12(%arg0: i32) -> (i32, i32) {
    %c0_i32 = arith.constant 0 : i32
    %c0_i32_0 = arith.constant 0 : i32
    %c0_i32_1 = arith.constant 0 : i32
    return %c0_i32, %c0_i32_0 : i32, i32
  }
  func.func @transform_13(%arg0: i32) -> (i32, i32) {
    %c0_i32 = arith.constant 0 : i32
    %c0_i32_0 = arith.constant 0 : i32
    %c0_i32_1 = arith.constant 0 : i32
    return %c0_i32, %c0_i32_0 : i32, i32
  }
  func.func @transform_14(%arg0: i32) -> (i32, i32) {
    %c0_i32 = arith.constant 0 : i32
    %c0_i32_0 = arith.constant 0 : i32
    %c0_i32_1 = arith.constant 0 : i32
    return %c0_i32, %c0_i32_0 : i32, i32
  }
  func.func @transform_15(%arg0: i32) -> (i32, i32) {
    %c0_i32 = arith.constant 0 : i32
    %c0_i32_0 = arith.constant 0 : i32
    %c0_i32_1 = arith.constant 0 : i32
    return %c0_i32, %c0_i32_0 : i32, i32
  }
  func.func @transform_16(%arg0: i32) -> (i32, i32) {
    %c0_i32 = arith.constant 0 : i32
    %c0_i32_0 = arith.constant 0 : i32
    %c0_i32_1 = arith.constant 0 : i32
    return %c0_i32, %c0_i32_0 : i32, i32
  }
  func.func @transform_17(%arg0: i32) -> (i32, i32) {
    %c0_i32 = arith.constant 0 : i32
    %c0_i32_0 = arith.constant 0 : i32
    %c0_i32_1 = arith.constant 0 : i32
    return %c0_i32, %c0_i32_0 : i32, i32
  }
  func.func @transform_18(%arg0: i32) -> (i32, i32) {
    %c0_i32 = arith.constant 0 : i32
    %c0_i32_0 = arith.constant 0 : i32
    %c0_i32_1 = arith.constant 0 : i32
    return %c0_i32, %c0_i32_0 : i32, i32
  }
  func.func @transform_19(%arg0: i32) -> (i32, i32) {
    %c0_i32 = arith.constant 0 : i32
    %c0_i32_0 = arith.constant 0 : i32
    %c0_i32_1 = arith.constant 0 : i32
    return %c0_i32, %c0_i32_0 : i32, i32
  }
  func.func @transform_20(%arg0: i32) -> (i32, i32) {
    %c0_i32 = arith.constant 0 : i32
    %c0_i32_0 = arith.constant 0 : i32
    %c0_i32_1 = arith.constant 0 : i32
    return %c0_i32, %c0_i32_0 : i32, i32
  }
  func.func @transform_21(%arg0: i32) -> (i32, i32) {
    %c0_i32 = arith.constant 0 : i32
    %c0_i32_0 = arith.constant 0 : i32
    return %arg0, %c0_i32 : i32, i32
  }
}

</mosaic_0001>

<bundles_post_ra>
// kernel: _forward_impl.1
= control target key start
LH: loop header
LB: loop body
LE: loop exit
PB: predicated region body
PF: predicated region fallthrough
CT: control target
= control target key end

     0   :  { %vm1310_vm0 = vcmask 130048   ;;  %vm7178_vm1 = vmmov 0   ;;  %s9334_s1 = inlined_call_operand.vmem [shape: bf16[784,512], index: 1, kind: input, shape index: {}]   ;;  %s9335_s0 = inlined_call_operand.vmem [shape: bf16[16,784], index: 0, kind: input, shape index: {}]   ;;  %s9336_s3 = inlined_call_operand.vmem [shape: bf16[512,256], index: 3, kind: input, shape index: {}]   ;;  %s9337_s5 = inlined_call_operand.vmem [shape: bf16[256,128], index: 5, kind: input, shape index: {}]   ;;  %s9338_s2 = inlined_call_operand.vmem [shape: f32[1,512], index: 2, kind: input, shape index: {}]   ;;  %s9339_s7 = inlined_call_operand.vmem [shape: bf16[128,128], index: 7, kind: input, shape index: {}]   ;;  %s9340_s4 = inlined_call_operand.vmem [shape: f32[1,256], index: 4, kind: input, shape index: {}]   ;;  %s9341_s9 = inlined_call_operand.vmem [shape: bf16[128,128], index: 9, kind: input, shape index: {}]   ;;  %s9342_s6 = inlined_call_operand.vmem [shape: f32[1,128], index: 6, kind: input, shape index: {}]   ;;  %s9343_s11 = inlined_call_operand.vmem [shape: bf16[128,128], index: 11, kind: input, shape index: {}]   ;;  %s9344_s8 = inlined_call_operand.vmem [shape: f32[1,128], index: 8, kind: input, shape index: {}]   ;;  %s9345_s13 = inlined_call_operand.vmem [shape: bf16[128,128], index: 13, kind: input, shape index: {}]   ;;  %s9346_s10 = inlined_call_operand.vmem [shape: f32[1,128], index: 10, kind: input, shape index: {}]   ;;  %s9347_s15 = inlined_call_operand.vmem [shape: bf16[128,256], index: 15, kind: input, shape index: {}]   ;;  %s9348_s12 = inlined_call_operand.vmem [shape: f32[1,128], index: 12, kind: input, shape index: {}]   ;;  %s9349_s17 = inlined_call_operand.vmem [shape: bf16[256,512], index: 17, kind: input, shape index: {}]   ;;  %s9350_s14 = inlined_call_operand.vmem [shape: f32[1,128], index: 14, kind: input, shape index: {}]   ;;  %s9351_s19 = inlined_call_operand.vmem [shape: bf16[512,784], index: 19, kind: input, shape index: {}]   ;;  %s9352_s16 = inlined_call_operand.vmem [shape: f32[1,256], index: 16, kind: input, shape index: {}]   ;;  %s9353_s18 = inlined_call_operand.vmem [shape: f32[1,512], index: 18, kind: input, shape index: {}]   ;;  %s9354_s20 = inlined_call_operand.vmem [shape: f32[1,784], index: 20, kind: input, shape index: {}]   ;;  %s9355_s21 = inlined_call_operand.vmem [shape: f32[16,784], index: 21, kind: output, shape index: {}]  }
   0x1   :  { %9361 = sst [smem:[#allocation2_spill]] %s9334_s1 }
   0x2   :  { %9362 = sst [smem:[#allocation3_spill]] %s9335_s0  ;;  %s9367_s26 = sld [smem:[#allocation2_spill]] }
   0x3   :  { %9363 = sst [smem:[#allocation4_spill]] %s9336_s3  ;;  %s9368_s3 = sld [smem:[#allocation3_spill]] }
   0x4   :  { %9364 = sst [smem:[#allocation5_spill]] %s9337_s5  ;;  %s9369_s22 = sld [smem:[#allocation4_spill]] }
   0x5   :  { %9365 = sst [smem:[#allocation6_spill]] %s9338_s2  ;;  %s9370_s30 = sld [smem:[#allocation5_spill]] }
   0x6   :  { %9366 = sst [smem:[#allocation7_spill]] %s9339_s7 }
   0x7   :  { %s9372_s25 = sld [smem:[#allocation7_spill]] }
   0x8   :  { %v6232_v0 = vld [vmem:[%s9367_s26 + $0x4] ss:$16 sps:$4 sm:$0xff]   ;;  %v6234_v1 = vld [vmem:[%s9367_s26 + $0xc] ss:$16 sps:$4 sm:$0xff]   ;;  %v6236_v2 = vld [vmem:[%s9367_s26] ss:$16 sps:$4 sm:$0xff]  }
   0x9   :  { %1314 = vmatprep.subr.bf16.mxu0 %v6232_v0  ;;  %v6237_v3 = vld [vmem:[%s9367_s26 + $0x8] ss:$16 sps:$4 sm:$0xff]   ;;  %1486 = vmatprep.subr.bf16.mxu1 %v6234_v1  ;;  %v6238_v4 = vld [vmem:[%s9367_s26 + $0x24] ss:$16 sps:$4 sm:$0xff]   ;;  %v6240_v5 = vld [vmem:[%s9367_s26 + $0x2c] ss:$16 sps:$4 sm:$0xff]  }
   0xa   :  { %1315 = vmatpush1.bf16.msra.mxu0 %v6236_v2  ;;  %1487 = vmatpush1.bf16.msra.mxu1 %v6237_v3  ;;  %v6242_v6 = vld [vmem:[%s9367_s26 + $0x20] ss:$16 sps:$4 sm:$0xff]   ;;  %v6243_v7 = vld [vmem:[%s9367_s26 + $0x28] ss:$16 sps:$4 sm:$0xff]   ;;  %v6244_v8 = vld [vmem:[%s9367_s26 + $0x44] ss:$16 sps:$4 sm:$0xff]  }
   0xb   :  { %1316 = vmatprep.subr.bf16.mxu0 %v6238_v4  ;;  %1488 = vmatprep.subr.bf16.mxu1 %v6240_v5  ;;  %v6246_v9 = vld [vmem:[%s9367_s26 + $0x4c] ss:$16 sps:$4 sm:$0xff]   ;;  %v6248_v10 = vld [vmem:[%s9367_s26 + $0x40] ss:$16 sps:$4 sm:$0xff]   ;;  %v6249_v11 = vld [vmem:[%s9367_s26 + $0x48] ss:$16 sps:$4 sm:$0xff]  }
   0xc   :  { %v6250_v12 = vld [vmem:[%s9367_s26 + $0x64] ss:$16 sps:$4 sm:$0xff]   ;;  %v6252_v13 = vld [vmem:[%s9367_s26 + $0x6c] ss:$16 sps:$4 sm:$0xff]   ;;  %v6254_v14 = vld [vmem:[%s9367_s26 + $0x60] ss:$16 sps:$4 sm:$0xff]  }
   0xd   :  { %v6255_v15 = vld [vmem:[%s9367_s26 + $0x68] ss:$16 sps:$4 sm:$0xff]   ;;  %v6256_v16 = vld [vmem:[%s9367_s26 + $0x84] ss:$16 sps:$4 sm:$0xff]   ;;  %v6258_v17 = vld [vmem:[%s9367_s26 + $0x8c] ss:$16 sps:$4 sm:$0xff]  }
   0xe   :  { %1317 = vmatpush1.bf16.msra.mxu0 %v6242_v6  ;;  %1489 = vmatpush1.bf16.msra.mxu1 %v6243_v7  ;;  %v6260_v18 = vld [vmem:[%s9367_s26 + $0x80] ss:$16 sps:$4 sm:$0xff]   ;;  %v6261_v19 = vld [vmem:[%s9367_s26 + $0x88] ss:$16 sps:$4 sm:$0xff]   ;;  %v6262_v20 = vld [vmem:[%s9367_s26 + $0xa4] ss:$16 sps:$4 sm:$0xff]  }
   0xf   :  { %1318 = vmatprep.subr.bf16.mxu0 %v6244_v8  ;;  %1490 = vmatprep.subr.bf16.mxu1 %v6246_v9  ;;  %v6264_v21 = vld [vmem:[%s9367_s26 + $0xac] ss:$16 sps:$4 sm:$0xff]   ;;  %v6266_v22 = vld [vmem:[%s9367_s26 + $0xa0] ss:$16 sps:$4 sm:$0xff]   ;;  %v6267_v23 = vld [vmem:[%s9367_s26 + $0xa8] ss:$16 sps:$4 sm:$0xff]  }
  0x10   :  { %v6268_v24 = vld [vmem:[%s9367_s26 + $0xc4] ss:$16 sps:$4 sm:$0xff]   ;;  %v6270_v25 = vld [vmem:[%s9367_s26 + $0xcc] ss:$16 sps:$4 sm:$0xff]   ;;  %v6272_v26 = vld [vmem:[%s9367_s26 + $0xc0] ss:$16 sps:$4 sm:$0xff]  }
  0x11   :  { %v6273_v27 = vld [vmem:[%s9367_s26 + $0xc8] ss:$16 sps:$4 sm:$0xff]   ;;  %v6274_v28 = vld [vmem:[%s9367_s26 + $0xe4] ss:$16 sps:$4 sm:$0xff]   ;;  %v6276_v29 = vld [vmem:[%s9367_s26 + $0xec] ss:$16 sps:$4 sm:$0xff]  }
  0x12   :  { %1319 = vmatpush1.bf16.msra.mxu0 %v6248_v10  ;;  %1491 = vmatpush1.bf16.msra.mxu1 %v6249_v11  ;;  %v6278_v30 = vld [vmem:[%s9367_s26 + $0xe0] ss:$16 sps:$4 sm:$0xff]   ;;  %v6279_v31 = vld [vmem:[%s9367_s26 + $0xe8] ss:$16 sps:$4 sm:$0xff]   ;;  %v6280_v32 = vld [vmem:[%s9367_s26 + $0x104] ss:$16 sps:$4 sm:$0xff]  }
  0x13   :  { %1320 = vmatprep.subr.bf16.mxu0 %v6250_v12  ;;  %1492 = vmatprep.subr.bf16.mxu1 %v6252_v13  ;;  %v6282_v33 = vld [vmem:[%s9367_s26 + $0x10c] ss:$16 sps:$4 sm:$0xff]   ;;  %v6284_v34 = vld [vmem:[%s9367_s26 + $0x100] ss:$16 sps:$4 sm:$0xff]   ;;  %v6285_v35 = vld [vmem:[%s9367_s26 + $0x108] ss:$16 sps:$4 sm:$0xff]  }
  0x14   :  { %v6286_v36 = vld [vmem:[%s9367_s26 + $0x124] ss:$16 sps:$4 sm:$0xff]   ;;  %v6288_v37 = vld [vmem:[%s9367_s26 + $0x12c] ss:$16 sps:$4 sm:$0xff]   ;;  %v6290_v38 = vld [vmem:[%s9367_s26 + $0x120] ss:$16 sps:$4 sm:$0xff]  }
  0x15   :  { %v6291_v39 = vld [vmem:[%s9367_s26 + $0x128] ss:$16 sps:$4 sm:$0xff]   ;;  %v6292_v40 = vld [vmem:[%s9367_s26 + $0x144] ss:$16 sps:$4 sm:$0xff]   ;;  %v6294_v41 = vld [vmem:[%s9367_s26 + $0x14c] ss:$16 sps:$4 sm:$0xff]  }
  0x16   :  { %1321 = vmatpush1.bf16.msra.mxu0 %v6254_v14  ;;  %1493 = vmatpush1.bf16.msra.mxu1 %v6255_v15  ;;  %v6296_v42 = vld [vmem:[%s9367_s26 + $0x140] ss:$16 sps:$4 sm:$0xff]   ;;  %v6297_v43 = vld [vmem:[%s9367_s26 + $0x148] ss:$16 sps:$4 sm:$0xff]   ;;  %v6298_v44 = vld [vmem:[%s9367_s26 + $0x164] ss:$16 sps:$4 sm:$0xff]  }
  0x17   :  { %1322 = vmatprep.subr.bf16.mxu0 %v6256_v16  ;;  %1494 = vmatprep.subr.bf16.mxu1 %v6258_v17  ;;  %v6300_v45 = vld [vmem:[%s9367_s26 + $0x16c] ss:$16 sps:$4 sm:$0xff]   ;;  %v6302_v46 = vld [vmem:[%s9367_s26 + $0x160] ss:$16 sps:$4 sm:$0xff]   ;;  %v6303_v47 = vld [vmem:[%s9367_s26 + $0x168] ss:$16 sps:$4 sm:$0xff]  }
  0x18   :  { %v6330_v48 = vld [vmem:[%s9368_s3 + $0x4] ss:$28 sps:$4 sm:$0xff]   ;;  %v6306_v50 = vld [vmem:[%s9367_s26 + $0x18c] ss:$16 sps:$4 sm:$0xff]   ;;  %v6309_v52 = vld [vmem:[%s9367_s26 + $0x188] ss:$16 sps:$4 sm:$0xff]  }
  0x19   :  { %v6304_v49 = vld [vmem:[%s9367_s26 + $0x184] ss:$16 sps:$4 sm:$0xff]   ;;  %1346 = vmatprep.mubr.bf16.mxu0 %v6330_v48  ;;  %1518 = vmatprep.mubr.bf16.mxu1 %v6330_v48  ;;  %v6308_v51 = vld [vmem:[%s9367_s26 + $0x180] ss:$16 sps:$4 sm:$0xff]   ;;  %v6312_v54 = vld [vmem:[%s9367_s26 + $0x1ac] ss:$16 sps:$4 sm:$0xff]  }
  0x1a   :  { %1323 = vmatpush1.bf16.msra.mxu0 %v6260_v18  ;;  %1495 = vmatpush1.bf16.msra.mxu1 %v6261_v19  ;;  %v6310_v53 = vld [vmem:[%s9367_s26 + $0x1a4] ss:$16 sps:$4 sm:$0xff]   ;;  %v6314_v55 = vld [vmem:[%s9367_s26 + $0x1a0] ss:$16 sps:$4 sm:$0xff]   ;;  %v6315_v56 = vld [vmem:[%s9367_s26 + $0x1a8] ss:$16 sps:$4 sm:$0xff]  }
  0x1b   :  { %1324 = vmatprep.subr.bf16.mxu0 %v6262_v20  ;;  %1496 = vmatprep.subr.bf16.mxu1 %v6264_v21  ;;  %v6316_v57 = vld [vmem:[%s9367_s26 + $0x1c4] ss:$16 sps:$4 sm:$0xff]   ;;  %v6318_v58 = vld [vmem:[%s9367_s26 + $0x1cc] ss:$16 sps:$4 sm:$0xff]   ;;  %v6320_v59 = vld [vmem:[%s9367_s26 + $0x1c0] ss:$16 sps:$4 sm:$0xff]  }
  0x1c   :  { %v6321_v60 = vld [vmem:[%s9367_s26 + $0x1c8] ss:$16 sps:$4 sm:$0xff]   ;;  %v6322_v61 = vld [vmem:[%s9367_s26 + $0x1e4] ss:$16 sps:$4 sm:$0xff]   ;;  %v6324_v62 = vld [vmem:[%s9367_s26 + $0x1ec] ss:$16 sps:$4 sm:$0xff]  }
  0x1d   :  { %v6326_v63 = vld [vmem:[%s9367_s26 + $0x1e0] ss:$16 sps:$4 sm:$0xff]   ;;  %v6327_v0 = vld [vmem:[%s9367_s26 + $0x1e8] ss:$16 sps:$4 sm:$0xff]   ;;  %v6333_v1 = vld [vmem:[%s9367_s26 + $0x204] ss:$16 sps:$4 sm:$0xff]  }
  0x1e   :  { %1325 = vmatpush1.bf16.msra.mxu0 %v6266_v22  ;;  %1497 = vmatpush1.bf16.msra.mxu1 %v6267_v23  ;;  %v6336_v2 = vld [vmem:[%s9367_s26 + $0x20c] ss:$16 sps:$4 sm:$0xff]   ;;  %v6331_v4 = vld [vmem:[%s9367_s26 + $0x200] ss:$16 sps:$4 sm:$0xff]   ;;  %v6334_v5 = vld [vmem:[%s9367_s26 + $0x208] ss:$16 sps:$4 sm:$0xff]  }
  0x1f   :  { %1326 = vmatprep.subr.bf16.mxu0 %v6268_v24  ;;  %1498 = vmatprep.subr.bf16.mxu1 %v6270_v25  ;;  %v6328_v3 = vld [vmem:[%s9368_s3] ss:$28 sps:$4 sm:$0xff]   ;;  %v6339_v6 = vld [vmem:[%s9367_s26 + $0x224] ss:$16 sps:$4 sm:$0xff]   ;;  %v6340_v9 = vld [vmem:[%s9367_s26 + $0x228] ss:$16 sps:$4 sm:$0xff]  }
  0x20   :  { %v6342_v7 = vld [vmem:[%s9367_s26 + $0x22c] ss:$16 sps:$4 sm:$0xff]   ;;  %v6337_v8 = vld [vmem:[%s9367_s26 + $0x220] ss:$16 sps:$4 sm:$0xff]   ;;  %v6345_v10 = vld [vmem:[%s9367_s26 + $0x244] ss:$16 sps:$4 sm:$0xff]  }
  0x21   :  { %v6348_v11 = vld [vmem:[%s9367_s26 + $0x24c] ss:$16 sps:$4 sm:$0xff]   ;;  %v6343_v12 = vld [vmem:[%s9367_s26 + $0x240] ss:$16 sps:$4 sm:$0xff]   ;;  %v6346_v13 = vld [vmem:[%s9367_s26 + $0x248] ss:$16 sps:$4 sm:$0xff]  }
  0x22   :  { %1327 = vmatpush1.bf16.msra.mxu0 %v6272_v26  ;;  %1499 = vmatpush1.bf16.msra.mxu1 %v6273_v27  ;;  %v6351_v14 = vld [vmem:[%s9367_s26 + $0x264] ss:$16 sps:$4 sm:$0xff]   ;;  %v6354_v15 = vld [vmem:[%s9367_s26 + $0x26c] ss:$16 sps:$4 sm:$0xff]   ;;  %v6349_v16 = vld [vmem:[%s9367_s26 + $0x260] ss:$16 sps:$4 sm:$0xff]  }
  0x23   :  { %1328 = vmatprep.subr.bf16.mxu0 %v6274_v28  ;;  %1500 = vmatprep.subr.bf16.mxu1 %v6276_v29  ;;  %v6352_v17 = vld [vmem:[%s9367_s26 + $0x268] ss:$16 sps:$4 sm:$0xff]   ;;  %v6357_v18 = vld [vmem:[%s9367_s26 + $0x284] ss:$16 sps:$4 sm:$0xff]   ;;  %v6360_v19 = vld [vmem:[%s9367_s26 + $0x28c] ss:$16 sps:$4 sm:$0xff]  }
  0x24   :  { %v6355_v20 = vld [vmem:[%s9367_s26 + $0x280] ss:$16 sps:$4 sm:$0xff]   ;;  %v6358_v21 = vld [vmem:[%s9367_s26 + $0x288] ss:$16 sps:$4 sm:$0xff]   ;;  %v6363_v22 = vld [vmem:[%s9367_s26 + $0x2a4] ss:$16 sps:$4 sm:$0xff]  }
  0x25   :  { %v6366_v23 = vld [vmem:[%s9367_s26 + $0x2ac] ss:$16 sps:$4 sm:$0xff]   ;;  %v6361_v24 = vld [vmem:[%s9367_s26 + $0x2a0] ss:$16 sps:$4 sm:$0xff]   ;;  %v6364_v25 = vld [vmem:[%s9367_s26 + $0x2a8] ss:$16 sps:$4 sm:$0xff]  }
  0x26   :  { %1329 = vmatpush1.bf16.msra.mxu0 %v6278_v30  ;;  %1501 = vmatpush1.bf16.msra.mxu1 %v6279_v31  ;;  %v6369_v26 = vld [vmem:[%s9367_s26 + $0x2c4] ss:$16 sps:$4 sm:$0xff]   ;;  %v6372_v27 = vld [vmem:[%s9367_s26 + $0x2cc] ss:$16 sps:$4 sm:$0xff]   ;;  %v6367_v28 = vld [vmem:[%s9367_s26 + $0x2c0] ss:$16 sps:$4 sm:$0xff]  }
  0x27   :  { %1330 = vmatprep.subr.bf16.mxu0 %v6280_v32  ;;  %1502 = vmatprep.subr.bf16.mxu1 %v6282_v33  ;;  %v6370_v29 = vld [vmem:[%s9367_s26 + $0x2c8] ss:$16 sps:$4 sm:$0xff]   ;;  %v6375_v31 = vld [vmem:[%s9367_s26 + $0x2e4] ss:$16 sps:$4 sm:$0xff]   ;;  %v6378_v32 = vld [vmem:[%s9367_s26 + $0x2ec] ss:$16 sps:$4 sm:$0xff]  }
  0x28   :  { %v6429_v30 = vld [vmem:[%s9368_s3 + $0xc] ss:$28 sps:$4 sm:$0xff]   ;;  %v6373_v33 = vld [vmem:[%s9367_s26 + $0x2e0] ss:$16 sps:$4 sm:$0xff]  }
  0x29   :  { %v6402_v48 = vld [vmem:[%s9367_s26 + $0x36c] ss:$16 sps:$4 sm:$0xff]  }
  0x2a   :  { %1331 = vmatpush1.bf16.msra.mxu0 %v6284_v34  ;;  %1503 = vmatpush1.bf16.msra.mxu1 %v6285_v35  ;;  %v6376_v34 = vld [vmem:[%s9367_s26 + $0x2e8] ss:$16 sps:$4 sm:$0xff]   ;;  %v6381_v35 = vld [vmem:[%s9367_s26 + $0x304] ss:$16 sps:$4 sm:$0xff]  }
  0x2b   :  { %1332 = vmatprep.subr.bf16.mxu0 %v6286_v36  ;;  %1504 = vmatprep.subr.bf16.mxu1 %v6288_v37  ;;  %v6384_v36 = vld [vmem:[%s9367_s26 + $0x30c] ss:$16 sps:$4 sm:$0xff]   ;;  %v6379_v37 = vld [vmem:[%s9367_s26 + $0x300] ss:$16 sps:$4 sm:$0xff]  }
  0x2e   :  { %1333 = vmatpush1.bf16.msra.mxu0 %v6290_v38  ;;  %1505 = vmatpush1.bf16.msra.mxu1 %v6291_v39  ;;  %v6382_v38 = vld [vmem:[%s9367_s26 + $0x308] ss:$16 sps:$4 sm:$0xff]   ;;  %v6387_v39 = vld [vmem:[%s9367_s26 + $0x324] ss:$16 sps:$4 sm:$0xff]  }
  0x2f   :  { %1334 = vmatprep.subr.bf16.mxu0 %v6292_v40  ;;  %1506 = vmatprep.subr.bf16.mxu1 %v6294_v41  ;;  %v6390_v40 = vld [vmem:[%s9367_s26 + $0x32c] ss:$16 sps:$4 sm:$0xff]   ;;  %v6385_v41 = vld [vmem:[%s9367_s26 + $0x320] ss:$16 sps:$4 sm:$0xff]  }
  0x32   :  { %1335 = vmatpush1.bf16.msra.mxu0 %v6296_v42  ;;  %1507 = vmatpush1.bf16.msra.mxu1 %v6297_v43  ;;  %v6388_v42 = vld [vmem:[%s9367_s26 + $0x328] ss:$16 sps:$4 sm:$0xff]   ;;  %v6393_v43 = vld [vmem:[%s9367_s26 + $0x344] ss:$16 sps:$4 sm:$0xff]  }
  0x33   :  { %1336 = vmatprep.subr.bf16.mxu0 %v6298_v44  ;;  %1508 = vmatprep.subr.bf16.mxu1 %v6300_v45  ;;  %v6396_v44 = vld [vmem:[%s9367_s26 + $0x34c] ss:$16 sps:$4 sm:$0xff]   ;;  %v6391_v45 = vld [vmem:[%s9367_s26 + $0x340] ss:$16 sps:$4 sm:$0xff]  }
  0x36   :  { %1337 = vmatpush1.bf16.msra.mxu0 %v6302_v46  ;;  %1509 = vmatpush1.bf16.msra.mxu1 %v6303_v47  ;;  %v6394_v46 = vld [vmem:[%s9367_s26 + $0x348] ss:$16 sps:$4 sm:$0xff]   ;;  %v6399_v47 = vld [vmem:[%s9367_s26 + $0x364] ss:$16 sps:$4 sm:$0xff]  }
  0x37   :  { %1338 = vmatprep.subr.bf16.mxu0 %v6304_v49  ;;  %1510 = vmatprep.subr.bf16.mxu1 %v6306_v50  ;;  %v6397_v49 = vld [vmem:[%s9367_s26 + $0x360] ss:$16 sps:$4 sm:$0xff]   ;;  %v6400_v50 = vld [vmem:[%s9367_s26 + $0x368] ss:$16 sps:$4 sm:$0xff]  }
  0x3a   :  { %1339 = vmatpush1.bf16.msra.mxu0 %v6308_v51  ;;  %1511 = vmatpush1.bf16.msra.mxu1 %v6309_v52  ;;  %v6405_v51 = vld [vmem:[%s9367_s26 + $0x384] ss:$16 sps:$4 sm:$0xff]   ;;  %v6408_v52 = vld [vmem:[%s9367_s26 + $0x38c] ss:$16 sps:$4 sm:$0xff]  }
  0x3b   :  { %1340 = vmatprep.subr.bf16.mxu0 %v6310_v53  ;;  %1512 = vmatprep.subr.bf16.mxu1 %v6312_v54  ;;  %v6403_v53 = vld [vmem:[%s9367_s26 + $0x380] ss:$16 sps:$4 sm:$0xff]   ;;  %v6406_v54 = vld [vmem:[%s9367_s26 + $0x388] ss:$16 sps:$4 sm:$0xff]  }
  0x3e   :  { %1341 = vmatpush1.bf16.msra.mxu0 %v6314_v55  ;;  %1513 = vmatpush1.bf16.msra.mxu1 %v6315_v56  ;;  %v6411_v55 = vld [vmem:[%s9367_s26 + $0x3a4] ss:$16 sps:$4 sm:$0xff]   ;;  %v6414_v56 = vld [vmem:[%s9367_s26 + $0x3ac] ss:$16 sps:$4 sm:$0xff]  }
  0x3f   :  { %1342 = vmatprep.subr.bf16.mxu0 %v6316_v57  ;;  %1514 = vmatprep.subr.bf16.mxu1 %v6318_v58  ;;  %v6409_v57 = vld [vmem:[%s9367_s26 + $0x3a0] ss:$16 sps:$4 sm:$0xff]   ;;  %v6412_v58 = vld [vmem:[%s9367_s26 + $0x3a8] ss:$16 sps:$4 sm:$0xff]  }
  0x42   :  { %1343 = vmatpush1.bf16.msra.mxu0 %v6320_v59  ;;  %1515 = vmatpush1.bf16.msra.mxu1 %v6321_v60  ;;  %v6417_v59 = vld [vmem:[%s9367_s26 + $0x3c4] ss:$16 sps:$4 sm:$0xff]   ;;  %v6420_v60 = vld [vmem:[%s9367_s26 + $0x3cc] ss:$16 sps:$4 sm:$0xff]  }
  0x43   :  { %1344 = vmatprep.subr.bf16.mxu0 %v6322_v61  ;;  %1516 = vmatprep.subr.bf16.mxu1 %v6324_v62  ;;  %v6415_v61 = vld [vmem:[%s9367_s26 + $0x3c0] ss:$16 sps:$4 sm:$0xff]   ;;  %v6418_v62 = vld [vmem:[%s9367_s26 + $0x3c8] ss:$16 sps:$4 sm:$0xff]  }
  0x46   :  { %1345 = vmatpush1.bf16.msra.mxu0 %v6326_v63  ;;  %1517 = vmatpush1.bf16.msra.mxu1 %v6327_v0  ;;  %v6423_v63 = vld [vmem:[%s9367_s26 + $0x3e4] ss:$16 sps:$4 sm:$0xff]   ;;  %v6426_v0 = vld [vmem:[%s9367_s26 + $0x3ec] ss:$16 sps:$4 sm:$0xff]  }
  0x47   :  { %1357 = vmatprep.subr.bf16.mxu0 %v6333_v1  ;;  %1529 = vmatprep.subr.bf16.mxu1 %v6336_v2  ;;  %v6421_v1 = vld [vmem:[%s9367_s26 + $0x3e0] ss:$16 sps:$4 sm:$0xff]   ;;  %v6424_v2 = vld [vmem:[%s9367_s26 + $0x3e8] ss:$16 sps:$4 sm:$0xff]  }
  0x49   :  { %1347 = vmatmul.mubr.bf16.vlgmr.msra.gmra.mrb[0].mxu0 %v6328_v3  ;;  %1519 = vmatmul.mubr.bf16.vlgmr.msra.gmra.mrb[0].mxu1 %v6328_v3  ;;  %v6432_v3 = vld [vmem:[%s9367_s26 + $0x404] ss:$16 sps:$4 sm:$0xff]  }
  0x4a   :  { %1358 = vmatpush1.bf16.msra.mxu0 %v6331_v4  ;;  %1530 = vmatpush1.bf16.msra.mxu1 %v6334_v5  ;;  %v6435_v4 = vld [vmem:[%s9367_s26 + $0x40c] ss:$16 sps:$4 sm:$0xff]   ;;  %v6427_v5 = vld [vmem:[%s9368_s3 + $0x8] ss:$28 sps:$4 sm:$0xff]  }
  0x4b   :  { %1359 = vmatprep.subr.bf16.mxu0 %v6339_v6  ;;  %1531 = vmatprep.subr.bf16.mxu1 %v6342_v7  ;;  %v6430_v6 = vld [vmem:[%s9367_s26 + $0x400] ss:$16 sps:$4 sm:$0xff]   ;;  %v6433_v7 = vld [vmem:[%s9367_s26 + $0x408] ss:$16 sps:$4 sm:$0xff]  }
  0x4c   :  { %1389 = vmatprep.mubr.bf16.mxu0 %v6429_v30  ;;  %1561 = vmatprep.mubr.bf16.mxu1 %v6429_v30  ;;  %v6471_v30 = vld [vmem:[%s9367_s26 + $0x4cc] ss:$16 sps:$4 sm:$0xff]  }
  0x4e   :  { %1360 = vmatpush1.bf16.msra.mxu0 %v6337_v8  ;;  %1532 = vmatpush1.bf16.msra.mxu1 %v6340_v9  ;;  %v6438_v8 = vld [vmem:[%s9367_s26 + $0x424] ss:$16 sps:$4 sm:$0xff]   ;;  %v6441_v9 = vld [vmem:[%s9367_s26 + $0x42c] ss:$16 sps:$4 sm:$0xff]  }
  0x4f   :  { %1361 = vmatprep.subr.bf16.mxu0 %v6345_v10  ;;  %1533 = vmatprep.subr.bf16.mxu1 %v6348_v11  ;;  %v6436_v10 = vld [vmem:[%s9367_s26 + $0x420] ss:$16 sps:$4 sm:$0xff]   ;;  %v6439_v11 = vld [vmem:[%s9367_s26 + $0x428] ss:$16 sps:$4 sm:$0xff]  }
  0x52   :  { %1362 = vmatpush1.bf16.msra.mxu0 %v6343_v12  ;;  %1534 = vmatpush1.bf16.msra.mxu1 %v6346_v13  ;;  %v6528_v12 = vld [vmem:[%s9368_s3 + $0x14] ss:$28 sps:$4 sm:$0xff]  }
  0x53   :  { %1363 = vmatprep.subr.bf16.mxu0 %v6351_v14  ;;  %1535 = vmatprep.subr.bf16.mxu1 %v6354_v15  ;;  %v6444_v13 = vld [vmem:[%s9367_s26 + $0x444] ss:$16 sps:$4 sm:$0xff]   ;;  %v6447_v14 = vld [vmem:[%s9367_s26 + $0x44c] ss:$16 sps:$4 sm:$0xff]   ;;  %v6442_v15 = vld [vmem:[%s9367_s26 + $0x440] ss:$16 sps:$4 sm:$0xff]  }
  0x56   :  { %1364 = vmatpush1.bf16.msra.mxu0 %v6349_v16  ;;  %1536 = vmatpush1.bf16.msra.mxu1 %v6352_v17  ;;  %v6445_v16 = vld [vmem:[%s9367_s26 + $0x448] ss:$16 sps:$4 sm:$0xff]   ;;  %v6450_v17 = vld [vmem:[%s9367_s26 + $0x464] ss:$16 sps:$4 sm:$0xff]  }
  0x57   :  { %1365 = vmatprep.subr.bf16.mxu0 %v6357_v18  ;;  %1537 = vmatprep.subr.bf16.mxu1 %v6360_v19  ;;  %v6453_v18 = vld [vmem:[%s9367_s26 + $0x46c] ss:$16 sps:$4 sm:$0xff]   ;;  %v6448_v19 = vld [vmem:[%s9367_s26 + $0x460] ss:$16 sps:$4 sm:$0xff]  }
  0x5a   :  { %1366 = vmatpush1.bf16.msra.mxu0 %v6355_v20  ;;  %1538 = vmatpush1.bf16.msra.mxu1 %v6358_v21  ;;  %v6451_v20 = vld [vmem:[%s9367_s26 + $0x468] ss:$16 sps:$4 sm:$0xff]   ;;  %v6456_v21 = vld [vmem:[%s9367_s26 + $0x484] ss:$16 sps:$4 sm:$0xff]  }
  0x5b   :  { %1367 = vmatprep.subr.bf16.mxu0 %v6363_v22  ;;  %1539 = vmatprep.subr.bf16.mxu1 %v6366_v23  ;;  %v6459_v22 = vld [vmem:[%s9367_s26 + $0x48c] ss:$16 sps:$4 sm:$0xff]   ;;  %v6454_v23 = vld [vmem:[%s9367_s26 + $0x480] ss:$16 sps:$4 sm:$0xff]  }
  0x5e   :  { %1368 = vmatpush1.bf16.msra.mxu0 %v6361_v24  ;;  %1540 = vmatpush1.bf16.msra.mxu1 %v6364_v25  ;;  %v6457_v24 = vld [vmem:[%s9367_s26 + $0x488] ss:$16 sps:$4 sm:$0xff]   ;;  %v6462_v25 = vld [vmem:[%s9367_s26 + $0x4a4] ss:$16 sps:$4 sm:$0xff]  }
  0x5f   :  { %1369 = vmatprep.subr.bf16.mxu0 %v6369_v26  ;;  %1541 = vmatprep.subr.bf16.mxu1 %v6372_v27  ;;  %v6465_v26 = vld [vmem:[%s9367_s26 + $0x4ac] ss:$16 sps:$4 sm:$0xff]   ;;  %v6460_v27 = vld [vmem:[%s9367_s26 + $0x4a0] ss:$16 sps:$4 sm:$0xff]  }
  0x62   :  { %1370 = vmatpush1.bf16.msra.mxu0 %v6367_v28  ;;  %1542 = vmatpush1.bf16.msra.mxu1 %v6370_v29  ;;  %v6463_v28 = vld [vmem:[%s9367_s26 + $0x4a8] ss:$16 sps:$4 sm:$0xff]   ;;  %v6468_v29 = vld [vmem:[%s9367_s26 + $0x4c4] ss:$16 sps:$4 sm:$0xff]  }
  0x63   :  { %1371 = vmatprep.subr.bf16.mxu0 %v6375_v31  ;;  %1543 = vmatprep.subr.bf16.mxu1 %v6378_v32  ;;  %v6466_v31 = vld [vmem:[%s9367_s26 + $0x4c0] ss:$16 sps:$4 sm:$0xff]   ;;  %v6469_v32 = vld [vmem:[%s9367_s26 + $0x4c8] ss:$16 sps:$4 sm:$0xff]  }
  0x66   :  { %1372 = vmatpush1.bf16.msra.mxu0 %v6373_v33  ;;  %1544 = vmatpush1.bf16.msra.mxu1 %v6376_v34  ;;  %v6474_v33 = vld [vmem:[%s9367_s26 + $0x4e4] ss:$16 sps:$4 sm:$0xff]   ;;  %v6477_v34 = vld [vmem:[%s9367_s26 + $0x4ec] ss:$16 sps:$4 sm:$0xff]  }
  0x67   :  { %1373 = vmatprep.subr.bf16.mxu0 %v6381_v35  ;;  %1545 = vmatprep.subr.bf16.mxu1 %v6384_v36  ;;  %v6472_v35 = vld [vmem:[%s9367_s26 + $0x4e0] ss:$16 sps:$4 sm:$0xff]   ;;  %v6475_v36 = vld [vmem:[%s9367_s26 + $0x4e8] ss:$16 sps:$4 sm:$0xff]  }
  0x6a   :  { %1374 = vmatpush1.bf16.msra.mxu0 %v6379_v37  ;;  %1546 = vmatpush1.bf16.msra.mxu1 %v6382_v38  ;;  %v6480_v37 = vld [vmem:[%s9367_s26 + $0x504] ss:$16 sps:$4 sm:$0xff]   ;;  %v6483_v38 = vld [vmem:[%s9367_s26 + $0x50c] ss:$16 sps:$4 sm:$0xff]  }
  0x6b   :  { %1375 = vmatprep.subr.bf16.mxu0 %v6387_v39  ;;  %1547 = vmatprep.subr.bf16.mxu1 %v6390_v40  ;;  %v6478_v39 = vld [vmem:[%s9367_s26 + $0x500] ss:$16 sps:$4 sm:$0xff]   ;;  %v6481_v40 = vld [vmem:[%s9367_s26 + $0x508] ss:$16 sps:$4 sm:$0xff]  }
  0x6e   :  { %1376 = vmatpush1.bf16.msra.mxu0 %v6385_v41  ;;  %1548 = vmatpush1.bf16.msra.mxu1 %v6388_v42  ;;  %v6486_v41 = vld [vmem:[%s9367_s26 + $0x524] ss:$16 sps:$4 sm:$0xff]   ;;  %v6489_v42 = vld [vmem:[%s9367_s26 + $0x52c] ss:$16 sps:$4 sm:$0xff]  }
  0x6f   :  { %1377 = vmatprep.subr.bf16.mxu0 %v6393_v43  ;;  %1549 = vmatprep.subr.bf16.mxu1 %v6396_v44  ;;  %v6484_v43 = vld [vmem:[%s9367_s26 + $0x520] ss:$16 sps:$4 sm:$0xff]   ;;  %v6487_v44 = vld [vmem:[%s9367_s26 + $0x528] ss:$16 sps:$4 sm:$0xff]  }
  0x72   :  { %1378 = vmatpush1.bf16.msra.mxu0 %v6391_v45  ;;  %1550 = vmatpush1.bf16.msra.mxu1 %v6394_v46  ;;  %v6492_v45 = vld [vmem:[%s9367_s26 + $0x544] ss:$16 sps:$4 sm:$0xff]   ;;  %v6495_v46 = vld [vmem:[%s9367_s26 + $0x54c] ss:$16 sps:$4 sm:$0xff]  }
  0x73   :  { %1379 = vmatprep.subr.bf16.mxu0 %v6399_v47  ;;  %1551 = vmatprep.subr.bf16.mxu1 %v6402_v48  ;;  %v6490_v47 = vld [vmem:[%s9367_s26 + $0x540] ss:$16 sps:$4 sm:$0xff]   ;;  %v6493_v48 = vld [vmem:[%s9367_s26 + $0x548] ss:$16 sps:$4 sm:$0xff]  }
  0x76   :  { %1380 = vmatpush1.bf16.msra.mxu0 %v6397_v49  ;;  %1552 = vmatpush1.bf16.msra.mxu1 %v6400_v50  ;;  %v6498_v49 = vld [vmem:[%s9367_s26 + $0x564] ss:$16 sps:$4 sm:$0xff]   ;;  %v6501_v50 = vld [vmem:[%s9367_s26 + $0x56c] ss:$16 sps:$4 sm:$0xff]  }
  0x77   :  { %1381 = vmatprep.subr.bf16.mxu0 %v6405_v51  ;;  %1553 = vmatprep.subr.bf16.mxu1 %v6408_v52  ;;  %v6496_v51 = vld [vmem:[%s9367_s26 + $0x560] ss:$16 sps:$4 sm:$0xff]   ;;  %v6499_v52 = vld [vmem:[%s9367_s26 + $0x568] ss:$16 sps:$4 sm:$0xff]  }
  0x7a   :  { %1382 = vmatpush1.bf16.msra.mxu0 %v6403_v53  ;;  %1554 = vmatpush1.bf16.msra.mxu1 %v6406_v54  ;;  %v6504_v53 = vld [vmem:[%s9367_s26 + $0x584] ss:$16 sps:$4 sm:$0xff]   ;;  %v6507_v54 = vld [vmem:[%s9367_s26 + $0x58c] ss:$16 sps:$4 sm:$0xff]  }
  0x7b   :  { %1383 = vmatprep.subr.bf16.mxu0 %v6411_v55  ;;  %1555 = vmatprep.subr.bf16.mxu1 %v6414_v56  ;;  %v6502_v55 = vld [vmem:[%s9367_s26 + $0x580] ss:$16 sps:$4 sm:$0xff]   ;;  %v6505_v56 = vld [vmem:[%s9367_s26 + $0x588] ss:$16 sps:$4 sm:$0xff]  }
  0x7e   :  { %1384 = vmatpush1.bf16.msra.mxu0 %v6409_v57  ;;  %1556 = vmatpush1.bf16.msra.mxu1 %v6412_v58  ;;  %v6510_v57 = vld [vmem:[%s9367_s26 + $0x5a4] ss:$16 sps:$4 sm:$0xff]   ;;  %v6513_v58 = vld [vmem:[%s9367_s26 + $0x5ac] ss:$16 sps:$4 sm:$0xff]  }
  0x7f   :  { %1385 = vmatprep.subr.bf16.mxu0 %v6417_v59  ;;  %1557 = vmatprep.subr.bf16.mxu1 %v6420_v60  ;;  %v6508_v59 = vld [vmem:[%s9367_s26 + $0x5a0] ss:$16 sps:$4 sm:$0xff]   ;;  %v6511_v60 = vld [vmem:[%s9367_s26 + $0x5a8] ss:$16 sps:$4 sm:$0xff]  }
  0x82   :  { %1386 = vmatpush1.bf16.msra.mxu0 %v6415_v61  ;;  %1558 = vmatpush1.bf16.msra.mxu1 %v6418_v62  ;;  %v6516_v61 = vld [vmem:[%s9367_s26 + $0x5c4] ss:$16 sps:$4 sm:$0xff]   ;;  %v6519_v62 = vld [vmem:[%s9367_s26 + $0x5cc] ss:$16 sps:$4 sm:$0xff]  }
  0x83   :  { %1387 = vmatprep.subr.bf16.mxu0 %v6423_v63  ;;  %1559 = vmatprep.subr.bf16.mxu1 %v6426_v0  ;;  %v6514_v63 = vld [vmem:[%s9367_s26 + $0x5c0] ss:$16 sps:$4 sm:$0xff]   ;;  %v6517_v0 = vld [vmem:[%s9367_s26 + $0x5c8] ss:$16 sps:$4 sm:$0xff]  }
  0x86   :  { %1388 = vmatpush1.bf16.msra.mxu0 %v6421_v1  ;;  %1560 = vmatpush1.bf16.msra.mxu1 %v6424_v2  ;;  %v6522_v1 = vld [vmem:[%s9367_s26 + $0x5e4] ss:$16 sps:$4 sm:$0xff]   ;;  %v6525_v2 = vld [vmem:[%s9367_s26 + $0x5ec] ss:$16 sps:$4 sm:$0xff]  }
  0x87   :  { %1400 = vmatprep.subr.bf16.mxu0 %v6432_v3  ;;  %1572 = vmatprep.subr.bf16.mxu1 %v6435_v4  ;;  %v6520_v3 = vld [vmem:[%s9367_s26 + $0x5e0] ss:$16 sps:$4 sm:$0xff]   ;;  %v6523_v4 = vld [vmem:[%s9367_s26 + $0x5e8] ss:$16 sps:$4 sm:$0xff]  }
  0x89   :  { %1390 = vmatmul.mubr.bf16.vlgmr.msra.gmra.mrb[0].mxu0 %v6427_v5  ;;  %1562 = vmatmul.mubr.bf16.vlgmr.msra.gmra.mrb[0].mxu1 %v6427_v5  ;;  %v6531_v5 = vld [vmem:[%s9367_s26 + $0x604] ss:$16 sps:$4 sm:$0xff]  }
  0x8a   :  { %1401 = vmatpush1.bf16.msra.mxu0 %v6430_v6  ;;  %1573 = vmatpush1.bf16.msra.mxu1 %v6433_v7  ;;  %v6534_v6 = vld [vmem:[%s9367_s26 + $0x60c] ss:$16 sps:$4 sm:$0xff]  }
  0x8b   :  { %1402 = vmatprep.subr.bf16.mxu0 %v6438_v8  ;;  %1574 = vmatprep.subr.bf16.mxu1 %v6441_v9  ;;  %v6526_v7 = vld [vmem:[%s9368_s3 + $0x10] ss:$28 sps:$4 sm:$0xff]   ;;  %v6532_v9 = vld [vmem:[%s9367_s26 + $0x608] ss:$16 sps:$4 sm:$0xff]  }
  0x8c   :  { %1432 = vmatprep.mubr.bf16.mxu0 %v6528_v12  ;;  %1604 = vmatprep.mubr.bf16.mxu1 %v6528_v12  ;;  %v6529_v8 = vld [vmem:[%s9367_s26 + $0x600] ss:$16 sps:$4 sm:$0xff]   ;;  %v6535_v12 = vld [vmem:[%s9368_s3 + $0x18] ss:$28 sps:$4 sm:$0xff]   ;;  %s9371_s3 = sld [smem:[#allocation6_spill]] }
  0x8e   :  { %1403 = vmatpush1.bf16.msra.mxu0 %v6436_v10  ;;  %1575 = vmatpush1.bf16.msra.mxu1 %v6439_v11  ;;  %v6538_v10 = vld [vmem:[%s9369_s22 + $0x4] ss:$8 sps:$4 sm:$0xff]   ;;  %v7176_v11 = vmov 0  }
  0x8f   :  { %1404 = vmatprep.subr.bf16.mxu0 %v6444_v13  ;;  %1576 = vmatprep.subr.bf16.mxu1 %v6447_v14  ;;  %v6536_v13 = vld [vmem:[%s9369_s22] ss:$8 sps:$4 sm:$0xff]   ;;  %v6541_v14 = vld [vmem:[%s9369_s22 + $0x14] ss:$8 sps:$4 sm:$0xff]  }
  0x92   :  { %1405 = vmatpush1.bf16.msra.mxu0 %v6442_v15  ;;  %1577 = vmatpush1.bf16.msra.mxu1 %v6445_v16  ;;  %v6539_v15 = vld [vmem:[%s9369_s22 + $0x10] ss:$8 sps:$4 sm:$0xff]   ;;  %v6544_v16 = vld [vmem:[%s9369_s22 + $0x24] ss:$8 sps:$4 sm:$0xff]  }
  0x93   :  { %1406 = vmatprep.subr.bf16.mxu0 %v6450_v17  ;;  %1578 = vmatprep.subr.bf16.mxu1 %v6453_v18  ;;  %v6542_v17 = vld [vmem:[%s9369_s22 + $0x20] ss:$8 sps:$4 sm:$0xff]   ;;  %v6547_v18 = vld [vmem:[%s9369_s22 + $0x34] ss:$8 sps:$4 sm:$0xff]  }
  0x96   :  { %1407 = vmatpush1.bf16.msra.mxu0 %v6448_v19  ;;  %1579 = vmatpush1.bf16.msra.mxu1 %v6451_v20  ;;  %v6545_v19 = vld [vmem:[%s9369_s22 + $0x30] ss:$8 sps:$4 sm:$0xff]   ;;  %v6550_v20 = vld [vmem:[%s9369_s22 + $0x44] ss:$8 sps:$4 sm:$0xff]  }
  0x97   :  { %1408 = vmatprep.subr.bf16.mxu0 %v6456_v21  ;;  %1580 = vmatprep.subr.bf16.mxu1 %v6459_v22  ;;  %v6548_v21 = vld [vmem:[%s9369_s22 + $0x40] ss:$8 sps:$4 sm:$0xff]   ;;  %v6553_v22 = vld [vmem:[%s9369_s22 + $0x54] ss:$8 sps:$4 sm:$0xff]  }
  0x9a   :  { %1409 = vmatpush1.bf16.msra.mxu0 %v6454_v23  ;;  %1581 = vmatpush1.bf16.msra.mxu1 %v6457_v24  ;;  %v6551_v23 = vld [vmem:[%s9369_s22 + $0x50] ss:$8 sps:$4 sm:$0xff]   ;;  %v6556_v24 = vld [vmem:[%s9369_s22 + $0x64] ss:$8 sps:$4 sm:$0xff]  }
  0x9b   :  { %1410 = vmatprep.subr.bf16.mxu0 %v6462_v25  ;;  %1582 = vmatprep.subr.bf16.mxu1 %v6465_v26  ;;  %v6554_v25 = vld [vmem:[%s9369_s22 + $0x60] ss:$8 sps:$4 sm:$0xff]   ;;  %v6559_v26 = vld [vmem:[%s9369_s22 + $0x74] ss:$8 sps:$4 sm:$0xff]  }
  0x9e   :  { %1411 = vmatpush1.bf16.msra.mxu0 %v6460_v27  ;;  %1583 = vmatpush1.bf16.msra.mxu1 %v6463_v28  ;;  %v6557_v27 = vld [vmem:[%s9369_s22 + $0x70] ss:$8 sps:$4 sm:$0xff]   ;;  %v6562_v28 = vld [vmem:[%s9369_s22 + $0x84] ss:$8 sps:$4 sm:$0xff]  }
  0x9f   :  { %1412 = vmatprep.subr.bf16.mxu0 %v6468_v29  ;;  %1584 = vmatprep.subr.bf16.mxu1 %v6471_v30  ;;  %v6560_v29 = vld [vmem:[%s9369_s22 + $0x80] ss:$8 sps:$4 sm:$0xff]   ;;  %v6565_v30 = vld [vmem:[%s9369_s22 + $0x94] ss:$8 sps:$4 sm:$0xff]  }
  0xa2   :  { %1413 = vmatpush1.bf16.msra.mxu0 %v6466_v31  ;;  %1585 = vmatpush1.bf16.msra.mxu1 %v6469_v32  ;;  %v6563_v31 = vld [vmem:[%s9369_s22 + $0x90] ss:$8 sps:$4 sm:$0xff]   ;;  %v6568_v32 = vld [vmem:[%s9369_s22 + $0xa4] ss:$8 sps:$4 sm:$0xff]  }
  0xa3   :  { %1414 = vmatprep.subr.bf16.mxu0 %v6474_v33  ;;  %1586 = vmatprep.subr.bf16.mxu1 %v6477_v34  ;;  %v6566_v33 = vld [vmem:[%s9369_s22 + $0xa0] ss:$8 sps:$4 sm:$0xff]   ;;  %v6571_v34 = vld [vmem:[%s9369_s22 + $0xb4] ss:$8 sps:$4 sm:$0xff]  }
  0xa6   :  { %1415 = vmatpush1.bf16.msra.mxu0 %v6472_v35  ;;  %1587 = vmatpush1.bf16.msra.mxu1 %v6475_v36  ;;  %v6569_v35 = vld [vmem:[%s9369_s22 + $0xb0] ss:$8 sps:$4 sm:$0xff]   ;;  %v6574_v36 = vld [vmem:[%s9369_s22 + $0xc4] ss:$8 sps:$4 sm:$0xff]  }
  0xa7   :  { %1416 = vmatprep.subr.bf16.mxu0 %v6480_v37  ;;  %1588 = vmatprep.subr.bf16.mxu1 %v6483_v38  ;;  %v6572_v37 = vld [vmem:[%s9369_s22 + $0xc0] ss:$8 sps:$4 sm:$0xff]   ;;  %v6577_v38 = vld [vmem:[%s9369_s22 + $0xd4] ss:$8 sps:$4 sm:$0xff]  }
  0xaa   :  { %1417 = vmatpush1.bf16.msra.mxu0 %v6478_v39  ;;  %1589 = vmatpush1.bf16.msra.mxu1 %v6481_v40  ;;  %v6575_v39 = vld [vmem:[%s9369_s22 + $0xd0] ss:$8 sps:$4 sm:$0xff]   ;;  %v6580_v40 = vld [vmem:[%s9369_s22 + $0xe4] ss:$8 sps:$4 sm:$0xff]  }
  0xab   :  { %1418 = vmatprep.subr.bf16.mxu0 %v6486_v41  ;;  %1590 = vmatprep.subr.bf16.mxu1 %v6489_v42  ;;  %v6578_v41 = vld [vmem:[%s9369_s22 + $0xe0] ss:$8 sps:$4 sm:$0xff]   ;;  %v6583_v42 = vld [vmem:[%s9369_s22 + $0xf4] ss:$8 sps:$4 sm:$0xff]  }
  0xae   :  { %1419 = vmatpush1.bf16.msra.mxu0 %v6484_v43  ;;  %1591 = vmatpush1.bf16.msra.mxu1 %v6487_v44  ;;  %v6581_v43 = vld [vmem:[%s9369_s22 + $0xf0] ss:$8 sps:$4 sm:$0xff]   ;;  %v6586_v44 = vld [vmem:[%s9369_s22 + $0x104] ss:$8 sps:$4 sm:$0xff]  }
  0xaf   :  { %1420 = vmatprep.subr.bf16.mxu0 %v6492_v45  ;;  %1592 = vmatprep.subr.bf16.mxu1 %v6495_v46  ;;  %v6632_v45 = vld [vmem:[%s9370_s30 + $0x40] sm:$0xff]  }
  0xb0   :  { %v6633_v46 = vld [vmem:[%s9370_s30] sm:$0xff]  }
  0xb2   :  { %1421 = vmatpush1.bf16.msra.mxu0 %v6490_v47  ;;  %1593 = vmatpush1.bf16.msra.mxu1 %v6493_v48  ;;  %v6634_v47 = vld [vmem:[%s9370_s30 + $0x48] sm:$0xff]  }
  0xb3   :  { %1422 = vmatprep.subr.bf16.mxu0 %v6498_v49  ;;  %1594 = vmatprep.subr.bf16.mxu1 %v6501_v50  ;;  %v6635_v48 = vld [vmem:[%s9370_s30 + $0x8] sm:$0xff]   ;;  %v6636_v49 = vld [vmem:[%s9370_s30 + $0x50] sm:$0xff]  }
  0xb4   :  { %v6637_v50 = vld [vmem:[%s9370_s30 + $0x10] sm:$0xff]  }
  0xb6   :  { %1423 = vmatpush1.bf16.msra.mxu0 %v6496_v51  ;;  %1595 = vmatpush1.bf16.msra.mxu1 %v6499_v52  ;;  %v6638_v51 = vld [vmem:[%s9370_s30 + $0x58] sm:$0xff]  }
  0xb7   :  { %1424 = vmatprep.subr.bf16.mxu0 %v6504_v53  ;;  %1596 = vmatprep.subr.bf16.mxu1 %v6507_v54  ;;  %v6639_v52 = vld [vmem:[%s9370_s30 + $0x18] sm:$0xff]   ;;  %v6640_v53 = vld [vmem:[%s9370_s30 + $0x60] sm:$0xff]  }
  0xb8   :  { %v6641_v54 = vld [vmem:[%s9370_s30 + $0x20] sm:$0xff]  }
  0xba   :  { %1425 = vmatpush1.bf16.msra.mxu0 %v6502_v55  ;;  %1597 = vmatpush1.bf16.msra.mxu1 %v6505_v56  ;;  %v6642_v55 = vld [vmem:[%s9370_s30 + $0x68] sm:$0xff]   ;;  %v275_v56 = vlaneseq }
  0xbb   :  { %1426 = vmatprep.subr.bf16.mxu0 %v6510_v57  ;;  %1598 = vmatprep.subr.bf16.mxu1 %v6513_v58 }
  0xbc   :  { %v8034_v57 = vshrl.u32 %v275_v56, 7  ;;  %v6620_v56 = vld [vmem:[%s9369_s22 + $0x1c0] ss:$8 sps:$4 sm:$0xff]  }
  0xbe   :  { %1427 = vmatpush1.bf16.msra.mxu0 %v6508_v59  ;;  %1599 = vmatpush1.bf16.msra.mxu1 %v6511_v60  ;;  %v8037_v58 = vsub.s32 0, %v8034_v57  ;;  %v8040_v59 = vsub.s32 2, %v8034_v57  ;;  %v273_v60 = vld [vmem:[%s9371_s3] sm:$0xf] }
  0xbf   :  { %1428 = vmatprep.subr.bf16.mxu0 %v6516_v61  ;;  %1600 = vmatprep.subr.bf16.mxu1 %v6519_v62  ;;  %v8046_v61 = vsub.s32 1, %v8034_v57  ;;  %v8049_v62 = vsub.s32 3, %v8034_v57 }
  0xc2   :  { %1429 = vmatpush1.bf16.msra.mxu0 %v6514_v63  ;;  %1601 = vmatpush1.bf16.msra.mxu1 %v6517_v0  ;;  %v278_v63 = vrot.slane %v273_v60, %v8037_v58  ;;  %v286_v0 = vrot.slane %v273_v60, %v8040_v59 }
  0xc3   :  { %1430 = vmatprep.subr.bf16.mxu0 %v6522_v1  ;;  %1602 = vmatprep.subr.bf16.mxu1 %v6525_v2  ;;  %v282_v1 = vrot.slane %v273_v60, %v8046_v61  ;;  %v290_v2 = vrot.slane %v273_v60, %v8049_v62  ;;  %v6625_v60 = vld [vmem:[%s9369_s22 + $0x1d4] ss:$8 sps:$4 sm:$0xff]  }
  0xc6   :  { %1431 = vmatpush1.bf16.msra.mxu0 %v6520_v3  ;;  %1603 = vmatpush1.bf16.msra.mxu1 %v6523_v4 }
  0xc7   :  { %1443 = vmatprep.subr.bf16.mxu0 %v6531_v5  ;;  %1615 = vmatprep.subr.bf16.mxu1 %v6534_v6 }
  0xc9   :  { %1433 = vmatmul.mubr.bf16.vlgmr.msra.gmra.mrb[0].mxu0 %v6526_v7  ;;  %1605 = vmatmul.mubr.bf16.vlgmr.msra.gmra.mrb[0].mxu1 %v6526_v7 }
  0xca   :  { %1444 = vmatpush1.bf16.msra.mxu0 %v6529_v8  ;;  %1616 = vmatpush1.bf16.msra.mxu1 %v6532_v9 }
  0xcb   :  { %1475 = vmatprep.mubr.bf16.mxu0 %v7176_v11  ;;  %1647 = vmatprep.mubr.bf16.mxu1 %v7176_v11 }
  0xcc   :  { %2066 = vmatprep.subr.bf16.mxu0 %v6538_v10  ;;  %5983 = vmatprep.subr.bf16.mxu1 %v6632_v45  ;;  %v6607_v45 = vld [vmem:[%s9369_s22 + $0x174] ss:$8 sps:$4 sm:$0xff]  }
  0xd5   :  { %5546 = vmatmul.mubr.msk.bf16.vlgmr.msra.gmra.mrb[0].mxu0 %vm1310_vm0, %v6535_v12  ;;  %5547 = vmatmul.mubr.msk.bf16.vlgmr.msra.gmra.mrb[0].mxu1 %vm1310_vm0, %v6535_v12 }
  0xd6   :  { %2067 = vmatpush1.bf16.msra.mxu0 %v6536_v13  ;;  %5984 = vmatpush3.bf16.msra.mxu1 %v6633_v46  ;;  %v6605_v46 = vld [vmem:[%s9369_s22 + $0x170] ss:$8 sps:$4 sm:$0xff]  }
  0xd7   :  { %2068 = vmatprep.subr.bf16.mxu0 %v6541_v14  ;;  %5985 = vmatprep.subr.bf16.mxu1 %v6634_v47  ;;  %v6610_v47 = vld [vmem:[%s9369_s22 + $0x184] ss:$8 sps:$4 sm:$0xff]  }
  0xda   :  { %2069 = vmatpush1.bf16.msra.mxu0 %v6539_v15  ;;  %5986 = vmatpush3.bf16.msra.mxu1 %v6635_v48  ;;  %v6608_v48 = vld [vmem:[%s9369_s22 + $0x180] ss:$8 sps:$4 sm:$0xff]  }
  0xdb   :  { %2070 = vmatprep.subr.bf16.mxu0 %v6544_v16  ;;  %5987 = vmatprep.subr.bf16.mxu1 %v6636_v49  ;;  %v6613_v49 = vld [vmem:[%s9369_s22 + $0x194] ss:$8 sps:$4 sm:$0xff]  }
  0xde   :  { %2071 = vmatpush1.bf16.msra.mxu0 %v6542_v17  ;;  %5988 = vmatpush3.bf16.msra.mxu1 %v6637_v50  ;;  %v6611_v50 = vld [vmem:[%s9369_s22 + $0x190] ss:$8 sps:$4 sm:$0xff]  }
  0xdf   :  { %2072 = vmatprep.subr.bf16.mxu0 %v6547_v18  ;;  %5989 = vmatprep.subr.bf16.mxu1 %v6638_v51  ;;  %v6616_v51 = vld [vmem:[%s9369_s22 + $0x1a4] ss:$8 sps:$4 sm:$0xff]  }
  0xe2   :  { %2073 = vmatpush1.bf16.msra.mxu0 %v6545_v19  ;;  %5990 = vmatpush3.bf16.msra.mxu1 %v6639_v52  ;;  %v6614_v52 = vld [vmem:[%s9369_s22 + $0x1a0] ss:$8 sps:$4 sm:$0xff]  }
  0xe3   :  { %2074 = vmatprep.subr.bf16.mxu0 %v6550_v20  ;;  %5991 = vmatprep.subr.bf16.mxu1 %v6640_v53  ;;  %v6619_v53 = vld [vmem:[%s9369_s22 + $0x1b4] ss:$8 sps:$4 sm:$0xff]  }
  0xe6   :  { %2075 = vmatpush1.bf16.msra.mxu0 %v6548_v21  ;;  %5992 = vmatpush3.bf16.msra.mxu1 %v6641_v54  ;;  %v6617_v54 = vld [vmem:[%s9369_s22 + $0x1b0] ss:$8 sps:$4 sm:$0xff]  }
  0xe7   :  { %2076 = vmatprep.subr.bf16.mxu0 %v6553_v22  ;;  %5993 = vmatprep.subr.bf16.mxu1 %v6642_v55  ;;  %v6622_v55 = vld [vmem:[%s9369_s22 + $0x1c4] ss:$8 sps:$4 sm:$0xff]  }
  0xea   :  { %2077 = vmatpush1.bf16.msra.mxu0 %v6551_v23 }
  0xeb   :  { %2078 = vmatprep.subr.bf16.mxu0 %v6556_v24 }
  0xee   :  { %2079 = vmatpush1.bf16.msra.mxu0 %v6554_v25 }
  0xef   :  { %2080 = vmatprep.subr.bf16.mxu0 %v6559_v26 }
  0xf2   :  { %2081 = vmatpush1.bf16.msra.mxu0 %v6557_v27 }
  0xf3   :  { %2082 = vmatprep.subr.bf16.mxu0 %v6562_v28 }
  0xf6   :  { %2083 = vmatpush1.bf16.msra.mxu0 %v6560_v29 }
  0xf7   :  { %2084 = vmatprep.subr.bf16.mxu0 %v6565_v30 }
  0xfa   :  { %2085 = vmatpush1.bf16.msra.mxu0 %v6563_v31 }
  0xfb   :  { %2086 = vmatprep.subr.bf16.mxu0 %v6568_v32  ;;  %v6584_v32 = vld [vmem:[%s9369_s22 + $0x100] ss:$8 sps:$4 sm:$0xff]  }
  0xfe   :  { %2087 = vmatpush1.bf16.msra.mxu0 %v6566_v33  ;;  %v6589_v33 = vld [vmem:[%s9369_s22 + $0x114] ss:$8 sps:$4 sm:$0xff]  }
  0xff   :  { %2088 = vmatprep.subr.bf16.mxu0 %v6571_v34  ;;  %v6587_v34 = vld [vmem:[%s9369_s22 + $0x110] ss:$8 sps:$4 sm:$0xff]  }
 0x102   :  { %2089 = vmatpush1.bf16.msra.mxu0 %v6569_v35  ;;  %v6592_v35 = vld [vmem:[%s9369_s22 + $0x124] ss:$8 sps:$4 sm:$0xff]  }
 0x103   :  { %2090 = vmatprep.subr.bf16.mxu0 %v6574_v36  ;;  %v6590_v36 = vld [vmem:[%s9369_s22 + $0x120] ss:$8 sps:$4 sm:$0xff]  }
 0x106   :  { %2091 = vmatpush1.bf16.msra.mxu0 %v6572_v37  ;;  %v6595_v37 = vld [vmem:[%s9369_s22 + $0x134] ss:$8 sps:$4 sm:$0xff]  }
 0x107   :  { %2092 = vmatprep.subr.bf16.mxu0 %v6577_v38  ;;  %v6593_v38 = vld [vmem:[%s9369_s22 + $0x130] ss:$8 sps:$4 sm:$0xff]  }
 0x10a   :  { %2093 = vmatpush1.bf16.msra.mxu0 %v6575_v39  ;;  %v6598_v39 = vld [vmem:[%s9369_s22 + $0x144] ss:$8 sps:$4 sm:$0xff]  }
 0x10b   :  { %2094 = vmatprep.subr.bf16.mxu0 %v6580_v40  ;;  %v6596_v40 = vld [vmem:[%s9369_s22 + $0x140] ss:$8 sps:$4 sm:$0xff]  }
 0x10e   :  { %2095 = vmatpush1.bf16.msra.mxu0 %v6578_v41  ;;  %v6601_v41 = vld [vmem:[%s9369_s22 + $0x154] ss:$8 sps:$4 sm:$0xff]  }
 0x10f   :  { %2096 = vmatprep.subr.bf16.mxu0 %v6583_v42  ;;  %v6599_v42 = vld [vmem:[%s9369_s22 + $0x150] ss:$8 sps:$4 sm:$0xff]  }
 0x112   :  { %2097 = vmatpush1.bf16.msra.mxu0 %v6581_v43  ;;  %v6604_v43 = vld [vmem:[%s9369_s22 + $0x164] ss:$8 sps:$4 sm:$0xff]  }
 0x113   :  { %2109 = vmatprep.subr.bf16.mxu0 %v6586_v44  ;;  %v6602_v44 = vld [vmem:[%s9369_s22 + $0x160] ss:$8 sps:$4 sm:$0xff]  }
 0x1a8   :  { %v1477_v3 = vpop.f32.mrb[0].mxu0  ;;  %v1649_v4 = vpop.f32.mrb[0].mxu1 }
 0x1a9   :  { %v6165_v5 = vadd.f32 %v1477_v3, %v278_v63  ;;  %v6169_v6 = vadd.f32 %v1649_v4, %v286_v0  ;;  %v1479_v7 = vpop.f32.mrb[1].mxu0  ;;  %v1651_v8 = vpop.f32.mrb[1].mxu1  ;;  %v6629_v3 = vld [vmem:[%s9369_s22 + $0x1f0] ss:$8 sps:$4 sm:$0xff]   ;;  %v6643_v4 = vld [vmem:[%s9370_s30 + $0x28] sm:$0xff]  }
 0x1aa   :  { %v6166_v9 = vadd.f32 %v1479_v7, %v282_v1  ;;  %v6170_v10 = vadd.f32 %v1651_v8, %v290_v2  ;;  %v1481_v12 = vpop.f32.mrb[2].mxu0  ;;  %v1653_v13 = vpop.f32.mrb[2].mxu1  ;;  %5994 = vmatpush3.bf16.msra.mxu1 %v6643_v4  ;;  %v6646_v7 = vld [vmem:[%s9370_s30 + $0x78] sm:$0xff]  }
 0x1ab   :  { %v6167_v14 = vadd.f32 %v1481_v12, %v278_v63  ;;  %v6171_v15 = vadd.f32 %v1653_v13, %v286_v0  ;;  %v1483_v16 = vpop.f32.mrb[3].mxu0  ;;  %v1655_v17 = vpop.f32.mrb[3].mxu1  ;;  %v1658_v20 = vmax.f32 %v6165_v5, 0.0  ;;  %v1660_v21 = vmax.f32 %v6169_v6, 0.0  ;;  %v6623_v63 = vld [vmem:[%s9369_s22 + $0x1d0] ss:$8 sps:$4 sm:$0xff]  }
 0x1ac   :  { %v6168_v18 = vadd.f32 %v1483_v16, %v282_v1  ;;  %v6172_v19 = vadd.f32 %v1655_v17, %v290_v2  ;;  %v1659_v24 = vmax.f32 %v6166_v9, 0.0  ;;  %v1661_v25 = vmax.f32 %v6170_v10, 0.0  ;;  %v6628_v0 = vld [vmem:[%s9369_s22 + $0x1e4] ss:$8 sps:$4 sm:$0xff]   ;;  %v6626_v1 = vld [vmem:[%s9369_s22 + $0x1e0] ss:$8 sps:$4 sm:$0xff]  }
 0x1ad   :  { %v1662_v22 = vmax.f32 %v6167_v14, 0.0  ;;  %v1664_v23 = vmax.f32 %v6171_v15, 0.0  ;;  %v6631_v2 = vld [vmem:[%s9369_s22 + $0x1f4] ss:$8 sps:$4 sm:$0xff]   ;;  %v7177_v9 = vmov 0.0  }
 0x1ae   :  { %v1663_v26 = vmax.f32 %v6168_v18, 0.0  ;;  %v1665_v27 = vmax.f32 %v6172_v19, 0.0  ;;  %v6644_v5 = vld [vmem:[%s9370_s30 + $0x70] sm:$0xff]   ;;  %v6647_v8 = vld [vmem:[%s9370_s30 + $0x38] sm:$0xff]   ;;  %v1734_v10 = vld [vmem:[%s9340_s4] sm:$0x3] }
 0x1af   :  { %v1666_v28 = vpack.c.bf16 %v1662_v22, %v1658_v20  ;;  %v8055_v29 = vpack.c.bf16 %v1664_v23, %v1660_v21  ;;  %v6645_v6 = vld [vmem:[%s9370_s30 + $0x30] sm:$0xff]   ;;  %5995 = vmatprep.subr.bf16.mxu1 %v6644_v5  ;;  %v1739_v12 = vrot.slane %v1734_v10, %v8037_v58  ;;  %v1743_v13 = vrot.slane %v1734_v10, %v8046_v61 }
 0x1b0   :  { %v1667_v30 = vpack.c.bf16 %v1663_v26, %v1659_v24  ;;  %v1669_v31 = vpack.c.bf16 %v1665_v27, %v1661_v25  ;;  %5996 = vmatpush3.bf16.msra.mxu1 %v6645_v6  ;;  %v6664_v6 = vld [vmem:[%s9343_s11] sm:$0xff]   ;;  %v6666_v10 = vld [vmem:[%s9343_s11 + $0x10] sm:$0xff]  }
 0x1b1   :  { %5997 = vmatprep.subr.bf16.mxu1 %v6646_v7 }
 0x1b2   :  { %2098 = vmatprep.mubr.bf16.mxu0 %v1667_v30  ;;  %v6650_v30 = vld [vmem:[%s9372_s25 + $0x10] sm:$0xff]  }
 0x1b3   :  { %2099 = vmatmul.mubr.bf16.vlgmr.msra.gmra.mrb[4].mxu0 %v1666_v28  ;;  %v6648_v28 = vld [vmem:[%s9372_s25] sm:$0xff]  }
 0x1b4   :  { %2110 = vmatpush1.bf16.msra.mxu0 %v6584_v32  ;;  %2141 = vmatprep.mubr.bf16.mxu0 %v1669_v31  ;;  %v6651_v31 = vld [vmem:[%s9372_s25 + $0x18] sm:$0xff]   ;;  %v6652_v32 = vld [vmem:[%s9372_s25 + $0x20] sm:$0xff]  }
 0x1b5   :  { %2111 = vmatprep.subr.bf16.mxu0 %v6589_v33  ;;  %5998 = vmatpush3.bf16.msra.mxu1 %v6647_v8  ;;  %v6653_v33 = vld [vmem:[%s9372_s25 + $0x28] sm:$0xff]  }
 0x1b6   :  { %6085 = vmatprep.subr.bf16.mxu1 %v7177_v9  ;;  %v6665_v8 = vld [vmem:[%s9343_s11 + $0x8] sm:$0xff]  }
 0x1b8   :  { %2112 = vmatpush1.bf16.msra.mxu0 %v6587_v34  ;;  %v6654_v34 = vld [vmem:[%s9372_s25 + $0x30] sm:$0xff]  }
 0x1b9   :  { %2113 = vmatprep.subr.bf16.mxu0 %v6592_v35  ;;  %v6655_v35 = vld [vmem:[%s9372_s25 + $0x38] sm:$0xff]  }
 0x1bc   :  { %2114 = vmatpush1.bf16.msra.mxu0 %v6590_v36 }
 0x1bd   :  { %2115 = vmatprep.subr.bf16.mxu0 %v6595_v37  ;;  %v5612_v37 = vld [vmem:[%s9342_s6] ss:$0 sm:$0xff] }
 0x1c0   :  { %2116 = vmatpush1.bf16.msra.mxu0 %v6593_v38 }
 0x1c1   :  { %2117 = vmatprep.subr.bf16.mxu0 %v6598_v39 }
 0x1c4   :  { %2118 = vmatpush1.bf16.msra.mxu0 %v6596_v40 }
 0x1c5   :  { %2119 = vmatprep.subr.bf16.mxu0 %v6601_v41 }
 0x1c8   :  { %2120 = vmatpush1.bf16.msra.mxu0 %v6599_v42 }
 0x1c9   :  { %2121 = vmatprep.subr.bf16.mxu0 %v6604_v43 }
 0x1cc   :  { %2122 = vmatpush1.bf16.msra.mxu0 %v6602_v44 }
 0x1cd   :  { %2123 = vmatprep.subr.bf16.mxu0 %v6607_v45 }
 0x1d0   :  { %2124 = vmatpush1.bf16.msra.mxu0 %v6605_v46 }
 0x1d1   :  { %2125 = vmatprep.subr.bf16.mxu0 %v6610_v47  ;;  %v6656_v47 = vld [vmem:[%s9341_s9] sm:$0xff]  }
 0x1d4   :  { %2126 = vmatpush1.bf16.msra.mxu0 %v6608_v48 }
 0x1d5   :  { %2127 = vmatprep.subr.bf16.mxu0 %v6613_v49  ;;  %v6657_v49 = vld [vmem:[%s9341_s9 + $0x8] sm:$0xff]  }
 0x1d8   :  { %2128 = vmatpush1.bf16.msra.mxu0 %v6611_v50  ;;  %v6658_v50 = vld [vmem:[%s9341_s9 + $0x10] sm:$0xff]  }
 0x1d9   :  { %2129 = vmatprep.subr.bf16.mxu0 %v6616_v51  ;;  %v6659_v51 = vld [vmem:[%s9341_s9 + $0x18] sm:$0xff]  }
 0x1dc   :  { %2130 = vmatpush1.bf16.msra.mxu0 %v6614_v52  ;;  %v6660_v52 = vld [vmem:[%s9341_s9 + $0x20] sm:$0xff]  }
 0x1dd   :  { %2131 = vmatprep.subr.bf16.mxu0 %v6619_v53  ;;  %v6661_v53 = vld [vmem:[%s9341_s9 + $0x28] sm:$0xff]  }
 0x1e0   :  { %2132 = vmatpush1.bf16.msra.mxu0 %v6617_v54  ;;  %v6662_v54 = vld [vmem:[%s9341_s9 + $0x30] sm:$0xff]  }
 0x1e1   :  { %2133 = vmatprep.subr.bf16.mxu0 %v6622_v55  ;;  %v6663_v55 = vld [vmem:[%s9341_s9 + $0x38] sm:$0xff]  }
 0x1e4   :  { %2134 = vmatpush1.bf16.msra.mxu0 %v6620_v56  ;;  %v5629_v56 = vld [vmem:[%s9344_s8] ss:$0 sm:$0xff] }
 0x1e5   :  { %2135 = vmatprep.subr.bf16.mxu0 %v6625_v60 }
 0x1e8   :  { %2136 = vmatpush1.bf16.msra.mxu0 %v6623_v63 }
 0x1e9   :  { %2137 = vmatprep.subr.bf16.mxu0 %v6628_v0 }
 0x1ec   :  { %2138 = vmatpush1.bf16.msra.mxu0 %v6626_v1 }
 0x1ed   :  { %2139 = vmatprep.subr.bf16.mxu0 %v6631_v2 }
 0x1f0   :  { %2140 = vmatpush1.bf16.msra.mxu0 %v6629_v3 }
 0x1f3   :  { %2142 = vmatmul.mubr.bf16.vlgmr.msra.gmra.mrb[4].mxu0 %v8055_v29  ;;  %v6649_v29 = vld [vmem:[%s9372_s25 + $0x8] sm:$0xff]  }
 0x2c6   :  { %v2143_v14 = vpop.f32.mrb[4].mxu0 }
 0x2c7   :  { %v6173_v15 = vadd.f32 %v2143_v14, %v1739_v12  ;;  %v2145_v16 = vpop.f32.mrb[5].mxu0  ;;  %v6669_v14 = vld [vmem:[%s9343_s11 + $0x28] sm:$0xff]  }
 0x2c8   :  { %v6174_v17 = vadd.f32 %v2145_v16, %v1743_v13  ;;  %v2147_v18 = vpop.f32.mrb[6].mxu0  ;;  %v6671_v16 = vld [vmem:[%s9343_s11 + $0x38] sm:$0xff]  }
 0x2c9   :  { %v6175_v19 = vadd.f32 %v2147_v18, %v1739_v12  ;;  %v2149_v20 = vpop.f32.mrb[7].mxu0  ;;  %v2152_v22 = vmax.f32 %v6173_v15, 0.0  ;;  %v6667_v12 = vld [vmem:[%s9343_s11 + $0x18] sm:$0xff]   ;;  %v6670_v15 = vld [vmem:[%s9343_s11 + $0x30] sm:$0xff]  }
 0x2ca   :  { %v6176_v21 = vadd.f32 %v2149_v20, %v1743_v13  ;;  %v2153_v24 = vmax.f32 %v6174_v17, 0.0  ;;  %v6668_v13 = vld [vmem:[%s9343_s11 + $0x20] sm:$0xff]  }
 0x2cb   :  { %v2154_v23 = vmax.f32 %v6175_v19, 0.0  ;;  %v5638_v17 = vld [vmem:[%s9346_s10] ss:$0 sm:$0xff] }
 0x2cc   :  { %v2155_v25 = vmax.f32 %v6176_v21, 0.0 }
 0x2cd   :  { %v2156_v26 = vpack.c.bf16 %v2154_v23, %v2152_v22 }
 0x2ce   :  { %v2157_v27 = vpack.c.bf16 %v2155_v25, %v2153_v24  ;;  %v6672_v24 = vld [vmem:[%s9345_s13] sm:$0xff]  }
 0x2d0   :  { %2325 = vmatprep.mubr.bf16.mxu1 %v2157_v27  ;;  %v6674_v27 = vld [vmem:[%s9345_s13 + $0x10] sm:$0xff]  }
 0x2d1   :  { %2326 = vmatmul.mubr.bf16.vlgmr.msra.gmra.mrb[4].mxu1 %v2156_v26  ;;  %v6673_v26 = vld [vmem:[%s9345_s13 + $0x8] sm:$0xff]  }
 0x2d2   :  { %6086 = vmatpush3.bf16.msra.mxu1 %v6648_v28  ;;  %6101 = vmatprep.mubr.msk.bf16.mxu1 %vm7178_vm1, %v7177_v9  ;;  %v6675_v28 = vld [vmem:[%s9345_s13 + $0x18] sm:$0xff]  }
 0x2d3   :  { %6087 = vmatprep.subr.bf16.mxu1 %v7177_v9 }
 0x2d6   :  { %6088 = vmatpush3.bf16.msra.mxu1 %v6649_v29  ;;  %v6676_v29 = vld [vmem:[%s9345_s13 + $0x20] sm:$0xff]  }
 0x2d7   :  { %6089 = vmatprep.subr.bf16.mxu1 %v7177_v9 }
 0x2da   :  { %6090 = vmatpush3.bf16.msra.mxu1 %v6650_v30  ;;  %v6677_v30 = vld [vmem:[%s9345_s13 + $0x28] sm:$0xff]  }
 0x2db   :  { %6091 = vmatprep.subr.bf16.mxu1 %v7177_v9 }
 0x2de   :  { %6092 = vmatpush3.bf16.msra.mxu1 %v6651_v31  ;;  %v6678_v31 = vld [vmem:[%s9345_s13 + $0x30] sm:$0xff]  }
 0x2df   :  { %6093 = vmatprep.subr.bf16.mxu1 %v7177_v9 }
 0x2e2   :  { %6094 = vmatpush3.bf16.msra.mxu1 %v6652_v32  ;;  %v6679_v32 = vld [vmem:[%s9345_s13 + $0x38] sm:$0xff]  }
 0x2e3   :  { %6095 = vmatprep.subr.bf16.mxu1 %v7177_v9 }
 0x2e6   :  { %6096 = vmatpush3.bf16.msra.mxu1 %v6653_v33  ;;  %v6682_v33 = vld [vmem:[%s9347_s15 + $0x4] ss:$8 sps:$4 sm:$0xff]  }
 0x2e7   :  { %6097 = vmatprep.subr.bf16.mxu1 %v7177_v9 }
 0x2ea   :  { %6098 = vmatpush3.bf16.msra.mxu1 %v6654_v34  ;;  %v5647_v34 = vld [vmem:[%s9348_s12] ss:$0 sm:$0xff] }
 0x2eb   :  { %6099 = vmatprep.subr.bf16.mxu1 %v7177_v9 }
 0x2ee   :  { %6100 = vmatpush3.bf16.msra.mxu1 %v6655_v35 }
 0x2ef   :  { %6105 = vmatprep.subr.bf16.mxu1 %v7177_v9 }
 0x3a4   :  { %v5999_v36 = vpop.f32.mrb[4].mxu1 }
 0x3a5   :  { %v6000_v38 = vpop.f32.mrb[5].mxu1 }
 0x3a6   :  { %v6001_v39 = vadd.f32 %v6000_v38, %v5999_v36  ;;  %v6002_v40 = vpop.f32.mrb[6].mxu1 }
 0x3a7   :  { %v6003_v41 = vpop.f32.mrb[7].mxu1 }
 0x3a8   :  { %v2328_v42 = vadd.f32 %v6001_v39, %v5612_v37  ;;  %v6004_v43 = vadd.f32 %v6003_v41, %v6002_v40 }
 0x3aa   :  { %v2331_v44 = vadd.f32 %v6004_v43, %v5612_v37  ;;  %v2334_v45 = vmax.f32 %v2328_v42, 0.0  ;;  %v6680_v42 = vld [vmem:[%s9347_s15] ss:$8 sps:$4 sm:$0xff]  }
 0x3ac   :  { %v2335_v46 = vmax.f32 %v2331_v44, 0.0  ;;  %v6685_v44 = vld [vmem:[%s9347_s15 + $0x14] ss:$8 sps:$4 sm:$0xff]  }
 0x3ae   :  { %v2336_v48 = vpack.c.bf16 %v2335_v46, %v2334_v45  ;;  %v6683_v45 = vld [vmem:[%s9347_s15 + $0x10] ss:$8 sps:$4 sm:$0xff]   ;;  %v6688_v46 = vld [vmem:[%s9347_s15 + $0x24] ss:$8 sps:$4 sm:$0xff]  }
 0x3b0   :  { %6102 = vmatmul.mubr.bf16.vlgmr.msra.gmra.mrb[8].mxu1 %v2336_v48  ;;  %v6691_v48 = vld [vmem:[%s9347_s15 + $0x34] ss:$8 sps:$4 sm:$0xff]  }
 0x3b1   :  { %6106 = vmatpush3.bf16.msra.mxu1 %v6656_v47  ;;  %6121 = vmatprep.mubr.msk.bf16.mxu1 %vm7178_vm1, %v7177_v9  ;;  %v6686_v47 = vld [vmem:[%s9347_s15 + $0x20] ss:$8 sps:$4 sm:$0xff]  }
 0x3b2   :  { %6107 = vmatprep.subr.bf16.mxu1 %v7177_v9 }
 0x3b5   :  { %6108 = vmatpush3.bf16.msra.mxu1 %v6657_v49  ;;  %v6694_v49 = vld [vmem:[%s9347_s15 + $0x44] ss:$8 sps:$4 sm:$0xff]  }
 0x3b6   :  { %6109 = vmatprep.subr.bf16.mxu1 %v7177_v9 }
 0x3b9   :  { %6110 = vmatpush3.bf16.msra.mxu1 %v6658_v50  ;;  %v6692_v50 = vld [vmem:[%s9347_s15 + $0x40] ss:$8 sps:$4 sm:$0xff]  }
 0x3ba   :  { %6111 = vmatprep.subr.bf16.mxu1 %v7177_v9 }
 0x3bd   :  { %6112 = vmatpush3.bf16.msra.mxu1 %v6659_v51  ;;  %v6697_v51 = vld [vmem:[%s9347_s15 + $0x54] ss:$8 sps:$4 sm:$0xff]  }
 0x3be   :  { %6113 = vmatprep.subr.bf16.mxu1 %v7177_v9 }
 0x3c1   :  { %6114 = vmatpush3.bf16.msra.mxu1 %v6660_v52  ;;  %v6695_v52 = vld [vmem:[%s9347_s15 + $0x50] ss:$8 sps:$4 sm:$0xff]  }
 0x3c2   :  { %6115 = vmatprep.subr.bf16.mxu1 %v7177_v9 }
 0x3c5   :  { %6116 = vmatpush3.bf16.msra.mxu1 %v6661_v53  ;;  %v6700_v53 = vld [vmem:[%s9347_s15 + $0x64] ss:$8 sps:$4 sm:$0xff]  }
 0x3c6   :  { %6117 = vmatprep.subr.bf16.mxu1 %v7177_v9 }
 0x3c9   :  { %6118 = vmatpush3.bf16.msra.mxu1 %v6662_v54  ;;  %v6698_v54 = vld [vmem:[%s9347_s15 + $0x60] ss:$8 sps:$4 sm:$0xff]  }
 0x3ca   :  { %6119 = vmatprep.subr.bf16.mxu1 %v7177_v9 }
 0x3cd   :  { %6120 = vmatpush3.bf16.msra.mxu1 %v6663_v55  ;;  %v6703_v55 = vld [vmem:[%s9347_s15 + $0x74] ss:$8 sps:$4 sm:$0xff]  }
 0x3ce   :  { %6125 = vmatprep.subr.bf16.mxu1 %v7177_v9 }
 0x483   :  { %v2442_v60 = vpop.f32.mrb[8].mxu1 }
 0x484   :  { %v2443_v63 = vadd.f32 %v5629_v56, %v2442_v60  ;;  %v6103_v0 = vpop.f32.mrb[9].mxu1  ;;  %v6704_v60 = vld [vmem:[%s9349_s17] ss:$16 sps:$4 sm:$0xff]  }
 0x485   :  { %v2445_v1 = vpop.f32.mrb[10].mxu1  ;;  %v6709_v0 = vld [vmem:[%s9349_s17 + $0xc] ss:$16 sps:$4 sm:$0xff]  }
 0x486   :  { %v2446_v2 = vadd.f32 %v5629_v56, %v2445_v1  ;;  %v6104_v3 = vpop.f32.mrb[11].mxu1  ;;  %v2449_v4 = vmax.f32 %v2443_v63, 0.0  ;;  %v6701_v56 = vld [vmem:[%s9347_s15 + $0x70] ss:$8 sps:$4 sm:$0xff]   ;;  %v6706_v63 = vld [vmem:[%s9349_s17 + $0x4] ss:$16 sps:$4 sm:$0xff]  }
 0x487   :  { %3358 = vmatprep.subr.bf16.mxu0 %v6706_v63  ;;  %v6712_v1 = vld [vmem:[%s9349_s17 + $0x24] ss:$16 sps:$4 sm:$0xff]   ;;  %v6775_v63 = vld [vmem:[%s9349_s17 + $0x16c] ss:$16 sps:$4 sm:$0xff]  }
 0x488   :  { %v2450_v5 = vmax.f32 %v2446_v2, 0.0  ;;  %3359 = vmatpush1.bf16.msra.mxu0 %v6704_v60  ;;  %v6710_v2 = vld [vmem:[%s9349_s17 + $0x20] ss:$16 sps:$4 sm:$0xff]   ;;  %v6718_v3 = vld [vmem:[%s9349_s17 + $0x44] ss:$16 sps:$4 sm:$0xff]  }
 0x489   :  { %3360 = vmatprep.subr.bf16.mxu0 %v6712_v1  ;;  %v6767_v60 = vld [vmem:[%s9349_s17 + $0x148] ss:$16 sps:$4 sm:$0xff]   ;;  %v6781_v1 = vld [vmem:[%s9349_s17 + $0x18c] ss:$16 sps:$4 sm:$0xff]  }
 0x48a   :  { %v2451_v7 = vpack.c.bf16 %v2450_v5, %v2449_v4  ;;  %v6716_v4 = vld [vmem:[%s9349_s17 + $0x40] ss:$16 sps:$4 sm:$0xff]   ;;  %v6724_v5 = vld [vmem:[%s9349_s17 + $0x64] ss:$16 sps:$4 sm:$0xff]  }
 0x48c   :  { %6122 = vmatmul.mubr.bf16.vlgmr.msra.gmra.mrb[12].mxu1 %v2451_v7  ;;  %3361 = vmatpush1.bf16.msra.mxu0 %v6710_v2  ;;  %v6730_v7 = vld [vmem:[%s9349_s17 + $0x84] ss:$16 sps:$4 sm:$0xff]   ;;  %v6779_v2 = vld [vmem:[%s9349_s17 + $0x188] ss:$16 sps:$4 sm:$0xff]  }
 0x48d   :  { %6126 = vmatpush3.bf16.msra.mxu1 %v6664_v6  ;;  %6141 = vmatprep.mubr.msk.bf16.mxu1 %vm7178_vm1, %v7177_v9  ;;  %v6722_v6 = vld [vmem:[%s9349_s17 + $0x60] ss:$16 sps:$4 sm:$0xff]  }
 0x48e   :  { %6127 = vmatprep.subr.bf16.mxu1 %v7177_v9  ;;  %3362 = vmatprep.subr.bf16.mxu0 %v6718_v3  ;;  %v6787_v3 = vld [vmem:[%s9349_s17 + $0x1ac] ss:$16 sps:$4 sm:$0xff]  }
 0x490   :  { %3363 = vmatpush1.bf16.msra.mxu0 %v6716_v4  ;;  %v6785_v4 = vld [vmem:[%s9349_s17 + $0x1a8] ss:$16 sps:$4 sm:$0xff]  }
 0x491   :  { %6128 = vmatpush3.bf16.msra.mxu1 %v6665_v8  ;;  %3364 = vmatprep.subr.bf16.mxu0 %v6724_v5  ;;  %v6728_v8 = vld [vmem:[%s9349_s17 + $0x80] ss:$16 sps:$4 sm:$0xff]   ;;  %v6790_v5 = vld [vmem:[%s9349_s17 + $0x1c4] ss:$16 sps:$4 sm:$0xff]  }
 0x492   :  { %6129 = vmatprep.subr.bf16.mxu1 %v7177_v9 }
 0x494   :  { %3365 = vmatpush1.bf16.msra.mxu0 %v6722_v6  ;;  %v6793_v6 = vld [vmem:[%s9349_s17 + $0x1cc] ss:$16 sps:$4 sm:$0xff]  }
 0x495   :  { %6130 = vmatpush3.bf16.msra.mxu1 %v6666_v10  ;;  %3366 = vmatprep.subr.bf16.mxu0 %v6730_v7  ;;  %v6736_v10 = vld [vmem:[%s9349_s17 + $0xa4] ss:$16 sps:$4 sm:$0xff]   ;;  %v6788_v7 = vld [vmem:[%s9349_s17 + $0x1c0] ss:$16 sps:$4 sm:$0xff]  }
 0x496   :  { %6131 = vmatprep.subr.bf16.mxu1 %v7177_v9 }
 0x498   :  { %3367 = vmatpush1.bf16.msra.mxu0 %v6728_v8  ;;  %v6791_v8 = vld [vmem:[%s9349_s17 + $0x1c8] ss:$16 sps:$4 sm:$0xff]  }
 0x499   :  { %6132 = vmatpush3.bf16.msra.mxu1 %v6667_v12  ;;  %v6734_v12 = vld [vmem:[%s9349_s17 + $0xa0] ss:$16 sps:$4 sm:$0xff]   ;;  %3368 = vmatprep.subr.bf16.mxu0 %v6736_v10  ;;  %v6796_v10 = vld [vmem:[%s9349_s17 + $0x1e4] ss:$16 sps:$4 sm:$0xff]  }
 0x49a   :  { %6133 = vmatprep.subr.bf16.mxu1 %v7177_v9 }
 0x49c   :  { %3369 = vmatpush1.bf16.msra.mxu0 %v6734_v12  ;;  %v6799_v12 = vld [vmem:[%s9349_s17 + $0x1ec] ss:$16 sps:$4 sm:$0xff]  }
 0x49d   :  { %6134 = vmatpush3.bf16.msra.mxu1 %v6668_v13  ;;  %v6742_v13 = vld [vmem:[%s9349_s17 + $0xc4] ss:$16 sps:$4 sm:$0xff]  }
 0x49e   :  { %6135 = vmatprep.subr.bf16.mxu1 %v7177_v9  ;;  %3370 = vmatprep.subr.bf16.mxu0 %v6742_v13  ;;  %v6794_v13 = vld [vmem:[%s9349_s17 + $0x1e0] ss:$16 sps:$4 sm:$0xff]  }
 0x4a1   :  { %6136 = vmatpush3.bf16.msra.mxu1 %v6669_v14  ;;  %v6740_v14 = vld [vmem:[%s9349_s17 + $0xc0] ss:$16 sps:$4 sm:$0xff]  }
 0x4a2   :  { %6137 = vmatprep.subr.bf16.mxu1 %v7177_v9  ;;  %3371 = vmatpush1.bf16.msra.mxu0 %v6740_v14  ;;  %v6797_v14 = vld [vmem:[%s9349_s17 + $0x1e8] ss:$16 sps:$4 sm:$0xff]  }
 0x4a5   :  { %6138 = vmatpush3.bf16.msra.mxu1 %v6670_v15  ;;  %v6748_v15 = vld [vmem:[%s9349_s17 + $0xe4] ss:$16 sps:$4 sm:$0xff]  }
 0x4a6   :  { %6139 = vmatprep.subr.bf16.mxu1 %v7177_v9  ;;  %3372 = vmatprep.subr.bf16.mxu0 %v6748_v15  ;;  %v6802_v15 = vld [vmem:[%s9351_s19 + $0x4] ss:$28 sps:$4 sm:$0xff]  }
 0x4a9   :  { %6140 = vmatpush3.bf16.msra.mxu1 %v6671_v16  ;;  %v6746_v16 = vld [vmem:[%s9349_s17 + $0xe0] ss:$16 sps:$4 sm:$0xff]  }
 0x4aa   :  { %6145 = vmatprep.subr.bf16.mxu1 %v7177_v9  ;;  %3373 = vmatpush1.bf16.msra.mxu0 %v6746_v16  ;;  %v6805_v16 = vld [vmem:[%s9351_s19 + $0xc] ss:$28 sps:$4 sm:$0xff]  }
 0x55f   :  { %v2557_v18 = vpop.f32.mrb[12].mxu1 }
 0x560   :  { %v6123_v19 = vpop.f32.mrb[13].mxu1  ;;  %v2558_v21 = vadd.f32 %v5638_v17, %v2557_v18  ;;  %v6752_v18 = vld [vmem:[%s9349_s17 + $0x100] ss:$16 sps:$4 sm:$0xff]  }
 0x561   :  { %v2560_v20 = vpop.f32.mrb[14].mxu1  ;;  %v6760_v19 = vld [vmem:[%s9349_s17 + $0x124] ss:$16 sps:$4 sm:$0xff]  }
 0x562   :  { %v2561_v22 = vadd.f32 %v5638_v17, %v2560_v20  ;;  %v6124_v23 = vpop.f32.mrb[15].mxu1  ;;  %v6754_v17 = vld [vmem:[%s9349_s17 + $0x104] ss:$16 sps:$4 sm:$0xff]   ;;  %v6758_v20 = vld [vmem:[%s9349_s17 + $0x120] ss:$16 sps:$4 sm:$0xff]  }
 0x563   :  { %3374 = vmatprep.subr.bf16.mxu0 %v6754_v17  ;;  %v6772_v23 = vld [vmem:[%s9349_s17 + $0x164] ss:$16 sps:$4 sm:$0xff]   ;;  %v2811_v17 = vld [vmem:[%s9352_s16] sm:$0x3] }
 0x564   :  { %v2564_v25 = vpack.c.bf16 %v2561_v22, %v2558_v21  ;;  %3375 = vmatpush1.bf16.msra.mxu0 %v6752_v18  ;;  %v6766_v21 = vld [vmem:[%s9349_s17 + $0x144] ss:$16 sps:$4 sm:$0xff]   ;;  %v6764_v22 = vld [vmem:[%s9349_s17 + $0x140] ss:$16 sps:$4 sm:$0xff]   ;;  %v2816_v18 = vrot.slane %v2811_v17, %v8037_v58 }
 0x565   :  { %3376 = vmatprep.subr.bf16.mxu0 %v6760_v19  ;;  %v2820_v19 = vrot.slane %v2811_v17, %v8046_v61  ;;  %v6868_v17 = vld [vmem:[%s9351_s19 + $0x26c] ss:$28 sps:$4 sm:$0xff]  }
 0x566   :  { %6142 = vmatmul.mubr.bf16.vlgmr.msra.gmra.mrb[16].mxu1 %v2564_v25  ;;  %v6778_v25 = vld [vmem:[%s9349_s17 + $0x184] ss:$16 sps:$4 sm:$0xff]  }
 0x567   :  { %6146 = vmatpush3.bf16.msra.mxu1 %v6672_v24  ;;  %6161 = vmatprep.mubr.msk.bf16.mxu1 %vm7178_vm1, %v7177_v9  ;;  %v6770_v24 = vld [vmem:[%s9349_s17 + $0x160] ss:$16 sps:$4 sm:$0xff]  }
 0x568   :  { %6147 = vmatprep.subr.bf16.mxu1 %v7177_v9  ;;  %3377 = vmatpush1.bf16.msra.mxu0 %v6758_v20 }
 0x569   :  { %3378 = vmatprep.subr.bf16.mxu0 %v6766_v21 }
 0x56b   :  { %6148 = vmatpush3.bf16.msra.mxu1 %v6673_v26  ;;  %v6776_v26 = vld [vmem:[%s9349_s17 + $0x180] ss:$16 sps:$4 sm:$0xff]  }
 0x56c   :  { %6149 = vmatprep.subr.bf16.mxu1 %v7177_v9  ;;  %3379 = vmatpush1.bf16.msra.mxu0 %v6764_v22 }
 0x56d   :  { %3380 = vmatprep.subr.bf16.mxu0 %v6772_v23 }
 0x56f   :  { %6150 = vmatpush3.bf16.msra.mxu1 %v6674_v27  ;;  %v6784_v27 = vld [vmem:[%s9349_s17 + $0x1a4] ss:$16 sps:$4 sm:$0xff]  }
 0x570   :  { %6151 = vmatprep.subr.bf16.mxu1 %v7177_v9  ;;  %3381 = vmatpush1.bf16.msra.mxu0 %v6770_v24 }
 0x571   :  { %3382 = vmatprep.subr.bf16.mxu0 %v6778_v25 }
 0x573   :  { %6152 = vmatpush3.bf16.msra.mxu1 %v6675_v28  ;;  %v6782_v28 = vld [vmem:[%s9349_s17 + $0x1a0] ss:$16 sps:$4 sm:$0xff]  }
 0x574   :  { %6153 = vmatprep.subr.bf16.mxu1 %v7177_v9  ;;  %3383 = vmatpush1.bf16.msra.mxu0 %v6776_v26 }
 0x575   :  { %3384 = vmatprep.subr.bf16.mxu0 %v6784_v27 }
 0x577   :  { %6154 = vmatpush3.bf16.msra.mxu1 %v6676_v29  ;;  %v5656_v29 = vld [vmem:[%s9350_s14] ss:$0 sm:$0xff] }
 0x578   :  { %6155 = vmatprep.subr.bf16.mxu1 %v7177_v9  ;;  %3385 = vmatpush1.bf16.msra.mxu0 %v6782_v28 }
 0x579   :  { %3386 = vmatprep.subr.bf16.mxu0 %v6790_v5  ;;  %v6848_v5 = vld [vmem:[%s9351_s19 + $0x1c0] ss:$28 sps:$4 sm:$0xff]  }
 0x57b   :  { %6156 = vmatpush3.bf16.msra.mxu1 %v6677_v30 }
 0x57c   :  { %6157 = vmatprep.subr.bf16.mxu1 %v7177_v9  ;;  %3387 = vmatpush1.bf16.msra.mxu0 %v6788_v7  ;;  %v6856_v7 = vld [vmem:[%s9351_s19 + $0x1fc] ss:$28 sps:$4 sm:$0xff]  }
 0x57d   :  { %3388 = vmatprep.subr.bf16.mxu0 %v6796_v10  ;;  %v6854_v10 = vld [vmem:[%s9351_s19 + $0x1f8] ss:$28 sps:$4 sm:$0xff]  }
 0x57f   :  { %6158 = vmatpush3.bf16.msra.mxu1 %v6678_v31 }
 0x580   :  { %6159 = vmatprep.subr.bf16.mxu1 %v7177_v9  ;;  %3389 = vmatpush1.bf16.msra.mxu0 %v6794_v13  ;;  %v6862_v13 = vld [vmem:[%s9351_s19 + $0x234] ss:$28 sps:$4 sm:$0xff]  }
 0x581   :  { %4901 = vmatprep.subr.bf16.mxu0 %v6802_v15  ;;  %v6860_v15 = vld [vmem:[%s9351_s19 + $0x230] ss:$28 sps:$4 sm:$0xff]  }
 0x583   :  { %6160 = vmatpush3.bf16.msra.mxu1 %v6679_v32 }
 0x584   :  { %2903 = vmatprep.subr.bf16.mxu1 %v6682_v33 }
 0x639   :  { %v2670_v35 = vpop.f32.mrb[16].mxu1 }
 0x63a   :  { %v2671_v36 = vadd.f32 %v5647_v34, %v2670_v35  ;;  %v6143_v37 = vpop.f32.mrb[17].mxu1 }
 0x63b   :  { %v2673_v38 = vpop.f32.mrb[18].mxu1 }
 0x63c   :  { %v2674_v39 = vadd.f32 %v5647_v34, %v2673_v38  ;;  %v6144_v9 = vpop.f32.mrb[19].mxu1  ;;  %v2677_v40 = vmax.f32 %v2671_v36, 0.0  ;;  %v6707_v38 = vld [vmem:[%s9349_s17 + $0x8] ss:$16 sps:$4 sm:$0xff]  }
 0x63d   :  { %v6715_v9 = vld [vmem:[%s9349_s17 + $0x2c] ss:$16 sps:$4 sm:$0xff]  }
 0x63e   :  { %v2678_v41 = vmax.f32 %v2674_v39, 0.0 }
 0x640   :  { %v2679_v43 = vpack.c.bf16 %v2678_v41, %v2677_v40  ;;  %v6713_v40 = vld [vmem:[%s9349_s17 + $0x28] ss:$16 sps:$4 sm:$0xff]   ;;  %v6721_v41 = vld [vmem:[%s9349_s17 + $0x4c] ss:$16 sps:$4 sm:$0xff]  }
 0x642   :  { %6162 = vmatmul.mubr.bf16.vlgmr.msra.gmra.mrb[20].mxu1 %v2679_v43  ;;  %v6727_v43 = vld [vmem:[%s9349_s17 + $0x6c] ss:$16 sps:$4 sm:$0xff]  }
 0x643   :  { %2904 = vmatpush1.bf16.msra.mxu1 %v6680_v42  ;;  %2935 = vmatprep.mubr.bf16.mxu1 %v7176_v11  ;;  %v6689_v11 = vld [vmem:[%s9347_s15 + $0x30] ss:$8 sps:$4 sm:$0xff]  }
 0x644   :  { %2905 = vmatprep.subr.bf16.mxu1 %v6685_v44  ;;  %v6719_v42 = vld [vmem:[%s9349_s17 + $0x48] ss:$16 sps:$4 sm:$0xff]  }
 0x645   :  { %v6725_v44 = vld [vmem:[%s9349_s17 + $0x68] ss:$16 sps:$4 sm:$0xff]  }
 0x647   :  { %2906 = vmatpush1.bf16.msra.mxu1 %v6683_v45  ;;  %v6733_v45 = vld [vmem:[%s9349_s17 + $0x8c] ss:$16 sps:$4 sm:$0xff]  }
 0x648   :  { %2907 = vmatprep.subr.bf16.mxu1 %v6688_v46  ;;  %v6731_v46 = vld [vmem:[%s9349_s17 + $0x88] ss:$16 sps:$4 sm:$0xff]  }
 0x64b   :  { %2908 = vmatpush1.bf16.msra.mxu1 %v6686_v47  ;;  %v6739_v47 = vld [vmem:[%s9349_s17 + $0xac] ss:$16 sps:$4 sm:$0xff]  }
 0x64c   :  { %2909 = vmatprep.subr.bf16.mxu1 %v6691_v48  ;;  %v6737_v48 = vld [vmem:[%s9349_s17 + $0xa8] ss:$16 sps:$4 sm:$0xff]  }
 0x64f   :  { %2910 = vmatpush1.bf16.msra.mxu1 %v6689_v11  ;;  %v6745_v11 = vld [vmem:[%s9349_s17 + $0xcc] ss:$16 sps:$4 sm:$0xff]  }
 0x650   :  { %2911 = vmatprep.subr.bf16.mxu1 %v6694_v49  ;;  %v6743_v49 = vld [vmem:[%s9349_s17 + $0xc8] ss:$16 sps:$4 sm:$0xff]  }
 0x653   :  { %2912 = vmatpush1.bf16.msra.mxu1 %v6692_v50  ;;  %v6751_v50 = vld [vmem:[%s9349_s17 + $0xec] ss:$16 sps:$4 sm:$0xff]  }
 0x654   :  { %2913 = vmatprep.subr.bf16.mxu1 %v6697_v51  ;;  %v6749_v51 = vld [vmem:[%s9349_s17 + $0xe8] ss:$16 sps:$4 sm:$0xff]  }
 0x657   :  { %2914 = vmatpush1.bf16.msra.mxu1 %v6695_v52  ;;  %v6757_v52 = vld [vmem:[%s9349_s17 + $0x10c] ss:$16 sps:$4 sm:$0xff]  }
 0x658   :  { %2915 = vmatprep.subr.bf16.mxu1 %v6700_v53  ;;  %v6755_v53 = vld [vmem:[%s9349_s17 + $0x108] ss:$16 sps:$4 sm:$0xff]  }
 0x65b   :  { %2916 = vmatpush1.bf16.msra.mxu1 %v6698_v54  ;;  %v6763_v54 = vld [vmem:[%s9349_s17 + $0x12c] ss:$16 sps:$4 sm:$0xff]  }
 0x65c   :  { %2917 = vmatprep.subr.bf16.mxu1 %v6703_v55  ;;  %v6761_v55 = vld [vmem:[%s9349_s17 + $0x128] ss:$16 sps:$4 sm:$0xff]  }
 0x65f   :  { %2918 = vmatpush1.bf16.msra.mxu1 %v6701_v56  ;;  %v6769_v56 = vld [vmem:[%s9349_s17 + $0x14c] ss:$16 sps:$4 sm:$0xff]  }
 0x660   :  { %3401 = vmatprep.subr.bf16.mxu1 %v6709_v0  ;;  %v6773_v0 = vld [vmem:[%s9349_s17 + $0x168] ss:$16 sps:$4 sm:$0xff]  }
 0x715   :  { %v2785_v30 = vpop.f32.mrb[20].mxu1 }
 0x716   :  { %v2786_v31 = vadd.f32 %v5656_v29, %v2785_v30  ;;  %v6163_v32 = vpop.f32.mrb[21].mxu1 }
 0x717   :  { %v2788_v33 = vpop.f32.mrb[22].mxu1 }
 0x718   :  { %v2789_v34 = vadd.f32 %v5656_v29, %v2788_v33  ;;  %v6164_v35 = vpop.f32.mrb[23].mxu1  ;;  %v2792_v36 = vmax.f32 %v2786_v31, 0.0 }
 0x719   :  { %v6803_v35 = vld [vmem:[%s9351_s19 + $0x8] ss:$28 sps:$4 sm:$0xff]  }
 0x71a   :  { %v2793_v37 = vmax.f32 %v2789_v34, 0.0  ;;  %v6800_v34 = vld [vmem:[%s9351_s19] ss:$28 sps:$4 sm:$0xff]  }
 0x71c   :  { %v2794_v39 = vpack.c.bf16 %v2793_v37, %v2792_v36  ;;  %v6808_v36 = vld [vmem:[%s9351_s19 + $0x3c] ss:$28 sps:$4 sm:$0xff]   ;;  %v6811_v37 = vld [vmem:[%s9351_s19 + $0x44] ss:$28 sps:$4 sm:$0xff]  }
 0x71e   :  { %2936 = vmatmul.mubr.bf16.vlgmr.msra.gmra.mrb[24].mxu1 %v2794_v39  ;;  %v6809_v39 = vld [vmem:[%s9351_s19 + $0x40] ss:$28 sps:$4 sm:$0xff]  }
 0x71f   :  { %3402 = vmatpush1.bf16.msra.mxu1 %v6707_v38  ;;  %v6806_v38 = vld [vmem:[%s9351_s19 + $0x38] ss:$28 sps:$4 sm:$0xff]  }
 0x720   :  { %3403 = vmatprep.subr.bf16.mxu1 %v6715_v9  ;;  %v6814_v9 = vld [vmem:[%s9351_s19 + $0x74] ss:$28 sps:$4 sm:$0xff]  }
 0x723   :  { %3404 = vmatpush1.bf16.msra.mxu1 %v6713_v40  ;;  %v6817_v40 = vld [vmem:[%s9351_s19 + $0x7c] ss:$28 sps:$4 sm:$0xff]  }
 0x724   :  { %3405 = vmatprep.subr.bf16.mxu1 %v6721_v41  ;;  %v6812_v41 = vld [vmem:[%s9351_s19 + $0x70] ss:$28 sps:$4 sm:$0xff]  }
 0x727   :  { %3406 = vmatpush1.bf16.msra.mxu1 %v6719_v42  ;;  %v6815_v42 = vld [vmem:[%s9351_s19 + $0x78] ss:$28 sps:$4 sm:$0xff]  }
 0x728   :  { %3407 = vmatprep.subr.bf16.mxu1 %v6727_v43  ;;  %v6820_v43 = vld [vmem:[%s9351_s19 + $0xac] ss:$28 sps:$4 sm:$0xff]  }
 0x72b   :  { %3408 = vmatpush1.bf16.msra.mxu1 %v6725_v44  ;;  %v6823_v44 = vld [vmem:[%s9351_s19 + $0xb4] ss:$28 sps:$4 sm:$0xff]  }
 0x72c   :  { %3409 = vmatprep.subr.bf16.mxu1 %v6733_v45  ;;  %v6818_v45 = vld [vmem:[%s9351_s19 + $0xa8] ss:$28 sps:$4 sm:$0xff]  }
 0x72f   :  { %3410 = vmatpush1.bf16.msra.mxu1 %v6731_v46  ;;  %v6821_v46 = vld [vmem:[%s9351_s19 + $0xb0] ss:$28 sps:$4 sm:$0xff]  }
 0x730   :  { %3411 = vmatprep.subr.bf16.mxu1 %v6739_v47  ;;  %v6826_v47 = vld [vmem:[%s9351_s19 + $0xe4] ss:$28 sps:$4 sm:$0xff]  }
 0x733   :  { %3412 = vmatpush1.bf16.msra.mxu1 %v6737_v48  ;;  %v6829_v48 = vld [vmem:[%s9351_s19 + $0xec] ss:$28 sps:$4 sm:$0xff]  }
 0x734   :  { %3413 = vmatprep.subr.bf16.mxu1 %v6745_v11  ;;  %v6824_v11 = vld [vmem:[%s9351_s19 + $0xe0] ss:$28 sps:$4 sm:$0xff]  }
 0x737   :  { %3414 = vmatpush1.bf16.msra.mxu1 %v6743_v49  ;;  %v6827_v49 = vld [vmem:[%s9351_s19 + $0xe8] ss:$28 sps:$4 sm:$0xff]  }
 0x738   :  { %3415 = vmatprep.subr.bf16.mxu1 %v6751_v50  ;;  %v6832_v50 = vld [vmem:[%s9351_s19 + $0x11c] ss:$28 sps:$4 sm:$0xff]  }
 0x73b   :  { %3416 = vmatpush1.bf16.msra.mxu1 %v6749_v51  ;;  %v6835_v51 = vld [vmem:[%s9351_s19 + $0x124] ss:$28 sps:$4 sm:$0xff]  }
 0x73c   :  { %3417 = vmatprep.subr.bf16.mxu1 %v6757_v52  ;;  %v6830_v52 = vld [vmem:[%s9351_s19 + $0x118] ss:$28 sps:$4 sm:$0xff]  }
 0x73f   :  { %3418 = vmatpush1.bf16.msra.mxu1 %v6755_v53  ;;  %v6833_v53 = vld [vmem:[%s9351_s19 + $0x120] ss:$28 sps:$4 sm:$0xff]  }
 0x740   :  { %3419 = vmatprep.subr.bf16.mxu1 %v6763_v54  ;;  %v6838_v54 = vld [vmem:[%s9351_s19 + $0x154] ss:$28 sps:$4 sm:$0xff]  }
 0x743   :  { %3420 = vmatpush1.bf16.msra.mxu1 %v6761_v55  ;;  %v6841_v55 = vld [vmem:[%s9351_s19 + $0x15c] ss:$28 sps:$4 sm:$0xff]  }
 0x744   :  { %3421 = vmatprep.subr.bf16.mxu1 %v6769_v56  ;;  %v6836_v56 = vld [vmem:[%s9351_s19 + $0x150] ss:$28 sps:$4 sm:$0xff]  }
 0x747   :  { %3422 = vmatpush1.bf16.msra.mxu1 %v6767_v60  ;;  %v6839_v60 = vld [vmem:[%s9351_s19 + $0x158] ss:$28 sps:$4 sm:$0xff]  }
 0x748   :  { %3423 = vmatprep.subr.bf16.mxu1 %v6775_v63  ;;  %v6844_v63 = vld [vmem:[%s9351_s19 + $0x18c] ss:$28 sps:$4 sm:$0xff]  }
 0x74b   :  { %3424 = vmatpush1.bf16.msra.mxu1 %v6773_v0  ;;  %v6847_v0 = vld [vmem:[%s9351_s19 + $0x194] ss:$28 sps:$4 sm:$0xff]  }
 0x74c   :  { %3425 = vmatprep.subr.bf16.mxu1 %v6781_v1  ;;  %v6842_v1 = vld [vmem:[%s9351_s19 + $0x188] ss:$28 sps:$4 sm:$0xff]  }
 0x74f   :  { %3426 = vmatpush1.bf16.msra.mxu1 %v6779_v2  ;;  %v6845_v2 = vld [vmem:[%s9351_s19 + $0x190] ss:$28 sps:$4 sm:$0xff]  }
 0x750   :  { %3427 = vmatprep.subr.bf16.mxu1 %v6787_v3  ;;  %v6850_v3 = vld [vmem:[%s9351_s19 + $0x1c4] ss:$28 sps:$4 sm:$0xff]  }
 0x753   :  { %3428 = vmatpush1.bf16.msra.mxu1 %v6785_v4  ;;  %v6853_v4 = vld [vmem:[%s9351_s19 + $0x1cc] ss:$28 sps:$4 sm:$0xff]  }
 0x754   :  { %3429 = vmatprep.subr.bf16.mxu1 %v6793_v6  ;;  %v6851_v6 = vld [vmem:[%s9351_s19 + $0x1c8] ss:$28 sps:$4 sm:$0xff]  }
 0x757   :  { %3430 = vmatpush1.bf16.msra.mxu1 %v6791_v8  ;;  %v6859_v8 = vld [vmem:[%s9351_s19 + $0x204] ss:$28 sps:$4 sm:$0xff]  }
 0x758   :  { %3431 = vmatprep.subr.bf16.mxu1 %v6799_v12  ;;  %v6857_v12 = vld [vmem:[%s9351_s19 + $0x200] ss:$28 sps:$4 sm:$0xff]  }
 0x75b   :  { %3432 = vmatpush1.bf16.msra.mxu1 %v6797_v14  ;;  %v6865_v14 = vld [vmem:[%s9351_s19 + $0x23c] ss:$28 sps:$4 sm:$0xff]  }
 0x75c   :  { %4987 = vmatprep.subr.bf16.mxu1 %v6805_v16  ;;  %v6863_v16 = vld [vmem:[%s9351_s19 + $0x238] ss:$28 sps:$4 sm:$0xff]  }
 0x7f1   :  { %v2937_v20 = vpop.f32.mrb[24].mxu1 }
 0x7f2   :  { %v2938_v21 = vadd.f32 %v2937_v20, %v2816_v18  ;;  %v2939_v22 = vpop.f32.mrb[25].mxu1  ;;  %v6869_v20 = vld [vmem:[%s9351_s19 + $0x270] ss:$28 sps:$4 sm:$0xff]  }
 0x7f3   :  { %v2940_v23 = vadd.f32 %v2939_v22, %v2820_v19  ;;  %v2941_v24 = vpop.f32.mrb[26].mxu1  ;;  %v6877_v22 = vld [vmem:[%s9351_s19 + $0x2ac] ss:$28 sps:$4 sm:$0xff]  }
 0x7f4   :  { %v2942_v25 = vadd.f32 %v2941_v24, %v2816_v18  ;;  %v2943_v26 = vpop.f32.mrb[27].mxu1  ;;  %v2946_v28 = vmax.f32 %v2938_v21, 0.0  ;;  %v6871_v18 = vld [vmem:[%s9351_s19 + $0x274] ss:$28 sps:$4 sm:$0xff]   ;;  %v6874_v21 = vld [vmem:[%s9351_s19 + $0x2a4] ss:$28 sps:$4 sm:$0xff]  }
 0x7f5   :  { %v2944_v27 = vadd.f32 %v2943_v26, %v2820_v19  ;;  %v2947_v30 = vmax.f32 %v2940_v23, 0.0  ;;  %v6866_v19 = vld [vmem:[%s9351_s19 + $0x268] ss:$28 sps:$4 sm:$0xff]   ;;  %v6872_v23 = vld [vmem:[%s9351_s19 + $0x2a0] ss:$28 sps:$4 sm:$0xff]  }
 0x7f6   :  { %v2948_v29 = vmax.f32 %v2942_v25, 0.0  ;;  %v6875_v24 = vld [vmem:[%s9351_s19 + $0x2a8] ss:$28 sps:$4 sm:$0xff]   ;;  %v6880_v25 = vld [vmem:[%s9351_s19 + $0x2dc] ss:$28 sps:$4 sm:$0xff]  }
 0x7f7   :  { %v2949_v31 = vmax.f32 %v2944_v27, 0.0  ;;  %v6883_v26 = vld [vmem:[%s9351_s19 + $0x2e4] ss:$28 sps:$4 sm:$0xff]   ;;  %v6878_v27 = vld [vmem:[%s9351_s19 + $0x2d8] ss:$28 sps:$4 sm:$0xff]  }
 0x7f8   :  { %v2950_v32 = vpack.c.bf16 %v2948_v29, %v2946_v28  ;;  %v6881_v28 = vld [vmem:[%s9351_s19 + $0x2e0] ss:$28 sps:$4 sm:$0xff]   ;;  %v6886_v29 = vld [vmem:[%s9351_s19 + $0x314] ss:$28 sps:$4 sm:$0xff]  }
 0x7f9   :  { %v2951_v33 = vpack.c.bf16 %v2949_v31, %v2947_v30  ;;  %v6889_v30 = vld [vmem:[%s9351_s19 + $0x31c] ss:$28 sps:$4 sm:$0xff]   ;;  %v6884_v31 = vld [vmem:[%s9351_s19 + $0x310] ss:$28 sps:$4 sm:$0xff]  }
 0x7fb   :  { %3390 = vmatprep.mubr.bf16.mxu0 %v2951_v33  ;;  %3433 = vmatprep.mubr.bf16.mxu1 %v2951_v33  ;;  %v6892_v33 = vld [vmem:[%s9351_s19 + $0x34c] ss:$28 sps:$4 sm:$0xff]  }
 0x7fc   :  { %3391 = vmatmul.mubr.bf16.vlgmr.msra.gmra.mrb[8].mxu0 %v2950_v32  ;;  %3434 = vmatmul.mubr.bf16.vlgmr.msra.gmra.mrb[28].mxu1 %v2950_v32  ;;  %v6887_v32 = vld [vmem:[%s9351_s19 + $0x318] ss:$28 sps:$4 sm:$0xff]  }
 0x7fd   :  { %4902 = vmatpush1.bf16.msra.mxu0 %v6800_v34  ;;  %4988 = vmatpush1.bf16.msra.mxu1 %v6803_v35  ;;  %v6895_v34 = vld [vmem:[%s9351_s19 + $0x354] ss:$28 sps:$4 sm:$0xff]   ;;  %v6890_v35 = vld [vmem:[%s9351_s19 + $0x348] ss:$28 sps:$4 sm:$0xff]  }
 0x7fe   :  { %4903 = vmatprep.subr.bf16.mxu0 %v6808_v36  ;;  %4989 = vmatprep.subr.bf16.mxu1 %v6811_v37  ;;  %v6893_v36 = vld [vmem:[%s9351_s19 + $0x350] ss:$28 sps:$4 sm:$0xff]   ;;  %v6898_v37 = vld [vmem:[%s9351_s19 + $0x384] ss:$28 sps:$4 sm:$0xff]  }
 0x801   :  { %4904 = vmatpush1.bf16.msra.mxu0 %v6806_v38  ;;  %4990 = vmatpush1.bf16.msra.mxu1 %v6809_v39  ;;  %v6901_v38 = vld [vmem:[%s9351_s19 + $0x38c] ss:$28 sps:$4 sm:$0xff]   ;;  %v3016_v39 = vld [vmem:[%s9353_s18] sm:$0xf] }
 0x802   :  { %4905 = vmatprep.subr.bf16.mxu0 %v6814_v9  ;;  %4991 = vmatprep.subr.bf16.mxu1 %v6817_v40  ;;  %v3021_v9 = vrot.slane %v3016_v39, %v8037_v58  ;;  %v3029_v40 = vrot.slane %v3016_v39, %v8040_v59 }
 0x805   :  { %4906 = vmatpush1.bf16.msra.mxu0 %v6812_v41  ;;  %4992 = vmatpush1.bf16.msra.mxu1 %v6815_v42  ;;  %v3025_v41 = vrot.slane %v3016_v39, %v8046_v61  ;;  %v3033_v42 = vrot.slane %v3016_v39, %v8049_v62  ;;  %v6940_v39 = vld [vmem:[%s9351_s19 + $0x50c] ss:$28 sps:$4 sm:$0xff]  }
 0x806   :  { %4907 = vmatprep.subr.bf16.mxu0 %v6820_v43  ;;  %4993 = vmatprep.subr.bf16.mxu1 %v6823_v44 }
 0x809   :  { %4908 = vmatpush1.bf16.msra.mxu0 %v6818_v45  ;;  %4994 = vmatpush1.bf16.msra.mxu1 %v6821_v46 }
 0x80a   :  { %4909 = vmatprep.subr.bf16.mxu0 %v6826_v47  ;;  %4995 = vmatprep.subr.bf16.mxu1 %v6829_v48 }
 0x80d   :  { %4910 = vmatpush1.bf16.msra.mxu0 %v6824_v11  ;;  %4996 = vmatpush1.bf16.msra.mxu1 %v6827_v49 }
 0x80e   :  { %4911 = vmatprep.subr.bf16.mxu0 %v6832_v50  ;;  %4997 = vmatprep.subr.bf16.mxu1 %v6835_v51 }
 0x811   :  { %4912 = vmatpush1.bf16.msra.mxu0 %v6830_v52  ;;  %4998 = vmatpush1.bf16.msra.mxu1 %v6833_v53 }
 0x812   :  { %4913 = vmatprep.subr.bf16.mxu0 %v6838_v54  ;;  %4999 = vmatprep.subr.bf16.mxu1 %v6841_v55 }
 0x815   :  { %4914 = vmatpush1.bf16.msra.mxu0 %v6836_v56  ;;  %5000 = vmatpush1.bf16.msra.mxu1 %v6839_v60 }
 0x816   :  { %4915 = vmatprep.subr.bf16.mxu0 %v6844_v63  ;;  %5001 = vmatprep.subr.bf16.mxu1 %v6847_v0 }
 0x819   :  { %4916 = vmatpush1.bf16.msra.mxu0 %v6842_v1  ;;  %5002 = vmatpush1.bf16.msra.mxu1 %v6845_v2 }
 0x81a   :  { %4917 = vmatprep.subr.bf16.mxu0 %v6850_v3  ;;  %5003 = vmatprep.subr.bf16.mxu1 %v6853_v4 }
 0x81d   :  { %4918 = vmatpush1.bf16.msra.mxu0 %v6848_v5  ;;  %5004 = vmatpush1.bf16.msra.mxu1 %v6851_v6 }
 0x81e   :  { %4919 = vmatprep.subr.bf16.mxu0 %v6856_v7  ;;  %5005 = vmatprep.subr.bf16.mxu1 %v6859_v8 }
 0x821   :  { %4920 = vmatpush1.bf16.msra.mxu0 %v6854_v10  ;;  %5006 = vmatpush1.bf16.msra.mxu1 %v6857_v12 }
 0x822   :  { %4921 = vmatprep.subr.bf16.mxu0 %v6862_v13  ;;  %5007 = vmatprep.subr.bf16.mxu1 %v6865_v14  ;;  %v6896_v13 = vld [vmem:[%s9351_s19 + $0x380] ss:$28 sps:$4 sm:$0xff]   ;;  %v6899_v14 = vld [vmem:[%s9351_s19 + $0x388] ss:$28 sps:$4 sm:$0xff]  }
 0x825   :  { %4922 = vmatpush1.bf16.msra.mxu0 %v6860_v15  ;;  %5008 = vmatpush1.bf16.msra.mxu1 %v6863_v16  ;;  %v6904_v15 = vld [vmem:[%s9351_s19 + $0x3bc] ss:$28 sps:$4 sm:$0xff]   ;;  %v6907_v16 = vld [vmem:[%s9351_s19 + $0x3c4] ss:$28 sps:$4 sm:$0xff]  }
 0x826   :  { %4923 = vmatprep.subr.bf16.mxu0 %v6868_v17  ;;  %5009 = vmatprep.subr.bf16.mxu1 %v6871_v18  ;;  %v6902_v17 = vld [vmem:[%s9351_s19 + $0x3b8] ss:$28 sps:$4 sm:$0xff]   ;;  %v6905_v18 = vld [vmem:[%s9351_s19 + $0x3c0] ss:$28 sps:$4 sm:$0xff]  }
 0x829   :  { %4924 = vmatpush1.bf16.msra.mxu0 %v6866_v19  ;;  %5010 = vmatpush1.bf16.msra.mxu1 %v6869_v20  ;;  %v6910_v19 = vld [vmem:[%s9351_s19 + $0x3f4] ss:$28 sps:$4 sm:$0xff]   ;;  %v6913_v20 = vld [vmem:[%s9351_s19 + $0x3fc] ss:$28 sps:$4 sm:$0xff]  }
 0x82a   :  { %4925 = vmatprep.subr.bf16.mxu0 %v6874_v21  ;;  %5011 = vmatprep.subr.bf16.mxu1 %v6877_v22  ;;  %v6908_v21 = vld [vmem:[%s9351_s19 + $0x3f0] ss:$28 sps:$4 sm:$0xff]   ;;  %v6911_v22 = vld [vmem:[%s9351_s19 + $0x3f8] ss:$28 sps:$4 sm:$0xff]  }
 0x82d   :  { %4926 = vmatpush1.bf16.msra.mxu0 %v6872_v23  ;;  %5012 = vmatpush1.bf16.msra.mxu1 %v6875_v24  ;;  %v6916_v23 = vld [vmem:[%s9351_s19 + $0x42c] ss:$28 sps:$4 sm:$0xff]   ;;  %v6919_v24 = vld [vmem:[%s9351_s19 + $0x434] ss:$28 sps:$4 sm:$0xff]  }
 0x82e   :  { %4927 = vmatprep.subr.bf16.mxu0 %v6880_v25  ;;  %5013 = vmatprep.subr.bf16.mxu1 %v6883_v26  ;;  %v6914_v25 = vld [vmem:[%s9351_s19 + $0x428] ss:$28 sps:$4 sm:$0xff]   ;;  %v6917_v26 = vld [vmem:[%s9351_s19 + $0x430] ss:$28 sps:$4 sm:$0xff]  }
 0x831   :  { %4928 = vmatpush1.bf16.msra.mxu0 %v6878_v27  ;;  %5014 = vmatpush1.bf16.msra.mxu1 %v6881_v28  ;;  %v6922_v27 = vld [vmem:[%s9351_s19 + $0x464] ss:$28 sps:$4 sm:$0xff]   ;;  %v6925_v28 = vld [vmem:[%s9351_s19 + $0x46c] ss:$28 sps:$4 sm:$0xff]  }
 0x832   :  { %4929 = vmatprep.subr.bf16.mxu0 %v6886_v29  ;;  %5015 = vmatprep.subr.bf16.mxu1 %v6889_v30  ;;  %v6920_v29 = vld [vmem:[%s9351_s19 + $0x460] ss:$28 sps:$4 sm:$0xff]   ;;  %v6923_v30 = vld [vmem:[%s9351_s19 + $0x468] ss:$28 sps:$4 sm:$0xff]  }
 0x835   :  { %4930 = vmatpush1.bf16.msra.mxu0 %v6884_v31  ;;  %5016 = vmatpush1.bf16.msra.mxu1 %v6887_v32  ;;  %v6928_v31 = vld [vmem:[%s9351_s19 + $0x49c] ss:$28 sps:$4 sm:$0xff]   ;;  %v6931_v32 = vld [vmem:[%s9351_s19 + $0x4a4] ss:$28 sps:$4 sm:$0xff]  }
 0x836   :  { %4931 = vmatprep.subr.bf16.mxu0 %v6892_v33  ;;  %5017 = vmatprep.subr.bf16.mxu1 %v6895_v34  ;;  %v6926_v33 = vld [vmem:[%s9351_s19 + $0x498] ss:$28 sps:$4 sm:$0xff]   ;;  %v6929_v34 = vld [vmem:[%s9351_s19 + $0x4a0] ss:$28 sps:$4 sm:$0xff]  }
 0x839   :  { %4932 = vmatpush1.bf16.msra.mxu0 %v6890_v35  ;;  %5018 = vmatpush1.bf16.msra.mxu1 %v6893_v36  ;;  %v6934_v35 = vld [vmem:[%s9351_s19 + $0x4d4] ss:$28 sps:$4 sm:$0xff]   ;;  %v6937_v36 = vld [vmem:[%s9351_s19 + $0x4dc] ss:$28 sps:$4 sm:$0xff]  }
 0x83a   :  { %4944 = vmatprep.subr.bf16.mxu0 %v6898_v37  ;;  %5030 = vmatprep.subr.bf16.mxu1 %v6901_v38  ;;  %v6932_v37 = vld [vmem:[%s9351_s19 + $0x4d0] ss:$28 sps:$4 sm:$0xff]   ;;  %v6935_v38 = vld [vmem:[%s9351_s19 + $0x4d8] ss:$28 sps:$4 sm:$0xff]  }
 0x8cf   :  { %v3392_v43 = vpop.f32.mrb[8].mxu0  ;;  %v3435_v44 = vpop.f32.mrb[28].mxu1 }
 0x8d0   :  { %v3393_v45 = vadd.f32 %v3392_v43, %v3021_v9  ;;  %v3436_v46 = vadd.f32 %v3435_v44, %v3029_v40  ;;  %v3394_v47 = vpop.f32.mrb[9].mxu0  ;;  %v3437_v48 = vpop.f32.mrb[29].mxu1  ;;  %v6949_v43 = vld [vmem:[%s9351_s19 + $0x54c] ss:$28 sps:$4 sm:$0xff]   ;;  %v6944_v44 = vld [vmem:[%s9351_s19 + $0x540] ss:$28 sps:$4 sm:$0xff]  }
 0x8d1   :  { %v3395_v11 = vadd.f32 %v3394_v47, %v3025_v41  ;;  %v3438_v49 = vadd.f32 %v3437_v48, %v3033_v42  ;;  %v3396_v50 = vpop.f32.mrb[10].mxu0  ;;  %v3439_v51 = vpop.f32.mrb[30].mxu1  ;;  %v6955_v47 = vld [vmem:[%s9351_s19 + $0x584] ss:$28 sps:$4 sm:$0xff]   ;;  %v6950_v48 = vld [vmem:[%s9351_s19 + $0x578] ss:$28 sps:$4 sm:$0xff]  }
 0x8d2   :  { %v3397_v52 = vadd.f32 %v3396_v50, %v3021_v9  ;;  %v3440_v53 = vadd.f32 %v3439_v51, %v3029_v40  ;;  %v3398_v54 = vpop.f32.mrb[11].mxu0  ;;  %v3441_v55 = vpop.f32.mrb[31].mxu1  ;;  %v3444_v63 = vmax.f32 %v3393_v45, 0.0  ;;  %v3446_v0 = vmax.f32 %v3436_v46, 0.0  ;;  %v6943_v9 = vld [vmem:[%s9351_s19 + $0x514] ss:$28 sps:$4 sm:$0xff]  }
 0x8d3   :  { %v3399_v56 = vadd.f32 %v3398_v54, %v3025_v41  ;;  %v3442_v60 = vadd.f32 %v3441_v55, %v3033_v42  ;;  %v3445_v3 = vmax.f32 %v3395_v11, 0.0  ;;  %v3447_v4 = vmax.f32 %v3438_v49, 0.0  ;;  %v6938_v40 = vld [vmem:[%s9351_s19 + $0x508] ss:$28 sps:$4 sm:$0xff]   ;;  %v6941_v41 = vld [vmem:[%s9351_s19 + $0x510] ss:$28 sps:$4 sm:$0xff]  }
 0x8d4   :  { %v3448_v1 = vmax.f32 %v3397_v52, 0.0  ;;  %v3450_v2 = vmax.f32 %v3440_v53, 0.0  ;;  %v6946_v42 = vld [vmem:[%s9351_s19 + $0x544] ss:$28 sps:$4 sm:$0xff]   ;;  %v6952_v46 = vld [vmem:[%s9351_s19 + $0x57c] ss:$28 sps:$4 sm:$0xff]  }
 0x8d5   :  { %v3449_v5 = vmax.f32 %v3399_v56, 0.0  ;;  %v3451_v6 = vmax.f32 %v3442_v60, 0.0  ;;  %v6947_v45 = vld [vmem:[%s9351_s19 + $0x548] ss:$28 sps:$4 sm:$0xff]   ;;  %v6953_v11 = vld [vmem:[%s9351_s19 + $0x580] ss:$28 sps:$4 sm:$0xff]  }
 0x8d6   :  { %v8773_v7 = vpack.c.bf16 %v3448_v1, %v3444_v63  ;;  %v8775_v8 = vpack.c.bf16 %v3450_v2, %v3446_v0  ;;  %v6958_v49 = vld [vmem:[%s9351_s19 + $0x5b4] ss:$28 sps:$4 sm:$0xff]   ;;  %v6961_v50 = vld [vmem:[%s9351_s19 + $0x5bc] ss:$28 sps:$4 sm:$0xff]   ;;  %v6964_v53 = vld [vmem:[%s9351_s19 + $0x5ec] ss:$28 sps:$4 sm:$0xff]  }
 0x8d7   :  { %v8777_v10 = vpack.c.bf16 %v3449_v5, %v3445_v3  ;;  %v8779_v12 = vpack.c.bf16 %v3451_v6, %v3447_v4  ;;  %v6956_v51 = vld [vmem:[%s9351_s19 + $0x5b0] ss:$28 sps:$4 sm:$0xff]   ;;  %v6959_v52 = vld [vmem:[%s9351_s19 + $0x5b8] ss:$28 sps:$4 sm:$0xff]   ;;  %v6962_v55 = vld [vmem:[%s9351_s19 + $0x5e8] ss:$28 sps:$4 sm:$0xff]  }
 0x8d8   :  { %v6967_v54 = vld [vmem:[%s9351_s19 + $0x5f4] ss:$28 sps:$4 sm:$0xff]   ;;  %v6970_v60 = vld [vmem:[%s9351_s19 + $0x624] ss:$28 sps:$4 sm:$0xff]   ;;  %v6973_v63 = vld [vmem:[%s9351_s19 + $0x62c] ss:$28 sps:$4 sm:$0xff]  }
 0x8d9   :  { %4933 = vmatprep.mubr.bf16.mxu0 %v8777_v10  ;;  %5019 = vmatprep.mubr.bf16.mxu1 %v8777_v10  ;;  %v6965_v56 = vld [vmem:[%s9351_s19 + $0x5f0] ss:$28 sps:$4 sm:$0xff]   ;;  %v6968_v0 = vld [vmem:[%s9351_s19 + $0x620] ss:$28 sps:$4 sm:$0xff]   ;;  %v6971_v1 = vld [vmem:[%s9351_s19 + $0x628] ss:$28 sps:$4 sm:$0xff]  }
 0x8da   :  { %4934 = vmatmul.mubr.bf16.vlgmr.msra.gmra.mrb[12].mxu0 %v8773_v7  ;;  %5020 = vmatmul.mubr.bf16.vlgmr.msra.gmra.mrb[32].mxu1 %v8773_v7  ;;  %v6976_v2 = vld [vmem:[%s9351_s19 + $0x65c] ss:$28 sps:$4 sm:$0xff]   ;;  %v6979_v3 = vld [vmem:[%s9351_s19 + $0x664] ss:$28 sps:$4 sm:$0xff]   ;;  %v6982_v6 = vld [vmem:[%s9351_s19 + $0x694] ss:$28 sps:$4 sm:$0xff]  }
 0x8db   :  { %4945 = vmatpush1.bf16.msra.mxu0 %v6896_v13  ;;  %5031 = vmatpush1.bf16.msra.mxu1 %v6899_v14  ;;  %v6974_v4 = vld [vmem:[%s9351_s19 + $0x658] ss:$28 sps:$4 sm:$0xff]   ;;  %v6977_v5 = vld [vmem:[%s9351_s19 + $0x660] ss:$28 sps:$4 sm:$0xff]   ;;  %v6980_v14 = vld [vmem:[%s9351_s19 + $0x690] ss:$28 sps:$4 sm:$0xff]  }
 0x8dc   :  { %4976 = vmatprep.mubr.bf16.mxu0 %v8779_v12  ;;  %5062 = vmatprep.mubr.bf16.mxu1 %v8779_v12  ;;  %v6985_v13 = vld [vmem:[%s9351_s19 + $0x69c] ss:$28 sps:$4 sm:$0xff]  }
 0x8dd   :  { %4946 = vmatprep.subr.bf16.mxu0 %v6904_v15  ;;  %5032 = vmatprep.subr.bf16.mxu1 %v6907_v16  ;;  %v6983_v15 = vld [vmem:[%s9351_s19 + $0x698] ss:$28 sps:$4 sm:$0xff]   ;;  %v6988_v16 = vld [vmem:[%s9351_s19 + $0x6cc] ss:$28 sps:$4 sm:$0xff]  }
 0x8df   :  { %4947 = vmatpush1.bf16.msra.mxu0 %v6902_v17  ;;  %5033 = vmatpush1.bf16.msra.mxu1 %v6905_v18  ;;  %v6991_v17 = vld [vmem:[%s9351_s19 + $0x6d4] ss:$28 sps:$4 sm:$0xff]   ;;  %v6986_v18 = vld [vmem:[%s9351_s19 + $0x6c8] ss:$28 sps:$4 sm:$0xff]  }
 0x8e0   :  { %4948 = vmatprep.subr.bf16.mxu0 %v6910_v19  ;;  %5034 = vmatprep.subr.bf16.mxu1 %v6913_v20  ;;  %v6989_v19 = vld [vmem:[%s9351_s19 + $0x6d0] ss:$28 sps:$4 sm:$0xff]  }
 0x8e1   :  { %v6994_v20 = vld [vmem:[%s9351_s19 + $0x14] ss:$28 sps:$4 sm:$0xff]  }
 0x8e3   :  { %4949 = vmatpush1.bf16.msra.mxu0 %v6908_v21  ;;  %5035 = vmatpush1.bf16.msra.mxu1 %v6911_v22  ;;  %v6995_v21 = vld [vmem:[%s9351_s19 + $0x1d8] ss:$28 sps:$4 sm:$0xff]   ;;  %v6992_v22 = vld [vmem:[%s9351_s19 + $0x10] ss:$28 sps:$4 sm:$0xff]  }
 0x8e4   :  { %4950 = vmatprep.subr.bf16.mxu0 %v6916_v23  ;;  %5036 = vmatprep.subr.bf16.mxu1 %v6919_v24  ;;  %v6996_v23 = vld [vmem:[%s9351_s19 + $0x18] ss:$28 sps:$4 sm:$0xff]   ;;  %v6999_v24 = vld [vmem:[%s9351_s19 + $0x4c] ss:$28 sps:$4 sm:$0xff]  }
 0x8e7   :  { %4951 = vmatpush1.bf16.msra.mxu0 %v6914_v25  ;;  %5037 = vmatpush1.bf16.msra.mxu1 %v6917_v26  ;;  %v7000_v25 = vld [vmem:[%s9351_s19 + $0x210] ss:$28 sps:$4 sm:$0xff]   ;;  %v6997_v26 = vld [vmem:[%s9351_s19 + $0x48] ss:$28 sps:$4 sm:$0xff]  }
 0x8e8   :  { %4952 = vmatprep.subr.bf16.mxu0 %v6922_v27  ;;  %5038 = vmatprep.subr.bf16.mxu1 %v6925_v28  ;;  %v7001_v27 = vld [vmem:[%s9351_s19 + $0x50] ss:$28 sps:$4 sm:$0xff]   ;;  %v7004_v28 = vld [vmem:[%s9351_s19 + $0x84] ss:$28 sps:$4 sm:$0xff]  }
 0x8eb   :  { %4953 = vmatpush1.bf16.msra.mxu0 %v6920_v29  ;;  %5039 = vmatpush1.bf16.msra.mxu1 %v6923_v30  ;;  %v7005_v29 = vld [vmem:[%s9351_s19 + $0x248] ss:$28 sps:$4 sm:$0xff]   ;;  %v7002_v30 = vld [vmem:[%s9351_s19 + $0x80] ss:$28 sps:$4 sm:$0xff]  }
 0x8ec   :  { %4954 = vmatprep.subr.bf16.mxu0 %v6928_v31  ;;  %5040 = vmatprep.subr.bf16.mxu1 %v6931_v32  ;;  %v7009_v31 = vld [vmem:[%s9351_s19 + $0xbc] ss:$28 sps:$4 sm:$0xff]  }
 0x8ed   :  { %v7010_v32 = vld [vmem:[%s9351_s19 + $0x280] ss:$28 sps:$4 sm:$0xff]  }
 0x8ef   :  { %4955 = vmatpush1.bf16.msra.mxu0 %v6926_v33  ;;  %5041 = vmatpush1.bf16.msra.mxu1 %v6929_v34  ;;  %v7007_v33 = vld [vmem:[%s9351_s19 + $0xb8] ss:$28 sps:$4 sm:$0xff]   ;;  %v7011_v34 = vld [vmem:[%s9351_s19 + $0xc0] ss:$28 sps:$4 sm:$0xff]  }
 0x8f0   :  { %4956 = vmatprep.subr.bf16.mxu0 %v6934_v35  ;;  %5042 = vmatprep.subr.bf16.mxu1 %v6937_v36  ;;  %v7014_v35 = vld [vmem:[%s9351_s19 + $0xf4] ss:$28 sps:$4 sm:$0xff]  }
 0x8f1   :  { %v7015_v36 = vld [vmem:[%s9351_s19 + $0x2b8] ss:$28 sps:$4 sm:$0xff]  }
 0x8f3   :  { %4957 = vmatpush1.bf16.msra.mxu0 %v6932_v37  ;;  %5043 = vmatpush1.bf16.msra.mxu1 %v6935_v38  ;;  %v7012_v37 = vld [vmem:[%s9351_s19 + $0xf0] ss:$28 sps:$4 sm:$0xff]   ;;  %v7016_v38 = vld [vmem:[%s9351_s19 + $0xf8] ss:$28 sps:$4 sm:$0xff]  }
 0x8f4   :  { %4958 = vmatprep.subr.bf16.mxu0 %v6940_v39  ;;  %5044 = vmatprep.subr.bf16.mxu1 %v6943_v9  ;;  %v7019_v39 = vld [vmem:[%s9351_s19 + $0x12c] ss:$28 sps:$4 sm:$0xff]  }
 0x8f5   :  { %v7020_v9 = vld [vmem:[%s9351_s19 + $0x2f0] ss:$28 sps:$4 sm:$0xff]  }
 0x8f7   :  { %4959 = vmatpush1.bf16.msra.mxu0 %v6938_v40  ;;  %5045 = vmatpush1.bf16.msra.mxu1 %v6941_v41  ;;  %v7017_v40 = vld [vmem:[%s9351_s19 + $0x128] ss:$28 sps:$4 sm:$0xff]   ;;  %v7021_v41 = vld [vmem:[%s9351_s19 + $0x130] ss:$28 sps:$4 sm:$0xff]  }
 0x8f8   :  { %4960 = vmatprep.subr.bf16.mxu0 %v6946_v42  ;;  %5046 = vmatprep.subr.bf16.mxu1 %v6949_v43  ;;  %v7024_v42 = vld [vmem:[%s9351_s19 + $0x164] ss:$28 sps:$4 sm:$0xff]  }
 0x8f9   :  { %v7025_v43 = vld [vmem:[%s9351_s19 + $0x328] ss:$28 sps:$4 sm:$0xff]  }
 0x8fb   :  { %4961 = vmatpush1.bf16.msra.mxu0 %v6944_v44  ;;  %5047 = vmatpush1.bf16.msra.mxu1 %v6947_v45  ;;  %v7022_v44 = vld [vmem:[%s9351_s19 + $0x160] ss:$28 sps:$4 sm:$0xff]   ;;  %v7026_v45 = vld [vmem:[%s9351_s19 + $0x168] ss:$28 sps:$4 sm:$0xff]  }
 0x8fc   :  { %4962 = vmatprep.subr.bf16.mxu0 %v6952_v46  ;;  %5048 = vmatprep.subr.bf16.mxu1 %v6955_v47  ;;  %v7029_v46 = vld [vmem:[%s9351_s19 + $0x19c] ss:$28 sps:$4 sm:$0xff]  }
 0x8fd   :  { %v7030_v47 = vld [vmem:[%s9351_s19 + $0x360] ss:$28 sps:$4 sm:$0xff]  }
 0x8ff   :  { %4963 = vmatpush1.bf16.msra.mxu0 %v6950_v48  ;;  %5049 = vmatpush1.bf16.msra.mxu1 %v6953_v11  ;;  %v7027_v48 = vld [vmem:[%s9351_s19 + $0x198] ss:$28 sps:$4 sm:$0xff]   ;;  %v7031_v11 = vld [vmem:[%s9351_s19 + $0x1a0] ss:$28 sps:$4 sm:$0xff]  }
 0x900   :  { %4964 = vmatprep.subr.bf16.mxu0 %v6958_v49  ;;  %5050 = vmatprep.subr.bf16.mxu1 %v6961_v50  ;;  %v7034_v49 = vld [vmem:[%s9351_s19 + $0x1d4] ss:$28 sps:$4 sm:$0xff]  }
 0x901   :  { %v7035_v50 = vld [vmem:[%s9351_s19 + $0x558] ss:$28 sps:$4 sm:$0xff]  }
 0x903   :  { %4965 = vmatpush1.bf16.msra.mxu0 %v6956_v51  ;;  %5051 = vmatpush1.bf16.msra.mxu1 %v6959_v52  ;;  %v7032_v51 = vld [vmem:[%s9351_s19 + $0x1d0] ss:$28 sps:$4 sm:$0xff]   ;;  %v7036_v52 = vld [vmem:[%s9351_s19 + $0x398] ss:$28 sps:$4 sm:$0xff]  }
 0x904   :  { %4966 = vmatprep.subr.bf16.mxu0 %v6964_v53  ;;  %5052 = vmatprep.subr.bf16.mxu1 %v6967_v54  ;;  %v7039_v53 = vld [vmem:[%s9351_s19 + $0x20c] ss:$28 sps:$4 sm:$0xff]  }
 0x905   :  { %v7040_v54 = vld [vmem:[%s9351_s19 + $0x590] ss:$28 sps:$4 sm:$0xff]  }
 0x907   :  { %4967 = vmatpush1.bf16.msra.mxu0 %v6962_v55  ;;  %5053 = vmatpush1.bf16.msra.mxu1 %v6965_v56  ;;  %v7037_v55 = vld [vmem:[%s9351_s19 + $0x208] ss:$28 sps:$4 sm:$0xff]   ;;  %v7041_v56 = vld [vmem:[%s9351_s19 + $0x3d0] ss:$28 sps:$4 sm:$0xff]  }
 0x908   :  { %4968 = vmatprep.subr.bf16.mxu0 %v6970_v60  ;;  %5054 = vmatprep.subr.bf16.mxu1 %v6973_v63  ;;  %v7044_v60 = vld [vmem:[%s9351_s19 + $0x244] ss:$28 sps:$4 sm:$0xff]  }
 0x909   :  { %v7045_v63 = vld [vmem:[%s9351_s19 + $0x5c8] ss:$28 sps:$4 sm:$0xff]  }
 0x90b   :  { %4969 = vmatpush1.bf16.msra.mxu0 %v6968_v0  ;;  %5055 = vmatpush1.bf16.msra.mxu1 %v6971_v1  ;;  %v7042_v0 = vld [vmem:[%s9351_s19 + $0x240] ss:$28 sps:$4 sm:$0xff]   ;;  %v7046_v1 = vld [vmem:[%s9351_s19 + $0x408] ss:$28 sps:$4 sm:$0xff]  }
 0x90c   :  { %4970 = vmatprep.subr.bf16.mxu0 %v6976_v2  ;;  %5056 = vmatprep.subr.bf16.mxu1 %v6979_v3  ;;  %v7049_v2 = vld [vmem:[%s9351_s19 + $0x27c] ss:$28 sps:$4 sm:$0xff]  }
 0x90d   :  { %v7050_v3 = vld [vmem:[%s9351_s19 + $0x600] ss:$28 sps:$4 sm:$0xff]  }
 0x90f   :  { %4971 = vmatpush1.bf16.msra.mxu0 %v6974_v4  ;;  %5057 = vmatpush1.bf16.msra.mxu1 %v6977_v5  ;;  %v7047_v4 = vld [vmem:[%s9351_s19 + $0x278] ss:$28 sps:$4 sm:$0xff]   ;;  %v7051_v5 = vld [vmem:[%s9351_s19 + $0x440] ss:$28 sps:$4 sm:$0xff]  }
 0x910   :  { %4972 = vmatprep.subr.bf16.mxu0 %v6982_v6  ;;  %5058 = vmatprep.subr.bf16.mxu1 %v6985_v13  ;;  %v7054_v6 = vld [vmem:[%s9351_s19 + $0x2b4] ss:$28 sps:$4 sm:$0xff]  }
 0x911   :  { %v7055_v13 = vld [vmem:[%s9351_s19 + $0x638] ss:$28 sps:$4 sm:$0xff]  }
 0x913   :  { %4973 = vmatpush1.bf16.msra.mxu0 %v6980_v14  ;;  %5059 = vmatpush1.bf16.msra.mxu1 %v6983_v15  ;;  %v7052_v14 = vld [vmem:[%s9351_s19 + $0x2b0] ss:$28 sps:$4 sm:$0xff]   ;;  %v7056_v15 = vld [vmem:[%s9351_s19 + $0x478] ss:$28 sps:$4 sm:$0xff]  }
 0x914   :  { %4974 = vmatprep.subr.bf16.mxu0 %v6988_v16  ;;  %5060 = vmatprep.subr.bf16.mxu1 %v6991_v17  ;;  %v7059_v16 = vld [vmem:[%s9351_s19 + $0x2ec] ss:$28 sps:$4 sm:$0xff]  }
 0x915   :  { %v7060_v17 = vld [vmem:[%s9351_s19 + $0x670] ss:$28 sps:$4 sm:$0xff]  }
 0x917   :  { %4975 = vmatpush1.bf16.msra.mxu0 %v6986_v18  ;;  %5061 = vmatpush1.bf16.msra.mxu1 %v6989_v19  ;;  %v7057_v18 = vld [vmem:[%s9351_s19 + $0x2e8] ss:$28 sps:$4 sm:$0xff]   ;;  %v7061_v19 = vld [vmem:[%s9351_s19 + $0x4b0] ss:$28 sps:$4 sm:$0xff]  }
 0x918   :  { %5073 = vmatprep.subr.bf16.mxu0 %v6994_v20  ;;  %6041 = vmatprep.subr.bf16.mxu1 %v6995_v21  ;;  %v7064_v20 = vld [vmem:[%s9351_s19 + $0x324] ss:$28 sps:$4 sm:$0xff]  }
 0x919   :  { %v7065_v21 = vld [vmem:[%s9351_s19 + $0x6a8] ss:$28 sps:$4 sm:$0xff]  }
 0x91a   :  { %4977 = vmatmul.mubr.bf16.vlgmr.msra.gmra.mrb[12].mxu0 %v8775_v8  ;;  %5063 = vmatmul.mubr.bf16.vlgmr.msra.gmra.mrb[32].mxu1 %v8775_v8 }
 0x91b   :  { %5074 = vmatpush1.bf16.msra.mxu0 %v6992_v22  ;;  %5105 = vmatprep.mubr.bf16.mxu0 %v8777_v10  ;;  %v7062_v22 = vld [vmem:[%s9351_s19 + $0x320] ss:$28 sps:$4 sm:$0xff]  }
 0x91c   :  { %6042 = vmatpush3.bf16.msra.mxu1 %v6996_v23  ;;  %5191 = vmatprep.mubr.bf16.mxu1 %v8777_v10  ;;  %v7006_v10 = vld [vmem:[%s9351_s19 + $0x88] ss:$28 sps:$4 sm:$0xff]  }
 0x91d   :  { %5075 = vmatprep.subr.bf16.mxu0 %v6999_v24  ;;  %6043 = vmatprep.subr.bf16.mxu1 %v7000_v25  ;;  %v7066_v23 = vld [vmem:[%s9351_s19 + $0x4e8] ss:$28 sps:$4 sm:$0xff]   ;;  %v7069_v24 = vld [vmem:[%s9351_s19 + $0x35c] ss:$28 sps:$4 sm:$0xff]  }
 0x91e   :  { %v7070_v25 = vld [vmem:[%s9351_s19 + $0x6e0] ss:$28 sps:$4 sm:$0xff]  }
 0x91f   :  { %5076 = vmatpush1.bf16.msra.mxu0 %v6997_v26  ;;  %v7067_v26 = vld [vmem:[%s9351_s19 + $0x358] ss:$28 sps:$4 sm:$0xff]  }
 0x920   :  { %6044 = vmatpush3.bf16.msra.mxu1 %v7001_v27  ;;  %5077 = vmatprep.subr.bf16.mxu0 %v7004_v28  ;;  %v7071_v27 = vld [vmem:[%s9351_s19 + $0x520] ss:$28 sps:$4 sm:$0xff]   ;;  %v7074_v28 = vld [vmem:[%s9351_s19 + $0x394] ss:$28 sps:$4 sm:$0xff]  }
 0x921   :  { %6045 = vmatprep.subr.bf16.mxu1 %v7005_v29  ;;  %v7072_v29 = vld [vmem:[%s9351_s19 + $0x390] ss:$28 sps:$4 sm:$0xff]  }
 0x923   :  { %5078 = vmatpush1.bf16.msra.mxu0 %v7002_v30  ;;  %v7077_v30 = vld [vmem:[%s9351_s19 + $0x3cc] ss:$28 sps:$4 sm:$0xff]  }
 0x924   :  { %6046 = vmatpush3.bf16.msra.mxu1 %v7006_v10  ;;  %5079 = vmatprep.subr.bf16.mxu0 %v7009_v31  ;;  %v7075_v10 = vld [vmem:[%s9351_s19 + $0x3c8] ss:$28 sps:$4 sm:$0xff]  }
 0x925   :  { %6047 = vmatprep.subr.bf16.mxu1 %v7010_v32  ;;  %v7080_v31 = vld [vmem:[%s9351_s19 + $0x404] ss:$28 sps:$4 sm:$0xff]  }
 0x926   :  { %v7078_v32 = vld [vmem:[%s9351_s19 + $0x400] ss:$28 sps:$4 sm:$0xff]  }
 0x927   :  { %5080 = vmatpush1.bf16.msra.mxu0 %v7007_v33  ;;  %v7086_v33 = vld [vmem:[%s9351_s19 + $0x474] ss:$28 sps:$4 sm:$0xff]  }
 0x928   :  { %6048 = vmatpush3.bf16.msra.mxu1 %v7011_v34  ;;  %5081 = vmatprep.subr.bf16.mxu0 %v7014_v35  ;;  %v7084_v34 = vld [vmem:[%s9351_s19 + $0x470] ss:$28 sps:$4 sm:$0xff]  }
 0x929   :  { %6049 = vmatprep.subr.bf16.mxu1 %v7015_v36  ;;  %v7089_v35 = vld [vmem:[%s9351_s19 + $0x4ac] ss:$28 sps:$4 sm:$0xff]  }
 0x92a   :  { %v7087_v36 = vld [vmem:[%s9351_s19 + $0x4a8] ss:$28 sps:$4 sm:$0xff]  }
 0x92b   :  { %5082 = vmatpush1.bf16.msra.mxu0 %v7012_v37  ;;  %v7092_v37 = vld [vmem:[%s9351_s19 + $0x4e4] ss:$28 sps:$4 sm:$0xff]  }
 0x92c   :  { %6050 = vmatpush3.bf16.msra.mxu1 %v7016_v38  ;;  %5083 = vmatprep.subr.bf16.mxu0 %v7019_v39  ;;  %v7090_v38 = vld [vmem:[%s9351_s19 + $0x4e0] ss:$28 sps:$4 sm:$0xff]  }
 0x92d   :  { %6051 = vmatprep.subr.bf16.mxu1 %v7020_v9  ;;  %v7095_v39 = vld [vmem:[%s9351_s19 + $0x51c] ss:$28 sps:$4 sm:$0xff]  }
 0x92e   :  { %v7093_v9 = vld [vmem:[%s9351_s19 + $0x518] ss:$28 sps:$4 sm:$0xff]  }
 0x92f   :  { %5084 = vmatpush1.bf16.msra.mxu0 %v7017_v40  ;;  %v7098_v40 = vld [vmem:[%s9351_s19 + $0x554] ss:$28 sps:$4 sm:$0xff]  }
 0x930   :  { %6052 = vmatpush3.bf16.msra.mxu1 %v7021_v41  ;;  %5085 = vmatprep.subr.bf16.mxu0 %v7024_v42  ;;  %v7096_v41 = vld [vmem:[%s9351_s19 + $0x550] ss:$28 sps:$4 sm:$0xff]  }
 0x931   :  { %6053 = vmatprep.subr.bf16.mxu1 %v7025_v43  ;;  %v7101_v42 = vld [vmem:[%s9351_s19 + $0x58c] ss:$28 sps:$4 sm:$0xff]  }
 0x932   :  { %v7099_v43 = vld [vmem:[%s9351_s19 + $0x588] ss:$28 sps:$4 sm:$0xff]  }
 0x933   :  { %5086 = vmatpush1.bf16.msra.mxu0 %v7022_v44  ;;  %v7104_v44 = vld [vmem:[%s9351_s19 + $0x5c4] ss:$28 sps:$4 sm:$0xff]  }
 0x934   :  { %6054 = vmatpush3.bf16.msra.mxu1 %v7026_v45  ;;  %5087 = vmatprep.subr.bf16.mxu0 %v7029_v46  ;;  %v7102_v45 = vld [vmem:[%s9351_s19 + $0x5c0] ss:$28 sps:$4 sm:$0xff]  }
 0x935   :  { %6055 = vmatprep.subr.bf16.mxu1 %v7030_v47  ;;  %v7107_v46 = vld [vmem:[%s9351_s19 + $0x5fc] ss:$28 sps:$4 sm:$0xff]  }
 0x936   :  { %v7105_v47 = vld [vmem:[%s9351_s19 + $0x5f8] ss:$28 sps:$4 sm:$0xff]  }
 0x937   :  { %5088 = vmatpush1.bf16.msra.mxu0 %v7027_v48  ;;  %v7110_v48 = vld [vmem:[%s9351_s19 + $0x634] ss:$28 sps:$4 sm:$0xff]  }
 0x938   :  { %6056 = vmatpush3.bf16.msra.mxu1 %v7031_v11  ;;  %5089 = vmatprep.subr.bf16.mxu0 %v7034_v49  ;;  %v7108_v11 = vld [vmem:[%s9351_s19 + $0x630] ss:$28 sps:$4 sm:$0xff]  }
 0x939   :  { %6063 = vmatprep.subr.bf16.mxu1 %v7035_v50  ;;  %v7113_v49 = vld [vmem:[%s9351_s19 + $0x66c] ss:$28 sps:$4 sm:$0xff]  }
 0x93a   :  { %v7111_v50 = vld [vmem:[%s9351_s19 + $0x668] ss:$28 sps:$4 sm:$0xff]  }
 0x93b   :  { %5192 = vmatmul.mubr.bf16.vlgmr.msra.gmra.mrb[36].mxu1 %v8773_v7  ;;  %5090 = vmatpush1.bf16.msra.mxu0 %v7032_v51  ;;  %v7116_v51 = vld [vmem:[%s9351_s19 + $0x6a4] ss:$28 sps:$4 sm:$0xff]  }
 0x93c   :  { %6064 = vmatpush3.bf16.msra.mxu1 %v7036_v52  ;;  %5232 = vmatprep.mubr.bf16.mxu1 %v8779_v12  ;;  %v7114_v52 = vld [vmem:[%s9351_s19 + $0x6a0] ss:$28 sps:$4 sm:$0xff]  }
 0x93d   :  { %5091 = vmatprep.subr.bf16.mxu0 %v7039_v53  ;;  %6065 = vmatprep.subr.bf16.mxu1 %v7040_v54  ;;  %v7119_v53 = vld [vmem:[%s9351_s19 + $0x6dc] ss:$28 sps:$4 sm:$0xff]  }
 0x93e   :  { %v7117_v54 = vld [vmem:[%s9351_s19 + $0x6d8] ss:$28 sps:$4 sm:$0xff]  }
 0x93f   :  { %5092 = vmatpush1.bf16.msra.mxu0 %v7037_v55  ;;  %v9274_v55 = vld [vmem:[%s9354_s20] sm:$0x7f] }
 0x940   :  { %6066 = vmatpush3.bf16.msra.mxu1 %v7041_v56  ;;  %5093 = vmatprep.subr.bf16.mxu0 %v7044_v60  ;;  %v3717_v56 = vrot.slane %v9274_v55, %v8037_v58  ;;  %v3725_v60 = vrot.slane %v9274_v55, %v8040_v59 }
 0x941   :  { %6067 = vmatprep.subr.bf16.mxu1 %v7045_v63  ;;  %v3721_v63 = vrot.slane %v9274_v55, %v8046_v61 }
 0x943   :  { %5094 = vmatpush1.bf16.msra.mxu0 %v7042_v0  ;;  %v3729_v0 = vrot.slane %v9274_v55, %v8049_v62 }
 0x944   :  { %6068 = vmatpush3.bf16.msra.mxu1 %v7046_v1  ;;  %5095 = vmatprep.subr.bf16.mxu0 %v7049_v2 }
 0x945   :  { %6069 = vmatprep.subr.bf16.mxu1 %v7050_v3 }
 0x947   :  { %5096 = vmatpush1.bf16.msra.mxu0 %v7047_v4 }
 0x948   :  { %6070 = vmatpush3.bf16.msra.mxu1 %v7051_v5  ;;  %5097 = vmatprep.subr.bf16.mxu0 %v7054_v6 }
 0x949   :  { %6071 = vmatprep.subr.bf16.mxu1 %v7055_v13 }
 0x94b   :  { %5098 = vmatpush1.bf16.msra.mxu0 %v7052_v14 }
 0x94c   :  { %6072 = vmatpush3.bf16.msra.mxu1 %v7056_v15  ;;  %5099 = vmatprep.subr.bf16.mxu0 %v7059_v16 }
 0x94d   :  { %6073 = vmatprep.subr.bf16.mxu1 %v7060_v17 }
 0x94f   :  { %5100 = vmatpush1.bf16.msra.mxu0 %v7057_v18 }
 0x950   :  { %6074 = vmatpush3.bf16.msra.mxu1 %v7061_v19  ;;  %5101 = vmatprep.subr.bf16.mxu0 %v7064_v20 }
 0x951   :  { %6075 = vmatprep.subr.bf16.mxu1 %v7065_v21 }
 0x953   :  { %5102 = vmatpush1.bf16.msra.mxu0 %v7062_v22 }
 0x954   :  { %6076 = vmatpush3.bf16.msra.mxu1 %v7066_v23  ;;  %5103 = vmatprep.subr.bf16.mxu0 %v7069_v24 }
 0x955   :  { %6077 = vmatprep.subr.bf16.mxu1 %v7070_v25 }
 0x957   :  { %5104 = vmatpush1.bf16.msra.mxu0 %v7067_v26 }
 0x958   :  { %6078 = vmatpush3.bf16.msra.mxu1 %v7071_v27  ;;  %5116 = vmatprep.subr.bf16.mxu0 %v7074_v28 }
 0x95a   :  { %5106 = vmatmul.mubr.bf16.vlgmr.msra.gmra.mrb[16].mxu0 %v8773_v7  ;;  %v7083_v7 = vld [vmem:[%s9351_s19 + $0x43c] ss:$28 sps:$4 sm:$0xff]  }
 0x95b   :  { %5233 = vmatmul.mubr.bf16.vlgmr.msra.gmra.mrb[40].mxu1 %v8775_v8  ;;  %5117 = vmatpush1.bf16.msra.mxu0 %v7072_v29 }
 0x95c   :  { %5148 = vmatprep.mubr.bf16.mxu0 %v8779_v12  ;;  %5118 = vmatprep.subr.bf16.mxu0 %v7077_v30  ;;  %v7081_v12 = vld [vmem:[%s9351_s19 + $0x438] ss:$28 sps:$4 sm:$0xff]  }
 0x95f   :  { %5119 = vmatpush1.bf16.msra.mxu0 %v7075_v10 }
 0x960   :  { %5120 = vmatprep.subr.bf16.mxu0 %v7080_v31 }
 0x963   :  { %5121 = vmatpush1.bf16.msra.mxu0 %v7078_v32 }
 0x964   :  { %5122 = vmatprep.subr.bf16.mxu0 %v7083_v7 }
 0x967   :  { %5123 = vmatpush1.bf16.msra.mxu0 %v7081_v12 }
 0x968   :  { %5124 = vmatprep.subr.bf16.mxu0 %v7086_v33 }
 0x96b   :  { %5125 = vmatpush1.bf16.msra.mxu0 %v7084_v34 }
 0x96c   :  { %5126 = vmatprep.subr.bf16.mxu0 %v7089_v35 }
 0x96f   :  { %5127 = vmatpush1.bf16.msra.mxu0 %v7087_v36 }
 0x970   :  { %5128 = vmatprep.subr.bf16.mxu0 %v7092_v37 }
 0x973   :  { %5129 = vmatpush1.bf16.msra.mxu0 %v7090_v38 }
 0x974   :  { %5130 = vmatprep.subr.bf16.mxu0 %v7095_v39 }
 0x977   :  { %5131 = vmatpush1.bf16.msra.mxu0 %v7093_v9 }
 0x978   :  { %5132 = vmatprep.subr.bf16.mxu0 %v7098_v40 }
 0x97b   :  { %5133 = vmatpush1.bf16.msra.mxu0 %v7096_v41 }
 0x97c   :  { %5134 = vmatprep.subr.bf16.mxu0 %v7101_v42 }
 0x97f   :  { %5135 = vmatpush1.bf16.msra.mxu0 %v7099_v43 }
 0x980   :  { %5136 = vmatprep.subr.bf16.mxu0 %v7104_v44 }
 0x983   :  { %5137 = vmatpush1.bf16.msra.mxu0 %v7102_v45 }
 0x984   :  { %5138 = vmatprep.subr.bf16.mxu0 %v7107_v46 }
 0x987   :  { %5139 = vmatpush1.bf16.msra.mxu0 %v7105_v47 }
 0x988   :  { %5140 = vmatprep.subr.bf16.mxu0 %v7110_v48 }
 0x98b   :  { %5141 = vmatpush1.bf16.msra.mxu0 %v7108_v11 }
 0x98c   :  { %5142 = vmatprep.subr.bf16.mxu0 %v7113_v49 }
 0x98f   :  { %5143 = vmatpush1.bf16.msra.mxu0 %v7111_v50 }
 0x990   :  { %5144 = vmatprep.subr.bf16.mxu0 %v7116_v51  ;;  %v3740_v51 = vsub.s32 6, %v8034_v57 }
 0x993   :  { %5145 = vmatpush1.bf16.msra.mxu0 %v7114_v52  ;;  %v3741_v52 = vrot.slane %v9274_v55, %v3740_v51 }
 0x994   :  { %5146 = vmatprep.subr.bf16.mxu0 %v7119_v53 }
 0x997   :  { %5147 = vmatpush1.bf16.msra.mxu0 %v7117_v54 }
 0x99a   :  { %5149 = vmatmul.mubr.bf16.vlgmr.msra.gmra.mrb[16].mxu0 %v8775_v8 }
 0x9ed   :  { %v4978_v1 = vpop.f32.mrb[12].mxu0  ;;  %v5064_v2 = vpop.f32.mrb[32].mxu1 }
 0x9ee   :  { %v6177_v8 = vadd.f32 %v4978_v1, %v3717_v56  ;;  %v6181_v3 = vadd.f32 %v5064_v2, %v3725_v60  ;;  %v4980_v4 = vpop.f32.mrb[13].mxu0  ;;  %v5066_v5 = vpop.f32.mrb[33].mxu1 }
 0x9ef   :  { %v6178_v6 = vadd.f32 %v4980_v4, %v3721_v63  ;;  %v6182_v13 = vadd.f32 %v5066_v5, %v3729_v0  ;;  %v4982_v14 = vpop.f32.mrb[14].mxu0  ;;  %v5068_v15 = vpop.f32.mrb[34].mxu1 }
 0x9f0   :  { %v5969_v58 = vmul.f32 -1.442695, %v6177_v8  ;;  %v5971_v16 = vmul.f32 -1.442695, %v6181_v3  ;;  %v6179_v17 = vadd.f32 %v4982_v14, %v3717_v56  ;;  %v6183_v59 = vadd.f32 %v5068_v15, %v3725_v60  ;;  %v4984_v18 = vpop.f32.mrb[15].mxu0  ;;  %v5070_v19 = vpop.f32.mrb[35].mxu1 }
 0x9f1   :  { %v5970_v61 = vmul.f32 -1.442695, %v6178_v6  ;;  %v5972_v20 = vmul.f32 -1.442695, %v6182_v13  ;;  %v6180_v21 = vadd.f32 %v4984_v18, %v3721_v63  ;;  %v6184_v62 = vadd.f32 %v5070_v19, %v3729_v0 }
 0x9f2   :  { %7120 = vpow2.f32 %v5969_v58  ;;  %v5976_v22 = vmul.f32 -1.442695, %v6179_v17  ;;  %v5978_v23 = vmul.f32 -1.442695, %v6183_v59  ;;  %v3732_v17 = vsub.s32 4, %v8034_v57 }
 0x9f3   :  { %7122 = vpow2.f32 %v5971_v16  ;;  %v5977_v24 = vmul.f32 -1.442695, %v6180_v21  ;;  %v5979_v25 = vmul.f32 -1.442695, %v6184_v62  ;;  %v3736_v59 = vsub.s32 5, %v8034_v57 }
 0x9f4   :  { %7124 = vpow2.f32 %v5970_v61  ;;  %v3733_v18 = vrot.slane %v9274_v55, %v3732_v17 }
 0x9f5   :  { %7126 = vpow2.f32 %v5972_v20  ;;  %v3737_v19 = vrot.slane %v9274_v55, %v3736_v59 }
 0x9f6   :  { %7128 = vpow2.f32 %v5976_v22 }
 0x9f7   :  { %7130 = vpow2.f32 %v5978_v23 }
 0x9f8   :  { %7132 = vpow2.f32 %v5977_v24 }
 0x9f9   :  { %7134 = vpow2.f32 %v5979_v25 }
 0x9fc   :  { %v7121_v26 = vpop.eup %7120 }
 0x9fd   :  { %v7123_v27 = vpop.eup %7122  ;;  %v5283_v28 = vadd.f32 1.0, %v7121_v26 }
 0x9fe   :  { %v7125_v29 = vpop.eup %7124  ;;  %v5285_v30 = vadd.f32 1.0, %v7123_v27 }
 0x9ff   :  { %v7127_v10 = vpop.eup %7126  ;;  %7136 = vrcp.f32 %v5283_v28  ;;  %v5284_v31 = vadd.f32 1.0, %v7125_v29 }
 0xa00   :  { %v7129_v32 = vpop.eup %7128  ;;  %7138 = vrcp.f32 %v5285_v30  ;;  %v5286_v7 = vadd.f32 1.0, %v7127_v10 }
 0xa01   :  { %v7131_v12 = vpop.eup %7130  ;;  %7140 = vrcp.f32 %v5284_v31  ;;  %v5290_v33 = vadd.f32 1.0, %v7129_v32 }
 0xa02   :  { %v7133_v34 = vpop.eup %7132  ;;  %7142 = vrcp.f32 %v5286_v7  ;;  %v5292_v35 = vadd.f32 1.0, %v7131_v12 }
 0xa03   :  { %v7135_v36 = vpop.eup %7134  ;;  %7144 = vrcp.f32 %v5290_v33  ;;  %v5291_v37 = vadd.f32 1.0, %v7133_v34 }
 0xa04   :  { %7146 = vrcp.f32 %v5292_v35  ;;  %v5293_v38 = vadd.f32 1.0, %v7135_v36 }
 0xa05   :  { %7148 = vrcp.f32 %v5291_v37 }
 0xa06   :  { %7150 = vrcp.f32 %v5293_v38 }
 0xa09   :  { %v7137_v39 = vpop.eup %7136 }
 0xa0a   :  { %v7139_v9 = vpop.eup %7138  ;;  %5325 = vst [vmem:[%s9355_s21] sm:$0xff] %v7137_v39 }
 0xa0b   :  { %v7141_v40 = vpop.eup %7140  ;;  %5327 = vst [vmem:[%s9355_s21 + $0x10] sm:$0xff] %v7139_v9 }
 0xa0c   :  { %v7143_v41 = vpop.eup %7142  ;;  %5326 = vst [vmem:[%s9355_s21 + $0x8] sm:$0xff] %v7141_v40 }
 0xa0d   :  { %v7145_v42 = vpop.eup %7144  ;;  %5328 = vst [vmem:[%s9355_s21 + $0x18] sm:$0xff] %v7143_v41 }
 0xa0e   :  { %v7147_v43 = vpop.eup %7146  ;;  %5332 = vst [vmem:[%s9355_s21 + $0x38] sm:$0xff] %v7145_v42  ;;  %v6057_v44 = vpop.f32.mrb[36].mxu1 }
 0xa0f   :  { %v7149_v45 = vpop.eup %7148  ;;  %5334 = vst [vmem:[%s9355_s21 + $0x48] sm:$0xff] %v7147_v43  ;;  %v6058_v46 = vpop.f32.mrb[37].mxu1 }
 0xa10   :  { %v7151_v47 = vpop.eup %7150  ;;  %5333 = vst [vmem:[%s9355_s21 + $0x40] sm:$0xff] %v7149_v45  ;;  %v6059_v48 = vadd.f32 %v6058_v46, %v6057_v44  ;;  %v6060_v11 = vpop.f32.mrb[38].mxu1 }
 0xa11   :  { %5335 = vst [vmem:[%s9355_s21 + $0x50] sm:$0xff] %v7151_v47  ;;  %v6061_v49 = vpop.f32.mrb[39].mxu1 }
 0xa12   :  { %v6062_v50 = vadd.f32 %v6061_v49, %v6060_v11  ;;  %v5194_v56 = vadd.f32 %v6059_v48, %v3741_v52 }
 0xa14   :  { %v5197_v1 = vadd.f32 %v6062_v50, %v3741_v52 }
 0xa2e   :  { %v6079_v53 = vpop.f32.mrb[40].mxu1 }
 0xa2f   :  { %v6080_v54 = vpop.f32.mrb[41].mxu1 }
 0xa30   :  { %v6081_v60 = vadd.f32 %v6080_v54, %v6079_v53  ;;  %v6082_v63 = vpop.f32.mrb[42].mxu1 }
 0xa31   :  { %v6083_v0 = vpop.f32.mrb[43].mxu1 }
 0xa32   :  { %v5235_v2 = vadd.f32 %v6081_v60, %v5194_v56  ;;  %v6084_v8 = vadd.f32 %v6083_v0, %v6082_v63 }
 0xa34   :  { %v5975_v3 = vmul.f32 -1.442695, %v5235_v2  ;;  %v5238_v4 = vadd.f32 %v6084_v8, %v5197_v1 }
 0xa36   :  { %7152 = vpow2.f32 %v5975_v3  ;;  %v5982_v5 = vmul.f32 -1.442695, %v5238_v4 }
 0xa38   :  { %7154 = vpow2.f32 %v5982_v5 }
 0xa40   :  { %v7153_v6 = vpop.eup %7152 }
 0xa41   :  { %v5289_v13 = vadd.f32 1.0, %v7153_v6 }
 0xa42   :  { %v7155_v14 = vpop.eup %7154 }
 0xa43   :  { %7156 = vrcp.f32 %v5289_v13  ;;  %v5296_v15 = vadd.f32 1.0, %v7155_v14 }
 0xa45   :  { %7158 = vrcp.f32 %v5296_v15 }
 0xa4d   :  { %v7157_v58 = vpop.eup %7156 }
 0xa4e   :  { %5331 = vst.msk [vmem:[%s9355_s21 + $0x30] sm:$0xff] %vm1310_vm0, %v7157_v58 }
 0xa4f   :  { %v7159_v16 = vpop.eup %7158 }
 0xa50   :  { %5338 = vst.msk [vmem:[%s9355_s21 + $0x68] sm:$0xff] %vm1310_vm0, %v7159_v16 }
 0xa6d   :  { %v5150_v61 = vpop.f32.mrb[16].mxu0 }
 0xa6e   :  { %v6185_v20 = vadd.f32 %v5150_v61, %v3733_v18  ;;  %v5152_v21 = vpop.f32.mrb[17].mxu0 }
 0xa6f   :  { %v6186_v62 = vadd.f32 %v5152_v21, %v3737_v19  ;;  %v5154_v22 = vpop.f32.mrb[18].mxu0 }
 0xa70   :  { %v5973_v23 = vmul.f32 -1.442695, %v6185_v20  ;;  %v6187_v24 = vadd.f32 %v5154_v22, %v3733_v18  ;;  %v5156_v25 = vpop.f32.mrb[19].mxu0 }
 0xa71   :  { %v5974_v26 = vmul.f32 -1.442695, %v6186_v62  ;;  %v6188_v27 = vadd.f32 %v5156_v25, %v3737_v19 }
 0xa72   :  { %7160 = vpow2.f32 %v5973_v23  ;;  %v5980_v28 = vmul.f32 -1.442695, %v6187_v24 }
 0xa73   :  { %7162 = vpow2.f32 %v5974_v26  ;;  %v5981_v29 = vmul.f32 -1.442695, %v6188_v27 }
 0xa74   :  { %7164 = vpow2.f32 %v5980_v28 }
 0xa75   :  { %7166 = vpow2.f32 %v5981_v29 }
 0xa7c   :  { %v7161_v57 = vpop.eup %7160 }
 0xa7d   :  { %v7163_v30 = vpop.eup %7162  ;;  %v5287_v10 = vadd.f32 1.0, %v7161_v57 }
 0xa7e   :  { %v7165_v55 = vpop.eup %7164  ;;  %v5288_v31 = vadd.f32 1.0, %v7163_v30 }
 0xa7f   :  { %v7167_v32 = vpop.eup %7166  ;;  %7168 = vrcp.f32 %v5287_v10  ;;  %v5294_v7 = vadd.f32 1.0, %v7165_v55 }
 0xa80   :  { %7170 = vrcp.f32 %v5288_v31  ;;  %v5295_v12 = vadd.f32 1.0, %v7167_v32 }
 0xa81   :  { %7172 = vrcp.f32 %v5294_v7 }
 0xa82   :  { %7174 = vrcp.f32 %v5295_v12 }
 0xa89   :  { %v7169_v33 = vpop.eup %7168 }
 0xa8a   :  { %v7171_v34 = vpop.eup %7170  ;;  %5329 = vst [vmem:[%s9355_s21 + $0x20] sm:$0xff] %v7169_v33 }
 0xa8b   :  { %v7173_v35 = vpop.eup %7172  ;;  %5330 = vst [vmem:[%s9355_s21 + $0x28] sm:$0xff] %v7171_v34 }
 0xa8c   :  { %v7175_v36 = vpop.eup %7174  ;;  %5336 = vst [vmem:[%s9355_s21 + $0x58] sm:$0xff] %v7173_v35 }
 0xa8d   :  { %5337 = vst [vmem:[%s9355_s21 + $0x60] sm:$0xff] %v7175_v36 }

// kernel: _forward_impl.1
= control target key start
LH: loop header
LB: loop body
LE: loop exit
PB: predicated region body
PF: predicated region fallthrough
CT: control target
= control target key end

     0   :  { %vm1310_vm0 = vcmask 130048   ;;  %vm7178_vm1 = vmmov 0   ;;  %s9334_s1 = inlined_call_operand.vmem [shape: bf16[784,512], index: 1, kind: input, shape index: {}]   ;;  %s9335_s0 = inlined_call_operand.vmem [shape: bf16[16,784], index: 0, kind: input, shape index: {}]   ;;  %s9336_s3 = inlined_call_operand.vmem [shape: bf16[512,256], index: 3, kind: input, shape index: {}]   ;;  %s9337_s5 = inlined_call_operand.vmem [shape: bf16[256,128], index: 5, kind: input, shape index: {}]   ;;  %s9338_s2 = inlined_call_operand.vmem [shape: f32[1,512], index: 2, kind: input, shape index: {}]   ;;  %s9339_s7 = inlined_call_operand.vmem [shape: bf16[128,128], index: 7, kind: input, shape index: {}]   ;;  %s9340_s4 = inlined_call_operand.vmem [shape: f32[1,256], index: 4, kind: input, shape index: {}]   ;;  %s9341_s9 = inlined_call_operand.vmem [shape: bf16[128,128], index: 9, kind: input, shape index: {}]   ;;  %s9342_s6 = inlined_call_operand.vmem [shape: f32[1,128], index: 6, kind: input, shape index: {}]   ;;  %s9343_s11 = inlined_call_operand.vmem [shape: bf16[128,128], index: 11, kind: input, shape index: {}]   ;;  %s9344_s8 = inlined_call_operand.vmem [shape: f32[1,128], index: 8, kind: input, shape index: {}]   ;;  %s9345_s13 = inlined_call_operand.vmem [shape: bf16[128,128], index: 13, kind: input, shape index: {}]   ;;  %s9346_s10 = inlined_call_operand.vmem [shape: f32[1,128], index: 10, kind: input, shape index: {}]   ;;  %s9347_s15 = inlined_call_operand.vmem [shape: bf16[128,256], index: 15, kind: input, shape index: {}]   ;;  %s9348_s12 = inlined_call_operand.vmem [shape: f32[1,128], index: 12, kind: input, shape index: {}]   ;;  %s9349_s17 = inlined_call_operand.vmem [shape: bf16[256,512], index: 17, kind: input, shape index: {}]   ;;  %s9350_s14 = inlined_call_operand.vmem [shape: f32[1,128], index: 14, kind: input, shape index: {}]   ;;  %s9351_s19 = inlined_call_operand.vmem [shape: bf16[512,784], index: 19, kind: input, shape index: {}]   ;;  %s9352_s16 = inlined_call_operand.vmem [shape: f32[1,256], index: 16, kind: input, shape index: {}]   ;;  %s9353_s18 = inlined_call_operand.vmem [shape: f32[1,512], index: 18, kind: input, shape index: {}]   ;;  %s9354_s20 = inlined_call_operand.vmem [shape: f32[1,784], index: 20, kind: input, shape index: {}]   ;;  %s9355_s21 = inlined_call_operand.vmem [shape: f32[16,784], index: 21, kind: output, shape index: {}]  }
   0x1   :  { %9361 = sst [smem:[#allocation2_spill]] %s9334_s1 }
   0x2   :  { %9362 = sst [smem:[#allocation3_spill]] %s9335_s0  ;;  %s9367_s26 = sld [smem:[#allocation2_spill]] }
   0x3   :  { %9363 = sst [smem:[#allocation4_spill]] %s9336_s3  ;;  %s9368_s3 = sld [smem:[#allocation3_spill]] }
   0x4   :  { %9364 = sst [smem:[#allocation5_spill]] %s9337_s5  ;;  %s9369_s22 = sld [smem:[#allocation4_spill]] }
   0x5   :  { %9365 = sst [smem:[#allocation6_spill]] %s9338_s2  ;;  %s9370_s30 = sld [smem:[#allocation5_spill]] }
   0x6   :  { %9366 = sst [smem:[#allocation7_spill]] %s9339_s7 }
   0x7   :  { %s9372_s25 = sld [smem:[#allocation7_spill]] }
   0x8   :  { %v6232_v0 = vld [vmem:[%s9367_s26 + $0x4] ss:$16 sps:$4 sm:$0xff]   ;;  %v6234_v1 = vld [vmem:[%s9367_s26 + $0xc] ss:$16 sps:$4 sm:$0xff]   ;;  %v6236_v2 = vld [vmem:[%s9367_s26] ss:$16 sps:$4 sm:$0xff]  }
   0x9   :  { %1314 = vmatprep.subr.bf16.mxu0 %v6232_v0  ;;  %v6237_v3 = vld [vmem:[%s9367_s26 + $0x8] ss:$16 sps:$4 sm:$0xff]   ;;  %1486 = vmatprep.subr.bf16.mxu1 %v6234_v1  ;;  %v6238_v4 = vld [vmem:[%s9367_s26 + $0x24] ss:$16 sps:$4 sm:$0xff]   ;;  %v6240_v5 = vld [vmem:[%s9367_s26 + $0x2c] ss:$16 sps:$4 sm:$0xff]  }
   0xa   :  { %1315 = vmatpush1.bf16.msra.mxu0 %v6236_v2  ;;  %1487 = vmatpush1.bf16.msra.mxu1 %v6237_v3  ;;  %v6242_v6 = vld [vmem:[%s9367_s26 + $0x20] ss:$16 sps:$4 sm:$0xff]   ;;  %v6243_v7 = vld [vmem:[%s9367_s26 + $0x28] ss:$16 sps:$4 sm:$0xff]   ;;  %v6244_v8 = vld [vmem:[%s9367_s26 + $0x44] ss:$16 sps:$4 sm:$0xff]  }
   0xb   :  { %1316 = vmatprep.subr.bf16.mxu0 %v6238_v4  ;;  %1488 = vmatprep.subr.bf16.mxu1 %v6240_v5  ;;  %v6246_v9 = vld [vmem:[%s9367_s26 + $0x4c] ss:$16 sps:$4 sm:$0xff]   ;;  %v6248_v10 = vld [vmem:[%s9367_s26 + $0x40] ss:$16 sps:$4 sm:$0xff]   ;;  %v6249_v11 = vld [vmem:[%s9367_s26 + $0x48] ss:$16 sps:$4 sm:$0xff]  }
   0xc   :  { %v6250_v12 = vld [vmem:[%s9367_s26 + $0x64] ss:$16 sps:$4 sm:$0xff]   ;;  %v6252_v13 = vld [vmem:[%s9367_s26 + $0x6c] ss:$16 sps:$4 sm:$0xff]   ;;  %v6254_v14 = vld [vmem:[%s9367_s26 + $0x60] ss:$16 sps:$4 sm:$0xff]  }
   0xd   :  { %v6255_v15 = vld [vmem:[%s9367_s26 + $0x68] ss:$16 sps:$4 sm:$0xff]   ;;  %v6256_v16 = vld [vmem:[%s9367_s26 + $0x84] ss:$16 sps:$4 sm:$0xff]   ;;  %v6258_v17 = vld [vmem:[%s9367_s26 + $0x8c] ss:$16 sps:$4 sm:$0xff]  }
   0xe   :  { %1317 = vmatpush1.bf16.msra.mxu0 %v6242_v6  ;;  %1489 = vmatpush1.bf16.msra.mxu1 %v6243_v7  ;;  %v6260_v18 = vld [vmem:[%s9367_s26 + $0x80] ss:$16 sps:$4 sm:$0xff]   ;;  %v6261_v19 = vld [vmem:[%s9367_s26 + $0x88] ss:$16 sps:$4 sm:$0xff]   ;;  %v6262_v20 = vld [vmem:[%s9367_s26 + $0xa4] ss:$16 sps:$4 sm:$0xff]  }
   0xf   :  { %1318 = vmatprep.subr.bf16.mxu0 %v6244_v8  ;;  %1490 = vmatprep.subr.bf16.mxu1 %v6246_v9  ;;  %v6264_v21 = vld [vmem:[%s9367_s26 + $0xac] ss:$16 sps:$4 sm:$0xff]   ;;  %v6266_v22 = vld [vmem:[%s9367_s26 + $0xa0] ss:$16 sps:$4 sm:$0xff]   ;;  %v6267_v23 = vld [vmem:[%s9367_s26 + $0xa8] ss:$16 sps:$4 sm:$0xff]  }
  0x10   :  { %v6268_v24 = vld [vmem:[%s9367_s26 + $0xc4] ss:$16 sps:$4 sm:$0xff]   ;;  %v6270_v25 = vld [vmem:[%s9367_s26 + $0xcc] ss:$16 sps:$4 sm:$0xff]   ;;  %v6272_v26 = vld [vmem:[%s9367_s26 + $0xc0] ss:$16 sps:$4 sm:$0xff]  }
  0x11   :  { %v6273_v27 = vld [vmem:[%s9367_s26 + $0xc8] ss:$16 sps:$4 sm:$0xff]   ;;  %v6274_v28 = vld [vmem:[%s9367_s26 + $0xe4] ss:$16 sps:$4 sm:$0xff]   ;;  %v6276_v29 = vld [vmem:[%s9367_s26 + $0xec] ss:$16 sps:$4 sm:$0xff]  }
  0x12   :  { %1319 = vmatpush1.bf16.msra.mxu0 %v6248_v10  ;;  %1491 = vmatpush1.bf16.msra.mxu1 %v6249_v11  ;;  %v6278_v30 = vld [vmem:[%s9367_s26 + $0xe0] ss:$16 sps:$4 sm:$0xff]   ;;  %v6279_v31 = vld [vmem:[%s9367_s26 + $0xe8] ss:$16 sps:$4 sm:$0xff]   ;;  %v6280_v32 = vld [vmem:[%s9367_s26 + $0x104] ss:$16 sps:$4 sm:$0xff]  }
  0x13   :  { %1320 = vmatprep.subr.bf16.mxu0 %v6250_v12  ;;  %1492 = vmatprep.subr.bf16.mxu1 %v6252_v13  ;;  %v6282_v33 = vld [vmem:[%s9367_s26 + $0x10c] ss:$16 sps:$4 sm:$0xff]   ;;  %v6284_v34 = vld [vmem:[%s9367_s26 + $0x100] ss:$16 sps:$4 sm:$0xff]   ;;  %v6285_v35 = vld [vmem:[%s9367_s26 + $0x108] ss:$16 sps:$4 sm:$0xff]  }
  0x14   :  { %v6286_v36 = vld [vmem:[%s9367_s26 + $0x124] ss:$16 sps:$4 sm:$0xff]   ;;  %v6288_v37 = vld [vmem:[%s9367_s26 + $0x12c] ss:$16 sps:$4 sm:$0xff]   ;;  %v6290_v38 = vld [vmem:[%s9367_s26 + $0x120] ss:$16 sps:$4 sm:$0xff]  }
  0x15   :  { %v6291_v39 = vld [vmem:[%s9367_s26 + $0x128] ss:$16 sps:$4 sm:$0xff]   ;;  %v6292_v40 = vld [vmem:[%s9367_s26 + $0x144] ss:$16 sps:$4 sm:$0xff]   ;;  %v6294_v41 = vld [vmem:[%s9367_s26 + $0x14c] ss:$16 sps:$4 sm:$0xff]  }
  0x16   :  { %1321 = vmatpush1.bf16.msra.mxu0 %v6254_v14  ;;  %1493 = vmatpush1.bf16.msra.mxu1 %v6255_v15  ;;  %v6296_v42 = vld [vmem:[%s9367_s26 + $0x140] ss:$16 sps:$4 sm:$0xff]   ;;  %v6297_v43 = vld [vmem:[%s9367_s26 + $0x148] ss:$16 sps:$4 sm:$0xff]   ;;  %v6298_v44 = vld [vmem:[%s9367_s26 + $0x164] ss:$16 sps:$4 sm:$0xff]  }
  0x17   :  { %1322 = vmatprep.subr.bf16.mxu0 %v6256_v16  ;;  %1494 = vmatprep.subr.bf16.mxu1 %v6258_v17  ;;  %v6300_v45 = vld [vmem:[%s9367_s26 + $0x16c] ss:$16 sps:$4 sm:$0xff]   ;;  %v6302_v46 = vld [vmem:[%s9367_s26 + $0x160] ss:$16 sps:$4 sm:$0xff]   ;;  %v6303_v47 = vld [vmem:[%s9367_s26 + $0x168] ss:$16 sps:$4 sm:$0xff]  }
  0x18   :  { %v6330_v48 = vld [vmem:[%s9368_s3 + $0x4] ss:$28 sps:$4 sm:$0xff]   ;;  %v6306_v50 = vld [vmem:[%s9367_s26 + $0x18c] ss:$16 sps:$4 sm:$0xff]   ;;  %v6309_v52 = vld [vmem:[%s9367_s26 + $0x188] ss:$16 sps:$4 sm:$0xff]  }
  0x19   :  { %v6304_v49 = vld [vmem:[%s9367_s26 + $0x184] ss:$16 sps:$4 sm:$0xff]   ;;  %1346 = vmatprep.mubr.bf16.mxu0 %v6330_v48  ;;  %1518 = vmatprep.mubr.bf16.mxu1 %v6330_v48  ;;  %v6308_v51 = vld [vmem:[%s9367_s26 + $0x180] ss:$16 sps:$4 sm:$0xff]   ;;  %v6312_v54 = vld [vmem:[%s9367_s26 + $0x1ac] ss:$16 sps:$4 sm:$0xff]  }
  0x1a   :  { %1323 = vmatpush1.bf16.msra.mxu0 %v6260_v18  ;;  %1495 = vmatpush1.bf16.msra.mxu1 %v6261_v19  ;;  %v6310_v53 = vld [vmem:[%s9367_s26 + $0x1a4] ss:$16 sps:$4 sm:$0xff]   ;;  %v6314_v55 = vld [vmem:[%s9367_s26 + $0x1a0] ss:$16 sps:$4 sm:$0xff]   ;;  %v6315_v56 = vld [vmem:[%s9367_s26 + $0x1a8] ss:$16 sps:$4 sm:$0xff]  }
  0x1b   :  { %1324 = vmatprep.subr.bf16.mxu0 %v6262_v20  ;;  %1496 = vmatprep.subr.bf16.mxu1 %v6264_v21  ;;  %v6316_v57 = vld [vmem:[%s9367_s26 + $0x1c4] ss:$16 sps:$4 sm:$0xff]   ;;  %v6318_v58 = vld [vmem:[%s9367_s26 + $0x1cc] ss:$16 sps:$4 sm:$0xff]   ;;  %v6320_v59 = vld [vmem:[%s9367_s26 + $0x1c0] ss:$16 sps:$4 sm:$0xff]  }
  0x1c   :  { %v6321_v60 = vld [vmem:[%s9367_s26 + $0x1c8] ss:$16 sps:$4 sm:$0xff]   ;;  %v6322_v61 = vld [vmem:[%s9367_s26 + $0x1e4] ss:$16 sps:$4 sm:$0xff]   ;;  %v6324_v62 = vld [vmem:[%s9367_s26 + $0x1ec] ss:$16 sps:$4 sm:$0xff]  }
  0x1d   :  { %v6326_v63 = vld [vmem:[%s9367_s26 + $0x1e0] ss:$16 sps:$4 sm:$0xff]   ;;  %v6327_v0 = vld [vmem:[%s9367_s26 + $0x1e8] ss:$16 sps:$4 sm:$0xff]   ;;  %v6333_v1 = vld [vmem:[%s9367_s26 + $0x204] ss:$16 sps:$4 sm:$0xff]  }
  0x1e   :  { %1325 = vmatpush1.bf16.msra.mxu0 %v6266_v22  ;;  %1497 = vmatpush1.bf16.msra.mxu1 %v6267_v23  ;;  %v6336_v2 = vld [vmem:[%s9367_s26 + $0x20c] ss:$16 sps:$4 sm:$0xff]   ;;  %v6331_v4 = vld [vmem:[%s9367_s26 + $0x200] ss:$16 sps:$4 sm:$0xff]   ;;  %v6334_v5 = vld [vmem:[%s9367_s26 + $0x208] ss:$16 sps:$4 sm:$0xff]  }
  0x1f   :  { %1326 = vmatprep.subr.bf16.mxu0 %v6268_v24  ;;  %1498 = vmatprep.subr.bf16.mxu1 %v6270_v25  ;;  %v6328_v3 = vld [vmem:[%s9368_s3] ss:$28 sps:$4 sm:$0xff]   ;;  %v6339_v6 = vld [vmem:[%s9367_s26 + $0x224] ss:$16 sps:$4 sm:$0xff]   ;;  %v6340_v9 = vld [vmem:[%s9367_s26 + $0x228] ss:$16 sps:$4 sm:$0xff]  }
  0x20   :  { %v6342_v7 = vld [vmem:[%s9367_s26 + $0x22c] ss:$16 sps:$4 sm:$0xff]   ;;  %v6337_v8 = vld [vmem:[%s9367_s26 + $0x220] ss:$16 sps:$4 sm:$0xff]   ;;  %v6345_v10 = vld [vmem:[%s9367_s26 + $0x244] ss:$16 sps:$4 sm:$0xff]  }
  0x21   :  { %v6348_v11 = vld [vmem:[%s9367_s26 + $0x24c] ss:$16 sps:$4 sm:$0xff]   ;;  %v6343_v12 = vld [vmem:[%s9367_s26 + $0x240] ss:$16 sps:$4 sm:$0xff]   ;;  %v6346_v13 = vld [vmem:[%s9367_s26 + $0x248] ss:$16 sps:$4 sm:$0xff]  }
  0x22   :  { %1327 = vmatpush1.bf16.msra.mxu0 %v6272_v26  ;;  %1499 = vmatpush1.bf16.msra.mxu1 %v6273_v27  ;;  %v6351_v14 = vld [vmem:[%s9367_s26 + $0x264] ss:$16 sps:$4 sm:$0xff]   ;;  %v6354_v15 = vld [vmem:[%s9367_s26 + $0x26c] ss:$16 sps:$4 sm:$0xff]   ;;  %v6349_v16 = vld [vmem:[%s9367_s26 + $0x260] ss:$16 sps:$4 sm:$0xff]  }
  0x23   :  { %1328 = vmatprep.subr.bf16.mxu0 %v6274_v28  ;;  %1500 = vmatprep.subr.bf16.mxu1 %v6276_v29  ;;  %v6352_v17 = vld [vmem:[%s9367_s26 + $0x268] ss:$16 sps:$4 sm:$0xff]   ;;  %v6357_v18 = vld [vmem:[%s9367_s26 + $0x284] ss:$16 sps:$4 sm:$0xff]   ;;  %v6360_v19 = vld [vmem:[%s9367_s26 + $0x28c] ss:$16 sps:$4 sm:$0xff]  }
  0x24   :  { %v6355_v20 = vld [vmem:[%s9367_s26 + $0x280] ss:$16 sps:$4 sm:$0xff]   ;;  %v6358_v21 = vld [vmem:[%s9367_s26 + $0x288] ss:$16 sps:$4 sm:$0xff]   ;;  %v6363_v22 = vld [vmem:[%s9367_s26 + $0x2a4] ss:$16 sps:$4 sm:$0xff]  }
  0x25   :  { %v6366_v23 = vld [vmem:[%s9367_s26 + $0x2ac] ss:$16 sps:$4 sm:$0xff]   ;;  %v6361_v24 = vld [vmem:[%s9367_s26 + $0x2a0] ss:$16 sps:$4 sm:$0xff]   ;;  %v6364_v25 = vld [vmem:[%s9367_s26 + $0x2a8] ss:$16 sps:$4 sm:$0xff]  }
  0x26   :  { %1329 = vmatpush1.bf16.msra.mxu0 %v6278_v30  ;;  %1501 = vmatpush1.bf16.msra.mxu1 %v6279_v31  ;;  %v6369_v26 = vld [vmem:[%s9367_s26 + $0x2c4] ss:$16 sps:$4 sm:$0xff]   ;;  %v6372_v27 = vld [vmem:[%s9367_s26 + $0x2cc] ss:$16 sps:$4 sm:$0xff]   ;;  %v6367_v28 = vld [vmem:[%s9367_s26 + $0x2c0] ss:$16 sps:$4 sm:$0xff]  }
  0x27   :  { %1330 = vmatprep.subr.bf16.mxu0 %v6280_v32  ;;  %1502 = vmatprep.subr.bf16.mxu1 %v6282_v33  ;;  %v6370_v29 = vld [vmem:[%s9367_s26 + $0x2c8] ss:$16 sps:$4 sm:$0xff]   ;;  %v6375_v31 = vld [vmem:[%s9367_s26 + $0x2e4] ss:$16 sps:$4 sm:$0xff]   ;;  %v6378_v32 = vld [vmem:[%s9367_s26 + $0x2ec] ss:$16 sps:$4 sm:$0xff]  }
  0x28   :  { %v6429_v30 = vld [vmem:[%s9368_s3 + $0xc] ss:$28 sps:$4 sm:$0xff]   ;;  %v6373_v33 = vld [vmem:[%s9367_s26 + $0x2e0] ss:$16 sps:$4 sm:$0xff]  }
  0x29   :  { %v6402_v48 = vld [vmem:[%s9367_s26 + $0x36c] ss:$16 sps:$4 sm:$0xff]  }
  0x2a   :  { %1331 = vmatpush1.bf16.msra.mxu0 %v6284_v34  ;;  %1503 = vmatpush1.bf16.msra.mxu1 %v6285_v35  ;;  %v6376_v34 = vld [vmem:[%s9367_s26 + $0x2e8] ss:$16 sps:$4 sm:$0xff]   ;;  %v6381_v35 = vld [vmem:[%s9367_s26 + $0x304] ss:$16 sps:$4 sm:$0xff]  }
  0x2b   :  { %1332 = vmatprep.subr.bf16.mxu0 %v6286_v36  ;;  %1504 = vmatprep.subr.bf16.mxu1 %v6288_v37  ;;  %v6384_v36 = vld [vmem:[%s9367_s26 + $0x30c] ss:$16 sps:$4 sm:$0xff]   ;;  %v6379_v37 = vld [vmem:[%s9367_s26 + $0x300] ss:$16 sps:$4 sm:$0xff]  }
  0x2e   :  { %1333 = vmatpush1.bf16.msra.mxu0 %v6290_v38  ;;  %1505 = vmatpush1.bf16.msra.mxu1 %v6291_v39  ;;  %v6382_v38 = vld [vmem:[%s9367_s26 + $0x308] ss:$16 sps:$4 sm:$0xff]   ;;  %v6387_v39 = vld [vmem:[%s9367_s26 + $0x324] ss:$16 sps:$4 sm:$0xff]  }
  0x2f   :  { %1334 = vmatprep.subr.bf16.mxu0 %v6292_v40  ;;  %1506 = vmatprep.subr.bf16.mxu1 %v6294_v41  ;;  %v6390_v40 = vld [vmem:[%s9367_s26 + $0x32c] ss:$16 sps:$4 sm:$0xff]   ;;  %v6385_v41 = vld [vmem:[%s9367_s26 + $0x320] ss:$16 sps:$4 sm:$0xff]  }
  0x32   :  { %1335 = vmatpush1.bf16.msra.mxu0 %v6296_v42  ;;  %1507 = vmatpush1.bf16.msra.mxu1 %v6297_v43  ;;  %v6388_v42 = vld [vmem:[%s9367_s26 + $0x328] ss:$16 sps:$4 sm:$0xff]   ;;  %v6393_v43 = vld [vmem:[%s9367_s26 + $0x344] ss:$16 sps:$4 sm:$0xff]  }
  0x33   :  { %1336 = vmatprep.subr.bf16.mxu0 %v6298_v44  ;;  %1508 = vmatprep.subr.bf16.mxu1 %v6300_v45  ;;  %v6396_v44 = vld [vmem:[%s9367_s26 + $0x34c] ss:$16 sps:$4 sm:$0xff]   ;;  %v6391_v45 = vld [vmem:[%s9367_s26 + $0x340] ss:$16 sps:$4 sm:$0xff]  }
  0x36   :  { %1337 = vmatpush1.bf16.msra.mxu0 %v6302_v46  ;;  %1509 = vmatpush1.bf16.msra.mxu1 %v6303_v47  ;;  %v6394_v46 = vld [vmem:[%s9367_s26 + $0x348] ss:$16 sps:$4 sm:$0xff]   ;;  %v6399_v47 = vld [vmem:[%s9367_s26 + $0x364] ss:$16 sps:$4 sm:$0xff]  }
  0x37   :  { %1338 = vmatprep.subr.bf16.mxu0 %v6304_v49  ;;  %1510 = vmatprep.subr.bf16.mxu1 %v6306_v50  ;;  %v6397_v49 = vld [vmem:[%s9367_s26 + $0x360] ss:$16 sps:$4 sm:$0xff]   ;;  %v6400_v50 = vld [vmem:[%s9367_s26 + $0x368] ss:$16 sps:$4 sm:$0xff]  }
  0x3a   :  { %1339 = vmatpush1.bf16.msra.mxu0 %v6308_v51  ;;  %1511 = vmatpush1.bf16.msra.mxu1 %v6309_v52  ;;  %v6405_v51 = vld [vmem:[%s9367_s26 + $0x384] ss:$16 sps:$4 sm:$0xff]   ;;  %v6408_v52 = vld [vmem:[%s9367_s26 + $0x38c] ss:$16 sps:$4 sm:$0xff]  }
  0x3b   :  { %1340 = vmatprep.subr.bf16.mxu0 %v6310_v53  ;;  %1512 = vmatprep.subr.bf16.mxu1 %v6312_v54  ;;  %v6403_v53 = vld [vmem:[%s9367_s26 + $0x380] ss:$16 sps:$4 sm:$0xff]   ;;  %v6406_v54 = vld [vmem:[%s9367_s26 + $0x388] ss:$16 sps:$4 sm:$0xff]  }
  0x3e   :  { %1341 = vmatpush1.bf16.msra.mxu0 %v6314_v55  ;;  %1513 = vmatpush1.bf16.msra.mxu1 %v6315_v56  ;;  %v6411_v55 = vld [vmem:[%s9367_s26 + $0x3a4] ss:$16 sps:$4 sm:$0xff]   ;;  %v6414_v56 = vld [vmem:[%s9367_s26 + $0x3ac] ss:$16 sps:$4 sm:$0xff]  }
  0x3f   :  { %1342 = vmatprep.subr.bf16.mxu0 %v6316_v57  ;;  %1514 = vmatprep.subr.bf16.mxu1 %v6318_v58  ;;  %v6409_v57 = vld [vmem:[%s9367_s26 + $0x3a0] ss:$16 sps:$4 sm:$0xff]   ;;  %v6412_v58 = vld [vmem:[%s9367_s26 + $0x3a8] ss:$16 sps:$4 sm:$0xff]  }
  0x42   :  { %1343 = vmatpush1.bf16.msra.mxu0 %v6320_v59  ;;  %1515 = vmatpush1.bf16.msra.mxu1 %v6321_v60  ;;  %v6417_v59 = vld [vmem:[%s9367_s26 + $0x3c4] ss:$16 sps:$4 sm:$0xff]   ;;  %v6420_v60 = vld [vmem:[%s9367_s26 + $0x3cc] ss:$16 sps:$4 sm:$0xff]  }
  0x43   :  { %1344 = vmatprep.subr.bf16.mxu0 %v6322_v61  ;;  %1516 = vmatprep.subr.bf16.mxu1 %v6324_v62  ;;  %v6415_v61 = vld [vmem:[%s9367_s26 + $0x3c0] ss:$16 sps:$4 sm:$0xff]   ;;  %v6418_v62 = vld [vmem:[%s9367_s26 + $0x3c8] ss:$16 sps:$4 sm:$0xff]  }
  0x46   :  { %1345 = vmatpush1.bf16.msra.mxu0 %v6326_v63  ;;  %1517 = vmatpush1.bf16.msra.mxu1 %v6327_v0  ;;  %v6423_v63 = vld [vmem:[%s9367_s26 + $0x3e4] ss:$16 sps:$4 sm:$0xff]   ;;  %v6426_v0 = vld [vmem:[%s9367_s26 + $0x3ec] ss:$16 sps:$4 sm:$0xff]  }
  0x47   :  { %1357 = vmatprep.subr.bf16.mxu0 %v6333_v1  ;;  %1529 = vmatprep.subr.bf16.mxu1 %v6336_v2  ;;  %v6421_v1 = vld [vmem:[%s9367_s26 + $0x3e0] ss:$16 sps:$4 sm:$0xff]   ;;  %v6424_v2 = vld [vmem:[%s9367_s26 + $0x3e8] ss:$16 sps:$4 sm:$0xff]  }
  0x49   :  { %1347 = vmatmul.mubr.bf16.vlgmr.msra.gmra.mrb[0].mxu0 %v6328_v3  ;;  %1519 = vmatmul.mubr.bf16.vlgmr.msra.gmra.mrb[0].mxu1 %v6328_v3  ;;  %v6432_v3 = vld [vmem:[%s9367_s26 + $0x404] ss:$16 sps:$4 sm:$0xff]  }
  0x4a   :  { %1358 = vmatpush1.bf16.msra.mxu0 %v6331_v4  ;;  %1530 = vmatpush1.bf16.msra.mxu1 %v6334_v5  ;;  %v6435_v4 = vld [vmem:[%s9367_s26 + $0x40c] ss:$16 sps:$4 sm:$0xff]   ;;  %v6427_v5 = vld [vmem:[%s9368_s3 + $0x8] ss:$28 sps:$4 sm:$0xff]  }
  0x4b   :  { %1359 = vmatprep.subr.bf16.mxu0 %v6339_v6  ;;  %1531 = vmatprep.subr.bf16.mxu1 %v6342_v7  ;;  %v6430_v6 = vld [vmem:[%s9367_s26 + $0x400] ss:$16 sps:$4 sm:$0xff]   ;;  %v6433_v7 = vld [vmem:[%s9367_s26 + $0x408] ss:$16 sps:$4 sm:$0xff]  }
  0x4c   :  { %1389 = vmatprep.mubr.bf16.mxu0 %v6429_v30  ;;  %1561 = vmatprep.mubr.bf16.mxu1 %v6429_v30  ;;  %v6471_v30 = vld [vmem:[%s9367_s26 + $0x4cc] ss:$16 sps:$4 sm:$0xff]  }
  0x4e   :  { %1360 = vmatpush1.bf16.msra.mxu0 %v6337_v8  ;;  %1532 = vmatpush1.bf16.msra.mxu1 %v6340_v9  ;;  %v6438_v8 = vld [vmem:[%s9367_s26 + $0x424] ss:$16 sps:$4 sm:$0xff]   ;;  %v6441_v9 = vld [vmem:[%s9367_s26 + $0x42c] ss:$16 sps:$4 sm:$0xff]  }
  0x4f   :  { %1361 = vmatprep.subr.bf16.mxu0 %v6345_v10  ;;  %1533 = vmatprep.subr.bf16.mxu1 %v6348_v11  ;;  %v6436_v10 = vld [vmem:[%s9367_s26 + $0x420] ss:$16 sps:$4 sm:$0xff]   ;;  %v6439_v11 = vld [vmem:[%s9367_s26 + $0x428] ss:$16 sps:$4 sm:$0xff]  }
  0x52   :  { %1362 = vmatpush1.bf16.msra.mxu0 %v6343_v12  ;;  %1534 = vmatpush1.bf16.msra.mxu1 %v6346_v13  ;;  %v6528_v12 = vld [vmem:[%s9368_s3 + $0x14] ss:$28 sps:$4 sm:$0xff]  }
  0x53   :  { %1363 = vmatprep.subr.bf16.mxu0 %v6351_v14  ;;  %1535 = vmatprep.subr.bf16.mxu1 %v6354_v15  ;;  %v6444_v13 = vld [vmem:[%s9367_s26 + $0x444] ss:$16 sps:$4 sm:$0xff]   ;;  %v6447_v14 = vld [vmem:[%s9367_s26 + $0x44c] ss:$16 sps:$4 sm:$0xff]   ;;  %v6442_v15 = vld [vmem:[%s9367_s26 + $0x440] ss:$16 sps:$4 sm:$0xff]  }
  0x56   :  { %1364 = vmatpush1.bf16.msra.mxu0 %v6349_v16  ;;  %1536 = vmatpush1.bf16.msra.mxu1 %v6352_v17  ;;  %v6445_v16 = vld [vmem:[%s9367_s26 + $0x448] ss:$16 sps:$4 sm:$0xff]   ;;  %v6450_v17 = vld [vmem:[%s9367_s26 + $0x464] ss:$16 sps:$4 sm:$0xff]  }
  0x57   :  { %1365 = vmatprep.subr.bf16.mxu0 %v6357_v18  ;;  %1537 = vmatprep.subr.bf16.mxu1 %v6360_v19  ;;  %v6453_v18 = vld [vmem:[%s9367_s26 + $0x46c] ss:$16 sps:$4 sm:$0xff]   ;;  %v6448_v19 = vld [vmem:[%s9367_s26 + $0x460] ss:$16 sps:$4 sm:$0xff]  }
  0x5a   :  { %1366 = vmatpush1.bf16.msra.mxu0 %v6355_v20  ;;  %1538 = vmatpush1.bf16.msra.mxu1 %v6358_v21  ;;  %v6451_v20 = vld [vmem:[%s9367_s26 + $0x468] ss:$16 sps:$4 sm:$0xff]   ;;  %v6456_v21 = vld [vmem:[%s9367_s26 + $0x484] ss:$16 sps:$4 sm:$0xff]  }
  0x5b   :  { %1367 = vmatprep.subr.bf16.mxu0 %v6363_v22  ;;  %1539 = vmatprep.subr.bf16.mxu1 %v6366_v23  ;;  %v6459_v22 = vld [vmem:[%s9367_s26 + $0x48c] ss:$16 sps:$4 sm:$0xff]   ;;  %v6454_v23 = vld [vmem:[%s9367_s26 + $0x480] ss:$16 sps:$4 sm:$0xff]  }
  0x5e   :  { %1368 = vmatpush1.bf16.msra.mxu0 %v6361_v24  ;;  %1540 = vmatpush1.bf16.msra.mxu1 %v6364_v25  ;;  %v6457_v24 = vld [vmem:[%s9367_s26 + $0x488] ss:$16 sps:$4 sm:$0xff]   ;;  %v6462_v25 = vld [vmem:[%s9367_s26 + $0x4a4] ss:$16 sps:$4 sm:$0xff]  }
  0x5f   :  { %1369 = vmatprep.subr.bf16.mxu0 %v6369_v26  ;;  %1541 = vmatprep.subr.bf16.mxu1 %v6372_v27  ;;  %v6465_v26 = vld [vmem:[%s9367_s26 + $0x4ac] ss:$16 sps:$4 sm:$0xff]   ;;  %v6460_v27 = vld [vmem:[%s9367_s26 + $0x4a0] ss:$16 sps:$4 sm:$0xff]  }
  0x62   :  { %1370 = vmatpush1.bf16.msra.mxu0 %v6367_v28  ;;  %1542 = vmatpush1.bf16.msra.mxu1 %v6370_v29  ;;  %v6463_v28 = vld [vmem:[%s9367_s26 + $0x4a8] ss:$16 sps:$4 sm:$0xff]   ;;  %v6468_v29 = vld [vmem:[%s9367_s26 + $0x4c4] ss:$16 sps:$4 sm:$0xff]  }
  0x63   :  { %1371 = vmatprep.subr.bf16.mxu0 %v6375_v31  ;;  %1543 = vmatprep.subr.bf16.mxu1 %v6378_v32  ;;  %v6466_v31 = vld [vmem:[%s9367_s26 + $0x4c0] ss:$16 sps:$4 sm:$0xff]   ;;  %v6469_v32 = vld [vmem:[%s9367_s26 + $0x4c8] ss:$16 sps:$4 sm:$0xff]  }
  0x66   :  { %1372 = vmatpush1.bf16.msra.mxu0 %v6373_v33  ;;  %1544 = vmatpush1.bf16.msra.mxu1 %v6376_v34  ;;  %v6474_v33 = vld [vmem:[%s9367_s26 + $0x4e4] ss:$16 sps:$4 sm:$0xff]   ;;  %v6477_v34 = vld [vmem:[%s9367_s26 + $0x4ec] ss:$16 sps:$4 sm:$0xff]  }
  0x67   :  { %1373 = vmatprep.subr.bf16.mxu0 %v6381_v35  ;;  %1545 = vmatprep.subr.bf16.mxu1 %v6384_v36  ;;  %v6472_v35 = vld [vmem:[%s9367_s26 + $0x4e0] ss:$16 sps:$4 sm:$0xff]   ;;  %v6475_v36 = vld [vmem:[%s9367_s26 + $0x4e8] ss:$16 sps:$4 sm:$0xff]  }
  0x6a   :  { %1374 = vmatpush1.bf16.msra.mxu0 %v6379_v37  ;;  %1546 = vmatpush1.bf16.msra.mxu1 %v6382_v38  ;;  %v6480_v37 = vld [vmem:[%s9367_s26 + $0x504] ss:$16 sps:$4 sm:$0xff]   ;;  %v6483_v38 = vld [vmem:[%s9367_s26 + $0x50c] ss:$16 sps:$4 sm:$0xff]  }
  0x6b   :  { %1375 = vmatprep.subr.bf16.mxu0 %v6387_v39  ;;  %1547 = vmatprep.subr.bf16.mxu1 %v6390_v40  ;;  %v6478_v39 = vld [vmem:[%s9367_s26 + $0x500] ss:$16 sps:$4 sm:$0xff]   ;;  %v6481_v40 = vld [vmem:[%s9367_s26 + $0x508] ss:$16 sps:$4 sm:$0xff]  }
  0x6e   :  { %1376 = vmatpush1.bf16.msra.mxu0 %v6385_v41  ;;  %1548 = vmatpush1.bf16.msra.mxu1 %v6388_v42  ;;  %v6486_v41 = vld [vmem:[%s9367_s26 + $0x524] ss:$16 sps:$4 sm:$0xff]   ;;  %v6489_v42 = vld [vmem:[%s9367_s26 + $0x52c] ss:$16 sps:$4 sm:$0xff]  }
  0x6f   :  { %1377 = vmatprep.subr.bf16.mxu0 %v6393_v43  ;;  %1549 = vmatprep.subr.bf16.mxu1 %v6396_v44  ;;  %v6484_v43 = vld [vmem:[%s9367_s26 + $0x520] ss:$16 sps:$4 sm:$0xff]   ;;  %v6487_v44 = vld [vmem:[%s9367_s26 + $0x528] ss:$16 sps:$4 sm:$0xff]  }
  0x72   :  { %1378 = vmatpush1.bf16.msra.mxu0 %v6391_v45  ;;  %1550 = vmatpush1.bf16.msra.mxu1 %v6394_v46  ;;  %v6492_v45 = vld [vmem:[%s9367_s26 + $0x544] ss:$16 sps:$4 sm:$0xff]   ;;  %v6495_v46 = vld [vmem:[%s9367_s26 + $0x54c] ss:$16 sps:$4 sm:$0xff]  }
  0x73   :  { %1379 = vmatprep.subr.bf16.mxu0 %v6399_v47  ;;  %1551 = vmatprep.subr.bf16.mxu1 %v6402_v48  ;;  %v6490_v47 = vld [vmem:[%s9367_s26 + $0x540] ss:$16 sps:$4 sm:$0xff]   ;;  %v6493_v48 = vld [vmem:[%s9367_s26 + $0x548] ss:$16 sps:$4 sm:$0xff]  }
  0x76   :  { %1380 = vmatpush1.bf16.msra.mxu0 %v6397_v49  ;;  %1552 = vmatpush1.bf16.msra.mxu1 %v6400_v50  ;;  %v6498_v49 = vld [vmem:[%s9367_s26 + $0x564] ss:$16 sps:$4 sm:$0xff]   ;;  %v6501_v50 = vld [vmem:[%s9367_s26 + $0x56c] ss:$16 sps:$4 sm:$0xff]  }
  0x77   :  { %1381 = vmatprep.subr.bf16.mxu0 %v6405_v51  ;;  %1553 = vmatprep.subr.bf16.mxu1 %v6408_v52  ;;  %v6496_v51 = vld [vmem:[%s9367_s26 + $0x560] ss:$16 sps:$4 sm:$0xff]   ;;  %v6499_v52 = vld [vmem:[%s9367_s26 + $0x568] ss:$16 sps:$4 sm:$0xff]  }
  0x7a   :  { %1382 = vmatpush1.bf16.msra.mxu0 %v6403_v53  ;;  %1554 = vmatpush1.bf16.msra.mxu1 %v6406_v54  ;;  %v6504_v53 = vld [vmem:[%s9367_s26 + $0x584] ss:$16 sps:$4 sm:$0xff]   ;;  %v6507_v54 = vld [vmem:[%s9367_s26 + $0x58c] ss:$16 sps:$4 sm:$0xff]  }
  0x7b   :  { %1383 = vmatprep.subr.bf16.mxu0 %v6411_v55  ;;  %1555 = vmatprep.subr.bf16.mxu1 %v6414_v56  ;;  %v6502_v55 = vld [vmem:[%s9367_s26 + $0x580] ss:$16 sps:$4 sm:$0xff]   ;;  %v6505_v56 = vld [vmem:[%s9367_s26 + $0x588] ss:$16 sps:$4 sm:$0xff]  }
  0x7e   :  { %1384 = vmatpush1.bf16.msra.mxu0 %v6409_v57  ;;  %1556 = vmatpush1.bf16.msra.mxu1 %v6412_v58  ;;  %v6510_v57 = vld [vmem:[%s9367_s26 + $0x5a4] ss:$16 sps:$4 sm:$0xff]   ;;  %v6513_v58 = vld [vmem:[%s9367_s26 + $0x5ac] ss:$16 sps:$4 sm:$0xff]  }
  0x7f   :  { %1385 = vmatprep.subr.bf16.mxu0 %v6417_v59  ;;  %1557 = vmatprep.subr.bf16.mxu1 %v6420_v60  ;;  %v6508_v59 = vld [vmem:[%s9367_s26 + $0x5a0] ss:$16 sps:$4 sm:$0xff]   ;;  %v6511_v60 = vld [vmem:[%s9367_s26 + $0x5a8] ss:$16 sps:$4 sm:$0xff]  }
  0x82   :  { %1386 = vmatpush1.bf16.msra.mxu0 %v6415_v61  ;;  %1558 = vmatpush1.bf16.msra.mxu1 %v6418_v62  ;;  %v6516_v61 = vld [vmem:[%s9367_s26 + $0x5c4] ss:$16 sps:$4 sm:$0xff]   ;;  %v6519_v62 = vld [vmem:[%s9367_s26 + $0x5cc] ss:$16 sps:$4 sm:$0xff]  }
  0x83   :  { %1387 = vmatprep.subr.bf16.mxu0 %v6423_v63  ;;  %1559 = vmatprep.subr.bf16.mxu1 %v6426_v0  ;;  %v6514_v63 = vld [vmem:[%s9367_s26 + $0x5c0] ss:$16 sps:$4 sm:$0xff]   ;;  %v6517_v0 = vld [vmem:[%s9367_s26 + $0x5c8] ss:$16 sps:$4 sm:$0xff]  }
  0x86   :  { %1388 = vmatpush1.bf16.msra.mxu0 %v6421_v1  ;;  %1560 = vmatpush1.bf16.msra.mxu1 %v6424_v2  ;;  %v6522_v1 = vld [vmem:[%s9367_s26 + $0x5e4] ss:$16 sps:$4 sm:$0xff]   ;;  %v6525_v2 = vld [vmem:[%s9367_s26 + $0x5ec] ss:$16 sps:$4 sm:$0xff]  }
  0x87   :  { %1400 = vmatprep.subr.bf16.mxu0 %v6432_v3  ;;  %1572 = vmatprep.subr.bf16.mxu1 %v6435_v4  ;;  %v6520_v3 = vld [vmem:[%s9367_s26 + $0x5e0] ss:$16 sps:$4 sm:$0xff]   ;;  %v6523_v4 = vld [vmem:[%s9367_s26 + $0x5e8] ss:$16 sps:$4 sm:$0xff]  }
  0x89   :  { %1390 = vmatmul.mubr.bf16.vlgmr.msra.gmra.mrb[0].mxu0 %v6427_v5  ;;  %1562 = vmatmul.mubr.bf16.vlgmr.msra.gmra.mrb[0].mxu1 %v6427_v5  ;;  %v6531_v5 = vld [vmem:[%s9367_s26 + $0x604] ss:$16 sps:$4 sm:$0xff]  }
  0x8a   :  { %1401 = vmatpush1.bf16.msra.mxu0 %v6430_v6  ;;  %1573 = vmatpush1.bf16.msra.mxu1 %v6433_v7  ;;  %v6534_v6 = vld [vmem:[%s9367_s26 + $0x60c] ss:$16 sps:$4 sm:$0xff]  }
  0x8b   :  { %1402 = vmatprep.subr.bf16.mxu0 %v6438_v8  ;;  %1574 = vmatprep.subr.bf16.mxu1 %v6441_v9  ;;  %v6526_v7 = vld [vmem:[%s9368_s3 + $0x10] ss:$28 sps:$4 sm:$0xff]   ;;  %v6532_v9 = vld [vmem:[%s9367_s26 + $0x608] ss:$16 sps:$4 sm:$0xff]  }
  0x8c   :  { %1432 = vmatprep.mubr.bf16.mxu0 %v6528_v12  ;;  %1604 = vmatprep.mubr.bf16.mxu1 %v6528_v12  ;;  %v6529_v8 = vld [vmem:[%s9367_s26 + $0x600] ss:$16 sps:$4 sm:$0xff]   ;;  %v6535_v12 = vld [vmem:[%s9368_s3 + $0x18] ss:$28 sps:$4 sm:$0xff]   ;;  %s9371_s3 = sld [smem:[#allocation6_spill]] }
  0x8e   :  { %1403 = vmatpush1.bf16.msra.mxu0 %v6436_v10  ;;  %1575 = vmatpush1.bf16.msra.mxu1 %v6439_v11  ;;  %v6538_v10 = vld [vmem:[%s9369_s22 + $0x4] ss:$8 sps:$4 sm:$0xff]   ;;  %v7176_v11 = vmov 0  }
  0x8f   :  { %1404 = vmatprep.subr.bf16.mxu0 %v6444_v13  ;;  %1576 = vmatprep.subr.bf16.mxu1 %v6447_v14  ;;  %v6536_v13 = vld [vmem:[%s9369_s22] ss:$8 sps:$4 sm:$0xff]   ;;  %v6541_v14 = vld [vmem:[%s9369_s22 + $0x14] ss:$8 sps:$4 sm:$0xff]  }
  0x92   :  { %1405 = vmatpush1.bf16.msra.mxu0 %v6442_v15  ;;  %1577 = vmatpush1.bf16.msra.mxu1 %v6445_v16  ;;  %v6539_v15 = vld [vmem:[%s9369_s22 + $0x10] ss:$8 sps:$4 sm:$0xff]   ;;  %v6544_v16 = vld [vmem:[%s9369_s22 + $0x24] ss:$8 sps:$4 sm:$0xff]  }
  0x93   :  { %1406 = vmatprep.subr.bf16.mxu0 %v6450_v17  ;;  %1578 = vmatprep.subr.bf16.mxu1 %v6453_v18  ;;  %v6542_v17 = vld [vmem:[%s9369_s22 + $0x20] ss:$8 sps:$4 sm:$0xff]   ;;  %v6547_v18 = vld [vmem:[%s9369_s22 + $0x34] ss:$8 sps:$4 sm:$0xff]  }
  0x96   :  { %1407 = vmatpush1.bf16.msra.mxu0 %v6448_v19  ;;  %1579 = vmatpush1.bf16.msra.mxu1 %v6451_v20  ;;  %v6545_v19 = vld [vmem:[%s9369_s22 + $0x30] ss:$8 sps:$4 sm:$0xff]   ;;  %v6550_v20 = vld [vmem:[%s9369_s22 + $0x44] ss:$8 sps:$4 sm:$0xff]  }
  0x97   :  { %1408 = vmatprep.subr.bf16.mxu0 %v6456_v21  ;;  %1580 = vmatprep.subr.bf16.mxu1 %v6459_v22  ;;  %v6548_v21 = vld [vmem:[%s9369_s22 + $0x40] ss:$8 sps:$4 sm:$0xff]   ;;  %v6553_v22 = vld [vmem:[%s9369_s22 + $0x54] ss:$8 sps:$4 sm:$0xff]  }
  0x9a   :  { %1409 = vmatpush1.bf16.msra.mxu0 %v6454_v23  ;;  %1581 = vmatpush1.bf16.msra.mxu1 %v6457_v24  ;;  %v6551_v23 = vld [vmem:[%s9369_s22 + $0x50] ss:$8 sps:$4 sm:$0xff]   ;;  %v6556_v24 = vld [vmem:[%s9369_s22 + $0x64] ss:$8 sps:$4 sm:$0xff]  }
  0x9b   :  { %1410 = vmatprep.subr.bf16.mxu0 %v6462_v25  ;;  %1582 = vmatprep.subr.bf16.mxu1 %v6465_v26  ;;  %v6554_v25 = vld [vmem:[%s9369_s22 + $0x60] ss:$8 sps:$4 sm:$0xff]   ;;  %v6559_v26 = vld [vmem:[%s9369_s22 + $0x74] ss:$8 sps:$4 sm:$0xff]  }
  0x9e   :  { %1411 = vmatpush1.bf16.msra.mxu0 %v6460_v27  ;;  %1583 = vmatpush1.bf16.msra.mxu1 %v6463_v28  ;;  %v6557_v27 = vld [vmem:[%s9369_s22 + $0x70] ss:$8 sps:$4 sm:$0xff]   ;;  %v6562_v28 = vld [vmem:[%s9369_s22 + $0x84] ss:$8 sps:$4 sm:$0xff]  }
  0x9f   :  { %1412 = vmatprep.subr.bf16.mxu0 %v6468_v29  ;;  %1584 = vmatprep.subr.bf16.mxu1 %v6471_v30  ;;  %v6560_v29 = vld [vmem:[%s9369_s22 + $0x80] ss:$8 sps:$4 sm:$0xff]   ;;  %v6565_v30 = vld [vmem:[%s9369_s22 + $0x94] ss:$8 sps:$4 sm:$0xff]  }
  0xa2   :  { %1413 = vmatpush1.bf16.msra.mxu0 %v6466_v31  ;;  %1585 = vmatpush1.bf16.msra.mxu1 %v6469_v32  ;;  %v6563_v31 = vld [vmem:[%s9369_s22 + $0x90] ss:$8 sps:$4 sm:$0xff]   ;;  %v6568_v32 = vld [vmem:[%s9369_s22 + $0xa4] ss:$8 sps:$4 sm:$0xff]  }
  0xa3   :  { %1414 = vmatprep.subr.bf16.mxu0 %v6474_v33  ;;  %1586 = vmatprep.subr.bf16.mxu1 %v6477_v34  ;;  %v6566_v33 = vld [vmem:[%s9369_s22 + $0xa0] ss:$8 sps:$4 sm:$0xff]   ;;  %v6571_v34 = vld [vmem:[%s9369_s22 + $0xb4] ss:$8 sps:$4 sm:$0xff]  }
  0xa6   :  { %1415 = vmatpush1.bf16.msra.mxu0 %v6472_v35  ;;  %1587 = vmatpush1.bf16.msra.mxu1 %v6475_v36  ;;  %v6569_v35 = vld [vmem:[%s9369_s22 + $0xb0] ss:$8 sps:$4 sm:$0xff]   ;;  %v6574_v36 = vld [vmem:[%s9369_s22 + $0xc4] ss:$8 sps:$4 sm:$0xff]  }
  0xa7   :  { %1416 = vmatprep.subr.bf16.mxu0 %v6480_v37  ;;  %1588 = vmatprep.subr.bf16.mxu1 %v6483_v38  ;;  %v6572_v37 = vld [vmem:[%s9369_s22 + $0xc0] ss:$8 sps:$4 sm:$0xff]   ;;  %v6577_v38 = vld [vmem:[%s9369_s22 + $0xd4] ss:$8 sps:$4 sm:$0xff]  }
  0xaa   :  { %1417 = vmatpush1.bf16.msra.mxu0 %v6478_v39  ;;  %1589 = vmatpush1.bf16.msra.mxu1 %v6481_v40  ;;  %v6575_v39 = vld [vmem:[%s9369_s22 + $0xd0] ss:$8 sps:$4 sm:$0xff]   ;;  %v6580_v40 = vld [vmem:[%s9369_s22 + $0xe4] ss:$8 sps:$4 sm:$0xff]  }
  0xab   :  { %1418 = vmatprep.subr.bf16.mxu0 %v6486_v41  ;;  %1590 = vmatprep.subr.bf16.mxu1 %v6489_v42  ;;  %v6578_v41 = vld [vmem:[%s9369_s22 + $0xe0] ss:$8 sps:$4 sm:$0xff]   ;;  %v6583_v42 = vld [vmem:[%s9369_s22 + $0xf4] ss:$8 sps:$4 sm:$0xff]  }
  0xae   :  { %1419 = vmatpush1.bf16.msra.mxu0 %v6484_v43  ;;  %1591 = vmatpush1.bf16.msra.mxu1 %v6487_v44  ;;  %v6581_v43 = vld [vmem:[%s9369_s22 + $0xf0] ss:$8 sps:$4 sm:$0xff]   ;;  %v6586_v44 = vld [vmem:[%s9369_s22 + $0x104] ss:$8 sps:$4 sm:$0xff]  }
  0xaf   :  { %1420 = vmatprep.subr.bf16.mxu0 %v6492_v45  ;;  %1592 = vmatprep.subr.bf16.mxu1 %v6495_v46  ;;  %v6632_v45 = vld [vmem:[%s9370_s30 + $0x40] sm:$0xff]  }
  0xb0   :  { %v6633_v46 = vld [vmem:[%s9370_s30] sm:$0xff]  }
  0xb2   :  { %1421 = vmatpush1.bf16.msra.mxu0 %v6490_v47  ;;  %1593 = vmatpush1.bf16.msra.mxu1 %v6493_v48  ;;  %v6634_v47 = vld [vmem:[%s9370_s30 + $0x48] sm:$0xff]  }
  0xb3   :  { %1422 = vmatprep.subr.bf16.mxu0 %v6498_v49  ;;  %1594 = vmatprep.subr.bf16.mxu1 %v6501_v50  ;;  %v6635_v48 = vld [vmem:[%s9370_s30 + $0x8] sm:$0xff]   ;;  %v6636_v49 = vld [vmem:[%s9370_s30 + $0x50] sm:$0xff]  }
  0xb4   :  { %v6637_v50 = vld [vmem:[%s9370_s30 + $0x10] sm:$0xff]  }
  0xb6   :  { %1423 = vmatpush1.bf16.msra.mxu0 %v6496_v51  ;;  %1595 = vmatpush1.bf16.msra.mxu1 %v6499_v52  ;;  %v6638_v51 = vld [vmem:[%s9370_s30 + $0x58] sm:$0xff]  }
  0xb7   :  { %1424 = vmatprep.subr.bf16.mxu0 %v6504_v53  ;;  %1596 = vmatprep.subr.bf16.mxu1 %v6507_v54  ;;  %v6639_v52 = vld [vmem:[%s9370_s30 + $0x18] sm:$0xff]   ;;  %v6640_v53 = vld [vmem:[%s9370_s30 + $0x60] sm:$0xff]  }
  0xb8   :  { %v6641_v54 = vld [vmem:[%s9370_s30 + $0x20] sm:$0xff]  }
  0xba   :  { %1425 = vmatpush1.bf16.msra.mxu0 %v6502_v55  ;;  %1597 = vmatpush1.bf16.msra.mxu1 %v6505_v56  ;;  %v6642_v55 = vld [vmem:[%s9370_s30 + $0x68] sm:$0xff]   ;;  %v275_v56 = vlaneseq }
  0xbb   :  { %1426 = vmatprep.subr.bf16.mxu0 %v6510_v57  ;;  %1598 = vmatprep.subr.bf16.mxu1 %v6513_v58 }
  0xbc   :  { %v8034_v57 = vshrl.u32 %v275_v56, 7  ;;  %v6620_v56 = vld [vmem:[%s9369_s22 + $0x1c0] ss:$8 sps:$4 sm:$0xff]  }
  0xbe   :  { %1427 = vmatpush1.bf16.msra.mxu0 %v6508_v59  ;;  %1599 = vmatpush1.bf16.msra.mxu1 %v6511_v60  ;;  %v8037_v58 = vsub.s32 0, %v8034_v57  ;;  %v8040_v59 = vsub.s32 2, %v8034_v57  ;;  %v273_v60 = vld [vmem:[%s9371_s3] sm:$0xf] }
  0xbf   :  { %1428 = vmatprep.subr.bf16.mxu0 %v6516_v61  ;;  %1600 = vmatprep.subr.bf16.mxu1 %v6519_v62  ;;  %v8046_v61 = vsub.s32 1, %v8034_v57  ;;  %v8049_v62 = vsub.s32 3, %v8034_v57 }
  0xc2   :  { %1429 = vmatpush1.bf16.msra.mxu0 %v6514_v63  ;;  %1601 = vmatpush1.bf16.msra.mxu1 %v6517_v0  ;;  %v278_v63 = vrot.slane %v273_v60, %v8037_v58  ;;  %v286_v0 = vrot.slane %v273_v60, %v8040_v59 }
  0xc3   :  { %1430 = vmatprep.subr.bf16.mxu0 %v6522_v1  ;;  %1602 = vmatprep.subr.bf16.mxu1 %v6525_v2  ;;  %v282_v1 = vrot.slane %v273_v60, %v8046_v61  ;;  %v290_v2 = vrot.slane %v273_v60, %v8049_v62  ;;  %v6625_v60 = vld [vmem:[%s9369_s22 + $0x1d4] ss:$8 sps:$4 sm:$0xff]  }
  0xc6   :  { %1431 = vmatpush1.bf16.msra.mxu0 %v6520_v3  ;;  %1603 = vmatpush1.bf16.msra.mxu1 %v6523_v4 }
  0xc7   :  { %1443 = vmatprep.subr.bf16.mxu0 %v6531_v5  ;;  %1615 = vmatprep.subr.bf16.mxu1 %v6534_v6 }
  0xc9   :  { %1433 = vmatmul.mubr.bf16.vlgmr.msra.gmra.mrb[0].mxu0 %v6526_v7  ;;  %1605 = vmatmul.mubr.bf16.vlgmr.msra.gmra.mrb[0].mxu1 %v6526_v7 }
  0xca   :  { %1444 = vmatpush1.bf16.msra.mxu0 %v6529_v8  ;;  %1616 = vmatpush1.bf16.msra.mxu1 %v6532_v9 }
  0xcb   :  { %1475 = vmatprep.mubr.bf16.mxu0 %v7176_v11  ;;  %1647 = vmatprep.mubr.bf16.mxu1 %v7176_v11 }
  0xcc   :  { %2066 = vmatprep.subr.bf16.mxu0 %v6538_v10  ;;  %5983 = vmatprep.subr.bf16.mxu1 %v6632_v45  ;;  %v6607_v45 = vld [vmem:[%s9369_s22 + $0x174] ss:$8 sps:$4 sm:$0xff]  }
  0xd5   :  { %5546 = vmatmul.mubr.msk.bf16.vlgmr.msra.gmra.mrb[0].mxu0 %vm1310_vm0, %v6535_v12  ;;  %5547 = vmatmul.mubr.msk.bf16.vlgmr.msra.gmra.mrb[0].mxu1 %vm1310_vm0, %v6535_v12 }
  0xd6   :  { %2067 = vmatpush1.bf16.msra.mxu0 %v6536_v13  ;;  %5984 = vmatpush3.bf16.msra.mxu1 %v6633_v46  ;;  %v6605_v46 = vld [vmem:[%s9369_s22 + $0x170] ss:$8 sps:$4 sm:$0xff]  }
  0xd7   :  { %2068 = vmatprep.subr.bf16.mxu0 %v6541_v14  ;;  %5985 = vmatprep.subr.bf16.mxu1 %v6634_v47  ;;  %v6610_v47 = vld [vmem:[%s9369_s22 + $0x184] ss:$8 sps:$4 sm:$0xff]  }
  0xda   :  { %2069 = vmatpush1.bf16.msra.mxu0 %v6539_v15  ;;  %5986 = vmatpush3.bf16.msra.mxu1 %v6635_v48  ;;  %v6608_v48 = vld [vmem:[%s9369_s22 + $0x180] ss:$8 sps:$4 sm:$0xff]  }
  0xdb   :  { %2070 = vmatprep.subr.bf16.mxu0 %v6544_v16  ;;  %5987 = vmatprep.subr.bf16.mxu1 %v6636_v49  ;;  %v6613_v49 = vld [vmem:[%s9369_s22 + $0x194] ss:$8 sps:$4 sm:$0xff]  }
  0xde   :  { %2071 = vmatpush1.bf16.msra.mxu0 %v6542_v17  ;;  %5988 = vmatpush3.bf16.msra.mxu1 %v6637_v50  ;;  %v6611_v50 = vld [vmem:[%s9369_s22 + $0x190] ss:$8 sps:$4 sm:$0xff]  }
  0xdf   :  { %2072 = vmatprep.subr.bf16.mxu0 %v6547_v18  ;;  %5989 = vmatprep.subr.bf16.mxu1 %v6638_v51  ;;  %v6616_v51 = vld [vmem:[%s9369_s22 + $0x1a4] ss:$8 sps:$4 sm:$0xff]  }
  0xe2   :  { %2073 = vmatpush1.bf16.msra.mxu0 %v6545_v19  ;;  %5990 = vmatpush3.bf16.msra.mxu1 %v6639_v52  ;;  %v6614_v52 = vld [vmem:[%s9369_s22 + $0x1a0] ss:$8 sps:$4 sm:$0xff]  }
  0xe3   :  { %2074 = vmatprep.subr.bf16.mxu0 %v6550_v20  ;;  %5991 = vmatprep.subr.bf16.mxu1 %v6640_v53  ;;  %v6619_v53 = vld [vmem:[%s9369_s22 + $0x1b4] ss:$8 sps:$4 sm:$0xff]  }
  0xe6   :  { %2075 = vmatpush1.bf16.msra.mxu0 %v6548_v21  ;;  %5992 = vmatpush3.bf16.msra.mxu1 %v6641_v54  ;;  %v6617_v54 = vld [vmem:[%s9369_s22 + $0x1b0] ss:$8 sps:$4 sm:$0xff]  }
  0xe7   :  { %2076 = vmatprep.subr.bf16.mxu0 %v6553_v22  ;;  %5993 = vmatprep.subr.bf16.mxu1 %v6642_v55  ;;  %v6622_v55 = vld [vmem:[%s9369_s22 + $0x1c4] ss:$8 sps:$4 sm:$0xff]  }
  0xea   :  { %2077 = vmatpush1.bf16.msra.mxu0 %v6551_v23 }
  0xeb   :  { %2078 = vmatprep.subr.bf16.mxu0 %v6556_v24 }
  0xee   :  { %2079 = vmatpush1.bf16.msra.mxu0 %v6554_v25 }
  0xef   :  { %2080 = vmatprep.subr.bf16.mxu0 %v6559_v26 }
  0xf2   :  { %2081 = vmatpush1.bf16.msra.mxu0 %v6557_v27 }
  0xf3   :  { %2082 = vmatprep.subr.bf16.mxu0 %v6562_v28 }
  0xf6   :  { %2083 = vmatpush1.bf16.msra.mxu0 %v6560_v29 }
  0xf7   :  { %2084 = vmatprep.subr.bf16.mxu0 %v6565_v30 }
  0xfa   :  { %2085 = vmatpush1.bf16.msra.mxu0 %v6563_v31 }
  0xfb   :  { %2086 = vmatprep.subr.bf16.mxu0 %v6568_v32  ;;  %v6584_v32 = vld [vmem:[%s9369_s22 + $0x100] ss:$8 sps:$4 sm:$0xff]  }
  0xfe   :  { %2087 = vmatpush1.bf16.msra.mxu0 %v6566_v33  ;;  %v6589_v33 = vld [vmem:[%s9369_s22 + $0x114] ss:$8 sps:$4 sm:$0xff]  }
  0xff   :  { %2088 = vmatprep.subr.bf16.mxu0 %v6571_v34  ;;  %v6587_v34 = vld [vmem:[%s9369_s22 + $0x110] ss:$8 sps:$4 sm:$0xff]  }
 0x102   :  { %2089 = vmatpush1.bf16.msra.mxu0 %v6569_v35  ;;  %v6592_v35 = vld [vmem:[%s9369_s22 + $0x124] ss:$8 sps:$4 sm:$0xff]  }
 0x103   :  { %2090 = vmatprep.subr.bf16.mxu0 %v6574_v36  ;;  %v6590_v36 = vld [vmem:[%s9369_s22 + $0x120] ss:$8 sps:$4 sm:$0xff]  }
 0x106   :  { %2091 = vmatpush1.bf16.msra.mxu0 %v6572_v37  ;;  %v6595_v37 = vld [vmem:[%s9369_s22 + $0x134] ss:$8 sps:$4 sm:$0xff]  }
 0x107   :  { %2092 = vmatprep.subr.bf16.mxu0 %v6577_v38  ;;  %v6593_v38 = vld [vmem:[%s9369_s22 + $0x130] ss:$8 sps:$4 sm:$0xff]  }
 0x10a   :  { %2093 = vmatpush1.bf16.msra.mxu0 %v6575_v39  ;;  %v6598_v39 = vld [vmem:[%s9369_s22 + $0x144] ss:$8 sps:$4 sm:$0xff]  }
 0x10b   :  { %2094 = vmatprep.subr.bf16.mxu0 %v6580_v40  ;;  %v6596_v40 = vld [vmem:[%s9369_s22 + $0x140] ss:$8 sps:$4 sm:$0xff]  }
 0x10e   :  { %2095 = vmatpush1.bf16.msra.mxu0 %v6578_v41  ;;  %v6601_v41 = vld [vmem:[%s9369_s22 + $0x154] ss:$8 sps:$4 sm:$0xff]  }
 0x10f   :  { %2096 = vmatprep.subr.bf16.mxu0 %v6583_v42  ;;  %v6599_v42 = vld [vmem:[%s9369_s22 + $0x150] ss:$8 sps:$4 sm:$0xff]  }
 0x112   :  { %2097 = vmatpush1.bf16.msra.mxu0 %v6581_v43  ;;  %v6604_v43 = vld [vmem:[%s9369_s22 + $0x164] ss:$8 sps:$4 sm:$0xff]  }
 0x113   :  { %2109 = vmatprep.subr.bf16.mxu0 %v6586_v44  ;;  %v6602_v44 = vld [vmem:[%s9369_s22 + $0x160] ss:$8 sps:$4 sm:$0xff]  }
 0x1a8   :  { %v1477_v3 = vpop.f32.mrb[0].mxu0  ;;  %v1649_v4 = vpop.f32.mrb[0].mxu1 }
 0x1a9   :  { %v6165_v5 = vadd.f32 %v1477_v3, %v278_v63  ;;  %v6169_v6 = vadd.f32 %v1649_v4, %v286_v0  ;;  %v1479_v7 = vpop.f32.mrb[1].mxu0  ;;  %v1651_v8 = vpop.f32.mrb[1].mxu1  ;;  %v6629_v3 = vld [vmem:[%s9369_s22 + $0x1f0] ss:$8 sps:$4 sm:$0xff]   ;;  %v6643_v4 = vld [vmem:[%s9370_s30 + $0x28] sm:$0xff]  }
 0x1aa   :  { %v6166_v9 = vadd.f32 %v1479_v7, %v282_v1  ;;  %v6170_v10 = vadd.f32 %v1651_v8, %v290_v2  ;;  %v1481_v12 = vpop.f32.mrb[2].mxu0  ;;  %v1653_v13 = vpop.f32.mrb[2].mxu1  ;;  %5994 = vmatpush3.bf16.msra.mxu1 %v6643_v4  ;;  %v6646_v7 = vld [vmem:[%s9370_s30 + $0x78] sm:$0xff]  }
 0x1ab   :  { %v6167_v14 = vadd.f32 %v1481_v12, %v278_v63  ;;  %v6171_v15 = vadd.f32 %v1653_v13, %v286_v0  ;;  %v1483_v16 = vpop.f32.mrb[3].mxu0  ;;  %v1655_v17 = vpop.f32.mrb[3].mxu1  ;;  %v1658_v20 = vmax.f32 %v6165_v5, 0.0  ;;  %v1660_v21 = vmax.f32 %v6169_v6, 0.0  ;;  %v6623_v63 = vld [vmem:[%s9369_s22 + $0x1d0] ss:$8 sps:$4 sm:$0xff]  }
 0x1ac   :  { %v6168_v18 = vadd.f32 %v1483_v16, %v282_v1  ;;  %v6172_v19 = vadd.f32 %v1655_v17, %v290_v2  ;;  %v1659_v24 = vmax.f32 %v6166_v9, 0.0  ;;  %v1661_v25 = vmax.f32 %v6170_v10, 0.0  ;;  %v6628_v0 = vld [vmem:[%s9369_s22 + $0x1e4] ss:$8 sps:$4 sm:$0xff]   ;;  %v6626_v1 = vld [vmem:[%s9369_s22 + $0x1e0] ss:$8 sps:$4 sm:$0xff]  }
 0x1ad   :  { %v1662_v22 = vmax.f32 %v6167_v14, 0.0  ;;  %v1664_v23 = vmax.f32 %v6171_v15, 0.0  ;;  %v6631_v2 = vld [vmem:[%s9369_s22 + $0x1f4] ss:$8 sps:$4 sm:$0xff]   ;;  %v7177_v9 = vmov 0.0  }
 0x1ae   :  { %v1663_v26 = vmax.f32 %v6168_v18, 0.0  ;;  %v1665_v27 = vmax.f32 %v6172_v19, 0.0  ;;  %v6644_v5 = vld [vmem:[%s9370_s30 + $0x70] sm:$0xff]   ;;  %v6647_v8 = vld [vmem:[%s9370_s30 + $0x38] sm:$0xff]   ;;  %v1734_v10 = vld [vmem:[%s9340_s4] sm:$0x3] }
 0x1af   :  { %v1666_v28 = vpack.c.bf16 %v1662_v22, %v1658_v20  ;;  %v8055_v29 = vpack.c.bf16 %v1664_v23, %v1660_v21  ;;  %v6645_v6 = vld [vmem:[%s9370_s30 + $0x30] sm:$0xff]   ;;  %5995 = vmatprep.subr.bf16.mxu1 %v6644_v5  ;;  %v1739_v12 = vrot.slane %v1734_v10, %v8037_v58  ;;  %v1743_v13 = vrot.slane %v1734_v10, %v8046_v61 }
 0x1b0   :  { %v1667_v30 = vpack.c.bf16 %v1663_v26, %v1659_v24  ;;  %v1669_v31 = vpack.c.bf16 %v1665_v27, %v1661_v25  ;;  %5996 = vmatpush3.bf16.msra.mxu1 %v6645_v6  ;;  %v6664_v6 = vld [vmem:[%s9343_s11] sm:$0xff]   ;;  %v6666_v10 = vld [vmem:[%s9343_s11 + $0x10] sm:$0xff]  }
 0x1b1   :  { %5997 = vmatprep.subr.bf16.mxu1 %v6646_v7 }
 0x1b2   :  { %2098 = vmatprep.mubr.bf16.mxu0 %v1667_v30  ;;  %v6650_v30 = vld [vmem:[%s9372_s25 + $0x10] sm:$0xff]  }
 0x1b3   :  { %2099 = vmatmul.mubr.bf16.vlgmr.msra.gmra.mrb[4].mxu0 %v1666_v28  ;;  %v6648_v28 = vld [vmem:[%s9372_s25] sm:$0xff]  }
 0x1b4   :  { %2110 = vmatpush1.bf16.msra.mxu0 %v6584_v32  ;;  %2141 = vmatprep.mubr.bf16.mxu0 %v1669_v31  ;;  %v6651_v31 = vld [vmem:[%s9372_s25 + $0x18] sm:$0xff]   ;;  %v6652_v32 = vld [vmem:[%s9372_s25 + $0x20] sm:$0xff]  }
 0x1b5   :  { %2111 = vmatprep.subr.bf16.mxu0 %v6589_v33  ;;  %5998 = vmatpush3.bf16.msra.mxu1 %v6647_v8  ;;  %v6653_v33 = vld [vmem:[%s9372_s25 + $0x28] sm:$0xff]  }
 0x1b6   :  { %6085 = vmatprep.subr.bf16.mxu1 %v7177_v9  ;;  %v6665_v8 = vld [vmem:[%s9343_s11 + $0x8] sm:$0xff]  }
 0x1b8   :  { %2112 = vmatpush1.bf16.msra.mxu0 %v6587_v34  ;;  %v6654_v34 = vld [vmem:[%s9372_s25 + $0x30] sm:$0xff]  }
 0x1b9   :  { %2113 = vmatprep.subr.bf16.mxu0 %v6592_v35  ;;  %v6655_v35 = vld [vmem:[%s9372_s25 + $0x38] sm:$0xff]  }
 0x1bc   :  { %2114 = vmatpush1.bf16.msra.mxu0 %v6590_v36 }
 0x1bd   :  { %2115 = vmatprep.subr.bf16.mxu0 %v6595_v37  ;;  %v5612_v37 = vld [vmem:[%s9342_s6] ss:$0 sm:$0xff] }
 0x1c0   :  { %2116 = vmatpush1.bf16.msra.mxu0 %v6593_v38 }
 0x1c1   :  { %2117 = vmatprep.subr.bf16.mxu0 %v6598_v39 }
 0x1c4   :  { %2118 = vmatpush1.bf16.msra.mxu0 %v6596_v40 }
 0x1c5   :  { %2119 = vmatprep.subr.bf16.mxu0 %v6601_v41 }
 0x1c8   :  { %2120 = vmatpush1.bf16.msra.mxu0 %v6599_v42 }
 0x1c9   :  { %2121 = vmatprep.subr.bf16.mxu0 %v6604_v43 }
 0x1cc   :  { %2122 = vmatpush1.bf16.msra.mxu0 %v6602_v44 }
 0x1cd   :  { %2123 = vmatprep.subr.bf16.mxu0 %v6607_v45 }
 0x1d0   :  { %2124 = vmatpush1.bf16.msra.mxu0 %v6605_v46 }
 0x1d1   :  { %2125 = vmatprep.subr.bf16.mxu0 %v6610_v47  ;;  %v6656_v47 = vld [vmem:[%s9341_s9] sm:$0xff]  }
 0x1d4   :  { %2126 = vmatpush1.bf16.msra.mxu0 %v6608_v48 }
 0x1d5   :  { %2127 = vmatprep.subr.bf16.mxu0 %v6613_v49  ;;  %v6657_v49 = vld [vmem:[%s9341_s9 + $0x8] sm:$0xff]  }
 0x1d8   :  { %2128 = vmatpush1.bf16.msra.mxu0 %v6611_v50  ;;  %v6658_v50 = vld [vmem:[%s9341_s9 + $0x10] sm:$0xff]  }
 0x1d9   :  { %2129 = vmatprep.subr.bf16.mxu0 %v6616_v51  ;;  %v6659_v51 = vld [vmem:[%s9341_s9 + $0x18] sm:$0xff]  }
 0x1dc   :  { %2130 = vmatpush1.bf16.msra.mxu0 %v6614_v52  ;;  %v6660_v52 = vld [vmem:[%s9341_s9 + $0x20] sm:$0xff]  }
 0x1dd   :  { %2131 = vmatprep.subr.bf16.mxu0 %v6619_v53  ;;  %v6661_v53 = vld [vmem:[%s9341_s9 + $0x28] sm:$0xff]  }
 0x1e0   :  { %2132 = vmatpush1.bf16.msra.mxu0 %v6617_v54  ;;  %v6662_v54 = vld [vmem:[%s9341_s9 + $0x30] sm:$0xff]  }
 0x1e1   :  { %2133 = vmatprep.subr.bf16.mxu0 %v6622_v55  ;;  %v6663_v55 = vld [vmem:[%s9341_s9 + $0x38] sm:$0xff]  }
 0x1e4   :  { %2134 = vmatpush1.bf16.msra.mxu0 %v6620_v56  ;;  %v5629_v56 = vld [vmem:[%s9344_s8] ss:$0 sm:$0xff] }
 0x1e5   :  { %2135 = vmatprep.subr.bf16.mxu0 %v6625_v60 }
 0x1e8   :  { %2136 = vmatpush1.bf16.msra.mxu0 %v6623_v63 }
 0x1e9   :  { %2137 = vmatprep.subr.bf16.mxu0 %v6628_v0 }
 0x1ec   :  { %2138 = vmatpush1.bf16.msra.mxu0 %v6626_v1 }
 0x1ed   :  { %2139 = vmatprep.subr.bf16.mxu0 %v6631_v2 }
 0x1f0   :  { %2140 = vmatpush1.bf16.msra.mxu0 %v6629_v3 }
 0x1f3   :  { %2142 = vmatmul.mubr.bf16.vlgmr.msra.gmra.mrb[4].mxu0 %v8055_v29  ;;  %v6649_v29 = vld [vmem:[%s9372_s25 + $0x8] sm:$0xff]  }
 0x2c6   :  { %v2143_v14 = vpop.f32.mrb[4].mxu0 }
 0x2c7   :  { %v6173_v15 = vadd.f32 %v2143_v14, %v1739_v12  ;;  %v2145_v16 = vpop.f32.mrb[5].mxu0  ;;  %v6669_v14 = vld [vmem:[%s9343_s11 + $0x28] sm:$0xff]  }
 0x2c8   :  { %v6174_v17 = vadd.f32 %v2145_v16, %v1743_v13  ;;  %v2147_v18 = vpop.f32.mrb[6].mxu0  ;;  %v6671_v16 = vld [vmem:[%s9343_s11 + $0x38] sm:$0xff]  }
 0x2c9   :  { %v6175_v19 = vadd.f32 %v2147_v18, %v1739_v12  ;;  %v2149_v20 = vpop.f32.mrb[7].mxu0  ;;  %v2152_v22 = vmax.f32 %v6173_v15, 0.0  ;;  %v6667_v12 = vld [vmem:[%s9343_s11 + $0x18] sm:$0xff]   ;;  %v6670_v15 = vld [vmem:[%s9343_s11 + $0x30] sm:$0xff]  }
 0x2ca   :  { %v6176_v21 = vadd.f32 %v2149_v20, %v1743_v13  ;;  %v2153_v24 = vmax.f32 %v6174_v17, 0.0  ;;  %v6668_v13 = vld [vmem:[%s9343_s11 + $0x20] sm:$0xff]  }
 0x2cb   :  { %v2154_v23 = vmax.f32 %v6175_v19, 0.0  ;;  %v5638_v17 = vld [vmem:[%s9346_s10] ss:$0 sm:$0xff] }
 0x2cc   :  { %v2155_v25 = vmax.f32 %v6176_v21, 0.0 }
 0x2cd   :  { %v2156_v26 = vpack.c.bf16 %v2154_v23, %v2152_v22 }
 0x2ce   :  { %v2157_v27 = vpack.c.bf16 %v2155_v25, %v2153_v24  ;;  %v6672_v24 = vld [vmem:[%s9345_s13] sm:$0xff]  }
 0x2d0   :  { %2325 = vmatprep.mubr.bf16.mxu1 %v2157_v27  ;;  %v6674_v27 = vld [vmem:[%s9345_s13 + $0x10] sm:$0xff]  }
 0x2d1   :  { %2326 = vmatmul.mubr.bf16.vlgmr.msra.gmra.mrb[4].mxu1 %v2156_v26  ;;  %v6673_v26 = vld [vmem:[%s9345_s13 + $0x8] sm:$0xff]  }
 0x2d2   :  { %6086 = vmatpush3.bf16.msra.mxu1 %v6648_v28  ;;  %6101 = vmatprep.mubr.msk.bf16.mxu1 %vm7178_vm1, %v7177_v9  ;;  %v6675_v28 = vld [vmem:[%s9345_s13 + $0x18] sm:$0xff]  }
 0x2d3   :  { %6087 = vmatprep.subr.bf16.mxu1 %v7177_v9 }
 0x2d6   :  { %6088 = vmatpush3.bf16.msra.mxu1 %v6649_v29  ;;  %v6676_v29 = vld [vmem:[%s9345_s13 + $0x20] sm:$0xff]  }
 0x2d7   :  { %6089 = vmatprep.subr.bf16.mxu1 %v7177_v9 }
 0x2da   :  { %6090 = vmatpush3.bf16.msra.mxu1 %v6650_v30  ;;  %v6677_v30 = vld [vmem:[%s9345_s13 + $0x28] sm:$0xff]  }
 0x2db   :  { %6091 = vmatprep.subr.bf16.mxu1 %v7177_v9 }
 0x2de   :  { %6092 = vmatpush3.bf16.msra.mxu1 %v6651_v31  ;;  %v6678_v31 = vld [vmem:[%s9345_s13 + $0x30] sm:$0xff]  }
 0x2df   :  { %6093 = vmatprep.subr.bf16.mxu1 %v7177_v9 }
 0x2e2   :  { %6094 = vmatpush3.bf16.msra.mxu1 %v6652_v32  ;;  %v6679_v32 = vld [vmem:[%s9345_s13 + $0x38] sm:$0xff]  }
 0x2e3   :  { %6095 = vmatprep.subr.bf16.mxu1 %v7177_v9 }
 0x2e6   :  { %6096 = vmatpush3.bf16.msra.mxu1 %v6653_v33  ;;  %v6682_v33 = vld [vmem:[%s9347_s15 + $0x4] ss:$8 sps:$4 sm:$0xff]  }
 0x2e7   :  { %6097 = vmatprep.subr.bf16.mxu1 %v7177_v9 }
 0x2ea   :  { %6098 = vmatpush3.bf16.msra.mxu1 %v6654_v34  ;;  %v5647_v34 = vld [vmem:[%s9348_s12] ss:$0 sm:$0xff] }
 0x2eb   :  { %6099 = vmatprep.subr.bf16.mxu1 %v7177_v9 }
 0x2ee   :  { %6100 = vmatpush3.bf16.msra.mxu1 %v6655_v35 }
 0x2ef   :  { %6105 = vmatprep.subr.bf16.mxu1 %v7177_v9 }
 0x3a4   :  { %v5999_v36 = vpop.f32.mrb[4].mxu1 }
 0x3a5   :  { %v6000_v38 = vpop.f32.mrb[5].mxu1 }
 0x3a6   :  { %v6001_v39 = vadd.f32 %v6000_v38, %v5999_v36  ;;  %v6002_v40 = vpop.f32.mrb[6].mxu1 }
 0x3a7   :  { %v6003_v41 = vpop.f32.mrb[7].mxu1 }
 0x3a8   :  { %v2328_v42 = vadd.f32 %v6001_v39, %v5612_v37  ;;  %v6004_v43 = vadd.f32 %v6003_v41, %v6002_v40 }
 0x3aa   :  { %v2331_v44 = vadd.f32 %v6004_v43, %v5612_v37  ;;  %v2334_v45 = vmax.f32 %v2328_v42, 0.0  ;;  %v6680_v42 = vld [vmem:[%s9347_s15] ss:$8 sps:$4 sm:$0xff]  }
 0x3ac   :  { %v2335_v46 = vmax.f32 %v2331_v44, 0.0  ;;  %v6685_v44 = vld [vmem:[%s9347_s15 + $0x14] ss:$8 sps:$4 sm:$0xff]  }
 0x3ae   :  { %v2336_v48 = vpack.c.bf16 %v2335_v46, %v2334_v45  ;;  %v6683_v45 = vld [vmem:[%s9347_s15 + $0x10] ss:$8 sps:$4 sm:$0xff]   ;;  %v6688_v46 = vld [vmem:[%s9347_s15 + $0x24] ss:$8 sps:$4 sm:$0xff]  }
 0x3b0   :  { %6102 = vmatmul.mubr.bf16.vlgmr.msra.gmra.mrb[8].mxu1 %v2336_v48  ;;  %v6691_v48 = vld [vmem:[%s9347_s15 + $0x34] ss:$8 sps:$4 sm:$0xff]  }
 0x3b1   :  { %6106 = vmatpush3.bf16.msra.mxu1 %v6656_v47  ;;  %6121 = vmatprep.mubr.msk.bf16.mxu1 %vm7178_vm1, %v7177_v9  ;;  %v6686_v47 = vld [vmem:[%s9347_s15 + $0x20] ss:$8 sps:$4 sm:$0xff]  }
 0x3b2   :  { %6107 = vmatprep.subr.bf16.mxu1 %v7177_v9 }
 0x3b5   :  { %6108 = vmatpush3.bf16.msra.mxu1 %v6657_v49  ;;  %v6694_v49 = vld [vmem:[%s9347_s15 + $0x44] ss:$8 sps:$4 sm:$0xff]  }
 0x3b6   :  { %6109 = vmatprep.subr.bf16.mxu1 %v7177_v9 }
 0x3b9   :  { %6110 = vmatpush3.bf16.msra.mxu1 %v6658_v50  ;;  %v6692_v50 = vld [vmem:[%s9347_s15 + $0x40] ss:$8 sps:$4 sm:$0xff]  }
 0x3ba   :  { %6111 = vmatprep.subr.bf16.mxu1 %v7177_v9 }
 0x3bd   :  { %6112 = vmatpush3.bf16.msra.mxu1 %v6659_v51  ;;  %v6697_v51 = vld [vmem:[%s9347_s15 + $0x54] ss:$8 sps:$4 sm:$0xff]  }
 0x3be   :  { %6113 = vmatprep.subr.bf16.mxu1 %v7177_v9 }
 0x3c1   :  { %6114 = vmatpush3.bf16.msra.mxu1 %v6660_v52  ;;  %v6695_v52 = vld [vmem:[%s9347_s15 + $0x50] ss:$8 sps:$4 sm:$0xff]  }
 0x3c2   :  { %6115 = vmatprep.subr.bf16.mxu1 %v7177_v9 }
 0x3c5   :  { %6116 = vmatpush3.bf16.msra.mxu1 %v6661_v53  ;;  %v6700_v53 = vld [vmem:[%s9347_s15 + $0x64] ss:$8 sps:$4 sm:$0xff]  }
 0x3c6   :  { %6117 = vmatprep.subr.bf16.mxu1 %v7177_v9 }
 0x3c9   :  { %6118 = vmatpush3.bf16.msra.mxu1 %v6662_v54  ;;  %v6698_v54 = vld [vmem:[%s9347_s15 + $0x60] ss:$8 sps:$4 sm:$0xff]  }
 0x3ca   :  { %6119 = vmatprep.subr.bf16.mxu1 %v7177_v9 }
 0x3cd   :  { %6120 = vmatpush3.bf16.msra.mxu1 %v6663_v55  ;;  %v6703_v55 = vld [vmem:[%s9347_s15 + $0x74] ss:$8 sps:$4 sm:$0xff]  }
 0x3ce   :  { %6125 = vmatprep.subr.bf16.mxu1 %v7177_v9 }
 0x483   :  { %v2442_v60 = vpop.f32.mrb[8].mxu1 }
 0x484   :  { %v2443_v63 = vadd.f32 %v5629_v56, %v2442_v60  ;;  %v6103_v0 = vpop.f32.mrb[9].mxu1  ;;  %v6704_v60 = vld [vmem:[%s9349_s17] ss:$16 sps:$4 sm:$0xff]  }
 0x485   :  { %v2445_v1 = vpop.f32.mrb[10].mxu1  ;;  %v6709_v0 = vld [vmem:[%s9349_s17 + $0xc] ss:$16 sps:$4 sm:$0xff]  }
 0x486   :  { %v2446_v2 = vadd.f32 %v5629_v56, %v2445_v1  ;;  %v6104_v3 = vpop.f32.mrb[11].mxu1  ;;  %v2449_v4 = vmax.f32 %v2443_v63, 0.0  ;;  %v6701_v56 = vld [vmem:[%s9347_s15 + $0x70] ss:$8 sps:$4 sm:$0xff]   ;;  %v6706_v63 = vld [vmem:[%s9349_s17 + $0x4] ss:$16 sps:$4 sm:$0xff]  }
 0x487   :  { %3358 = vmatprep.subr.bf16.mxu0 %v6706_v63  ;;  %v6712_v1 = vld [vmem:[%s9349_s17 + $0x24] ss:$16 sps:$4 sm:$0xff]   ;;  %v6775_v63 = vld [vmem:[%s9349_s17 + $0x16c] ss:$16 sps:$4 sm:$0xff]  }
 0x488   :  { %v2450_v5 = vmax.f32 %v2446_v2, 0.0  ;;  %3359 = vmatpush1.bf16.msra.mxu0 %v6704_v60  ;;  %v6710_v2 = vld [vmem:[%s9349_s17 + $0x20] ss:$16 sps:$4 sm:$0xff]   ;;  %v6718_v3 = vld [vmem:[%s9349_s17 + $0x44] ss:$16 sps:$4 sm:$0xff]  }
 0x489   :  { %3360 = vmatprep.subr.bf16.mxu0 %v6712_v1  ;;  %v6767_v60 = vld [vmem:[%s9349_s17 + $0x148] ss:$16 sps:$4 sm:$0xff]   ;;  %v6781_v1 = vld [vmem:[%s9349_s17 + $0x18c] ss:$16 sps:$4 sm:$0xff]  }
 0x48a   :  { %v2451_v7 = vpack.c.bf16 %v2450_v5, %v2449_v4  ;;  %v6716_v4 = vld [vmem:[%s9349_s17 + $0x40] ss:$16 sps:$4 sm:$0xff]   ;;  %v6724_v5 = vld [vmem:[%s9349_s17 + $0x64] ss:$16 sps:$4 sm:$0xff]  }
 0x48c   :  { %6122 = vmatmul.mubr.bf16.vlgmr.msra.gmra.mrb[12].mxu1 %v2451_v7  ;;  %3361 = vmatpush1.bf16.msra.mxu0 %v6710_v2  ;;  %v6730_v7 = vld [vmem:[%s9349_s17 + $0x84] ss:$16 sps:$4 sm:$0xff]   ;;  %v6779_v2 = vld [vmem:[%s9349_s17 + $0x188] ss:$16 sps:$4 sm:$0xff]  }
 0x48d   :  { %6126 = vmatpush3.bf16.msra.mxu1 %v6664_v6  ;;  %6141 = vmatprep.mubr.msk.bf16.mxu1 %vm7178_vm1, %v7177_v9  ;;  %v6722_v6 = vld [vmem:[%s9349_s17 + $0x60] ss:$16 sps:$4 sm:$0xff]  }
 0x48e   :  { %6127 = vmatprep.subr.bf16.mxu1 %v7177_v9  ;;  %3362 = vmatprep.subr.bf16.mxu0 %v6718_v3  ;;  %v6787_v3 = vld [vmem:[%s9349_s17 + $0x1ac] ss:$16 sps:$4 sm:$0xff]  }
 0x490   :  { %3363 = vmatpush1.bf16.msra.mxu0 %v6716_v4  ;;  %v6785_v4 = vld [vmem:[%s9349_s17 + $0x1a8] ss:$16 sps:$4 sm:$0xff]  }
 0x491   :  { %6128 = vmatpush3.bf16.msra.mxu1 %v6665_v8  ;;  %3364 = vmatprep.subr.bf16.mxu0 %v6724_v5  ;;  %v6728_v8 = vld [vmem:[%s9349_s17 + $0x80] ss:$16 sps:$4 sm:$0xff]   ;;  %v6790_v5 = vld [vmem:[%s9349_s17 + $0x1c4] ss:$16 sps:$4 sm:$0xff]  }
 0x492   :  { %6129 = vmatprep.subr.bf16.mxu1 %v7177_v9 }
 0x494   :  { %3365 = vmatpush1.bf16.msra.mxu0 %v6722_v6  ;;  %v6793_v6 = vld [vmem:[%s9349_s17 + $0x1cc] ss:$16 sps:$4 sm:$0xff]  }
 0x495   :  { %6130 = vmatpush3.bf16.msra.mxu1 %v6666_v10  ;;  %3366 = vmatprep.subr.bf16.mxu0 %v6730_v7  ;;  %v6736_v10 = vld [vmem:[%s9349_s17 + $0xa4] ss:$16 sps:$4 sm:$0xff]   ;;  %v6788_v7 = vld [vmem:[%s9349_s17 + $0x1c0] ss:$16 sps:$4 sm:$0xff]  }
 0x496   :  { %6131 = vmatprep.subr.bf16.mxu1 %v7177_v9 }
 0x498   :  { %3367 = vmatpush1.bf16.msra.mxu0 %v6728_v8  ;;  %v6791_v8 = vld [vmem:[%s9349_s17 + $0x1c8] ss:$16 sps:$4 sm:$0xff]  }
 0x499   :  { %6132 = vmatpush3.bf16.msra.mxu1 %v6667_v12  ;;  %v6734_v12 = vld [vmem:[%s9349_s17 + $0xa0] ss:$16 sps:$4 sm:$0xff]   ;;  %3368 = vmatprep.subr.bf16.mxu0 %v6736_v10  ;;  %v6796_v10 = vld [vmem:[%s9349_s17 + $0x1e4] ss:$16 sps:$4 sm:$0xff]  }
 0x49a   :  { %6133 = vmatprep.subr.bf16.mxu1 %v7177_v9 }
 0x49c   :  { %3369 = vmatpush1.bf16.msra.mxu0 %v6734_v12  ;;  %v6799_v12 = vld [vmem:[%s9349_s17 + $0x1ec] ss:$16 sps:$4 sm:$0xff]  }
 0x49d   :  { %6134 = vmatpush3.bf16.msra.mxu1 %v6668_v13  ;;  %v6742_v13 = vld [vmem:[%s9349_s17 + $0xc4] ss:$16 sps:$4 sm:$0xff]  }
 0x49e   :  { %6135 = vmatprep.subr.bf16.mxu1 %v7177_v9  ;;  %3370 = vmatprep.subr.bf16.mxu0 %v6742_v13  ;;  %v6794_v13 = vld [vmem:[%s9349_s17 + $0x1e0] ss:$16 sps:$4 sm:$0xff]  }
 0x4a1   :  { %6136 = vmatpush3.bf16.msra.mxu1 %v6669_v14  ;;  %v6740_v14 = vld [vmem:[%s9349_s17 + $0xc0] ss:$16 sps:$4 sm:$0xff]  }
 0x4a2   :  { %6137 = vmatprep.subr.bf16.mxu1 %v7177_v9  ;;  %3371 = vmatpush1.bf16.msra.mxu0 %v6740_v14  ;;  %v6797_v14 = vld [vmem:[%s9349_s17 + $0x1e8] ss:$16 sps:$4 sm:$0xff]  }
 0x4a5   :  { %6138 = vmatpush3.bf16.msra.mxu1 %v6670_v15  ;;  %v6748_v15 = vld [vmem:[%s9349_s17 + $0xe4] ss:$16 sps:$4 sm:$0xff]  }
 0x4a6   :  { %6139 = vmatprep.subr.bf16.mxu1 %v7177_v9  ;;  %3372 = vmatprep.subr.bf16.mxu0 %v6748_v15  ;;  %v6802_v15 = vld [vmem:[%s9351_s19 + $0x4] ss:$28 sps:$4 sm:$0xff]  }
 0x4a9   :  { %6140 = vmatpush3.bf16.msra.mxu1 %v6671_v16  ;;  %v6746_v16 = vld [vmem:[%s9349_s17 + $0xe0] ss:$16 sps:$4 sm:$0xff]  }
 0x4aa   :  { %6145 = vmatprep.subr.bf16.mxu1 %v7177_v9  ;;  %3373 = vmatpush1.bf16.msra.mxu0 %v6746_v16  ;;  %v6805_v16 = vld [vmem:[%s9351_s19 + $0xc] ss:$28 sps:$4 sm:$0xff]  }
 0x55f   :  { %v2557_v18 = vpop.f32.mrb[12].mxu1 }
 0x560   :  { %v6123_v19 = vpop.f32.mrb[13].mxu1  ;;  %v2558_v21 = vadd.f32 %v5638_v17, %v2557_v18  ;;  %v6752_v18 = vld [vmem:[%s9349_s17 + $0x100] ss:$16 sps:$4 sm:$0xff]  }
 0x561   :  { %v2560_v20 = vpop.f32.mrb[14].mxu1  ;;  %v6760_v19 = vld [vmem:[%s9349_s17 + $0x124] ss:$16 sps:$4 sm:$0xff]  }
 0x562   :  { %v2561_v22 = vadd.f32 %v5638_v17, %v2560_v20  ;;  %v6124_v23 = vpop.f32.mrb[15].mxu1  ;;  %v6754_v17 = vld [vmem:[%s9349_s17 + $0x104] ss:$16 sps:$4 sm:$0xff]   ;;  %v6758_v20 = vld [vmem:[%s9349_s17 + $0x120] ss:$16 sps:$4 sm:$0xff]  }
 0x563   :  { %3374 = vmatprep.subr.bf16.mxu0 %v6754_v17  ;;  %v6772_v23 = vld [vmem:[%s9349_s17 + $0x164] ss:$16 sps:$4 sm:$0xff]   ;;  %v2811_v17 = vld [vmem:[%s9352_s16] sm:$0x3] }
 0x564   :  { %v2564_v25 = vpack.c.bf16 %v2561_v22, %v2558_v21  ;;  %3375 = vmatpush1.bf16.msra.mxu0 %v6752_v18  ;;  %v6766_v21 = vld [vmem:[%s9349_s17 + $0x144] ss:$16 sps:$4 sm:$0xff]   ;;  %v6764_v22 = vld [vmem:[%s9349_s17 + $0x140] ss:$16 sps:$4 sm:$0xff]   ;;  %v2816_v18 = vrot.slane %v2811_v17, %v8037_v58 }
 0x565   :  { %3376 = vmatprep.subr.bf16.mxu0 %v6760_v19  ;;  %v2820_v19 = vrot.slane %v2811_v17, %v8046_v61  ;;  %v6868_v17 = vld [vmem:[%s9351_s19 + $0x26c] ss:$28 sps:$4 sm:$0xff]  }
 0x566   :  { %6142 = vmatmul.mubr.bf16.vlgmr.msra.gmra.mrb[16].mxu1 %v2564_v25  ;;  %v6778_v25 = vld [vmem:[%s9349_s17 + $0x184] ss:$16 sps:$4 sm:$0xff]  }
 0x567   :  { %6146 = vmatpush3.bf16.msra.mxu1 %v6672_v24  ;;  %6161 = vmatprep.mubr.msk.bf16.mxu1 %vm7178_vm1, %v7177_v9  ;;  %v6770_v24 = vld [vmem:[%s9349_s17 + $0x160] ss:$16 sps:$4 sm:$0xff]  }
 0x568   :  { %6147 = vmatprep.subr.bf16.mxu1 %v7177_v9  ;;  %3377 = vmatpush1.bf16.msra.mxu0 %v6758_v20 }
 0x569   :  { %3378 = vmatprep.subr.bf16.mxu0 %v6766_v21 }
 0x56b   :  { %6148 = vmatpush3.bf16.msra.mxu1 %v6673_v26  ;;  %v6776_v26 = vld [vmem:[%s9349_s17 + $0x180] ss:$16 sps:$4 sm:$0xff]  }
 0x56c   :  { %6149 = vmatprep.subr.bf16.mxu1 %v7177_v9  ;;  %3379 = vmatpush1.bf16.msra.mxu0 %v6764_v22 }
 0x56d   :  { %3380 = vmatprep.subr.bf16.mxu0 %v6772_v23 }
 0x56f   :  { %6150 = vmatpush3.bf16.msra.mxu1 %v6674_v27  ;;  %v6784_v27 = vld [vmem:[%s9349_s17 + $0x1a4] ss:$16 sps:$4 sm:$0xff]  }
 0x570   :  { %6151 = vmatprep.subr.bf16.mxu1 %v7177_v9  ;;  %3381 = vmatpush1.bf16.msra.mxu0 %v6770_v24 }
 0x571   :  { %3382 = vmatprep.subr.bf16.mxu0 %v6778_v25 }
 0x573   :  { %6152 = vmatpush3.bf16.msra.mxu1 %v6675_v28  ;;  %v6782_v28 = vld [vmem:[%s9349_s17 + $0x1a0] ss:$16 sps:$4 sm:$0xff]  }
 0x574   :  { %6153 = vmatprep.subr.bf16.mxu1 %v7177_v9  ;;  %3383 = vmatpush1.bf16.msra.mxu0 %v6776_v26 }
 0x575   :  { %3384 = vmatprep.subr.bf16.mxu0 %v6784_v27 }
 0x577   :  { %6154 = vmatpush3.bf16.msra.mxu1 %v6676_v29  ;;  %v5656_v29 = vld [vmem:[%s9350_s14] ss:$0 sm:$0xff] }
 0x578   :  { %6155 = vmatprep.subr.bf16.mxu1 %v7177_v9  ;;  %3385 = vmatpush1.bf16.msra.mxu0 %v6782_v28 }
 0x579   :  { %3386 = vmatprep.subr.bf16.mxu0 %v6790_v5  ;;  %v6848_v5 = vld [vmem:[%s9351_s19 + $0x1c0] ss:$28 sps:$4 sm:$0xff]  }
 0x57b   :  { %6156 = vmatpush3.bf16.msra.mxu1 %v6677_v30 }
 0x57c   :  { %6157 = vmatprep.subr.bf16.mxu1 %v7177_v9  ;;  %3387 = vmatpush1.bf16.msra.mxu0 %v6788_v7  ;;  %v6856_v7 = vld [vmem:[%s9351_s19 + $0x1fc] ss:$28 sps:$4 sm:$0xff]  }
 0x57d   :  { %3388 = vmatprep.subr.bf16.mxu0 %v6796_v10  ;;  %v6854_v10 = vld [vmem:[%s9351_s19 + $0x1f8] ss:$28 sps:$4 sm:$0xff]  }
 0x57f   :  { %6158 = vmatpush3.bf16.msra.mxu1 %v6678_v31 }
 0x580   :  { %6159 = vmatprep.subr.bf16.mxu1 %v7177_v9  ;;  %3389 = vmatpush1.bf16.msra.mxu0 %v6794_v13  ;;  %v6862_v13 = vld [vmem:[%s9351_s19 + $0x234] ss:$28 sps:$4 sm:$0xff]  }
 0x581   :  { %4901 = vmatprep.subr.bf16.mxu0 %v6802_v15  ;;  %v6860_v15 = vld [vmem:[%s9351_s19 + $0x230] ss:$28 sps:$4 sm:$0xff]  }
 0x583   :  { %6160 = vmatpush3.bf16.msra.mxu1 %v6679_v32 }
 0x584   :  { %2903 = vmatprep.subr.bf16.mxu1 %v6682_v33 }
 0x639   :  { %v2670_v35 = vpop.f32.mrb[16].mxu1 }
 0x63a   :  { %v2671_v36 = vadd.f32 %v5647_v34, %v2670_v35  ;;  %v6143_v37 = vpop.f32.mrb[17].mxu1 }
 0x63b   :  { %v2673_v38 = vpop.f32.mrb[18].mxu1 }
 0x63c   :  { %v2674_v39 = vadd.f32 %v5647_v34, %v2673_v38  ;;  %v6144_v9 = vpop.f32.mrb[19].mxu1  ;;  %v2677_v40 = vmax.f32 %v2671_v36, 0.0  ;;  %v6707_v38 = vld [vmem:[%s9349_s17 + $0x8] ss:$16 sps:$4 sm:$0xff]  }
 0x63d   :  { %v6715_v9 = vld [vmem:[%s9349_s17 + $0x2c] ss:$16 sps:$4 sm:$0xff]  }
 0x63e   :  { %v2678_v41 = vmax.f32 %v2674_v39, 0.0 }
 0x640   :  { %v2679_v43 = vpack.c.bf16 %v2678_v41, %v2677_v40  ;;  %v6713_v40 = vld [vmem:[%s9349_s17 + $0x28] ss:$16 sps:$4 sm:$0xff]   ;;  %v6721_v41 = vld [vmem:[%s9349_s17 + $0x4c] ss:$16 sps:$4 sm:$0xff]  }
 0x642   :  { %6162 = vmatmul.mubr.bf16.vlgmr.msra.gmra.mrb[20].mxu1 %v2679_v43  ;;  %v6727_v43 = vld [vmem:[%s9349_s17 + $0x6c] ss:$16 sps:$4 sm:$0xff]  }
 0x643   :  { %2904 = vmatpush1.bf16.msra.mxu1 %v6680_v42  ;;  %2935 = vmatprep.mubr.bf16.mxu1 %v7176_v11  ;;  %v6689_v11 = vld [vmem:[%s9347_s15 + $0x30] ss:$8 sps:$4 sm:$0xff]  }
 0x644   :  { %2905 = vmatprep.subr.bf16.mxu1 %v6685_v44  ;;  %v6719_v42 = vld [vmem:[%s9349_s17 + $0x48] ss:$16 sps:$4 sm:$0xff]  }
 0x645   :  { %v6725_v44 = vld [vmem:[%s9349_s17 + $0x68] ss:$16 sps:$4 sm:$0xff]  }
 0x647   :  { %2906 = vmatpush1.bf16.msra.mxu1 %v6683_v45  ;;  %v6733_v45 = vld [vmem:[%s9349_s17 + $0x8c] ss:$16 sps:$4 sm:$0xff]  }
 0x648   :  { %2907 = vmatprep.subr.bf16.mxu1 %v6688_v46  ;;  %v6731_v46 = vld [vmem:[%s9349_s17 + $0x88] ss:$16 sps:$4 sm:$0xff]  }
 0x64b   :  { %2908 = vmatpush1.bf16.msra.mxu1 %v6686_v47  ;;  %v6739_v47 = vld [vmem:[%s9349_s17 + $0xac] ss:$16 sps:$4 sm:$0xff]  }
 0x64c   :  { %2909 = vmatprep.subr.bf16.mxu1 %v6691_v48  ;;  %v6737_v48 = vld [vmem:[%s9349_s17 + $0xa8] ss:$16 sps:$4 sm:$0xff]  }
 0x64f   :  { %2910 = vmatpush1.bf16.msra.mxu1 %v6689_v11  ;;  %v6745_v11 = vld [vmem:[%s9349_s17 + $0xcc] ss:$16 sps:$4 sm:$0xff]  }
 0x650   :  { %2911 = vmatprep.subr.bf16.mxu1 %v6694_v49  ;;  %v6743_v49 = vld [vmem:[%s9349_s17 + $0xc8] ss:$16 sps:$4 sm:$0xff]  }
 0x653   :  { %2912 = vmatpush1.bf16.msra.mxu1 %v6692_v50  ;;  %v6751_v50 = vld [vmem:[%s9349_s17 + $0xec] ss:$16 sps:$4 sm:$0xff]  }
 0x654   :  { %2913 = vmatprep.subr.bf16.mxu1 %v6697_v51  ;;  %v6749_v51 = vld [vmem:[%s9349_s17 + $0xe8] ss:$16 sps:$4 sm:$0xff]  }
 0x657   :  { %2914 = vmatpush1.bf16.msra.mxu1 %v6695_v52  ;;  %v6757_v52 = vld [vmem:[%s9349_s17 + $0x10c] ss:$16 sps:$4 sm:$0xff]  }
 0x658   :  { %2915 = vmatprep.subr.bf16.mxu1 %v6700_v53  ;;  %v6755_v53 = vld [vmem:[%s9349_s17 + $0x108] ss:$16 sps:$4 sm:$0xff]  }
 0x65b   :  { %2916 = vmatpush1.bf16.msra.mxu1 %v6698_v54  ;;  %v6763_v54 = vld [vmem:[%s9349_s17 + $0x12c] ss:$16 sps:$4 sm:$0xff]  }
 0x65c   :  { %2917 = vmatprep.subr.bf16.mxu1 %v6703_v55  ;;  %v6761_v55 = vld [vmem:[%s9349_s17 + $0x128] ss:$16 sps:$4 sm:$0xff]  }
 0x65f   :  { %2918 = vmatpush1.bf16.msra.mxu1 %v6701_v56  ;;  %v6769_v56 = vld [vmem:[%s9349_s17 + $0x14c] ss:$16 sps:$4 sm:$0xff]  }
 0x660   :  { %3401 = vmatprep.subr.bf16.mxu1 %v6709_v0  ;;  %v6773_v0 = vld [vmem:[%s9349_s17 + $0x168] ss:$16 sps:$4 sm:$0xff]  }
 0x715   :  { %v2785_v30 = vpop.f32.mrb[20].mxu1 }
 0x716   :  { %v2786_v31 = vadd.f32 %v5656_v29, %v2785_v30  ;;  %v6163_v32 = vpop.f32.mrb[21].mxu1 }
 0x717   :  { %v2788_v33 = vpop.f32.mrb[22].mxu1 }
 0x718   :  { %v2789_v34 = vadd.f32 %v5656_v29, %v2788_v33  ;;  %v6164_v35 = vpop.f32.mrb[23].mxu1  ;;  %v2792_v36 = vmax.f32 %v2786_v31, 0.0 }
 0x719   :  { %v6803_v35 = vld [vmem:[%s9351_s19 + $0x8] ss:$28 sps:$4 sm:$0xff]  }
 0x71a   :  { %v2793_v37 = vmax.f32 %v2789_v34, 0.0  ;;  %v6800_v34 = vld [vmem:[%s9351_s19] ss:$28 sps:$4 sm:$0xff]  }
 0x71c   :  { %v2794_v39 = vpack.c.bf16 %v2793_v37, %v2792_v36  ;;  %v6808_v36 = vld [vmem:[%s9351_s19 + $0x3c] ss:$28 sps:$4 sm:$0xff]   ;;  %v6811_v37 = vld [vmem:[%s9351_s19 + $0x44] ss:$28 sps:$4 sm:$0xff]  }
 0x71e   :  { %2936 = vmatmul.mubr.bf16.vlgmr.msra.gmra.mrb[24].mxu1 %v2794_v39  ;;  %v6809_v39 = vld [vmem:[%s9351_s19 + $0x40] ss:$28 sps:$4 sm:$0xff]  }
 0x71f   :  { %3402 = vmatpush1.bf16.msra.mxu1 %v6707_v38  ;;  %v6806_v38 = vld [vmem:[%s9351_s19 + $0x38] ss:$28 sps:$4 sm:$0xff]  }
 0x720   :  { %3403 = vmatprep.subr.bf16.mxu1 %v6715_v9  ;;  %v6814_v9 = vld [vmem:[%s9351_s19 + $0x74] ss:$28 sps:$4 sm:$0xff]  }
 0x723   :  { %3404 = vmatpush1.bf16.msra.mxu1 %v6713_v40  ;;  %v6817_v40 = vld [vmem:[%s9351_s19 + $0x7c] ss:$28 sps:$4 sm:$0xff]  }
 0x724   :  { %3405 = vmatprep.subr.bf16.mxu1 %v6721_v41  ;;  %v6812_v41 = vld [vmem:[%s9351_s19 + $0x70] ss:$28 sps:$4 sm:$0xff]  }
 0x727   :  { %3406 = vmatpush1.bf16.msra.mxu1 %v6719_v42  ;;  %v6815_v42 = vld [vmem:[%s9351_s19 + $0x78] ss:$28 sps:$4 sm:$0xff]  }
 0x728   :  { %3407 = vmatprep.subr.bf16.mxu1 %v6727_v43  ;;  %v6820_v43 = vld [vmem:[%s9351_s19 + $0xac] ss:$28 sps:$4 sm:$0xff]  }
 0x72b   :  { %3408 = vmatpush1.bf16.msra.mxu1 %v6725_v44  ;;  %v6823_v44 = vld [vmem:[%s9351_s19 + $0xb4] ss:$28 sps:$4 sm:$0xff]  }
 0x72c   :  { %3409 = vmatprep.subr.bf16.mxu1 %v6733_v45  ;;  %v6818_v45 = vld [vmem:[%s9351_s19 + $0xa8] ss:$28 sps:$4 sm:$0xff]  }
 0x72f   :  { %3410 = vmatpush1.bf16.msra.mxu1 %v6731_v46  ;;  %v6821_v46 = vld [vmem:[%s9351_s19 + $0xb0] ss:$28 sps:$4 sm:$0xff]  }
 0x730   :  { %3411 = vmatprep.subr.bf16.mxu1 %v6739_v47  ;;  %v6826_v47 = vld [vmem:[%s9351_s19 + $0xe4] ss:$28 sps:$4 sm:$0xff]  }
 0x733   :  { %3412 = vmatpush1.bf16.msra.mxu1 %v6737_v48  ;;  %v6829_v48 = vld [vmem:[%s9351_s19 + $0xec] ss:$28 sps:$4 sm:$0xff]  }
 0x734   :  { %3413 = vmatprep.subr.bf16.mxu1 %v6745_v11  ;;  %v6824_v11 = vld [vmem:[%s9351_s19 + $0xe0] ss:$28 sps:$4 sm:$0xff]  }
 0x737   :  { %3414 = vmatpush1.bf16.msra.mxu1 %v6743_v49  ;;  %v6827_v49 = vld [vmem:[%s9351_s19 + $0xe8] ss:$28 sps:$4 sm:$0xff]  }
 0x738   :  { %3415 = vmatprep.subr.bf16.mxu1 %v6751_v50  ;;  %v6832_v50 = vld [vmem:[%s9351_s19 + $0x11c] ss:$28 sps:$4 sm:$0xff]  }
 0x73b   :  { %3416 = vmatpush1.bf16.msra.mxu1 %v6749_v51  ;;  %v6835_v51 = vld [vmem:[%s9351_s19 + $0x124] ss:$28 sps:$4 sm:$0xff]  }
 0x73c   :  { %3417 = vmatprep.subr.bf16.mxu1 %v6757_v52  ;;  %v6830_v52 = vld [vmem:[%s9351_s19 + $0x118] ss:$28 sps:$4 sm:$0xff]  }
 0x73f   :  { %3418 = vmatpush1.bf16.msra.mxu1 %v6755_v53  ;;  %v6833_v53 = vld [vmem:[%s9351_s19 + $0x120] ss:$28 sps:$4 sm:$0xff]  }
 0x740   :  { %3419 = vmatprep.subr.bf16.mxu1 %v6763_v54  ;;  %v6838_v54 = vld [vmem:[%s9351_s19 + $0x154] ss:$28 sps:$4 sm:$0xff]  }
 0x743   :  { %3420 = vmatpush1.bf16.msra.mxu1 %v6761_v55  ;;  %v6841_v55 = vld [vmem:[%s9351_s19 + $0x15c] ss:$28 sps:$4 sm:$0xff]  }
 0x744   :  { %3421 = vmatprep.subr.bf16.mxu1 %v6769_v56  ;;  %v6836_v56 = vld [vmem:[%s9351_s19 + $0x150] ss:$28 sps:$4 sm:$0xff]  }
 0x747   :  { %3422 = vmatpush1.bf16.msra.mxu1 %v6767_v60  ;;  %v6839_v60 = vld [vmem:[%s9351_s19 + $0x158] ss:$28 sps:$4 sm:$0xff]  }
 0x748   :  { %3423 = vmatprep.subr.bf16.mxu1 %v6775_v63  ;;  %v6844_v63 = vld [vmem:[%s9351_s19 + $0x18c] ss:$28 sps:$4 sm:$0xff]  }
 0x74b   :  { %3424 = vmatpush1.bf16.msra.mxu1 %v6773_v0  ;;  %v6847_v0 = vld [vmem:[%s9351_s19 + $0x194] ss:$28 sps:$4 sm:$0xff]  }
 0x74c   :  { %3425 = vmatprep.subr.bf16.mxu1 %v6781_v1  ;;  %v6842_v1 = vld [vmem:[%s9351_s19 + $0x188] ss:$28 sps:$4 sm:$0xff]  }
 0x74f   :  { %3426 = vmatpush1.bf16.msra.mxu1 %v6779_v2  ;;  %v6845_v2 = vld [vmem:[%s9351_s19 + $0x190] ss:$28 sps:$4 sm:$0xff]  }
 0x750   :  { %3427 = vmatprep.subr.bf16.mxu1 %v6787_v3  ;;  %v6850_v3 = vld [vmem:[%s9351_s19 + $0x1c4] ss:$28 sps:$4 sm:$0xff]  }
 0x753   :  { %3428 = vmatpush1.bf16.msra.mxu1 %v6785_v4  ;;  %v6853_v4 = vld [vmem:[%s9351_s19 + $0x1cc] ss:$28 sps:$4 sm:$0xff]  }
 0x754   :  { %3429 = vmatprep.subr.bf16.mxu1 %v6793_v6  ;;  %v6851_v6 = vld [vmem:[%s9351_s19 + $0x1c8] ss:$28 sps:$4 sm:$0xff]  }
 0x757   :  { %3430 = vmatpush1.bf16.msra.mxu1 %v6791_v8  ;;  %v6859_v8 = vld [vmem:[%s9351_s19 + $0x204] ss:$28 sps:$4 sm:$0xff]  }
 0x758   :  { %3431 = vmatprep.subr.bf16.mxu1 %v6799_v12  ;;  %v6857_v12 = vld [vmem:[%s9351_s19 + $0x200] ss:$28 sps:$4 sm:$0xff]  }
 0x75b   :  { %3432 = vmatpush1.bf16.msra.mxu1 %v6797_v14  ;;  %v6865_v14 = vld [vmem:[%s9351_s19 + $0x23c] ss:$28 sps:$4 sm:$0xff]  }
 0x75c   :  { %4987 = vmatprep.subr.bf16.mxu1 %v6805_v16  ;;  %v6863_v16 = vld [vmem:[%s9351_s19 + $0x238] ss:$28 sps:$4 sm:$0xff]  }
 0x7f1   :  { %v2937_v20 = vpop.f32.mrb[24].mxu1 }
 0x7f2   :  { %v2938_v21 = vadd.f32 %v2937_v20, %v2816_v18  ;;  %v2939_v22 = vpop.f32.mrb[25].mxu1  ;;  %v6869_v20 = vld [vmem:[%s9351_s19 + $0x270] ss:$28 sps:$4 sm:$0xff]  }
 0x7f3   :  { %v2940_v23 = vadd.f32 %v2939_v22, %v2820_v19  ;;  %v2941_v24 = vpop.f32.mrb[26].mxu1  ;;  %v6877_v22 = vld [vmem:[%s9351_s19 + $0x2ac] ss:$28 sps:$4 sm:$0xff]  }
 0x7f4   :  { %v2942_v25 = vadd.f32 %v2941_v24, %v2816_v18  ;;  %v2943_v26 = vpop.f32.mrb[27].mxu1  ;;  %v2946_v28 = vmax.f32 %v2938_v21, 0.0  ;;  %v6871_v18 = vld [vmem:[%s9351_s19 + $0x274] ss:$28 sps:$4 sm:$0xff]   ;;  %v6874_v21 = vld [vmem:[%s9351_s19 + $0x2a4] ss:$28 sps:$4 sm:$0xff]  }
 0x7f5   :  { %v2944_v27 = vadd.f32 %v2943_v26, %v2820_v19  ;;  %v2947_v30 = vmax.f32 %v2940_v23, 0.0  ;;  %v6866_v19 = vld [vmem:[%s9351_s19 + $0x268] ss:$28 sps:$4 sm:$0xff]   ;;  %v6872_v23 = vld [vmem:[%s9351_s19 + $0x2a0] ss:$28 sps:$4 sm:$0xff]  }
 0x7f6   :  { %v2948_v29 = vmax.f32 %v2942_v25, 0.0  ;;  %v6875_v24 = vld [vmem:[%s9351_s19 + $0x2a8] ss:$28 sps:$4 sm:$0xff]   ;;  %v6880_v25 = vld [vmem:[%s9351_s19 + $0x2dc] ss:$28 sps:$4 sm:$0xff]  }
 0x7f7   :  { %v2949_v31 = vmax.f32 %v2944_v27, 0.0  ;;  %v6883_v26 = vld [vmem:[%s9351_s19 + $0x2e4] ss:$28 sps:$4 sm:$0xff]   ;;  %v6878_v27 = vld [vmem:[%s9351_s19 + $0x2d8] ss:$28 sps:$4 sm:$0xff]  }
 0x7f8   :  { %v2950_v32 = vpack.c.bf16 %v2948_v29, %v2946_v28  ;;  %v6881_v28 = vld [vmem:[%s9351_s19 + $0x2e0] ss:$28 sps:$4 sm:$0xff]   ;;  %v6886_v29 = vld [vmem:[%s9351_s19 + $0x314] ss:$28 sps:$4 sm:$0xff]  }
 0x7f9   :  { %v2951_v33 = vpack.c.bf16 %v2949_v31, %v2947_v30  ;;  %v6889_v30 = vld [vmem:[%s9351_s19 + $0x31c] ss:$28 sps:$4 sm:$0xff]   ;;  %v6884_v31 = vld [vmem:[%s9351_s19 + $0x310] ss:$28 sps:$4 sm:$0xff]  }
 0x7fb   :  { %3390 = vmatprep.mubr.bf16.mxu0 %v2951_v33  ;;  %3433 = vmatprep.mubr.bf16.mxu1 %v2951_v33  ;;  %v6892_v33 = vld [vmem:[%s9351_s19 + $0x34c] ss:$28 sps:$4 sm:$0xff]  }
 0x7fc   :  { %3391 = vmatmul.mubr.bf16.vlgmr.msra.gmra.mrb[8].mxu0 %v2950_v32  ;;  %3434 = vmatmul.mubr.bf16.vlgmr.msra.gmra.mrb[28].mxu1 %v2950_v32  ;;  %v6887_v32 = vld [vmem:[%s9351_s19 + $0x318] ss:$28 sps:$4 sm:$0xff]  }
 0x7fd   :  { %4902 = vmatpush1.bf16.msra.mxu0 %v6800_v34  ;;  %4988 = vmatpush1.bf16.msra.mxu1 %v6803_v35  ;;  %v6895_v34 = vld [vmem:[%s9351_s19 + $0x354] ss:$28 sps:$4 sm:$0xff]   ;;  %v6890_v35 = vld [vmem:[%s9351_s19 + $0x348] ss:$28 sps:$4 sm:$0xff]  }
 0x7fe   :  { %4903 = vmatprep.subr.bf16.mxu0 %v6808_v36  ;;  %4989 = vmatprep.subr.bf16.mxu1 %v6811_v37  ;;  %v6893_v36 = vld [vmem:[%s9351_s19 + $0x350] ss:$28 sps:$4 sm:$0xff]   ;;  %v6898_v37 = vld [vmem:[%s9351_s19 + $0x384] ss:$28 sps:$4 sm:$0xff]  }
 0x801   :  { %4904 = vmatpush1.bf16.msra.mxu0 %v6806_v38  ;;  %4990 = vmatpush1.bf16.msra.mxu1 %v6809_v39  ;;  %v6901_v38 = vld [vmem:[%s9351_s19 + $0x38c] ss:$28 sps:$4 sm:$0xff]   ;;  %v3016_v39 = vld [vmem:[%s9353_s18] sm:$0xf] }
 0x802   :  { %4905 = vmatprep.subr.bf16.mxu0 %v6814_v9  ;;  %4991 = vmatprep.subr.bf16.mxu1 %v6817_v40  ;;  %v3021_v9 = vrot.slane %v3016_v39, %v8037_v58  ;;  %v3029_v40 = vrot.slane %v3016_v39, %v8040_v59 }
 0x805   :  { %4906 = vmatpush1.bf16.msra.mxu0 %v6812_v41  ;;  %4992 = vmatpush1.bf16.msra.mxu1 %v6815_v42  ;;  %v3025_v41 = vrot.slane %v3016_v39, %v8046_v61  ;;  %v3033_v42 = vrot.slane %v3016_v39, %v8049_v62  ;;  %v6940_v39 = vld [vmem:[%s9351_s19 + $0x50c] ss:$28 sps:$4 sm:$0xff]  }
 0x806   :  { %4907 = vmatprep.subr.bf16.mxu0 %v6820_v43  ;;  %4993 = vmatprep.subr.bf16.mxu1 %v6823_v44 }
 0x809   :  { %4908 = vmatpush1.bf16.msra.mxu0 %v6818_v45  ;;  %4994 = vmatpush1.bf16.msra.mxu1 %v6821_v46 }
 0x80a   :  { %4909 = vmatprep.subr.bf16.mxu0 %v6826_v47  ;;  %4995 = vmatprep.subr.bf16.mxu1 %v6829_v48 }
 0x80d   :  { %4910 = vmatpush1.bf16.msra.mxu0 %v6824_v11  ;;  %4996 = vmatpush1.bf16.msra.mxu1 %v6827_v49 }
 0x80e   :  { %4911 = vmatprep.subr.bf16.mxu0 %v6832_v50  ;;  %4997 = vmatprep.subr.bf16.mxu1 %v6835_v51 }
 0x811   :  { %4912 = vmatpush1.bf16.msra.mxu0 %v6830_v52  ;;  %4998 = vmatpush1.bf16.msra.mxu1 %v6833_v53 }
 0x812   :  { %4913 = vmatprep.subr.bf16.mxu0 %v6838_v54  ;;  %4999 = vmatprep.subr.bf16.mxu1 %v6841_v55 }
 0x815   :  { %4914 = vmatpush1.bf16.msra.mxu0 %v6836_v56  ;;  %5000 = vmatpush1.bf16.msra.mxu1 %v6839_v60 }
 0x816   :  { %4915 = vmatprep.subr.bf16.mxu0 %v6844_v63  ;;  %5001 = vmatprep.subr.bf16.mxu1 %v6847_v0 }
 0x819   :  { %4916 = vmatpush1.bf16.msra.mxu0 %v6842_v1  ;;  %5002 = vmatpush1.bf16.msra.mxu1 %v6845_v2 }
 0x81a   :  { %4917 = vmatprep.subr.bf16.mxu0 %v6850_v3  ;;  %5003 = vmatprep.subr.bf16.mxu1 %v6853_v4 }
 0x81d   :  { %4918 = vmatpush1.bf16.msra.mxu0 %v6848_v5  ;;  %5004 = vmatpush1.bf16.msra.mxu1 %v6851_v6 }
 0x81e   :  { %4919 = vmatprep.subr.bf16.mxu0 %v6856_v7  ;;  %5005 = vmatprep.subr.bf16.mxu1 %v6859_v8 }
 0x821   :  { %4920 = vmatpush1.bf16.msra.mxu0 %v6854_v10  ;;  %5006 = vmatpush1.bf16.msra.mxu1 %v6857_v12 }
 0x822   :  { %4921 = vmatprep.subr.bf16.mxu0 %v6862_v13  ;;  %5007 = vmatprep.subr.bf16.mxu1 %v6865_v14  ;;  %v6896_v13 = vld [vmem:[%s9351_s19 + $0x380] ss:$28 sps:$4 sm:$0xff]   ;;  %v6899_v14 = vld [vmem:[%s9351_s19 + $0x388] ss:$28 sps:$4 sm:$0xff]  }
 0x825   :  { %4922 = vmatpush1.bf16.msra.mxu0 %v6860_v15  ;;  %5008 = vmatpush1.bf16.msra.mxu1 %v6863_v16  ;;  %v6904_v15 = vld [vmem:[%s9351_s19 + $0x3bc] ss:$28 sps:$4 sm:$0xff]   ;;  %v6907_v16 = vld [vmem:[%s9351_s19 + $0x3c4] ss:$28 sps:$4 sm:$0xff]  }
 0x826   :  { %4923 = vmatprep.subr.bf16.mxu0 %v6868_v17  ;;  %5009 = vmatprep.subr.bf16.mxu1 %v6871_v18  ;;  %v6902_v17 = vld [vmem:[%s9351_s19 + $0x3b8] ss:$28 sps:$4 sm:$0xff]   ;;  %v6905_v18 = vld [vmem:[%s9351_s19 + $0x3c0] ss:$28 sps:$4 sm:$0xff]  }
 0x829   :  { %4924 = vmatpush1.bf16.msra.mxu0 %v6866_v19  ;;  %5010 = vmatpush1.bf16.msra.mxu1 %v6869_v20  ;;  %v6910_v19 = vld [vmem:[%s9351_s19 + $0x3f4] ss:$28 sps:$4 sm:$0xff]   ;;  %v6913_v20 = vld [vmem:[%s9351_s19 + $0x3fc] ss:$28 sps:$4 sm:$0xff]  }
 0x82a   :  { %4925 = vmatprep.subr.bf16.mxu0 %v6874_v21  ;;  %5011 = vmatprep.subr.bf16.mxu1 %v6877_v22  ;;  %v6908_v21 = vld [vmem:[%s9351_s19 + $0x3f0] ss:$28 sps:$4 sm:$0xff]   ;;  %v6911_v22 = vld [vmem:[%s9351_s19 + $0x3f8] ss:$28 sps:$4 sm:$0xff]  }
 0x82d   :  { %4926 = vmatpush1.bf16.msra.mxu0 %v6872_v23  ;;  %5012 = vmatpush1.bf16.msra.mxu1 %v6875_v24  ;;  %v6916_v23 = vld [vmem:[%s9351_s19 + $0x42c] ss:$28 sps:$4 sm:$0xff]   ;;  %v6919_v24 = vld [vmem:[%s9351_s19 + $0x434] ss:$28 sps:$4 sm:$0xff]  }
 0x82e   :  { %4927 = vmatprep.subr.bf16.mxu0 %v6880_v25  ;;  %5013 = vmatprep.subr.bf16.mxu1 %v6883_v26  ;;  %v6914_v25 = vld [vmem:[%s9351_s19 + $0x428] ss:$28 sps:$4 sm:$0xff]   ;;  %v6917_v26 = vld [vmem:[%s9351_s19 + $0x430] ss:$28 sps:$4 sm:$0xff]  }
 0x831   :  { %4928 = vmatpush1.bf16.msra.mxu0 %v6878_v27  ;;  %5014 = vmatpush1.bf16.msra.mxu1 %v6881_v28  ;;  %v6922_v27 = vld [vmem:[%s9351_s19 + $0x464] ss:$28 sps:$4 sm:$0xff]   ;;  %v6925_v28 = vld [vmem:[%s9351_s19 + $0x46c] ss:$28 sps:$4 sm:$0xff]  }
 0x832   :  { %4929 = vmatprep.subr.bf16.mxu0 %v6886_v29  ;;  %5015 = vmatprep.subr.bf16.mxu1 %v6889_v30  ;;  %v6920_v29 = vld [vmem:[%s9351_s19 + $0x460] ss:$28 sps:$4 sm:$0xff]   ;;  %v6923_v30 = vld [vmem:[%s9351_s19 + $0x468] ss:$28 sps:$4 sm:$0xff]  }
 0x835   :  { %4930 = vmatpush1.bf16.msra.mxu0 %v6884_v31  ;;  %5016 = vmatpush1.bf16.msra.mxu1 %v6887_v32  ;;  %v6928_v31 = vld [vmem:[%s9351_s19 + $0x49c] ss:$28 sps:$4 sm:$0xff]   ;;  %v6931_v32 = vld [vmem:[%s9351_s19 + $0x4a4] ss:$28 sps:$4 sm:$0xff]  }
 0x836   :  { %4931 = vmatprep.subr.bf16.mxu0 %v6892_v33  ;;  %5017 = vmatprep.subr.bf16.mxu1 %v6895_v34  ;;  %v6926_v33 = vld [vmem:[%s9351_s19 + $0x498] ss:$28 sps:$4 sm:$0xff]   ;;  %v6929_v34 = vld [vmem:[%s9351_s19 + $0x4a0] ss:$28 sps:$4 sm:$0xff]  }
 0x839   :  { %4932 = vmatpush1.bf16.msra.mxu0 %v6890_v35  ;;  %5018 = vmatpush1.bf16.msra.mxu1 %v6893_v36  ;;  %v6934_v35 = vld [vmem:[%s9351_s19 + $0x4d4] ss:$28 sps:$4 sm:$0xff]   ;;  %v6937_v36 = vld [vmem:[%s9351_s19 + $0x4dc] ss:$28 sps:$4 sm:$0xff]  }
 0x83a   :  { %4944 = vmatprep.subr.bf16.mxu0 %v6898_v37  ;;  %5030 = vmatprep.subr.bf16.mxu1 %v6901_v38  ;;  %v6932_v37 = vld [vmem:[%s9351_s19 + $0x4d0] ss:$28 sps:$4 sm:$0xff]   ;;  %v6935_v38 = vld [vmem:[%s9351_s19 + $0x4d8] ss:$28 sps:$4 sm:$0xff]  }
 0x8cf   :  { %v3392_v43 = vpop.f32.mrb[8].mxu0  ;;  %v3435_v44 = vpop.f32.mrb[28].mxu1 }
 0x8d0   :  { %v3393_v45 = vadd.f32 %v3392_v43, %v3021_v9  ;;  %v3436_v46 = vadd.f32 %v3435_v44, %v3029_v40  ;;  %v3394_v47 = vpop.f32.mrb[9].mxu0  ;;  %v3437_v48 = vpop.f32.mrb[29].mxu1  ;;  %v6949_v43 = vld [vmem:[%s9351_s19 + $0x54c] ss:$28 sps:$4 sm:$0xff]   ;;  %v6944_v44 = vld [vmem:[%s9351_s19 + $0x540] ss:$28 sps:$4 sm:$0xff]  }
 0x8d1   :  { %v3395_v11 = vadd.f32 %v3394_v47, %v3025_v41  ;;  %v3438_v49 = vadd.f32 %v3437_v48, %v3033_v42  ;;  %v3396_v50 = vpop.f32.mrb[10].mxu0  ;;  %v3439_v51 = vpop.f32.mrb[30].mxu1  ;;  %v6955_v47 = vld [vmem:[%s9351_s19 + $0x584] ss:$28 sps:$4 sm:$0xff]   ;;  %v6950_v48 = vld [vmem:[%s9351_s19 + $0x578] ss:$28 sps:$4 sm:$0xff]  }
 0x8d2   :  { %v3397_v52 = vadd.f32 %v3396_v50, %v3021_v9  ;;  %v3440_v53 = vadd.f32 %v3439_v51, %v3029_v40  ;;  %v3398_v54 = vpop.f32.mrb[11].mxu0  ;;  %v3441_v55 = vpop.f32.mrb[31].mxu1  ;;  %v3444_v63 = vmax.f32 %v3393_v45, 0.0  ;;  %v3446_v0 = vmax.f32 %v3436_v46, 0.0  ;;  %v6943_v9 = vld [vmem:[%s9351_s19 + $0x514] ss:$28 sps:$4 sm:$0xff]  }
 0x8d3   :  { %v3399_v56 = vadd.f32 %v3398_v54, %v3025_v41  ;;  %v3442_v60 = vadd.f32 %v3441_v55, %v3033_v42  ;;  %v3445_v3 = vmax.f32 %v3395_v11, 0.0  ;;  %v3447_v4 = vmax.f32 %v3438_v49, 0.0  ;;  %v6938_v40 = vld [vmem:[%s9351_s19 + $0x508] ss:$28 sps:$4 sm:$0xff]   ;;  %v6941_v41 = vld [vmem:[%s9351_s19 + $0x510] ss:$28 sps:$4 sm:$0xff]  }
 0x8d4   :  { %v3448_v1 = vmax.f32 %v3397_v52, 0.0  ;;  %v3450_v2 = vmax.f32 %v3440_v53, 0.0  ;;  %v6946_v42 = vld [vmem:[%s9351_s19 + $0x544] ss:$28 sps:$4 sm:$0xff]   ;;  %v6952_v46 = vld [vmem:[%s9351_s19 + $0x57c] ss:$28 sps:$4 sm:$0xff]  }
 0x8d5   :  { %v3449_v5 = vmax.f32 %v3399_v56, 0.0  ;;  %v3451_v6 = vmax.f32 %v3442_v60, 0.0  ;;  %v6947_v45 = vld [vmem:[%s9351_s19 + $0x548] ss:$28 sps:$4 sm:$0xff]   ;;  %v6953_v11 = vld [vmem:[%s9351_s19 + $0x580] ss:$28 sps:$4 sm:$0xff]  }
 0x8d6   :  { %v8773_v7 = vpack.c.bf16 %v3448_v1, %v3444_v63  ;;  %v8775_v8 = vpack.c.bf16 %v3450_v2, %v3446_v0  ;;  %v6958_v49 = vld [vmem:[%s9351_s19 + $0x5b4] ss:$28 sps:$4 sm:$0xff]   ;;  %v6961_v50 = vld [vmem:[%s9351_s19 + $0x5bc] ss:$28 sps:$4 sm:$0xff]   ;;  %v6964_v53 = vld [vmem:[%s9351_s19 + $0x5ec] ss:$28 sps:$4 sm:$0xff]  }
 0x8d7   :  { %v8777_v10 = vpack.c.bf16 %v3449_v5, %v3445_v3  ;;  %v8779_v12 = vpack.c.bf16 %v3451_v6, %v3447_v4  ;;  %v6956_v51 = vld [vmem:[%s9351_s19 + $0x5b0] ss:$28 sps:$4 sm:$0xff]   ;;  %v6959_v52 = vld [vmem:[%s9351_s19 + $0x5b8] ss:$28 sps:$4 sm:$0xff]   ;;  %v6962_v55 = vld [vmem:[%s9351_s19 + $0x5e8] ss:$28 sps:$4 sm:$0xff]  }
 0x8d8   :  { %v6967_v54 = vld [vmem:[%s9351_s19 + $0x5f4] ss:$28 sps:$4 sm:$0xff]   ;;  %v6970_v60 = vld [vmem:[%s9351_s19 + $0x624] ss:$28 sps:$4 sm:$0xff]   ;;  %v6973_v63 = vld [vmem:[%s9351_s19 + $0x62c] ss:$28 sps:$4 sm:$0xff]  }
 0x8d9   :  { %4933 = vmatprep.mubr.bf16.mxu0 %v8777_v10  ;;  %5019 = vmatprep.mubr.bf16.mxu1 %v8777_v10  ;;  %v6965_v56 = vld [vmem:[%s9351_s19 + $0x5f0] ss:$28 sps:$4 sm:$0xff]   ;;  %v6968_v0 = vld [vmem:[%s9351_s19 + $0x620] ss:$28 sps:$4 sm:$0xff]   ;;  %v6971_v1 = vld [vmem:[%s9351_s19 + $0x628] ss:$28 sps:$4 sm:$0xff]  }
 0x8da   :  { %4934 = vmatmul.mubr.bf16.vlgmr.msra.gmra.mrb[12].mxu0 %v8773_v7  ;;  %5020 = vmatmul.mubr.bf16.vlgmr.msra.gmra.mrb[32].mxu1 %v8773_v7  ;;  %v6976_v2 = vld [vmem:[%s9351_s19 + $0x65c] ss:$28 sps:$4 sm:$0xff]   ;;  %v6979_v3 = vld [vmem:[%s9351_s19 + $0x664] ss:$28 sps:$4 sm:$0xff]   ;;  %v6982_v6 = vld [vmem:[%s9351_s19 + $0x694] ss:$28 sps:$4 sm:$0xff]  }
 0x8db   :  { %4945 = vmatpush1.bf16.msra.mxu0 %v6896_v13  ;;  %5031 = vmatpush1.bf16.msra.mxu1 %v6899_v14  ;;  %v6974_v4 = vld [vmem:[%s9351_s19 + $0x658] ss:$28 sps:$4 sm:$0xff]   ;;  %v6977_v5 = vld [vmem:[%s9351_s19 + $0x660] ss:$28 sps:$4 sm:$0xff]   ;;  %v6980_v14 = vld [vmem:[%s9351_s19 + $0x690] ss:$28 sps:$4 sm:$0xff]  }
 0x8dc   :  { %4976 = vmatprep.mubr.bf16.mxu0 %v8779_v12  ;;  %5062 = vmatprep.mubr.bf16.mxu1 %v8779_v12  ;;  %v6985_v13 = vld [vmem:[%s9351_s19 + $0x69c] ss:$28 sps:$4 sm:$0xff]  }
 0x8dd   :  { %4946 = vmatprep.subr.bf16.mxu0 %v6904_v15  ;;  %5032 = vmatprep.subr.bf16.mxu1 %v6907_v16  ;;  %v6983_v15 = vld [vmem:[%s9351_s19 + $0x698] ss:$28 sps:$4 sm:$0xff]   ;;  %v6988_v16 = vld [vmem:[%s9351_s19 + $0x6cc] ss:$28 sps:$4 sm:$0xff]  }
 0x8df   :  { %4947 = vmatpush1.bf16.msra.mxu0 %v6902_v17  ;;  %5033 = vmatpush1.bf16.msra.mxu1 %v6905_v18  ;;  %v6991_v17 = vld [vmem:[%s9351_s19 + $0x6d4] ss:$28 sps:$4 sm:$0xff]   ;;  %v6986_v18 = vld [vmem:[%s9351_s19 + $0x6c8] ss:$28 sps:$4 sm:$0xff]  }
 0x8e0   :  { %4948 = vmatprep.subr.bf16.mxu0 %v6910_v19  ;;  %5034 = vmatprep.subr.bf16.mxu1 %v6913_v20  ;;  %v6989_v19 = vld [vmem:[%s9351_s19 + $0x6d0] ss:$28 sps:$4 sm:$0xff]  }
 0x8e1   :  { %v6994_v20 = vld [vmem:[%s9351_s19 + $0x14] ss:$28 sps:$4 sm:$0xff]  }
 0x8e3   :  { %4949 = vmatpush1.bf16.msra.mxu0 %v6908_v21  ;;  %5035 = vmatpush1.bf16.msra.mxu1 %v6911_v22  ;;  %v6995_v21 = vld [vmem:[%s9351_s19 + $0x1d8] ss:$28 sps:$4 sm:$0xff]   ;;  %v6992_v22 = vld [vmem:[%s9351_s19 + $0x10] ss:$28 sps:$4 sm:$0xff]  }
 0x8e4   :  { %4950 = vmatprep.subr.bf16.mxu0 %v6916_v23  ;;  %5036 = vmatprep.subr.bf16.mxu1 %v6919_v24  ;;  %v6996_v23 = vld [vmem:[%s9351_s19 + $0x18] ss:$28 sps:$4 sm:$0xff]   ;;  %v6999_v24 = vld [vmem:[%s9351_s19 + $0x4c] ss:$28 sps:$4 sm:$0xff]  }
 0x8e7   :  { %4951 = vmatpush1.bf16.msra.mxu0 %v6914_v25  ;;  %5037 = vmatpush1.bf16.msra.mxu1 %v6917_v26  ;;  %v7000_v25 = vld [vmem:[%s9351_s19 + $0x210] ss:$28 sps:$4 sm:$0xff]   ;;  %v6997_v26 = vld [vmem:[%s9351_s19 + $0x48] ss:$28 sps:$4 sm:$0xff]  }
 0x8e8   :  { %4952 = vmatprep.subr.bf16.mxu0 %v6922_v27  ;;  %5038 = vmatprep.subr.bf16.mxu1 %v6925_v28  ;;  %v7001_v27 = vld [vmem:[%s9351_s19 + $0x50] ss:$28 sps:$4 sm:$0xff]   ;;  %v7004_v28 = vld [vmem:[%s9351_s19 + $0x84] ss:$28 sps:$4 sm:$0xff]  }
 0x8eb   :  { %4953 = vmatpush1.bf16.msra.mxu0 %v6920_v29  ;;  %5039 = vmatpush1.bf16.msra.mxu1 %v6923_v30  ;;  %v7005_v29 = vld [vmem:[%s9351_s19 + $0x248] ss:$28 sps:$4 sm:$0xff]   ;;  %v7002_v30 = vld [vmem:[%s9351_s19 + $0x80] ss:$28 sps:$4 sm:$0xff]  }
 0x8ec   :  { %4954 = vmatprep.subr.bf16.mxu0 %v6928_v31  ;;  %5040 = vmatprep.subr.bf16.mxu1 %v6931_v32  ;;  %v7009_v31 = vld [vmem:[%s9351_s19 + $0xbc] ss:$28 sps:$4 sm:$0xff]  }
 0x8ed   :  { %v7010_v32 = vld [vmem:[%s9351_s19 + $0x280] ss:$28 sps:$4 sm:$0xff]  }
 0x8ef   :  { %4955 = vmatpush1.bf16.msra.mxu0 %v6926_v33  ;;  %5041 = vmatpush1.bf16.msra.mxu1 %v6929_v34  ;;  %v7007_v33 = vld [vmem:[%s9351_s19 + $0xb8] ss:$28 sps:$4 sm:$0xff]   ;;  %v7011_v34 = vld [vmem:[%s9351_s19 + $0xc0] ss:$28 sps:$4 sm:$0xff]  }
 0x8f0   :  { %4956 = vmatprep.subr.bf16.mxu0 %v6934_v35  ;;  %5042 = vmatprep.subr.bf16.mxu1 %v6937_v36  ;;  %v7014_v35 = vld [vmem:[%s9351_s19 + $0xf4] ss:$28 sps:$4 sm:$0xff]  }
 0x8f1   :  { %v7015_v36 = vld [vmem:[%s9351_s19 + $0x2b8] ss:$28 sps:$4 sm:$0xff]  }
 0x8f3   :  { %4957 = vmatpush1.bf16.msra.mxu0 %v6932_v37  ;;  %5043 = vmatpush1.bf16.msra.mxu1 %v6935_v38  ;;  %v7012_v37 = vld [vmem:[%s9351_s19 + $0xf0] ss:$28 sps:$4 sm:$0xff]   ;;  %v7016_v38 = vld [vmem:[%s9351_s19 + $0xf8] ss:$28 sps:$4 sm:$0xff]  }
 0x8f4   :  { %4958 = vmatprep.subr.bf16.mxu0 %v6940_v39  ;;  %5044 = vmatprep.subr.bf16.mxu1 %v6943_v9  ;;  %v7019_v39 = vld [vmem:[%s9351_s19 + $0x12c] ss:$28 sps:$4 sm:$0xff]  }
 0x8f5   :  { %v7020_v9 = vld [vmem:[%s9351_s19 + $0x2f0] ss:$28 sps:$4 sm:$0xff]  }
 0x8f7   :  { %4959 = vmatpush1.bf16.msra.mxu0 %v6938_v40  ;;  %5045 = vmatpush1.bf16.msra.mxu1 %v6941_v41  ;;  %v7017_v40 = vld [vmem:[%s9351_s19 + $0x128] ss:$28 sps:$4 sm:$0xff]   ;;  %v7021_v41 = vld [vmem:[%s9351_s19 + $0x130] ss:$28 sps:$4 sm:$0xff]  }
 0x8f8   :  { %4960 = vmatprep.subr.bf16.mxu0 %v6946_v42  ;;  %5046 = vmatprep.subr.bf16.mxu1 %v6949_v43  ;;  %v7024_v42 = vld [vmem:[%s9351_s19 + $0x164] ss:$28 sps:$4 sm:$0xff]  }
 0x8f9   :  { %v7025_v43 = vld [vmem:[%s9351_s19 + $0x328] ss:$28 sps:$4 sm:$0xff]  }
 0x8fb   :  { %4961 = vmatpush1.bf16.msra.mxu0 %v6944_v44  ;;  %5047 = vmatpush1.bf16.msra.mxu1 %v6947_v45  ;;  %v7022_v44 = vld [vmem:[%s9351_s19 + $0x160] ss:$28 sps:$4 sm:$0xff]   ;;  %v7026_v45 = vld [vmem:[%s9351_s19 + $0x168] ss:$28 sps:$4 sm:$0xff]  }
 0x8fc   :  { %4962 = vmatprep.subr.bf16.mxu0 %v6952_v46  ;;  %5048 = vmatprep.subr.bf16.mxu1 %v6955_v47  ;;  %v7029_v46 = vld [vmem:[%s9351_s19 + $0x19c] ss:$28 sps:$4 sm:$0xff]  }
 0x8fd   :  { %v7030_v47 = vld [vmem:[%s9351_s19 + $0x360] ss:$28 sps:$4 sm:$0xff]  }
 0x8ff   :  { %4963 = vmatpush1.bf16.msra.mxu0 %v6950_v48  ;;  %5049 = vmatpush1.bf16.msra.mxu1 %v6953_v11  ;;  %v7027_v48 = vld [vmem:[%s9351_s19 + $0x198] ss:$28 sps:$4 sm:$0xff]   ;;  %v7031_v11 = vld [vmem:[%s9351_s19 + $0x1a0] ss:$28 sps:$4 sm:$0xff]  }
 0x900   :  { %4964 = vmatprep.subr.bf16.mxu0 %v6958_v49  ;;  %5050 = vmatprep.subr.bf16.mxu1 %v6961_v50  ;;  %v7034_v49 = vld [vmem:[%s9351_s19 + $0x1d4] ss:$28 sps:$4 sm:$0xff]  }
 0x901   :  { %v7035_v50 = vld [vmem:[%s9351_s19 + $0x558] ss:$28 sps:$4 sm:$0xff]  }
 0x903   :  { %4965 = vmatpush1.bf16.msra.mxu0 %v6956_v51  ;;  %5051 = vmatpush1.bf16.msra.mxu1 %v6959_v52  ;;  %v7032_v51 = vld [vmem:[%s9351_s19 + $0x1d0] ss:$28 sps:$4 sm:$0xff]   ;;  %v7036_v52 = vld [vmem:[%s9351_s19 + $0x398] ss:$28 sps:$4 sm:$0xff]  }
 0x904   :  { %4966 = vmatprep.subr.bf16.mxu0 %v6964_v53  ;;  %5052 = vmatprep.subr.bf16.mxu1 %v6967_v54  ;;  %v7039_v53 = vld [vmem:[%s9351_s19 + $0x20c] ss:$28 sps:$4 sm:$0xff]  }
 0x905   :  { %v7040_v54 = vld [vmem:[%s9351_s19 + $0x590] ss:$28 sps:$4 sm:$0xff]  }
 0x907   :  { %4967 = vmatpush1.bf16.msra.mxu0 %v6962_v55  ;;  %5053 = vmatpush1.bf16.msra.mxu1 %v6965_v56  ;;  %v7037_v55 = vld [vmem:[%s9351_s19 + $0x208] ss:$28 sps:$4 sm:$0xff]   ;;  %v7041_v56 = vld [vmem:[%s9351_s19 + $0x3d0] ss:$28 sps:$4 sm:$0xff]  }
 0x908   :  { %4968 = vmatprep.subr.bf16.mxu0 %v6970_v60  ;;  %5054 = vmatprep.subr.bf16.mxu1 %v6973_v63  ;;  %v7044_v60 = vld [vmem:[%s9351_s19 + $0x244] ss:$28 sps:$4 sm:$0xff]  }
 0x909   :  { %v7045_v63 = vld [vmem:[%s9351_s19 + $0x5c8] ss:$28 sps:$4 sm:$0xff]  }
 0x90b   :  { %4969 = vmatpush1.bf16.msra.mxu0 %v6968_v0  ;;  %5055 = vmatpush1.bf16.msra.mxu1 %v6971_v1  ;;  %v7042_v0 = vld [vmem:[%s9351_s19 + $0x240] ss:$28 sps:$4 sm:$0xff]   ;;  %v7046_v1 = vld [vmem:[%s9351_s19 + $0x408] ss:$28 sps:$4 sm:$0xff]  }
 0x90c   :  { %4970 = vmatprep.subr.bf16.mxu0 %v6976_v2  ;;  %5056 = vmatprep.subr.bf16.mxu1 %v6979_v3  ;;  %v7049_v2 = vld [vmem:[%s9351_s19 + $0x27c] ss:$28 sps:$4 sm:$0xff]  }
 0x90d   :  { %v7050_v3 = vld [vmem:[%s9351_s19 + $0x600] ss:$28 sps:$4 sm:$0xff]  }
 0x90f   :  { %4971 = vmatpush1.bf16.msra.mxu0 %v6974_v4  ;;  %5057 = vmatpush1.bf16.msra.mxu1 %v6977_v5  ;;  %v7047_v4 = vld [vmem:[%s9351_s19 + $0x278] ss:$28 sps:$4 sm:$0xff]   ;;  %v7051_v5 = vld [vmem:[%s9351_s19 + $0x440] ss:$28 sps:$4 sm:$0xff]  }
 0x910   :  { %4972 = vmatprep.subr.bf16.mxu0 %v6982_v6  ;;  %5058 = vmatprep.subr.bf16.mxu1 %v6985_v13  ;;  %v7054_v6 = vld [vmem:[%s9351_s19 + $0x2b4] ss:$28 sps:$4 sm:$0xff]  }
 0x911   :  { %v7055_v13 = vld [vmem:[%s9351_s19 + $0x638] ss:$28 sps:$4 sm:$0xff]  }
 0x913   :  { %4973 = vmatpush1.bf16.msra.mxu0 %v6980_v14  ;;  %5059 = vmatpush1.bf16.msra.mxu1 %v6983_v15  ;;  %v7052_v14 = vld [vmem:[%s9351_s19 + $0x2b0] ss:$28 sps:$4 sm:$0xff]   ;;  %v7056_v15 = vld [vmem:[%s9351_s19 + $0x478] ss:$28 sps:$4 sm:$0xff]  }
 0x914   :  { %4974 = vmatprep.subr.bf16.mxu0 %v6988_v16  ;;  %5060 = vmatprep.subr.bf16.mxu1 %v6991_v17  ;;  %v7059_v16 = vld [vmem:[%s9351_s19 + $0x2ec] ss:$28 sps:$4 sm:$0xff]  }
 0x915   :  { %v7060_v17 = vld [vmem:[%s9351_s19 + $0x670] ss:$28 sps:$4 sm:$0xff]  }
 0x917   :  { %4975 = vmatpush1.bf16.msra.mxu0 %v6986_v18  ;;  %5061 = vmatpush1.bf16.msra.mxu1 %v6989_v19  ;;  %v7057_v18 = vld [vmem:[%s9351_s19 + $0x2e8] ss:$28 sps:$4 sm:$0xff]   ;;  %v7061_v19 = vld [vmem:[%s9351_s19 + $0x4b0] ss:$28 sps:$4 sm:$0xff]  }
 0x918   :  { %5073 = vmatprep.subr.bf16.mxu0 %v6994_v20  ;;  %6041 = vmatprep.subr.bf16.mxu1 %v6995_v21  ;;  %v7064_v20 = vld [vmem:[%s9351_s19 + $0x324] ss:$28 sps:$4 sm:$0xff]  }
 0x919   :  { %v7065_v21 = vld [vmem:[%s9351_s19 + $0x6a8] ss:$28 sps:$4 sm:$0xff]  }
 0x91a   :  { %4977 = vmatmul.mubr.bf16.vlgmr.msra.gmra.mrb[12].mxu0 %v8775_v8  ;;  %5063 = vmatmul.mubr.bf16.vlgmr.msra.gmra.mrb[32].mxu1 %v8775_v8 }
 0x91b   :  { %5074 = vmatpush1.bf16.msra.mxu0 %v6992_v22  ;;  %5105 = vmatprep.mubr.bf16.mxu0 %v8777_v10  ;;  %v7062_v22 = vld [vmem:[%s9351_s19 + $0x320] ss:$28 sps:$4 sm:$0xff]  }
 0x91c   :  { %6042 = vmatpush3.bf16.msra.mxu1 %v6996_v23  ;;  %5191 = vmatprep.mubr.bf16.mxu1 %v8777_v10  ;;  %v7006_v10 = vld [vmem:[%s9351_s19 + $0x88] ss:$28 sps:$4 sm:$0xff]  }
 0x91d   :  { %5075 = vmatprep.subr.bf16.mxu0 %v6999_v24  ;;  %6043 = vmatprep.subr.bf16.mxu1 %v7000_v25  ;;  %v7066_v23 = vld [vmem:[%s9351_s19 + $0x4e8] ss:$28 sps:$4 sm:$0xff]   ;;  %v7069_v24 = vld [vmem:[%s9351_s19 + $0x35c] ss:$28 sps:$4 sm:$0xff]  }
 0x91e   :  { %v7070_v25 = vld [vmem:[%s9351_s19 + $0x6e0] ss:$28 sps:$4 sm:$0xff]  }
 0x91f   :  { %5076 = vmatpush1.bf16.msra.mxu0 %v6997_v26  ;;  %v7067_v26 = vld [vmem:[%s9351_s19 + $0x358] ss:$28 sps:$4 sm:$0xff]  }
 0x920   :  { %6044 = vmatpush3.bf16.msra.mxu1 %v7001_v27  ;;  %5077 = vmatprep.subr.bf16.mxu0 %v7004_v28  ;;  %v7071_v27 = vld [vmem:[%s9351_s19 + $0x520] ss:$28 sps:$4 sm:$0xff]   ;;  %v7074_v28 = vld [vmem:[%s9351_s19 + $0x394] ss:$28 sps:$4 sm:$0xff]  }
 0x921   :  { %6045 = vmatprep.subr.bf16.mxu1 %v7005_v29  ;;  %v7072_v29 = vld [vmem:[%s9351_s19 + $0x390] ss:$28 sps:$4 sm:$0xff]  }
 0x923   :  { %5078 = vmatpush1.bf16.msra.mxu0 %v7002_v30  ;;  %v7077_v30 = vld [vmem:[%s9351_s19 + $0x3cc] ss:$28 sps:$4 sm:$0xff]  }
 0x924   :  { %6046 = vmatpush3.bf16.msra.mxu1 %v7006_v10  ;;  %5079 = vmatprep.subr.bf16.mxu0 %v7009_v31  ;;  %v7075_v10 = vld [vmem:[%s9351_s19 + $0x3c8] ss:$28 sps:$4 sm:$0xff]  }
 0x925   :  { %6047 = vmatprep.subr.bf16.mxu1 %v7010_v32  ;;  %v7080_v31 = vld [vmem:[%s9351_s19 + $0x404] ss:$28 sps:$4 sm:$0xff]  }
 0x926   :  { %v7078_v32 = vld [vmem:[%s9351_s19 + $0x400] ss:$28 sps:$4 sm:$0xff]  }
 0x927   :  { %5080 = vmatpush1.bf16.msra.mxu0 %v7007_v33  ;;  %v7086_v33 = vld [vmem:[%s9351_s19 + $0x474] ss:$28 sps:$4 sm:$0xff]  }
 0x928   :  { %6048 = vmatpush3.bf16.msra.mxu1 %v7011_v34  ;;  %5081 = vmatprep.subr.bf16.mxu0 %v7014_v35  ;;  %v7084_v34 = vld [vmem:[%s9351_s19 + $0x470] ss:$28 sps:$4 sm:$0xff]  }
 0x929   :  { %6049 = vmatprep.subr.bf16.mxu1 %v7015_v36  ;;  %v7089_v35 = vld [vmem:[%s9351_s19 + $0x4ac] ss:$28 sps:$4 sm:$0xff]  }
 0x92a   :  { %v7087_v36 = vld [vmem:[%s9351_s19 + $0x4a8] ss:$28 sps:$4 sm:$0xff]  }
 0x92b   :  { %5082 = vmatpush1.bf16.msra.mxu0 %v7012_v37  ;;  %v7092_v37 = vld [vmem:[%s9351_s19 + $0x4e4] ss:$28 sps:$4 sm:$0xff]  }
 0x92c   :  { %6050 = vmatpush3.bf16.msra.mxu1 %v7016_v38  ;;  %5083 = vmatprep.subr.bf16.mxu0 %v7019_v39  ;;  %v7090_v38 = vld [vmem:[%s9351_s19 + $0x4e0] ss:$28 sps:$4 sm:$0xff]  }
 0x92d   :  { %6051 = vmatprep.subr.bf16.mxu1 %v7020_v9  ;;  %v7095_v39 = vld [vmem:[%s9351_s19 + $0x51c] ss:$28 sps:$4 sm:$0xff]  }
 0x92e   :  { %v7093_v9 = vld [vmem:[%s9351_s19 + $0x518] ss:$28 sps:$4 sm:$0xff]  }
 0x92f   :  { %5084 = vmatpush1.bf16.msra.mxu0 %v7017_v40  ;;  %v7098_v40 = vld [vmem:[%s9351_s19 + $0x554] ss:$28 sps:$4 sm:$0xff]  }
 0x930   :  { %6052 = vmatpush3.bf16.msra.mxu1 %v7021_v41  ;;  %5085 = vmatprep.subr.bf16.mxu0 %v7024_v42  ;;  %v7096_v41 = vld [vmem:[%s9351_s19 + $0x550] ss:$28 sps:$4 sm:$0xff]  }
 0x931   :  { %6053 = vmatprep.subr.bf16.mxu1 %v7025_v43  ;;  %v7101_v42 = vld [vmem:[%s9351_s19 + $0x58c] ss:$28 sps:$4 sm:$0xff]  }
 0x932   :  { %v7099_v43 = vld [vmem:[%s9351_s19 + $0x588] ss:$28 sps:$4 sm:$0xff]  }
 0x933   :  { %5086 = vmatpush1.bf16.msra.mxu0 %v7022_v44  ;;  %v7104_v44 = vld [vmem:[%s9351_s19 + $0x5c4] ss:$28 sps:$4 sm:$0xff]  }
 0x934   :  { %6054 = vmatpush3.bf16.msra.mxu1 %v7026_v45  ;;  %5087 = vmatprep.subr.bf16.mxu0 %v7029_v46  ;;  %v7102_v45 = vld [vmem:[%s9351_s19 + $0x5c0] ss:$28 sps:$4 sm:$0xff]  }
 0x935   :  { %6055 = vmatprep.subr.bf16.mxu1 %v7030_v47  ;;  %v7107_v46 = vld [vmem:[%s9351_s19 + $0x5fc] ss:$28 sps:$4 sm:$0xff]  }
 0x936   :  { %v7105_v47 = vld [vmem:[%s9351_s19 + $0x5f8] ss:$28 sps:$4 sm:$0xff]  }
 0x937   :  { %5088 = vmatpush1.bf16.msra.mxu0 %v7027_v48  ;;  %v7110_v48 = vld [vmem:[%s9351_s19 + $0x634] ss:$28 sps:$4 sm:$0xff]  }
 0x938   :  { %6056 = vmatpush3.bf16.msra.mxu1 %v7031_v11  ;;  %5089 = vmatprep.subr.bf16.mxu0 %v7034_v49  ;;  %v7108_v11 = vld [vmem:[%s9351_s19 + $0x630] ss:$28 sps:$4 sm:$0xff]  }
 0x939   :  { %6063 = vmatprep.subr.bf16.mxu1 %v7035_v50  ;;  %v7113_v49 = vld [vmem:[%s9351_s19 + $0x66c] ss:$28 sps:$4 sm:$0xff]  }
 0x93a   :  { %v7111_v50 = vld [vmem:[%s9351_s19 + $0x668] ss:$28 sps:$4 sm:$0xff]  }
 0x93b   :  { %5192 = vmatmul.mubr.bf16.vlgmr.msra.gmra.mrb[36].mxu1 %v8773_v7  ;;  %5090 = vmatpush1.bf16.msra.mxu0 %v7032_v51  ;;  %v7116_v51 = vld [vmem:[%s9351_s19 + $0x6a4] ss:$28 sps:$4 sm:$0xff]  }
 0x93c   :  { %6064 = vmatpush3.bf16.msra.mxu1 %v7036_v52  ;;  %5232 = vmatprep.mubr.bf16.mxu1 %v8779_v12  ;;  %v7114_v52 = vld [vmem:[%s9351_s19 + $0x6a0] ss:$28 sps:$4 sm:$0xff]  }
 0x93d   :  { %5091 = vmatprep.subr.bf16.mxu0 %v7039_v53  ;;  %6065 = vmatprep.subr.bf16.mxu1 %v7040_v54  ;;  %v7119_v53 = vld [vmem:[%s9351_s19 + $0x6dc] ss:$28 sps:$4 sm:$0xff]  }
 0x93e   :  { %v7117_v54 = vld [vmem:[%s9351_s19 + $0x6d8] ss:$28 sps:$4 sm:$0xff]  }
 0x93f   :  { %5092 = vmatpush1.bf16.msra.mxu0 %v7037_v55  ;;  %v9274_v55 = vld [vmem:[%s9354_s20] sm:$0x7f] }
 0x940   :  { %6066 = vmatpush3.bf16.msra.mxu1 %v7041_v56  ;;  %5093 = vmatprep.subr.bf16.mxu0 %v7044_v60  ;;  %v3717_v56 = vrot.slane %v9274_v55, %v8037_v58  ;;  %v3725_v60 = vrot.slane %v9274_v55, %v8040_v59 }
 0x941   :  { %6067 = vmatprep.subr.bf16.mxu1 %v7045_v63  ;;  %v3721_v63 = vrot.slane %v9274_v55, %v8046_v61 }
 0x943   :  { %5094 = vmatpush1.bf16.msra.mxu0 %v7042_v0  ;;  %v3729_v0 = vrot.slane %v9274_v55, %v8049_v62 }
 0x944   :  { %6068 = vmatpush3.bf16.msra.mxu1 %v7046_v1  ;;  %5095 = vmatprep.subr.bf16.mxu0 %v7049_v2 }
 0x945   :  { %6069 = vmatprep.subr.bf16.mxu1 %v7050_v3 }
 0x947   :  { %5096 = vmatpush1.bf16.msra.mxu0 %v7047_v4 }
 0x948   :  { %6070 = vmatpush3.bf16.msra.mxu1 %v7051_v5  ;;  %5097 = vmatprep.subr.bf16.mxu0 %v7054_v6 }
 0x949   :  { %6071 = vmatprep.subr.bf16.mxu1 %v7055_v13 }
 0x94b   :  { %5098 = vmatpush1.bf16.msra.mxu0 %v7052_v14 }
 0x94c   :  { %6072 = vmatpush3.bf16.msra.mxu1 %v7056_v15  ;;  %5099 = vmatprep.subr.bf16.mxu0 %v7059_v16 }
 0x94d   :  { %6073 = vmatprep.subr.bf16.mxu1 %v7060_v17 }
 0x94f   :  { %5100 = vmatpush1.bf16.msra.mxu0 %v7057_v18 }
 0x950   :  { %6074 = vmatpush3.bf16.msra.mxu1 %v7061_v19  ;;  %5101 = vmatprep.subr.bf16.mxu0 %v7064_v20 }
 0x951   :  { %6075 = vmatprep.subr.bf16.mxu1 %v7065_v21 }
 0x953   :  { %5102 = vmatpush1.bf16.msra.mxu0 %v7062_v22 }
 0x954   :  { %6076 = vmatpush3.bf16.msra.mxu1 %v7066_v23  ;;  %5103 = vmatprep.subr.bf16.mxu0 %v7069_v24 }
 0x955   :  { %6077 = vmatprep.subr.bf16.mxu1 %v7070_v25 }
 0x957   :  { %5104 = vmatpush1.bf16.msra.mxu0 %v7067_v26 }
 0x958   :  { %6078 = vmatpush3.bf16.msra.mxu1 %v7071_v27  ;;  %5116 = vmatprep.subr.bf16.mxu0 %v7074_v28 }
 0x95a   :  { %5106 = vmatmul.mubr.bf16.vlgmr.msra.gmra.mrb[16].mxu0 %v8773_v7  ;;  %v7083_v7 = vld [vmem:[%s9351_s19 + $0x43c] ss:$28 sps:$4 sm:$0xff]  }
 0x95b   :  { %5233 = vmatmul.mubr.bf16.vlgmr.msra.gmra.mrb[40].mxu1 %v8775_v8  ;;  %5117 = vmatpush1.bf16.msra.mxu0 %v7072_v29 }
 0x95c   :  { %5148 = vmatprep.mubr.bf16.mxu0 %v8779_v12  ;;  %5118 = vmatprep.subr.bf16.mxu0 %v7077_v30  ;;  %v7081_v12 = vld [vmem:[%s9351_s19 + $0x438] ss:$28 sps:$4 sm:$0xff]  }
 0x95f   :  { %5119 = vmatpush1.bf16.msra.mxu0 %v7075_v10 }
 0x960   :  { %5120 = vmatprep.subr.bf16.mxu0 %v7080_v31 }
 0x963   :  { %5121 = vmatpush1.bf16.msra.mxu0 %v7078_v32 }
 0x964   :  { %5122 = vmatprep.subr.bf16.mxu0 %v7083_v7 }
 0x967   :  { %5123 = vmatpush1.bf16.msra.mxu0 %v7081_v12 }
 0x968   :  { %5124 = vmatprep.subr.bf16.mxu0 %v7086_v33 }
 0x96b   :  { %5125 = vmatpush1.bf16.msra.mxu0 %v7084_v34 }
 0x96c   :  { %5126 = vmatprep.subr.bf16.mxu0 %v7089_v35 }
 0x96f   :  { %5127 = vmatpush1.bf16.msra.mxu0 %v7087_v36 }
 0x970   :  { %5128 = vmatprep.subr.bf16.mxu0 %v7092_v37 }
 0x973   :  { %5129 = vmatpush1.bf16.msra.mxu0 %v7090_v38 }
 0x974   :  { %5130 = vmatprep.subr.bf16.mxu0 %v7095_v39 }
 0x977   :  { %5131 = vmatpush1.bf16.msra.mxu0 %v7093_v9 }
 0x978   :  { %5132 = vmatprep.subr.bf16.mxu0 %v7098_v40 }
 0x97b   :  { %5133 = vmatpush1.bf16.msra.mxu0 %v7096_v41 }
 0x97c   :  { %5134 = vmatprep.subr.bf16.mxu0 %v7101_v42 }
 0x97f   :  { %5135 = vmatpush1.bf16.msra.mxu0 %v7099_v43 }
 0x980   :  { %5136 = vmatprep.subr.bf16.mxu0 %v7104_v44 }
 0x983   :  { %5137 = vmatpush1.bf16.msra.mxu0 %v7102_v45 }
 0x984   :  { %5138 = vmatprep.subr.bf16.mxu0 %v7107_v46 }
 0x987   :  { %5139 = vmatpush1.bf16.msra.mxu0 %v7105_v47 }
 0x988   :  { %5140 = vmatprep.subr.bf16.mxu0 %v7110_v48 }
 0x98b   :  { %5141 = vmatpush1.bf16.msra.mxu0 %v7108_v11 }
 0x98c   :  { %5142 = vmatprep.subr.bf16.mxu0 %v7113_v49 }
 0x98f   :  { %5143 = vmatpush1.bf16.msra.mxu0 %v7111_v50 }
 0x990   :  { %5144 = vmatprep.subr.bf16.mxu0 %v7116_v51  ;;  %v3740_v51 = vsub.s32 6, %v8034_v57 }
 0x993   :  { %5145 = vmatpush1.bf16.msra.mxu0 %v7114_v52  ;;  %v3741_v52 = vrot.slane %v9274_v55, %v3740_v51 }
 0x994   :  { %5146 = vmatprep.subr.bf16.mxu0 %v7119_v53 }
 0x997   :  { %5147 = vmatpush1.bf16.msra.mxu0 %v7117_v54 }
 0x99a   :  { %5149 = vmatmul.mubr.bf16.vlgmr.msra.gmra.mrb[16].mxu0 %v8775_v8 }
 0x9ed   :  { %v4978_v1 = vpop.f32.mrb[12].mxu0  ;;  %v5064_v2 = vpop.f32.mrb[32].mxu1 }
 0x9ee   :  { %v6177_v8 = vadd.f32 %v4978_v1, %v3717_v56  ;;  %v6181_v3 = vadd.f32 %v5064_v2, %v3725_v60  ;;  %v4980_v4 = vpop.f32.mrb[13].mxu0  ;;  %v5066_v5 = vpop.f32.mrb[33].mxu1 }
 0x9ef   :  { %v6178_v6 = vadd.f32 %v4980_v4, %v3721_v63  ;;  %v6182_v13 = vadd.f32 %v5066_v5, %v3729_v0  ;;  %v4982_v14 = vpop.f32.mrb[14].mxu0  ;;  %v5068_v15 = vpop.f32.mrb[34].mxu1 }
 0x9f0   :  { %v5969_v58 = vmul.f32 -1.442695, %v6177_v8  ;;  %v5971_v16 = vmul.f32 -1.442695, %v6181_v3  ;;  %v6179_v17 = vadd.f32 %v4982_v14, %v3717_v56  ;;  %v6183_v59 = vadd.f32 %v5068_v15, %v3725_v60  ;;  %v4984_v18 = vpop.f32.mrb[15].mxu0  ;;  %v5070_v19 = vpop.f32.mrb[35].mxu1 }
 0x9f1   :  { %v5970_v61 = vmul.f32 -1.442695, %v6178_v6  ;;  %v5972_v20 = vmul.f32 -1.442695, %v6182_v13  ;;  %v6180_v21 = vadd.f32 %v4984_v18, %v3721_v63  ;;  %v6184_v62 = vadd.f32 %v5070_v19, %v3729_v0 }
 0x9f2   :  { %7120 = vpow2.f32 %v5969_v58  ;;  %v5976_v22 = vmul.f32 -1.442695, %v6179_v17  ;;  %v5978_v23 = vmul.f32 -1.442695, %v6183_v59  ;;  %v3732_v17 = vsub.s32 4, %v8034_v57 }
 0x9f3   :  { %7122 = vpow2.f32 %v5971_v16  ;;  %v5977_v24 = vmul.f32 -1.442695, %v6180_v21  ;;  %v5979_v25 = vmul.f32 -1.442695, %v6184_v62  ;;  %v3736_v59 = vsub.s32 5, %v8034_v57 }
 0x9f4   :  { %7124 = vpow2.f32 %v5970_v61  ;;  %v3733_v18 = vrot.slane %v9274_v55, %v3732_v17 }
 0x9f5   :  { %7126 = vpow2.f32 %v5972_v20  ;;  %v3737_v19 = vrot.slane %v9274_v55, %v3736_v59 }
 0x9f6   :  { %7128 = vpow2.f32 %v5976_v22 }
 0x9f7   :  { %7130 = vpow2.f32 %v5978_v23 }
 0x9f8   :  { %7132 = vpow2.f32 %v5977_v24 }
 0x9f9   :  { %7134 = vpow2.f32 %v5979_v25 }
 0x9fc   :  { %v7121_v26 = vpop.eup %7120 }
 0x9fd   :  { %v7123_v27 = vpop.eup %7122  ;;  %v5283_v28 = vadd.f32 1.0, %v7121_v26 }
 0x9fe   :  { %v7125_v29 = vpop.eup %7124  ;;  %v5285_v30 = vadd.f32 1.0, %v7123_v27 }
 0x9ff   :  { %v7127_v10 = vpop.eup %7126  ;;  %7136 = vrcp.f32 %v5283_v28  ;;  %v5284_v31 = vadd.f32 1.0, %v7125_v29 }
 0xa00   :  { %v7129_v32 = vpop.eup %7128  ;;  %7138 = vrcp.f32 %v5285_v30  ;;  %v5286_v7 = vadd.f32 1.0, %v7127_v10 }
 0xa01   :  { %v7131_v12 = vpop.eup %7130  ;;  %7140 = vrcp.f32 %v5284_v31  ;;  %v5290_v33 = vadd.f32 1.0, %v7129_v32 }
 0xa02   :  { %v7133_v34 = vpop.eup %7132  ;;  %7142 = vrcp.f32 %v5286_v7  ;;  %v5292_v35 = vadd.f32 1.0, %v7131_v12 }
 0xa03   :  { %v7135_v36 = vpop.eup %7134  ;;  %7144 = vrcp.f32 %v5290_v33  ;;  %v5291_v37 = vadd.f32 1.0, %v7133_v34 }
 0xa04   :  { %7146 = vrcp.f32 %v5292_v35  ;;  %v5293_v38 = vadd.f32 1.0, %v7135_v36 }
 0xa05   :  { %7148 = vrcp.f32 %v5291_v37 }
 0xa06   :  { %7150 = vrcp.f32 %v5293_v38 }
 0xa09   :  { %v7137_v39 = vpop.eup %7136 }
 0xa0a   :  { %v7139_v9 = vpop.eup %7138  ;;  %5325 = vst [vmem:[%s9355_s21] sm:$0xff] %v7137_v39 }
 0xa0b   :  { %v7141_v40 = vpop.eup %7140  ;;  %5327 = vst [vmem:[%s9355_s21 + $0x10] sm:$0xff] %v7139_v9 }
 0xa0c   :  { %v7143_v41 = vpop.eup %7142  ;;  %5326 = vst [vmem:[%s9355_s21 + $0x8] sm:$0xff] %v7141_v40 }
 0xa0d   :  { %v7145_v42 = vpop.eup %7144  ;;  %5328 = vst [vmem:[%s9355_s21 + $0x18] sm:$0xff] %v7143_v41 }
 0xa0e   :  { %v7147_v43 = vpop.eup %7146  ;;  %5332 = vst [vmem:[%s9355_s21 + $0x38] sm:$0xff] %v7145_v42  ;;  %v6057_v44 = vpop.f32.mrb[36].mxu1 }
 0xa0f   :  { %v7149_v45 = vpop.eup %7148  ;;  %5334 = vst [vmem:[%s9355_s21 + $0x48] sm:$0xff] %v7147_v43  ;;  %v6058_v46 = vpop.f32.mrb[37].mxu1 }
 0xa10   :  { %v7151_v47 = vpop.eup %7150  ;;  %5333 = vst [vmem:[%s9355_s21 + $0x40] sm:$0xff] %v7149_v45  ;;  %v6059_v48 = vadd.f32 %v6058_v46, %v6057_v44  ;;  %v6060_v11 = vpop.f32.mrb[38].mxu1 }
 0xa11   :  { %5335 = vst [vmem:[%s9355_s21 + $0x50] sm:$0xff] %v7151_v47  ;;  %v6061_v49 = vpop.f32.mrb[39].mxu1 }
 0xa12   :  { %v6062_v50 = vadd.f32 %v6061_v49, %v6060_v11  ;;  %v5194_v56 = vadd.f32 %v6059_v48, %v3741_v52 }
 0xa14   :  { %v5197_v1 = vadd.f32 %v6062_v50, %v3741_v52 }
 0xa2e   :  { %v6079_v53 = vpop.f32.mrb[40].mxu1 }
 0xa2f   :  { %v6080_v54 = vpop.f32.mrb[41].mxu1 }
 0xa30   :  { %v6081_v60 = vadd.f32 %v6080_v54, %v6079_v53  ;;  %v6082_v63 = vpop.f32.mrb[42].mxu1 }
 0xa31   :  { %v6083_v0 = vpop.f32.mrb[43].mxu1 }
 0xa32   :  { %v5235_v2 = vadd.f32 %v6081_v60, %v5194_v56  ;;  %v6084_v8 = vadd.f32 %v6083_v0, %v6082_v63 }
 0xa34   :  { %v5975_v3 = vmul.f32 -1.442695, %v5235_v2  ;;  %v5238_v4 = vadd.f32 %v6084_v8, %v5197_v1 }
 0xa36   :  { %7152 = vpow2.f32 %v5975_v3  ;;  %v5982_v5 = vmul.f32 -1.442695, %v5238_v4 }
 0xa38   :  { %7154 = vpow2.f32 %v5982_v5 }
 0xa40   :  { %v7153_v6 = vpop.eup %7152 }
 0xa41   :  { %v5289_v13 = vadd.f32 1.0, %v7153_v6 }
 0xa42   :  { %v7155_v14 = vpop.eup %7154 }
 0xa43   :  { %7156 = vrcp.f32 %v5289_v13  ;;  %v5296_v15 = vadd.f32 1.0, %v7155_v14 }
 0xa45   :  { %7158 = vrcp.f32 %v5296_v15 }
 0xa4d   :  { %v7157_v58 = vpop.eup %7156 }
 0xa4e   :  { %5331 = vst.msk [vmem:[%s9355_s21 + $0x30] sm:$0xff] %vm1310_vm0, %v7157_v58 }
 0xa4f   :  { %v7159_v16 = vpop.eup %7158 }
 0xa50   :  { %5338 = vst.msk [vmem:[%s9355_s21 + $0x68] sm:$0xff] %vm1310_vm0, %v7159_v16 }
 0xa6d   :  { %v5150_v61 = vpop.f32.mrb[16].mxu0 }
 0xa6e   :  { %v6185_v20 = vadd.f32 %v5150_v61, %v3733_v18  ;;  %v5152_v21 = vpop.f32.mrb[17].mxu0 }
 0xa6f   :  { %v6186_v62 = vadd.f32 %v5152_v21, %v3737_v19  ;;  %v5154_v22 = vpop.f32.mrb[18].mxu0 }
 0xa70   :  { %v5973_v23 = vmul.f32 -1.442695, %v6185_v20  ;;  %v6187_v24 = vadd.f32 %v5154_v22, %v3733_v18  ;;  %v5156_v25 = vpop.f32.mrb[19].mxu0 }
 0xa71   :  { %v5974_v26 = vmul.f32 -1.442695, %v6186_v62  ;;  %v6188_v27 = vadd.f32 %v5156_v25, %v3737_v19 }
 0xa72   :  { %7160 = vpow2.f32 %v5973_v23  ;;  %v5980_v28 = vmul.f32 -1.442695, %v6187_v24 }
 0xa73   :  { %7162 = vpow2.f32 %v5974_v26  ;;  %v5981_v29 = vmul.f32 -1.442695, %v6188_v27 }
 0xa74   :  { %7164 = vpow2.f32 %v5980_v28 }
 0xa75   :  { %7166 = vpow2.f32 %v5981_v29 }
 0xa7c   :  { %v7161_v57 = vpop.eup %7160 }
 0xa7d   :  { %v7163_v30 = vpop.eup %7162  ;;  %v5287_v10 = vadd.f32 1.0, %v7161_v57 }
 0xa7e   :  { %v7165_v55 = vpop.eup %7164  ;;  %v5288_v31 = vadd.f32 1.0, %v7163_v30 }
 0xa7f   :  { %v7167_v32 = vpop.eup %7166  ;;  %7168 = vrcp.f32 %v5287_v10  ;;  %v5294_v7 = vadd.f32 1.0, %v7165_v55 }
 0xa80   :  { %7170 = vrcp.f32 %v5288_v31  ;;  %v5295_v12 = vadd.f32 1.0, %v7167_v32 }
 0xa81   :  { %7172 = vrcp.f32 %v5294_v7 }
 0xa82   :  { %7174 = vrcp.f32 %v5295_v12 }
 0xa89   :  { %v7169_v33 = vpop.eup %7168 }
 0xa8a   :  { %v7171_v34 = vpop.eup %7170  ;;  %5329 = vst [vmem:[%s9355_s21 + $0x20] sm:$0xff] %v7169_v33 }
 0xa8b   :  { %v7173_v35 = vpop.eup %7172  ;;  %5330 = vst [vmem:[%s9355_s21 + $0x28] sm:$0xff] %v7171_v34 }
 0xa8c   :  { %v7175_v36 = vpop.eup %7174  ;;  %5336 = vst [vmem:[%s9355_s21 + $0x58] sm:$0xff] %v7173_v35 }
 0xa8d   :  { %5337 = vst [vmem:[%s9355_s21 + $0x60] sm:$0xff] %v7175_v36 }

</bundles_post_ra>
